<compile_context>
chip_gen: v5e
topology: v5e:2x2
jax: 0.10.0
libtpu: 0.0.40
codegen_flags: <defaults>
</compile_context>

<pallas_src>
import functools

import jax
import jax.numpy as jnp
import numpy as np
from jax.experimental import pallas as pl
from jax.experimental.pallas import tpu as pltpu


def _round_up(x, m):
    return (x + m - 1) // m * m


# ----------------------------------------------------------------------------
# Pallas kernel: one 3x3 conv layer (+ folded BN scale/bias + optional ReLU),
# consuming and producing the flat zero-framed padded layout.
# ----------------------------------------------------------------------------
def _conv3x3_kernel(x_ref, w_ref, scale_ref, bias_ref, mask_ref, o_ref, *,
                    apply_relu, wp):
    # x_ref    : (G, Cin)       bf16  flat padded activations (NB whole images)
    # w_ref    : (9*Cin, Cout)  bf16  3x3 kernel flattened over taps
    # scale_ref: (1, Cout)      f32   folded BatchNorm scale (ones if no BN)
    # bias_ref : (1, Cout)      f32   folded BatchNorm bias  (zeros if no BN)
    # mask_ref : (G, 1)         f32   1.0 at interior output positions else 0.0
    # o_ref    : (G, Cout)            flat padded output (next layer's input)
    G = x_ref.shape[0]
    cout = o_ref.shape[-1]
    L = G - (2 * wp + 2)

    # 9 taps = 9 static sublane-offset windows of the padded block,
    # lane-concatenated into one (L, 9*Cin) operand -> single MXU dot (K=9*Cin).
    taps = [x_ref[pl.ds(dy * wp + dx, L), :]
            for dy in range(3) for dx in range(3)]
    a = jnp.concatenate(taps, axis=-1)
    y = jnp.dot(a, w_ref[...], preferred_element_type=jnp.float32)  # (L, Cout)

    y = y * scale_ref[...] + bias_ref[...]
    if apply_relu:
        y = jnp.maximum(y, 0.0)

    # Zero everything that is not an interior pixel so the stored block is the
    # next layer's zero-padding frame (garbage positions are never read back).
    y = y * mask_ref[pl.ds(wp + 1, L), :]
    y = y.astype(o_ref.dtype)

    zpad = jnp.zeros((wp + 1, cout), o_ref.dtype)
    o_ref[...] = jnp.concatenate([zpad, y, zpad], axis=0)


def conv3x3_layer(x_flat, w_mat, scale, bias, mask, *, apply_relu, W,
                  nf_pad, group, out_dtype):
    """x_flat: (N*nf_pad, Cin) padded layout -> (N*nf_pad, Cout) padded layout."""
    total, cin = x_flat.shape
    cout = w_mat.shape[-1]
    wp = W + 4
    G = group * nf_pad            # rows per grid step (whole images, no halo)
    n_blocks = total // G
    L = G - (2 * wp + 2)

    # VMEM estimate: double-buffered in/out blocks + K-concat operand + f32 acc.
    est = (2 * G * cin * x_flat.dtype.itemsize
           + 2 * G * cout * jnp.dtype(out_dtype).itemsize
           + L * 9 * cin * 2 + L * cout * 4 + G * 4)
    vmem_limit = int(min(100 << 20, max(32 << 20, 2 * est)))

    kernel = functools.partial(_conv3x3_kernel, apply_relu=apply_relu, wp=wp)
    return pl.pallas_call(
        kernel,
        out_shape=jax.ShapeDtypeStruct((total, cout), out_dtype),
        grid=(n_blocks,),
        in_specs=[
            pl.BlockSpec((G, cin), lambda b: (b, 0)),
            pl.BlockSpec((9 * cin, cout), lambda b: (0, 0)),
            pl.BlockSpec((1, cout), lambda b: (0, 0)),
            pl.BlockSpec((1, cout), lambda b: (0, 0)),
            pl.BlockSpec((G, 1), lambda b: (b, 0)),
        ],
        out_specs=pl.BlockSpec((G, cout), lambda b: (b, 0)),
        compiler_params=pltpu.CompilerParams(
            dimension_semantics=("parallel",),
            vmem_limit_bytes=vmem_limit),
    )(x_flat, w_mat, scale, bias, mask)


# ----------------------------------------------------------------------------
# Padded-layout plumbing (wrapper-side, runs once per forward, not per layer)
# ----------------------------------------------------------------------------
def to_padded_flat(x_nhwc, H, W, nf_pad, dtype):
    """(N,H,W,C) -> (N*nf_pad, C): H padded (1,2), W padded (2,2), flat-padded."""
    N, _, _, C = x_nhwc.shape
    xp = jnp.pad(x_nhwc, ((0, 0), (1, 2), (2, 2), (0, 0)))
    xf = xp.reshape(N, (H + 3) * (W + 4), C)
    xf = jnp.pad(xf, ((0, 0), (0, nf_pad - (H + 3) * (W + 4)), (0, 0)))
    return xf.reshape(N * nf_pad, C).astype(dtype)


def from_padded_flat(y_flat, N, H, W, nf_pad):
    C = y_flat.shape[-1]
    y = y_flat.reshape(N, nf_pad, C)[:, :(H + 3) * (W + 4), :]
    y = y.reshape(N, H + 3, W + 4, C)
    return y[:, 1:H + 1, 2:W + 2, :]


def build_interior_mask(N, H, W, nf_pad):
    wp = W + 4
    q = np.arange(nf_pad)
    row, col = q // wp, q % wp
    valid = (row >= 1) & (row <= H) & (col >= 2) & (col <= W + 1)
    m = np.tile(valid.astype(np.float32), N).reshape(N * nf_pad, 1)
    return jnp.asarray(m)


def _choose_group(N, nf_pad, feat):
    """Images per grid step: keep block under a VMEM budget, prefer >=2 steps."""
    per_img = nf_pad * (2 * feat * 2 + 2 * feat * 2 + 9 * feat * 2 + feat * 4)
    budget = 12 << 20
    best = 1
    for d in range(1, N + 1):
        if N % d or d * per_img > budget:
            continue
        if N // d >= 2 or N == 1:
            best = d
    return best


# ----------------------------------------------------------------------------
# Parameter construction (deterministic, synthetic)
# ----------------------------------------------------------------------------
def init_dncnn_params(key, channels, num_of_layers=17, num_of_est=0,
                      features=64, eps=1e-5):
    """Returns list of (w[9,Cin,Cout], scale[1,Cout], bias[1,Cout], relu)."""
    layers = []

    def conv_w(k, cin, cout):
        std = np.sqrt(2.0 / (9 * cin))
        return jax.random.normal(k, (9, cin, cout), jnp.float32) * std

    keys = jax.random.split(key, num_of_layers * 5)
    ki = 0

    # First layer: conv -> ReLU (no BN)
    cin0 = channels + num_of_est
    layers.append((conv_w(keys[ki], cin0, features),
                   jnp.ones((1, features), jnp.float32),
                   jnp.zeros((1, features), jnp.float32), True))
    ki += 1

    # Middle layers: conv -> BatchNorm (folded eval-mode stats) -> ReLU
    # TODO(synk): training-mode BatchNorm (batch statistics) not implemented;
    # running stats are folded into a per-channel scale/bias.
    for _ in range(num_of_layers - 2):
        w = conv_w(keys[ki], features, features); ki += 1
        gamma = 1.0 + 0.1 * jax.random.normal(keys[ki], (features,)); ki += 1
        beta = 0.1 * jax.random.normal(keys[ki], (features,)); ki += 1
        rmean = 0.1 * jax.random.normal(keys[ki], (features,)); ki += 1
        rvar = 1.0 + 0.1 * jax.random.uniform(keys[ki], (features,)); ki += 1
        scale = gamma / jnp.sqrt(rvar + eps)
        bias = beta - rmean * scale
        layers.append((w, scale.reshape(1, features).astype(jnp.float32),
                       bias.reshape(1, features).astype(jnp.float32), True))

    # Last layer: conv only
    layers.append((conv_w(keys[ki], features, channels),
                   jnp.ones((1, channels), jnp.float32),
                   jnp.zeros((1, channels), jnp.float32), False))
    return layers


# ----------------------------------------------------------------------------
# Full forward:  (B, S, H, W, CH) -> (B, S, H, W, CH)
# ----------------------------------------------------------------------------
def dncnn_c_forward(x, layers, features=64):
    B, S, H, W, CH = x.shape
    N = B * S
    nf_pad = _round_up((H + 3) * (W + 4), 8)
    group = _choose_group(N, nf_pad, features)
    mask = build_interior_mask(N, H, W, nf_pad)

    h = to_padded_flat(x.reshape(N, H, W, CH), H, W, nf_pad, jnp.bfloat16)
    n_layers = len(layers)
    for li, (w9, scale, bias, relu) in enumerate(layers):
        cin, cout = w9.shape[1], w9.shape[2]
        w_mat = w9.reshape(9 * cin, cout).astype(jnp.bfloat16)
        out_dtype = jnp.float32 if li == n_layers - 1 else jnp.bfloat16
        h = conv3x3_layer(h, w_mat, scale, bias, mask,
                          apply_relu=relu, W=W, nf_pad=nf_pad,
                          group=group, out_dtype=out_dtype)
    y = from_padded_flat(h, N, H, W, nf_pad).reshape(B, S, H, W, CH)
    assert y.shape == (B, S, H, W, CH)
    return y


# Pure-JAX reference (XLA conv) with matching bf16 matmul precision.
def dncnn_c_reference(x, layers):
    B, S, H, W, CH = x.shape
    h = x.reshape(B * S, H, W, CH)
    for (w9, scale, bias, relu) in layers:
        cin, cout = w9.shape[1], w9.shape[2]
        wk = w9.reshape(3, 3, cin, cout).astype(jnp.bfloat16)  # HWIO
        h = jax.lax.conv_general_dilated(
            h.astype(jnp.bfloat16), wk, (1, 1), "SAME",
            dimension_numbers=("NHWC", "HWIO", "NHWC"),
            preferred_element_type=jnp.float32)
        h = h * scale + bias
        if relu:
            h = jnp.maximum(h, 0.0)
    return h.reshape(B, S, H, W, CH)


if __name__ == "__main__":
    # Small shapes consistent with the module's 5D input (B, S, H, W, CH).
    B, S, H, W, CH = 2, 2, 16, 16, 4
    NUM_LAYERS = 5  # DnCNN_c(channels=CH, num_of_layers=5, num_of_est=0)

    key = jax.random.PRNGKey(0)
    kx, kp = jax.random.split(key)
    x = jax.random.normal(kx, (B, S, H, W, CH), jnp.float32)
    layers = init_dncnn_params(kp, channels=CH, num_of_layers=NUM_LAYERS,
                               num_of_est=0, features=64)

    y = jax.block_until_ready(dncnn_c_forward(x, layers))
    y_ref = jax.block_until_ready(dncnn_c_reference(x, layers))

    max_err = float(jnp.max(jnp.abs(y - y_ref)))
    assert y.shape == (B, S, H, W, CH)
    assert max_err < 5e-2, f"mismatch vs reference, max abs err {max_err}"

    print("KERNEL_OK")
</pallas_src>

<mosaic_0001>
module attributes {stable_mosaic.version = 11 : i64} {
  func.func @_conv3x3_kernel(%arg0: i32, %arg1: memref<768x4xbf16, #tpu.memory_space<vmem>>, %arg2: memref<36x64xbf16, #tpu.memory_space<vmem>>, %arg3: memref<1x64xf32, #tpu.memory_space<vmem>>, %arg4: memref<1x64xf32, #tpu.memory_space<vmem>>, %arg5: memref<768x1xf32, #tpu.memory_space<vmem>>, %arg6: memref<768x64xbf16, #tpu.memory_space<vmem>>) attributes {dimension_semantics = [#tpu.dimension_semantics<parallel>], iteration_bounds = array<i64: 2>, scalar_prefetch = 0 : i64, scratch_operands = 0 : i64, tpu.core_type = #tpu.core_type<tc>, window_params = [{transform_indices = @transform_0, window_bounds = array<i64: 768, 4>}, {pipeline_mode = #tpu.pipeline_mode<synchronous>, transform_indices = @transform_1, window_bounds = array<i64: 36, 64>}, {pipeline_mode = #tpu.pipeline_mode<synchronous>, transform_indices = @transform_2, window_bounds = array<i64: 1, 64>}, {pipeline_mode = #tpu.pipeline_mode<synchronous>, transform_indices = @transform_3, window_bounds = array<i64: 1, 64>}, {transform_indices = @transform_4, window_bounds = array<i64: 768, 1>}, {transform_indices = @transform_5, window_bounds = array<i64: 768, 64>}]} {
    %c0 = arith.constant 0 : index
    %c0_0 = arith.constant 0 : index
    %0 = vector.load %arg1[%c0, %c0_0] : memref<768x4xbf16, #tpu.memory_space<vmem>>, vector<726x4xbf16>
    %c1 = arith.constant 1 : index
    %c0_1 = arith.constant 0 : index
    %1 = vector.load %arg1[%c1, %c0_1] : memref<768x4xbf16, #tpu.memory_space<vmem>>, vector<726x4xbf16>
    %c2 = arith.constant 2 : index
    %c0_2 = arith.constant 0 : index
    %2 = vector.load %arg1[%c2, %c0_2] : memref<768x4xbf16, #tpu.memory_space<vmem>>, vector<726x4xbf16>
    %c20 = arith.constant 20 : index
    %c0_3 = arith.constant 0 : index
    %3 = vector.load %arg1[%c20, %c0_3] : memref<768x4xbf16, #tpu.memory_space<vmem>>, vector<726x4xbf16>
    %c21 = arith.constant 21 : index
    %c0_4 = arith.constant 0 : index
    %4 = vector.load %arg1[%c21, %c0_4] : memref<768x4xbf16, #tpu.memory_space<vmem>>, vector<726x4xbf16>
    %c22 = arith.constant 22 : index
    %c0_5 = arith.constant 0 : index
    %5 = vector.load %arg1[%c22, %c0_5] : memref<768x4xbf16, #tpu.memory_space<vmem>>, vector<726x4xbf16>
    %c40 = arith.constant 40 : index
    %c0_6 = arith.constant 0 : index
    %6 = vector.load %arg1[%c40, %c0_6] : memref<768x4xbf16, #tpu.memory_space<vmem>>, vector<726x4xbf16>
    %c41 = arith.constant 41 : index
    %c0_7 = arith.constant 0 : index
    %7 = vector.load %arg1[%c41, %c0_7] : memref<768x4xbf16, #tpu.memory_space<vmem>>, vector<726x4xbf16>
    %c42 = arith.constant 42 : index
    %c0_8 = arith.constant 0 : index
    %8 = vector.load %arg1[%c42, %c0_8] : memref<768x4xbf16, #tpu.memory_space<vmem>>, vector<726x4xbf16>
    %9 = tpu.concatenate %0, %1, %2, %3, %4, %5, %6, %7, %8 in 1 : vector<726x4xbf16>, vector<726x4xbf16>, vector<726x4xbf16>, vector<726x4xbf16>, vector<726x4xbf16>, vector<726x4xbf16>, vector<726x4xbf16>, vector<726x4xbf16>, vector<726x4xbf16> -> vector<726x36xbf16>
    %c0_9 = arith.constant 0 : index
    %c0_10 = arith.constant 0 : index
    %10 = vector.load %arg2[%c0_9, %c0_10] : memref<36x64xbf16, #tpu.memory_space<vmem>>, vector<36x64xbf16>
    %cst = arith.constant dense<0.000000e+00> : vector<726x64xf32>
    %11 = tpu.matmul %9, %10, %cst {dimension_numbers = #tpu.dot_dimension_numbers<[1], [0], [0], [1], [0, 0, 1, 1], [], []>} : vector<726x36xbf16>, vector<36x64xbf16>, vector<726x64xf32> -> vector<726x64xf32>
    %c0_11 = arith.constant 0 : index
    %c0_12 = arith.constant 0 : index
    %12 = vector.load %arg3[%c0_11, %c0_12] : memref<1x64xf32, #tpu.memory_space<vmem>>, vector<1x64xf32>
    %13 = vector.broadcast %12 : vector<1x64xf32> to vector<726x64xf32>
    %14 = arith.mulf %11, %13 : vector<726x64xf32>
    %c0_13 = arith.constant 0 : index
    %c0_14 = arith.constant 0 : index
    %15 = vector.load %arg4[%c0_13, %c0_14] : memref<1x64xf32, #tpu.memory_space<vmem>>, vector<1x64xf32>
    %16 = vector.broadcast %15 : vector<1x64xf32> to vector<726x64xf32>
    %17 = arith.addf %14, %16 : vector<726x64xf32>
    %cst_15 = arith.constant 0.000000e+00 : f32
    %18 = vector.broadcast %cst_15 : f32 to vector<726x64xf32>
    %19 = arith.maximumf %17, %18 : vector<726x64xf32>
    %c21_16 = arith.constant 21 : index
    %c0_17 = arith.constant 0 : index
    %20 = vector.load %arg5[%c21_16, %c0_17] : memref<768x1xf32, #tpu.memory_space<vmem>>, vector<726x1xf32>
    %21 = vector.broadcast %20 : vector<726x1xf32> to vector<726x64xf32>
    %22 = arith.mulf %19, %21 : vector<726x64xf32>
    %23 = arith.truncf %22 : vector<726x64xf32> to vector<726x64xbf16>
    %cst_18 = arith.constant 0.000000e+00 : bf16
    %24 = vector.broadcast %cst_18 : bf16 to vector<21x64xbf16>
    %25 = tpu.concatenate %24, %23, %24 in 0 : vector<21x64xbf16>, vector<726x64xbf16>, vector<21x64xbf16> -> vector<768x64xbf16>
    %c0_19 = arith.constant 0 : index
    %c0_20 = arith.constant 0 : index
    %26 = vector.load %arg6[%c0_19, %c0_20] : memref<768x64xbf16, #tpu.memory_space<vmem>>, vector<768x64xbf16>
    tpu.vector_store %arg6[%c0_19, %c0_20], %25 {strides = array<i32>} : memref<768x64xbf16, #tpu.memory_space<vmem>>, vector<768x64xbf16>,
    return
  }
  func.func @transform_0(%arg0: i32) -> (i32, i32) {
    %c0_i32 = arith.constant 0 : i32
    %c0_i32_0 = arith.constant 0 : i32
    return %arg0, %c0_i32 : i32, i32
  }
  func.func @transform_1(%arg0: i32) -> (i32, i32) {
    %c0_i32 = arith.constant 0 : i32
    %c0_i32_0 = arith.constant 0 : i32
    %c0_i32_1 = arith.constant 0 : i32
    return %c0_i32, %c0_i32_0 : i32, i32
  }
  func.func @transform_2(%arg0: i32) -> (i32, i32) {
    %c0_i32 = arith.constant 0 : i32
    %c0_i32_0 = arith.constant 0 : i32
    %c0_i32_1 = arith.constant 0 : i32
    return %c0_i32, %c0_i32_0 : i32, i32
  }
  func.func @transform_3(%arg0: i32) -> (i32, i32) {
    %c0_i32 = arith.constant 0 : i32
    %c0_i32_0 = arith.constant 0 : i32
    %c0_i32_1 = arith.constant 0 : i32
    return %c0_i32, %c0_i32_0 : i32, i32
  }
  func.func @transform_4(%arg0: i32) -> (i32, i32) {
    %c0_i32 = arith.constant 0 : i32
    %c0_i32_0 = arith.constant 0 : i32
    return %arg0, %c0_i32 : i32, i32
  }
  func.func @transform_5(%arg0: i32) -> (i32, i32) {
    %c0_i32 = arith.constant 0 : i32
    %c0_i32_0 = arith.constant 0 : i32
    return %arg0, %c0_i32 : i32, i32
  }
}

</mosaic_0001>

<bundles_post_ra>
// kernel: tpu_custom_call.1
= control target key start
LH: loop header
LB: loop body
LE: loop exit
PB: predicated region body
PF: predicated region fallthrough
CT: control target
= control target key end

     0   :  { %s6680_s18 = smov 0   ;;  %s11075_s0 = inlined_call_operand.vmem [shape: bf16[1536,4], index: 0, kind: input, shape index: {}]   ;;  %s11076_s1 = inlined_call_operand.vmem [shape: bf16[36,64], index: 1, kind: input, shape index: {}]   ;;  %s11077_s2 = inlined_call_operand.vmem [shape: f32[1,64], index: 2, kind: input, shape index: {}]   ;;  %s11078_s3 = inlined_call_operand.vmem [shape: f32[1,64], index: 3, kind: input, shape index: {}]   ;;  %s11079_s4 = inlined_call_operand.vmem [shape: f32[1536,1], index: 4, kind: input, shape index: {}]   ;;  %s11080_s5 = inlined_call_operand.vmem [shape: bf16[1536,64], index: 5, kind: output, shape index: {}]  }
   0x1 LB: > { %s5909_s19 = sadd.s32 4294967295, %s6639_s18   ;;  %p5913_p0 = scmp.ge.s32.totalorder %s6639_s18, 1  ;;  %s6639_s18 = sphi %s6680_s18, %s15_s18  }
   0x2   : > { %p199_p1 = scmp.lt.s32.totalorder %s6639_s18, 3 }
   0x4   : > { %p200_p2 = pnand %p5913_p0, %p199_p1 }
   0x6   : > { %203 = sbr.rel (%p200_p2) target bundleno = 1448 (0x5a8), region = 40 }
   0xb   : > { %s232_s20 = smul.u32 96, %s5909_s19  ;;  %vm586_vm0 = vsmask.f32 7424  ;;  %s6641_s25 = smov 4   ;;  %vm1049_vm1 = vcmask 1046528   ;;  %vm1244_vm2 = vcmask 1045504  }
   0xc   : > { %s6642_s26 = smov 8   ;;  %s6643_s27 = smov 12   ;;  %vm1431_vm3 = vsmask.f32 5376  ;;  %vm1725_vm4 = vcmask 1044480   ;;  %vm3559_vm5 = vcmask 1041408  }
   0xd   : > { %p233_p3 = scmp.lt.s32.totalorder %s232_s20, 191  ;;  %s6644_s28 = smov 16   ;;  %vm5744_vm6 = vcmask 519168   ;;  %vm2701_vm7 = vcmask 31744   ;;  %vm2888_vm8 = vcmask 97280   ;;  %vm2795_vm9 = vcmask 64512  }
   0xe   : > { %s6645_s29 = smov 20   ;;  %s6646_s30 = smov 24   ;;  %vm2981_vm10 = vcmask 130048   ;;  %vm3167_vm11 = vcmask 195584   ;;  %vm3074_vm12 = vcmask 162816   ;;  %vm3260_vm13 = vcmask 228352  }
   0xf   : > { %s11878_s20 = smov (!%p233_p3, %s232_s20), 191  ;;  %s6647_s6 = smov 28   ;;  %vm3466_vm14 = vcmask 293888   ;;  %vm3353_vm15 = vcmask 261120  }
  0x10   : > { %s5914_s21 = sshll.u32 %s11878_s20, 2  ;;  %s6648_s7 = smov 32  }
  0x11   : > { %s6696_s24 = scalar_lea.vmem %s11075_s0, %s5914_s21  ;;  %s9084_s16 = scalar_lea.vmem %s11080_s5, %s5914_s21 }
  0x12   : > { %v6699_v0 = vld [vmem:[%s6696_s24 + $0x20] sm:$0xff]   ;;  %v6702_v1 = vld [vmem:[%s6696_s24 + $0x28] sm:$0xff]   ;;  %v6705_v2 = vld [vmem:[%s6696_s24 + $0x10] sm:$0xff]   ;;  %s5915_s17 = sshll.u32 %s11878_s20, 3 }
  0x13   : > { %v11151_v3 = vshll.u32 %v6699_v0, 16  ;;  %v11153_v4 = vshrl.u32 %v6699_v0, 16  ;;  %v11131_v5 = vshll.u32 %v6702_v1, 16  ;;  %v6711_v6 = vld [vmem:[%s6696_s24 + $0x18] sm:$0xff]   ;;  %v11149_v7 = vshll.u32 %v6705_v2, 16  ;;  %v5981_v8 = vld [vmem:[%s6696_s24] sm:$0xff]   ;;  %s9161_s21 = scalar_lea.vmem %s11079_s4, %s5915_s17 }
  0x14   : > { %v11150_v9 = vshrl.u32 %v6705_v2, 16  ;;  %v11154_v10 = vshll.u32 %v6711_v6, 16  ;;  %v6718_v11 = vld [vmem:[%s6696_s24 + $0x8] sm:$0xff]   ;;  %v588_v12 = vshrl.u32 %v5981_v8, 16  ;;  %v590_v13 = vshll.u32 %v5981_v8, 16  ;;  %v6721_v14 = vld [vmem:[%s6696_s24 + $0x30] sm:$0xff]  }
  0x15   : > { %11181 = vst [vmem:[#allocation2_spill] sm:$0xff] %v6718_v11  ;;  %v621_v15 = vrot.slane %v11151_v3, 1  ;;  %v629_v16 = vrot.slane %v11131_v5, 1  ;;  %v605_v17 = vrot.slane %v11149_v7, 1  ;;  %v595_v18 = vshll.u32 %v6718_v11, 16  ;;  %v6741_v29 = vld [vmem:[%s6696_s24 + $0x40] sm:$0xff]  }
  0x16   : > { %v613_v19 = vrot.slane %v11154_v10, 1  ;;  %v592_v20 = vrot.slane %v590_v13, 1  ;;  %v11132_v21 = vshrl.u32 %v6702_v1, 16  ;;  %v11144_v22 = vshll.u32 %v6721_v14, 16  ;;  %v6744_v30 = vld [vmem:[%s6696_s24 + $0x38] sm:$0xff]   ;;  %v6761_v40 = vld [vmem:[%s6696_s24 + $0x48] sm:$0xff]  }
  0x17   : > { %v625_v23 = vor.u32 %v11153_v4, %v621_v15  ;;  %v609_v24 = vor.u32 %v11150_v9, %v605_v17  ;;  %v597_v25 = vrot.slane %v595_v18, 1  ;;  %v11160_v26 = vshrl.u32 %v6711_v6, 16  ;;  %v6773_v48 = vld [vmem:[%s6696_s24 + $0x58] sm:$0xff]   ;;  %v6778_v51 = vld [vmem:[%s6696_s24 + $0x50] sm:$0xff]   ;;  %v6791_v56 = vld [vmem:[%s6696_s24 + $0x60] sm:$0xff]  }
  0x18   : > { %v593_v27 = vor.u32 %v592_v20, %v588_v12  ;;  %v599_v28 = vshrl.u32 %v6718_v11, 16  ;;  %v633_v34 = vor.u32 %v11132_v21, %v629_v16  ;;  %v637_v35 = vrot.slane %v11144_v22, 1  ;;  %v7146_v10 = vld [vmem:[%s6696_s24 + $0x160] sm:$0xff]  }
  0x19   : > { %v630_v31 = vsel %vm586_vm0, %v625_v23, %v629_v16  ;;  %v614_v32 = vsel %vm586_vm0, %v609_v24, %v613_v19  ;;  %v617_v36 = vor.u32 %v11160_v26, %v613_v19  ;;  %v11113_v37 = vshll.u32 %v6741_v29, 16  ;;  %v6808_v16 = vld [vmem:[%s6696_s24 + $0x70] sm:$0xff]   ;;  %v6823_v23 = vld [vmem:[%s6696_s24 + $0x78] sm:$0xff]   ;;  %11184 = vst [vmem:[#allocation5_spill] sm:$0xff] %v7146_v10 }
  0x1a   : > { %962 = vrot.lane.b32.xlu2 %v630_v31, %s6641_s25  ;;  %958 = vrot.lane.b32.xlu1 %v614_v32, %s6641_s25  ;;  %v598_v33 = vsel %vm586_vm0, %v593_v27, %v597_v25  ;;  %v11134_v38 = vshll.u32 %v6744_v30, 16  ;;  %v601_v39 = vor.u32 %v599_v28, %v597_v25  ;;  %v638_v41 = vsel %vm586_vm0, %v633_v34, %v637_v35 }
  0x1b   : > { %954 = vrot.lane.b32.xlu0 %v598_v33, %s6641_s25  ;;  %v622_v42 = vsel %vm586_vm0, %v617_v36, %v621_v15  ;;  %v11114_v43 = vshrl.u32 %v6741_v29, 16  ;;  %v653_v44 = vrot.slane %v11113_v37, 1  ;;  %v11126_v45 = vshll.u32 %v6761_v40, 16 }
  0x1c   : > { %v645_v46 = vrot.slane %v11134_v38, 1  ;;  %v11140_v47 = vshrl.u32 %v6744_v30, 16  ;;  %v606_v49 = vsel %vm586_vm0, %v601_v39, %v605_v17  ;;  %v11145_v50 = vshrl.u32 %v6721_v14, 16  ;;  %v6811_v17 = vld [vmem:[%s6696_s24 + $0x68] sm:$0xff]  }
  0x1d   : > { %v11095_v52 = vshll.u32 %v6773_v48, 16  ;;  %v657_v53 = vor.u32 %v11114_v43, %v653_v44  ;;  %v661_v54 = vrot.slane %v11126_v45, 1  ;;  %v11116_v57 = vshll.u32 %v6778_v51, 16  ;;  %v6839_v39 = vld [vmem:[%s6696_s24 + $0x88] sm:$0xff]  }
  0x1e   : > { %v649_v55 = vor.u32 %v11140_v47, %v645_v46  ;;  %v641_v58 = vor.u32 %v11145_v50, %v637_v35  ;;  %v11096_v60 = vshrl.u32 %v6773_v48, 16  ;;  %v11108_v61 = vshll.u32 %v6791_v56, 16  ;;  %v7075_v38 = vld [vmem:[%s6696_s24 + $0x128] sm:$0xff]  }
  0x1f   : > { %v677_v59 = vrot.slane %v11095_v52, 1  ;;  %v662_v62 = vsel %vm586_vm0, %v657_v53, %v661_v54  ;;  %v669_v8 = vrot.slane %v11116_v57, 1  ;;  %v11122_v12 = vshrl.u32 %v6778_v51, 16  ;;  %v7009_v57 = vld [vmem:[%s6696_s24 + $0xf8] sm:$0xff]   ;;  %v7129_v50 = vld [vmem:[%s6696_s24 + $0x168] sm:$0xff]  }
  0x20   : > { %v654_v63 = vsel %vm586_vm0, %v649_v55, %v653_v44  ;;  %v646_v13 = vsel %vm586_vm0, %v641_v58, %v645_v46  ;;  %v11127_v15 = vshrl.u32 %v6761_v40, 16  ;;  %v685_v19 = vrot.slane %v11108_v61, 1  ;;  %v6844_v44 = vld [vmem:[%s6696_s24 + $0x80] sm:$0xff]   ;;  %v6857_v55 = vld [vmem:[%s6696_s24 + $0x90] sm:$0xff]  }
  0x21   : > { %v681_v18 = vor.u32 %v11096_v60, %v677_v59  ;;  %v673_v20 = vor.u32 %v11122_v12, %v669_v8  ;;  %v11084_v24 = vshll.u32 %v6808_v16, 16  ;;  %v11098_v25 = vshll.u32 %v6811_v17, 16 }
  0x22   : > { %964 = vrot.lane.b32.xlu2 %v638_v41, %s6641_s25  ;;  %960 = vrot.lane.b32.xlu1 %v622_v42, %s6641_s25  ;;  %v665_v27 = vor.u32 %v11127_v15, %v661_v54  ;;  %v11085_v31 = vshrl.u32 %v6808_v16, 16  ;;  %v11088_v32 = vshll.u32 %v6823_v23, 16  ;;  %v11104_v36 = vshrl.u32 %v6811_v17, 16 }
  0x23   : > { %956 = vrot.lane.b32.xlu0 %v606_v49, %s6641_s25  ;;  %v686_v28 = vsel %vm586_vm0, %v681_v18, %v685_v19  ;;  %v678_v33 = vsel %vm586_vm0, %v673_v20, %v677_v59  ;;  %v701_v34 = vrot.slane %v11084_v24, 1  ;;  %v693_v35 = vrot.slane %v11098_v25, 1  ;;  %v6943_v25 = vld [vmem:[%s6696_s24 + $0xc8] sm:$0xff]  }
  0x24   : > { %v670_v41 = vsel %vm586_vm0, %v665_v27, %v669_v8  ;;  %v11109_v42 = vshrl.u32 %v6791_v56, 16  ;;  %v11081_v46 = vshll.u32 %v6839_v39, 16  ;;  %v709_v53 = vrot.slane %v11088_v32, 1 }
  0x25   : > { %v705_v49 = vor.u32 %v11085_v31, %v701_v34  ;;  %v697_v54 = vor.u32 %v11104_v36, %v693_v35  ;;  %v11086_v58 = vshll.u32 %v6844_v44, 16  ;;  %v11083_v8 = vshll.u32 %v6857_v55, 16 }
  0x26   : > { %v689_v59 = vor.u32 %v11109_v42, %v685_v19  ;;  %v11087_v27 = vshrl.u32 %v6844_v44, 16  ;;  %v11091_v19 = vshrl.u32 %v6823_v23, 16  ;;  %v11097_v32 = vshrl.u32 %v6857_v55, 16 }
  0x27   : > { %v702_v18 = vsel %vm586_vm0, %v697_v54, %v701_v34  ;;  %v717_v20 = vrot.slane %v11086_v58, 1  ;;  %v6889_v54 = vld [vmem:[%s6696_s24 + $0xa8] sm:$0xff]   ;;  %v11112_v36 = vshrl.u32 %v6943_v25, 16  ;;  %v11130_v12 = vshrl.u32 %v7009_v57, 16 }
  0x28   : > { %v11148_v47 = vshrl.u32 %v7075_v38, 16 }
  0x2a   : > { %970 = vrot.lane.b32.xlu2 %v662_v62, %s6641_s25  ;;  %968 = vrot.lane.b32.xlu1 %v654_v63, %s6641_s25  ;;  %v725_v62 = vrot.slane %v11081_v46, 1  ;;  %v11082_v63 = vshrl.u32 %v6839_v39, 16 }
  0x2b   : > { %966 = vrot.lane.b32.xlu0 %v646_v13, %s6641_s25  ;;  %v710_v13 = vsel %vm586_vm0, %v705_v49, %v709_v53  ;;  %v733_v49 = vrot.slane %v11083_v8, 1  ;;  %v11093_v8 = vshll.u32 %v6889_v54, 16 }
  0x2c   : > { %v729_v34 = vor.u32 %v11082_v63, %v725_v62 }
  0x2e   : > { %v734_v46 = vsel %vm586_vm0, %v729_v34, %v733_v49 }
  0x32   : > { %976 = vrot.lane.b32.xlu2 %v686_v28, %s6641_s25  ;;  %974 = vrot.lane.b32.xlu1 %v678_v33, %s6641_s25  ;;  %v694_v28 = vsel %vm586_vm0, %v689_v59, %v693_v35  ;;  %v6874_v33 = vld [vmem:[%s6696_s24 + $0xa0] sm:$0xff]   ;;  %v721_v35 = vor.u32 %v11087_v27, %v717_v20  ;;  %v6905_v27 = vld [vmem:[%s6696_s24 + $0xb8] sm:$0xff]  }
  0x33   : > { %972 = vrot.lane.b32.xlu0 %v670_v41, %s6641_s25  ;;  %v6877_v41 = vld [vmem:[%s6696_s24 + $0x98] sm:$0xff]   ;;  %v11089_v59 = vshll.u32 %v6874_v33, 16  ;;  %v11092_v63 = vshrl.u32 %v6874_v33, 16 }
  0x34   : > { %v11094_v58 = vshrl.u32 %v6877_v41, 16 }
  0x35   : > { %v749_v24 = vrot.slane %v11089_v59, 1 }
  0x37   : > { %v753_v59 = vor.u32 %v11092_v63, %v749_v24 }
  0x3a   : > { %982 = vrot.lane.b32.xlu2 %v710_v13, %s6641_s25  ;;  %980 = vrot.lane.b32.xlu1 %v702_v18, %s6641_s25  ;;  %v11090_v13 = vshll.u32 %v6877_v41, 16  ;;  %v713_v18 = vor.u32 %v11091_v19, %v709_v53  ;;  %v6908_v53 = vld [vmem:[%s6696_s24 + $0xb0] sm:$0xff]  }
  0x3b   : > { %978 = vrot.lane.b32.xlu0 %v694_v28, %s6641_s25  ;;  %v726_v28 = vsel %vm586_vm0, %v721_v35, %v725_v62  ;;  %v11099_v62 = vshll.u32 %v6905_v27, 16  ;;  %v11102_v35 = vshll.u32 %v6908_v53, 16 }
  0x3c   : > { %v741_v31 = vrot.slane %v11090_v13, 1  ;;  %v718_v34 = vsel %vm586_vm0, %v713_v18, %v717_v20  ;;  %v757_v20 = vrot.slane %v11093_v8, 1  ;;  %v11100_v13 = vshrl.u32 %v6905_v27, 16 }
  0x3d   : > { %v765_v63 = vrot.slane %v11102_v35, 1  ;;  %v11103_v8 = vshrl.u32 %v6908_v53, 16 }
  0x3e   : > { %v745_v18 = vor.u32 %v11094_v58, %v741_v31  ;;  %v758_v58 = vsel %vm586_vm0, %v753_v59, %v757_v20 }
  0x40   : > { %v750_v52 = vsel %vm586_vm0, %v745_v18, %v749_v24  ;;  %v11107_v18 = vshll.u32 %v6943_v25, 16 }
  0x42   : > { %988 = vrot.lane.b32.xlu2 %v734_v46, %s6641_s25  ;;  %986 = vrot.lane.b32.xlu1 %v726_v28, %s6641_s25  ;;  %v6924_v46 = vld [vmem:[%s6696_s24 + $0xc0] sm:$0xff]   ;;  %v737_v28 = vor.u32 %v11097_v32, %v733_v49  ;;  %v11105_v49 = vshrl.u32 %v6889_v54, 16  ;;  %v6940_v32 = vld [vmem:[%s6696_s24 + $0xd0] sm:$0xff]  }
  0x43   : > { %984 = vrot.lane.b32.xlu0 %v718_v34, %s6641_s25  ;;  %v773_v34 = vrot.slane %v11099_v62, 1  ;;  %v11101_v19 = vshll.u32 %v6924_v46, 16  ;;  %v11106_v59 = vshll.u32 %v6940_v32, 16 }
  0x44   : > { %v742_v60 = vsel %vm586_vm0, %v737_v28, %v741_v31  ;;  %v769_v31 = vor.u32 %v11103_v8, %v765_v63  ;;  %v789_v8 = vrot.slane %v11107_v18, 1 }
  0x45   : > { %v777_v62 = vor.u32 %v11100_v13, %v773_v34  ;;  %v781_v24 = vrot.slane %v11101_v19, 1  ;;  %v11110_v19 = vshrl.u32 %v6940_v32, 16  ;;  %v797_v35 = vrot.slane %v11106_v59, 1 }
  0x46   : > { %v774_v13 = vsel %vm586_vm0, %v769_v31, %v773_v34  ;;  %v11115_v34 = vshrl.u32 %v6924_v46, 16 }
  0x47   : > { %v782_v28 = vsel %vm586_vm0, %v777_v62, %v781_v24  ;;  %v801_v18 = vor.u32 %v11110_v19, %v797_v35 }
  0x4a   : > { %994 = vrot.lane.b32.xlu2 %v758_v58, %s6641_s25  ;;  %992 = vrot.lane.b32.xlu1 %v750_v52, %s6641_s25  ;;  %v761_v52 = vor.u32 %v11105_v49, %v757_v20  ;;  %v6959_v58 = vld [vmem:[%s6696_s24 + $0xd8] sm:$0xff]   ;;  %v6971_v20 = vld [vmem:[%s6696_s24 + $0xe8] sm:$0xff]  }
  0x4b   : > { %990 = vrot.lane.b32.xlu0 %v742_v60, %s6641_s25  ;;  %v11111_v60 = vshll.u32 %v6959_v58, 16  ;;  %v6974_v49 = vld [vmem:[%s6696_s24 + $0xe0] sm:$0xff]   ;;  %v11117_v31 = vshll.u32 %v6971_v20, 16  ;;  %v11118_v61 = vshrl.u32 %v6971_v20, 16 }
  0x4c   : > { %v766_v62 = vsel %vm586_vm0, %v761_v52, %v765_v63  ;;  %v11120_v59 = vshll.u32 %v6974_v49, 16  ;;  %v793_v52 = vor.u32 %v11112_v36, %v789_v8 }
  0x4d   : > { %v805_v63 = vrot.slane %v11111_v60, 1  ;;  %v11121_v60 = vshrl.u32 %v6974_v49, 16 }
  0x4e   : > { %v813_v19 = vrot.slane %v11120_v59, 1  ;;  %v798_v37 = vsel %vm586_vm0, %v793_v52, %v797_v35  ;;  %v11125_v52 = vshll.u32 %v7009_v57, 16 }
  0x4f   : > { %v806_v36 = vsel %vm586_vm0, %v801_v18, %v805_v63 }
  0x52   : > { %1000 = vrot.lane.b32.xlu2 %v782_v28, %s6641_s25  ;;  %998 = vrot.lane.b32.xlu1 %v774_v13, %s6641_s25  ;;  %v6990_v28 = vld [vmem:[%s6696_s24 + $0xf0] sm:$0xff]   ;;  %v785_v13 = vor.u32 %v11115_v34, %v781_v24  ;;  %v11123_v24 = vshrl.u32 %v6959_v58, 16  ;;  %v7006_v34 = vld [vmem:[%s6696_s24 + $0x100] sm:$0xff]  }
  0x53   : > { %996 = vrot.lane.b32.xlu0 %v766_v62, %s6641_s25  ;;  %v821_v62 = vrot.slane %v11117_v31, 1  ;;  %v11119_v42 = vshll.u32 %v6990_v28, 16  ;;  %v11124_v18 = vshll.u32 %v7006_v34, 16 }
  0x54   : > { %v790_v43 = vsel %vm586_vm0, %v785_v13, %v789_v8  ;;  %v817_v8 = vor.u32 %v11121_v60, %v813_v19  ;;  %v837_v60 = vrot.slane %v11125_v52, 1 }
  0x55   : > { %v825_v31 = vor.u32 %v11118_v61, %v821_v62  ;;  %v829_v35 = vrot.slane %v11119_v42, 1  ;;  %v11128_v42 = vshrl.u32 %v7006_v34, 16  ;;  %v845_v59 = vrot.slane %v11124_v18, 1 }
  0x56   : > { %v822_v61 = vsel %vm586_vm0, %v817_v8, %v821_v62  ;;  %v11133_v62 = vshrl.u32 %v6990_v28, 16 }
  0x57   : > { %v830_v13 = vsel %vm586_vm0, %v825_v31, %v829_v35  ;;  %v849_v52 = vor.u32 %v11128_v42, %v845_v59 }
  0x5a   : > { %1006 = vrot.lane.b32.xlu2 %v806_v36, %s6641_s25  ;;  %1004 = vrot.lane.b32.xlu1 %v798_v37, %s6641_s25  ;;  %v809_v37 = vor.u32 %v11123_v24, %v805_v63  ;;  %v7025_v36 = vld [vmem:[%s6696_s24 + $0x108] sm:$0xff]   ;;  %v7037_v63 = vld [vmem:[%s6696_s24 + $0x118] sm:$0xff]  }
  0x5b   : > { %1002 = vrot.lane.b32.xlu0 %v790_v43, %s6641_s25  ;;  %v11129_v43 = vshll.u32 %v7025_v36, 16  ;;  %v7040_v24 = vld [vmem:[%s6696_s24 + $0x110] sm:$0xff]   ;;  %v11135_v8 = vshll.u32 %v7037_v63, 16  ;;  %v11136_v45 = vshrl.u32 %v7037_v63, 16 }
  0x5c   : > { %v814_v31 = vsel %vm586_vm0, %v809_v37, %v813_v19  ;;  %v11138_v18 = vshll.u32 %v7040_v24, 16  ;;  %v841_v37 = vor.u32 %v11130_v12, %v837_v60 }
  0x5d   : > { %v853_v19 = vrot.slane %v11129_v43, 1  ;;  %v11139_v43 = vshrl.u32 %v7040_v24, 16 }
  0x5e   : > { %v861_v42 = vrot.slane %v11138_v18, 1  ;;  %v846_v5 = vsel %vm586_vm0, %v841_v37, %v845_v59  ;;  %v11143_v37 = vshll.u32 %v7075_v38, 16 }
  0x5f   : > { %v854_v12 = vsel %vm586_vm0, %v849_v52, %v853_v19 }
  0x62   : > { %1012 = vrot.lane.b32.xlu2 %v830_v13, %s6641_s25  ;;  %1010 = vrot.lane.b32.xlu1 %v822_v61, %s6641_s25  ;;  %v7056_v13 = vld [vmem:[%s6696_s24 + $0x120] sm:$0xff]   ;;  %v833_v61 = vor.u32 %v11133_v62, %v829_v35  ;;  %v11141_v35 = vshrl.u32 %v7025_v36, 16  ;;  %v7072_v62 = vld [vmem:[%s6696_s24 + $0x130] sm:$0xff]  }
  0x63   : > { %1008 = vrot.lane.b32.xlu0 %v814_v31, %s6641_s25  ;;  %v869_v31 = vrot.slane %v11135_v8, 1  ;;  %v11137_v15 = vshll.u32 %v7056_v13, 16  ;;  %v11142_v52 = vshll.u32 %v7072_v62, 16 }
  0x64   : > { %v838_v21 = vsel %vm586_vm0, %v833_v61, %v837_v60  ;;  %v865_v60 = vor.u32 %v11139_v43, %v861_v42  ;;  %v885_v43 = vrot.slane %v11143_v37, 1 }
  0x65   : > { %v873_v8 = vor.u32 %v11136_v45, %v869_v31  ;;  %v877_v59 = vrot.slane %v11137_v15, 1  ;;  %v11146_v15 = vshrl.u32 %v7072_v62, 16  ;;  %v893_v18 = vrot.slane %v11142_v52, 1 }
  0x66   : > { %v870_v45 = vsel %vm586_vm0, %v865_v60, %v869_v31  ;;  %v11152_v31 = vshrl.u32 %v7056_v13, 16 }
  0x67   : > { %v878_v61 = vsel %vm586_vm0, %v873_v8, %v877_v59  ;;  %v897_v37 = vor.u32 %v11146_v15, %v893_v18 }
  0x6a   : > { %1018 = vrot.lane.b32.xlu2 %v854_v12, %s6641_s25  ;;  %1016 = vrot.lane.b32.xlu1 %v846_v5, %s6641_s25  ;;  %v857_v5 = vor.u32 %v11141_v35, %v853_v19  ;;  %v7091_v12 = vld [vmem:[%s6696_s24 + $0x138] sm:$0xff]   ;;  %v7103_v19 = vld [vmem:[%s6696_s24 + $0x148] sm:$0xff]  }
  0x6b   : > { %1014 = vrot.lane.b32.xlu0 %v838_v21, %s6641_s25  ;;  %v11147_v21 = vshll.u32 %v7091_v12, 16  ;;  %v7106_v35 = vld [vmem:[%s6696_s24 + $0x140] sm:$0xff]   ;;  %v11155_v60 = vshll.u32 %v7103_v19, 16  ;;  %v11163_v4 = vshrl.u32 %v7091_v12, 16 }
  0x6c   : > { %v862_v8 = vsel %vm586_vm0, %v857_v5, %v861_v42  ;;  %v11158_v52 = vshll.u32 %v7106_v35, 16  ;;  %v889_v42 = vor.u32 %v11148_v47, %v885_v43  ;;  %v7122_v5 = vld [vmem:[%s6696_s24 + $0x150] sm:$0xff]   ;;  %v11159_v7 = vshrl.u32 %v7106_v35, 16 }
  0x6d   : > { %v901_v22 = vrot.slane %v11147_v21, 1  ;;  %v917_v15 = vrot.slane %v11155_v60, 1  ;;  %v11157_v21 = vshll.u32 %v7122_v5, 16  ;;  %v7149_v60 = vld [vmem:[%s6696_s24 + $0x158] sm:$0xff]  }
  0x6e   : > { %v909_v47 = vrot.slane %v11158_v52, 1  ;;  %v894_v3 = vsel %vm586_vm0, %v889_v42, %v893_v18 }
  0x6f   : > { %v902_v9 = vsel %vm586_vm0, %v897_v37, %v901_v22  ;;  %v925_v18 = vrot.slane %v11157_v21, 1 }
  0x70   : > { %v913_v42 = vor.u32 %v11159_v7, %v909_v47 }
  0x72   : > { %1024 = vrot.lane.b32.xlu2 %v878_v61, %s6641_s25  ;;  %1022 = vrot.lane.b32.xlu1 %v870_v45, %s6641_s25  ;;  %v881_v61 = vor.u32 %v11152_v31, %v877_v59  ;;  %v7141_v59 = vunpack.c.l.b16 %v7129_v50  ;;  %v918_v52 = vsel %vm586_vm0, %v913_v42, %v917_v15 }
  0x73   : > { %1020 = vrot.lane.b32.xlu0 %v862_v8, %s6641_s25  ;;  %v11156_v8 = vshrl.u32 %v7103_v19, 16 }
  0x74   : > { %v7124_v45 = vpop.permute.xlu2 %962  ;;  %11183 = vst [vmem:[#allocation4_spill] sm:$0xff] %v7141_v59  ;;  %v886_v31 = vsel %vm586_vm0, %v881_v61, %v885_v43  ;;  %v7162_v43 = vpack.c.b16 %v7141_v59, %v7141_v59  ;;  %v11161_v61 = vshll.u32 %v7146_v10, 16 }
  0x75   : > { %11182 = vst [vmem:[#allocation3_spill] sm:$0xff] %v7124_v45  ;;  %v921_v37 = vor.u32 %v11156_v8, %v917_v15  ;;  %v905_v8 = vor.u32 %v11163_v4, %v901_v22  ;;  %v6210_v4 = vld [vmem:[%s6696_s24] sm:$0xe] }
  0x76   : > { %v941_v7 = vrot.slane %v11161_v61, 1  ;;  %v947_v26 = vshll.u32 %v7162_v43, 16 }
  0x77   : > { %v926_v21 = vsel %vm586_vm0, %v921_v37, %v925_v18  ;;  %v910_v22 = vsel %vm586_vm0, %v905_v8, %v909_v47  ;;  %v11167_v37 = vshrl.u32 %v7122_v5, 16  ;;  %v6209_v8 = vld [vmem:[%s6696_s24] sm:$0xf0] }
  0x78   : > { %v949_v42 = vrot.slane %v947_v26, 1  ;;  %v6211_v59 = vor.u32 %v6210_v4, %v6209_v8  ;;  %v1051_v26 = vrot.slane %v6718_v11, 1  ;;  %v1055_v8 = vrot.slane %v6711_v6, 1 }
  0x79   : > { %v929_v47 = vor.u32 %v11167_v37, %v925_v18 }
  0x7a   : > { %1030 = vrot.lane.b32.xlu2 %v902_v9, %s6641_s25  ;;  %1028 = vrot.lane.b32.xlu1 %v894_v3, %s6641_s25  ;;  %v11162_v9 = vshll.u32 %v7149_v60, 16  ;;  %v1050_v18 = vrot.slane %v6211_v59, 1  ;;  %v1057_v59 = vrot.slane %v6699_v0, 1 }
  0x7b   : > { %1026 = vrot.lane.b32.xlu0 %v886_v31, %s6641_s25  ;;  %v11165_v31 = vshrl.u32 %v7146_v10, 16 }
  0x7c   : > { %v7166_v3 = vpop.permute.xlu2 %964  ;;  %v933_v45 = vrot.slane %v11162_v9, 1 }
  0x7d   : > { %11185 = vst [vmem:[#allocation6_spill] sm:$0xff] %v7166_v3  ;;  %v11166_v3 = vshrl.u32 %v7149_v60, 16  ;;  %v945_v15 = vor.u32 %v11165_v31, %v941_v7  ;;  %v1053_v31 = vrot.slane %v6705_v2, 1 }
  0x7f   : > { %v937_v61 = vor.u32 %v11166_v3, %v933_v45  ;;  %v951_v3 = vshrl.u32 %v7162_v43, 16 }
  0x82   : > { %1036 = vrot.lane.b32.xlu2 %v926_v21, %s6641_s25  ;;  %1034 = vrot.lane.b32.xlu1 %v918_v52, %s6641_s25  ;;  %v950_v21 = vsel %vm586_vm0, %v945_v15, %v949_v42  ;;  %v942_v52 = vsel %vm586_vm0, %v937_v61, %v941_v7  ;;  %v1054_v7 = vsel %vm1049_vm1, %v1051_v26, %v1053_v31 }
  0x83   : > { %1032 = vrot.lane.b32.xlu0 %v910_v22, %s6641_s25  ;;  %v934_v22 = vsel %vm586_vm0, %v929_v47, %v933_v45  ;;  %v1052_v45 = vsel %vm1049_vm1, %v1050_v18, %v1051_v26  ;;  %v953_v61 = vor.u32 %v951_v3, %v949_v42  ;;  %v1059_v47 = vrot.slane %v6702_v1, 1 }
  0x84   : > { %v7188_v9 = vpop.permute.xlu2 %970  ;;  %v1058_v42 = vsel %vm1049_vm1, %v1055_v8, %v1057_v59  ;;  %v1056_v26 = vsel %vm1049_vm1, %v1053_v31, %v1055_v8  ;;  %v1063_v18 = vrot.slane %v6744_v30, 1 }
  0x85   : > { %11186 = vst [vmem:[#allocation7_spill] sm:$0xff] %v7188_v9  ;;  %v1060_v3 = vsel %vm1049_vm1, %v1057_v59, %v1059_v47 }
  0x8a   : > { %1042 = vrot.lane.b32.xlu2 %v950_v21, %s6641_s25  ;;  %1040 = vrot.lane.b32.xlu1 %v942_v52, %s6641_s25 }
  0x8b   : > { %1038 = vrot.lane.b32.xlu0 %v934_v22, %s6641_s25 }
  0x8c   : > { %v7203_v37 = vpop.permute.xlu2 %976  ;;  %v7205_v15 = vpop.permute.xlu1 %958 }
  0x8d   : > { %11187 = vst [vmem:[#allocation8_spill] sm:$0xff] %v7203_v37  ;;  %v7207_v4 = vpop.permute.xlu0 %954 }
  0x8e   : > { %11188 = vst [vmem:[#allocation9_spill] sm:$0xff] %v7205_v15 }
  0x8f   : > { %11189 = vst [vmem:[#allocation10_spill] sm:$0xff] %v7207_v4 }
  0x92   : > { %1143 = vrot.lane.b32.xlu2 %v1054_v7, %s6642_s26  ;;  %1141 = vrot.lane.b32.xlu1 %v1052_v45, %s6642_s26  ;;  %v1065_v7 = vrot.slane %v6741_v29, 1  ;;  %v1061_v45 = vrot.slane %v6721_v14, 1 }
  0x93   : > { %1044 = vrot.lane.b32.xlu0 %v953_v61, %s6641_s25 }
  0x94   : > { %v7217_v21 = vpop.permute.xlu2 %982  ;;  %v7219_v52 = vpop.permute.xlu1 %960  ;;  %v1066_v31 = vsel %vm1049_vm1, %v1063_v18, %v1065_v7  ;;  %v1064_v59 = vsel %vm1049_vm1, %v1061_v45, %v1063_v18  ;;  %v1062_v8 = vsel %vm1049_vm1, %v1059_v47, %v1061_v45 }
  0x95   : > { %11190 = vst [vmem:[#allocation11_spill] sm:$0xff] %v7217_v21  ;;  %v7221_v22 = vpop.permute.xlu0 %956 }
  0x96   : > { %11191 = vst [vmem:[#allocation12_spill] sm:$0xff] %v7219_v52 }
  0x97   : > { %11192 = vst [vmem:[#allocation13_spill] sm:$0xff] %v7221_v22  ;;  %v7474_v22 = vld [vmem:[%s6696_s24 + $0x30] sm:$0xff]  }
  0x98   : > { %11242 = vst [vmem:[#allocation63_spill] sm:$0xff] %v7474_v22 }
  0x9a   : > { %1149 = vrot.lane.b32.xlu2 %v1060_v3, %s6642_s26  ;;  %1147 = vrot.lane.b32.xlu1 %v1058_v42, %s6642_s26  ;;  %v1069_v3 = vrot.slane %v6778_v51, 1  ;;  %v1071_v42 = vrot.slane %v6773_v48, 1 }
  0x9b   : > { %1145 = vrot.lane.b32.xlu0 %v1056_v26, %s6642_s26  ;;  %v1067_v26 = vrot.slane %v6761_v40, 1 }
  0x9c   : > { %v7232_v61 = vpop.permute.xlu2 %988  ;;  %v7234_v37 = vpop.permute.xlu1 %968  ;;  %v1072_v47 = vsel %vm1049_vm1, %v1069_v3, %v1071_v42 }
  0x9d   : > { %11193 = vst [vmem:[#allocation14_spill] sm:$0xff] %v7232_v61  ;;  %v7236_v9 = vpop.permute.xlu0 %966  ;;  %v1070_v18 = vsel %vm1049_vm1, %v1067_v26, %v1069_v3  ;;  %v1068_v45 = vsel %vm1049_vm1, %v1065_v7, %v1067_v26 }
  0x9e   : > { %11194 = vst [vmem:[#allocation15_spill] sm:$0xff] %v7234_v37 }
  0x9f   : > { %11195 = vst [vmem:[#allocation16_spill] sm:$0xff] %v7236_v9 }
  0xa2   : > { %1155 = vrot.lane.b32.xlu2 %v1066_v31, %s6642_s26  ;;  %1153 = vrot.lane.b32.xlu1 %v1064_v59, %s6642_s26  ;;  %v1075_v31 = vrot.slane %v6811_v17, 1  ;;  %v1077_v59 = vrot.slane %v6808_v16, 1 }
  0xa3   : > { %1151 = vrot.lane.b32.xlu0 %v1062_v8, %s6642_s26  ;;  %v1073_v8 = vrot.slane %v6791_v56, 1 }
  0xa4   : > { %v7247_v37 = vpop.permute.xlu2 %994  ;;  %v7249_v61 = vpop.permute.xlu1 %974  ;;  %v1078_v7 = vsel %vm1049_vm1, %v1075_v31, %v1077_v59 }
  0xa5   : > { %11196 = vst [vmem:[#allocation17_spill] sm:$0xff] %v7247_v37  ;;  %v7251_v9 = vpop.permute.xlu0 %972  ;;  %v1076_v3 = vsel %vm1049_vm1, %v1073_v8, %v1075_v31  ;;  %v1074_v26 = vsel %vm1049_vm1, %v1071_v42, %v1073_v8 }
  0xa6   : > { %11197 = vst [vmem:[#allocation18_spill] sm:$0xff] %v7249_v61 }
  0xa7   : > { %11198 = vst [vmem:[#allocation19_spill] sm:$0xff] %v7251_v9 }
  0xaa   : > { %1161 = vrot.lane.b32.xlu2 %v1072_v47, %s6642_s26  ;;  %1159 = vrot.lane.b32.xlu1 %v1070_v18, %s6642_s26  ;;  %v1081_v47 = vrot.slane %v6844_v44, 1  ;;  %v1083_v18 = vrot.slane %v6839_v39, 1 }
  0xab   : > { %1157 = vrot.lane.b32.xlu0 %v1068_v45, %s6642_s26  ;;  %v1079_v45 = vrot.slane %v6823_v23, 1 }
  0xac   : > { %v7262_v61 = vpop.permute.xlu2 %1000  ;;  %v7264_v37 = vpop.permute.xlu1 %980  ;;  %v1084_v42 = vsel %vm1049_vm1, %v1081_v47, %v1083_v18 }
  0xad   : > { %11199 = vst [vmem:[#allocation20_spill] sm:$0xff] %v7262_v61  ;;  %v7266_v9 = vpop.permute.xlu0 %978  ;;  %v1082_v31 = vsel %vm1049_vm1, %v1079_v45, %v1081_v47  ;;  %v1080_v8 = vsel %vm1049_vm1, %v1077_v59, %v1079_v45 }
  0xae   : > { %11200 = vst [vmem:[#allocation21_spill] sm:$0xff] %v7264_v37 }
  0xaf   : > { %11201 = vst [vmem:[#allocation22_spill] sm:$0xff] %v7266_v9 }
  0xb2   : > { %1167 = vrot.lane.b32.xlu2 %v1078_v7, %s6642_s26  ;;  %1165 = vrot.lane.b32.xlu1 %v1076_v3, %s6642_s26  ;;  %v1087_v7 = vrot.slane %v6877_v41, 1  ;;  %v1089_v3 = vrot.slane %v6874_v33, 1 }
  0xb3   : > { %1163 = vrot.lane.b32.xlu0 %v1074_v26, %s6642_s26  ;;  %v1085_v26 = vrot.slane %v6857_v55, 1 }
  0xb4   : > { %v7277_v61 = vpop.permute.xlu2 %1006  ;;  %v7279_v21 = vpop.permute.xlu1 %986  ;;  %v1090_v59 = vsel %vm1049_vm1, %v1087_v7, %v1089_v3 }
  0xb5   : > { %11202 = vst [vmem:[#allocation23_spill] sm:$0xff] %v7277_v61  ;;  %v7281_v37 = vpop.permute.xlu0 %984  ;;  %v1088_v47 = vsel %vm1049_vm1, %v1085_v26, %v1087_v7  ;;  %v1086_v45 = vsel %vm1049_vm1, %v1083_v18, %v1085_v26 }
  0xb6   : > { %11203 = vst [vmem:[#allocation24_spill] sm:$0xff] %v7279_v21 }
  0xb7   : > { %11204 = vst [vmem:[#allocation25_spill] sm:$0xff] %v7281_v37 }
  0xba   : > { %1173 = vrot.lane.b32.xlu2 %v1084_v42, %s6642_s26  ;;  %1171 = vrot.lane.b32.xlu1 %v1082_v31, %s6642_s26  ;;  %v1093_v42 = vrot.slane %v6908_v53, 1  ;;  %v1095_v31 = vrot.slane %v6905_v27, 1 }
  0xbb   : > { %1169 = vrot.lane.b32.xlu0 %v1080_v8, %s6642_s26  ;;  %v1091_v8 = vrot.slane %v6889_v54, 1 }
  0xbc   : > { %v7292_v21 = vpop.permute.xlu2 %1012  ;;  %v7294_v61 = vpop.permute.xlu1 %992  ;;  %v1096_v18 = vsel %vm1049_vm1, %v1093_v42, %v1095_v31 }
  0xbd   : > { %11205 = vst [vmem:[#allocation26_spill] sm:$0xff] %v7292_v21  ;;  %v7296_v37 = vpop.permute.xlu0 %990  ;;  %v1094_v7 = vsel %vm1049_vm1, %v1091_v8, %v1093_v42  ;;  %v1092_v26 = vsel %vm1049_vm1, %v1089_v3, %v1091_v8 }
  0xbe   : > { %11206 = vst [vmem:[#allocation27_spill] sm:$0xff] %v7294_v61 }
  0xbf   : > { %11207 = vst [vmem:[#allocation28_spill] sm:$0xff] %v7296_v37 }
  0xc2   : > { %1179 = vrot.lane.b32.xlu2 %v1090_v59, %s6642_s26  ;;  %1177 = vrot.lane.b32.xlu1 %v1088_v47, %s6642_s26  ;;  %v1099_v59 = vrot.slane %v6943_v25, 1  ;;  %v1101_v47 = vrot.slane %v6940_v32, 1 }
  0xc3   : > { %1175 = vrot.lane.b32.xlu0 %v1086_v45, %s6642_s26  ;;  %v1097_v45 = vrot.slane %v6924_v46, 1 }
  0xc4   : > { %v7307_v61 = vpop.permute.xlu2 %1018  ;;  %v7309_v21 = vpop.permute.xlu1 %998  ;;  %v1102_v3 = vsel %vm1049_vm1, %v1099_v59, %v1101_v47 }
  0xc5   : > { %11208 = vst [vmem:[#allocation29_spill] sm:$0xff] %v7307_v61  ;;  %v7311_v37 = vpop.permute.xlu0 %996  ;;  %v1100_v42 = vsel %vm1049_vm1, %v1097_v45, %v1099_v59  ;;  %v1098_v8 = vsel %vm1049_vm1, %v1095_v31, %v1097_v45 }
  0xc6   : > { %11209 = vst [vmem:[#allocation30_spill] sm:$0xff] %v7309_v21 }
  0xc7   : > { %11210 = vst [vmem:[#allocation31_spill] sm:$0xff] %v7311_v37 }
  0xca   : > { %1185 = vrot.lane.b32.xlu2 %v1096_v18, %s6642_s26  ;;  %1183 = vrot.lane.b32.xlu1 %v1094_v7, %s6642_s26  ;;  %v1105_v18 = vrot.slane %v6974_v49, 1  ;;  %v1107_v7 = vrot.slane %v6971_v20, 1 }
  0xcb   : > { %1181 = vrot.lane.b32.xlu0 %v1092_v26, %s6642_s26  ;;  %v1103_v26 = vrot.slane %v6959_v58, 1 }
  0xcc   : > { %v7322_v61 = vpop.permute.xlu2 %1024  ;;  %v7324_v21 = vpop.permute.xlu1 %1004  ;;  %v1108_v31 = vsel %vm1049_vm1, %v1105_v18, %v1107_v7 }
  0xcd   : > { %11211 = vst [vmem:[#allocation32_spill] sm:$0xff] %v7322_v61  ;;  %v7326_v37 = vpop.permute.xlu0 %1002  ;;  %v1106_v59 = vsel %vm1049_vm1, %v1103_v26, %v1105_v18  ;;  %v1104_v45 = vsel %vm1049_vm1, %v1101_v47, %v1103_v26 }
  0xce   : > { %11212 = vst [vmem:[#allocation33_spill] sm:$0xff] %v7324_v21 }
  0xcf   : > { %11213 = vst [vmem:[#allocation34_spill] sm:$0xff] %v7326_v37 }
  0xd2   : > { %1191 = vrot.lane.b32.xlu2 %v1102_v3, %s6642_s26  ;;  %1189 = vrot.lane.b32.xlu1 %v1100_v42, %s6642_s26  ;;  %v1111_v3 = vrot.slane %v7009_v57, 1  ;;  %v1113_v42 = vrot.slane %v7006_v34, 1 }
  0xd3   : > { %1187 = vrot.lane.b32.xlu0 %v1098_v8, %s6642_s26  ;;  %v1109_v8 = vrot.slane %v6990_v28, 1 }
  0xd4   : > { %v7337_v61 = vpop.permute.xlu2 %1030  ;;  %v7339_v21 = vpop.permute.xlu1 %1010  ;;  %v1114_v47 = vsel %vm1049_vm1, %v1111_v3, %v1113_v42 }
  0xd5   : > { %11214 = vst [vmem:[#allocation35_spill] sm:$0xff] %v7337_v61  ;;  %v7341_v37 = vpop.permute.xlu0 %1008  ;;  %v1112_v18 = vsel %vm1049_vm1, %v1109_v8, %v1111_v3  ;;  %v1110_v26 = vsel %vm1049_vm1, %v1107_v7, %v1109_v8 }
  0xd6   : > { %11215 = vst [vmem:[#allocation36_spill] sm:$0xff] %v7339_v21 }
  0xd7   : > { %11216 = vst [vmem:[#allocation37_spill] sm:$0xff] %v7341_v37 }
  0xda   : > { %1197 = vrot.lane.b32.xlu2 %v1108_v31, %s6642_s26  ;;  %1195 = vrot.lane.b32.xlu1 %v1106_v59, %s6642_s26  ;;  %v1117_v31 = vrot.slane %v7040_v24, 1  ;;  %v1119_v59 = vrot.slane %v7037_v63, 1 }
  0xdb   : > { %1193 = vrot.lane.b32.xlu0 %v1104_v45, %s6642_s26  ;;  %v1115_v45 = vrot.slane %v7025_v36, 1 }
  0xdc   : > { %v7352_v21 = vpop.permute.xlu2 %1036  ;;  %v7354_v61 = vpop.permute.xlu1 %1016  ;;  %v1120_v7 = vsel %vm1049_vm1, %v1117_v31, %v1119_v59 }
  0xdd   : > { %11217 = vst [vmem:[#allocation38_spill] sm:$0xff] %v7352_v21  ;;  %v7356_v37 = vpop.permute.xlu0 %1014  ;;  %v1118_v3 = vsel %vm1049_vm1, %v1115_v45, %v1117_v31  ;;  %v1116_v8 = vsel %vm1049_vm1, %v1113_v42, %v1115_v45 }
  0xde   : > { %11218 = vst [vmem:[#allocation39_spill] sm:$0xff] %v7354_v61 }
  0xdf   : > { %11219 = vst [vmem:[#allocation40_spill] sm:$0xff] %v7356_v37 }
  0xe2   : > { %1203 = vrot.lane.b32.xlu2 %v1114_v47, %s6642_s26  ;;  %1201 = vrot.lane.b32.xlu1 %v1112_v18, %s6642_s26  ;;  %v1123_v47 = vrot.slane %v7075_v38, 1  ;;  %v1125_v18 = vrot.slane %v7072_v62, 1 }
  0xe3   : > { %1199 = vrot.lane.b32.xlu0 %v1110_v26, %s6642_s26  ;;  %v1121_v26 = vrot.slane %v7056_v13, 1 }
  0xe4   : > { %v7367_v61 = vpop.permute.xlu2 %1042  ;;  %v7369_v37 = vpop.permute.xlu1 %1022  ;;  %v1126_v42 = vsel %vm1049_vm1, %v1123_v47, %v1125_v18 }
  0xe5   : > { %11220 = vst [vmem:[#allocation41_spill] sm:$0xff] %v7367_v61  ;;  %v7371_v21 = vpop.permute.xlu0 %1020  ;;  %v1124_v31 = vsel %vm1049_vm1, %v1121_v26, %v1123_v47  ;;  %v1122_v45 = vsel %vm1049_vm1, %v1119_v59, %v1121_v26 }
  0xe6   : > { %11221 = vst [vmem:[#allocation42_spill] sm:$0xff] %v7369_v37 }
  0xe7   : > { %11222 = vst [vmem:[#allocation43_spill] sm:$0xff] %v7371_v21 }
  0xea   : > { %1209 = vrot.lane.b32.xlu2 %v1120_v7, %s6642_s26  ;;  %1207 = vrot.lane.b32.xlu1 %v1118_v3, %s6642_s26  ;;  %v1129_v7 = vrot.slane %v7106_v35, 1  ;;  %v1131_v3 = vrot.slane %v7103_v19, 1 }
  0xeb   : > { %1205 = vrot.lane.b32.xlu0 %v1116_v8, %s6642_s26  ;;  %v1127_v8 = vrot.slane %v7091_v12, 1 }
  0xec   : > { %v7382_v37 = vpop.permute.xlu1 %1028  ;;  %v7384_v21 = vpop.permute.xlu2 %1143  ;;  %v1132_v59 = vsel %vm1049_vm1, %v1129_v7, %v1131_v3 }
  0xed   : > { %11223 = vst [vmem:[#allocation44_spill] sm:$0xff] %v7382_v37  ;;  %v7386_v61 = vpop.permute.xlu0 %1026  ;;  %v1130_v47 = vsel %vm1049_vm1, %v1127_v8, %v1129_v7  ;;  %v1128_v26 = vsel %vm1049_vm1, %v1125_v18, %v1127_v8 }
  0xee   : > { %11224 = vst [vmem:[#allocation45_spill] sm:$0xff] %v7384_v21  ;;  %v1256_v21 = vrot.slane %v6744_v30, 2 }
  0xef   : > { %11225 = vst [vmem:[#allocation46_spill] sm:$0xff] %v7386_v61 }
  0xf2   : > { %1215 = vrot.lane.b32.xlu2 %v1126_v42, %s6642_s26  ;;  %1213 = vrot.lane.b32.xlu1 %v1124_v31, %s6642_s26  ;;  %v344_v42 = vld [vmem:[%s6696_s24 + $0x8] sm:$0xc]  ;;  %v1135_v31 = vrot.slane %v7149_v60, 1 }
  0xf3   : > { %1211 = vrot.lane.b32.xlu0 %v1122_v45, %s6642_s26  ;;  %v1137_v45 = vrot.slane %v7146_v10, 1 }
  0xf4   : > { %v7397_v37 = vpop.permute.xlu1 %1034  ;;  %v7399_v61 = vpop.permute.xlu2 %1149 }
  0xf5   : > { %11226 = vst [vmem:[#allocation47_spill] sm:$0xff] %v7397_v37  ;;  %v7401_v52 = vpop.permute.xlu0 %1032  ;;  %v1133_v37 = vrot.slane %v7122_v5, 1 }
  0xf6   : > { %11227 = vst [vmem:[#allocation48_spill] sm:$0xff] %v7399_v61  ;;  %v1237_v61 = vunpack.c.l.b16 %v344_v42 }
  0xf7   : > { %11228 = vst [vmem:[#allocation49_spill] sm:$0xff] %v7401_v52  ;;  %v11168_v52 = vunpack.c.h.b16 %v6718_v11  ;;  %v1134_v9 = vsel %vm1049_vm1, %v1131_v3, %v1133_v37 }
  0xfa   : > { %1221 = vrot.lane.b32.xlu2 %v1132_v59, %s6642_s26  ;;  %1219 = vrot.lane.b32.xlu1 %v1130_v47, %s6642_s26  ;;  %v1138_v59 = vsel %vm1049_vm1, %v1135_v31, %v1137_v45  ;;  %v1136_v47 = vsel %vm1049_vm1, %v1133_v37, %v1135_v31  ;;  %v1139_v37 = vrot.slane %v7162_v43, 1 }
  0xfb   : > { %1217 = vrot.lane.b32.xlu0 %v1128_v26, %s6642_s26  ;;  %v7424_v26 = vpack.c.b16 %v11168_v52, %v1237_v61 }
  0xfc   : > { %v7414_v7 = vpop.permute.xlu1 %1040  ;;  %v7416_v18 = vpop.permute.xlu2 %1155 }
  0xfd   : > { %11229 = vst [vmem:[#allocation50_spill] sm:$0xff] %v7414_v7  ;;  %v7418_v8 = vpop.permute.xlu0 %1038  ;;  %v1245_v42 = vrot.slane %v7424_v26, 2 }
  0xfe   : > { %11230 = vst [vmem:[#allocation51_spill] sm:$0xff] %v7416_v18 }
  0xff   : > { %11231 = vst [vmem:[#allocation52_spill] sm:$0xff] %v7418_v8  ;;  %v7432_v8 = vld [vmem:[%s6696_s24 + $0x10] sm:$0xff]  }
 0x100   : > { %11232 = vst [vmem:[#allocation53_spill] sm:$0xff] %v7432_v8  ;;  %v1246_v31 = vrot.slane %v7432_v8, 2 }
 0x102   : > { %1227 = vrot.lane.b32.xlu2 %v1138_v59, %s6642_s26  ;;  %1225 = vrot.lane.b32.xlu1 %v1136_v47, %s6642_s26  ;;  %v1247_v59 = vsel %vm1244_vm2, %v1245_v42, %v1246_v31  ;;  %v7448_v47 = vld [vmem:[%s6696_s24 + $0x20] sm:$0xff]  }
 0x103   : > { %1223 = vrot.lane.b32.xlu0 %v1134_v9, %s6642_s26  ;;  %v1140_v9 = vsel %vm1049_vm1, %v1137_v45, %v1139_v37  ;;  %11236 = vst [vmem:[#allocation57_spill] sm:$0xff] %v7448_v47  ;;  %v1250_v52 = vrot.slane %v7448_v47, 2 }
 0x104   : > { %v7435_v18 = vpop.permute.xlu2 %1161  ;;  %v7437_v61 = vpop.permute.xlu1 %1141 }
 0x105   : > { %11233 = vst [vmem:[#allocation54_spill] sm:$0xff] %v7435_v18  ;;  %v7440_v3 = vpop.permute.xlu0 %1044  ;;  %v7452_v18 = vld [vmem:[%s6696_s24 + $0x28] sm:$0xff]  }
 0x106   : > { %11234 = vst [vmem:[#allocation55_spill] sm:$0xff] %v7437_v61  ;;  %v1252_v43 = vrot.slane %v7452_v18, 2 }
 0x107   : > { %11235 = vst [vmem:[#allocation56_spill] sm:$0xff] %v7440_v3  ;;  %v7456_v3 = vld [vmem:[%s6696_s24 + $0x18] sm:$0xff]  }
 0x108   : > { %11237 = vst [vmem:[#allocation58_spill] sm:$0xff] %v7452_v18  ;;  %v1248_v45 = vrot.slane %v7456_v3, 2  ;;  %v11289_v18 = vshrl.u32 %v6705_v2, 16 }
 0x109   : > { %11238 = vst [vmem:[#allocation59_spill] sm:$0xff] %v7456_v3 }
 0x10a   : > { %1336 = vrot.lane.b32.xlu2 %v1247_v59, %s6643_s27  ;;  %1231 = vrot.lane.b32.xlu1 %v1139_v37, %s6642_s26  ;;  %v1251_v7 = vsel %vm1244_vm2, %v1248_v45, %v1250_v52  ;;  %v1249_v15 = vsel %vm1244_vm2, %v1246_v31, %v1248_v45  ;;  %v1262_v45 = vrot.slane %v6778_v51, 2  ;;  %v1440_v3 = vrot.slane %v11289_v18, 2 }
 0x10b   : > { %1229 = vrot.lane.b32.xlu0 %v1140_v9, %s6642_s26  ;;  %v1253_v9 = vsel %vm1244_vm2, %v1250_v52, %v1252_v43 }
 0x10c   : > { %v7459_v42 = vpop.permute.xlu2 %1167  ;;  %v7461_v59 = vpop.permute.xlu1 %1147 }
 0x10d   : > { %11239 = vst [vmem:[#allocation60_spill] sm:$0xff] %v7459_v42  ;;  %v7463_v37 = vpop.permute.xlu0 %1145  ;;  %v1258_v42 = vrot.slane %v6741_v29, 2 }
 0x10e   : > { %11240 = vst [vmem:[#allocation61_spill] sm:$0xff] %v7461_v59  ;;  %v1254_v59 = vrot.slane %v7474_v22, 2 }
 0x10f   : > { %11241 = vst [vmem:[#allocation62_spill] sm:$0xff] %v7463_v37  ;;  %v1259_v31 = vsel %vm1244_vm2, %v1256_v21, %v1258_v42 }
 0x112   : > { %1342 = vrot.lane.b32.xlu2 %v1253_v9, %s6643_s27  ;;  %1340 = vrot.lane.b32.xlu1 %v1251_v7, %s6643_s27  ;;  %v1257_v7 = vsel %vm1244_vm2, %v1254_v59, %v1256_v21  ;;  %v1264_v9 = vrot.slane %v6773_v48, 2 }
 0x113   : > { %1338 = vrot.lane.b32.xlu0 %v1249_v15, %s6643_s27  ;;  %v1255_v15 = vsel %vm1244_vm2, %v1252_v43, %v1254_v59 }
 0x114   : > { %v7477_v37 = vpop.permute.xlu2 %1173  ;;  %v7479_v61 = vpop.permute.xlu1 %1153  ;;  %v1265_v21 = vsel %vm1244_vm2, %v1262_v45, %v1264_v9 }
 0x115   : > { %11243 = vst [vmem:[#allocation64_spill] sm:$0xff] %v7477_v37  ;;  %v7481_v52 = vpop.permute.xlu0 %1151 }
 0x116   : > { %11244 = vst [vmem:[#allocation65_spill] sm:$0xff] %v7479_v61  ;;  %v1260_v61 = vrot.slane %v6761_v40, 2 }
 0x117   : > { %11245 = vst [vmem:[#allocation66_spill] sm:$0xff] %v7481_v52 }
 0x118   : > { %v1263_v43 = vsel %vm1244_vm2, %v1260_v61, %v1262_v45  ;;  %v1261_v59 = vsel %vm1244_vm2, %v1258_v42, %v1260_v61 }
 0x11a   : > { %1348 = vrot.lane.b32.xlu2 %v1259_v31, %s6643_s27  ;;  %1346 = vrot.lane.b32.xlu1 %v1257_v7, %s6643_s27  ;;  %v1268_v31 = vrot.slane %v6811_v17, 2  ;;  %v1270_v7 = vrot.slane %v6808_v16, 2 }
 0x11b   : > { %1344 = vrot.lane.b32.xlu0 %v1255_v15, %s6643_s27  ;;  %v1266_v15 = vrot.slane %v6791_v56, 2 }
 0x11c   : > { %v7492_v37 = vpop.permute.xlu2 %1179  ;;  %v7494_v52 = vpop.permute.xlu1 %1159  ;;  %v1271_v61 = vsel %vm1244_vm2, %v1268_v31, %v1270_v7 }
 0x11d   : > { %11246 = vst [vmem:[#allocation67_spill] sm:$0xff] %v7492_v37  ;;  %v7496_v4 = vpop.permute.xlu0 %1157  ;;  %v1269_v42 = vsel %vm1244_vm2, %v1266_v15, %v1268_v31  ;;  %v1267_v45 = vsel %vm1244_vm2, %v1264_v9, %v1266_v15 }
 0x11e   : > { %11247 = vst [vmem:[#allocation68_spill] sm:$0xff] %v7494_v52 }
 0x11f   : > { %11248 = vst [vmem:[#allocation69_spill] sm:$0xff] %v7496_v4 }
 0x122   : > { %1354 = vrot.lane.b32.xlu2 %v1265_v21, %s6643_s27  ;;  %1352 = vrot.lane.b32.xlu1 %v1263_v43, %s6643_s27  ;;  %v1274_v21 = vrot.slane %v6844_v44, 2  ;;  %v1276_v43 = vrot.slane %v6839_v39, 2 }
 0x123   : > { %1350 = vrot.lane.b32.xlu0 %v1261_v59, %s6643_s27  ;;  %v1272_v59 = vrot.slane %v6823_v23, 2 }
 0x124   : > { %v7507_v52 = vpop.permute.xlu2 %1185  ;;  %v7509_v37 = vpop.permute.xlu1 %1165  ;;  %v1277_v9 = vsel %vm1244_vm2, %v1274_v21, %v1276_v43 }
 0x125   : > { %11249 = vst [vmem:[#allocation70_spill] sm:$0xff] %v7507_v52  ;;  %v7511_v4 = vpop.permute.xlu0 %1163  ;;  %v1275_v31 = vsel %vm1244_vm2, %v1272_v59, %v1274_v21  ;;  %v1273_v15 = vsel %vm1244_vm2, %v1270_v7, %v1272_v59 }
 0x126   : > { %11250 = vst [vmem:[#allocation71_spill] sm:$0xff] %v7509_v37 }
 0x127   : > { %11251 = vst [vmem:[#allocation72_spill] sm:$0xff] %v7511_v4 }
 0x12a   : > { %1360 = vrot.lane.b32.xlu2 %v1271_v61, %s6643_s27  ;;  %1358 = vrot.lane.b32.xlu1 %v1269_v42, %s6643_s27  ;;  %v1280_v61 = vrot.slane %v6877_v41, 2  ;;  %v1282_v42 = vrot.slane %v6874_v33, 2 }
 0x12b   : > { %1356 = vrot.lane.b32.xlu0 %v1267_v45, %s6643_s27  ;;  %v1278_v45 = vrot.slane %v6857_v55, 2 }
 0x12c   : > { %v7522_v52 = vpop.permute.xlu2 %1191  ;;  %v7524_v4 = vpop.permute.xlu1 %1171  ;;  %v1283_v7 = vsel %vm1244_vm2, %v1280_v61, %v1282_v42 }
 0x12d   : > { %11252 = vst [vmem:[#allocation73_spill] sm:$0xff] %v7522_v52  ;;  %v7526_v37 = vpop.permute.xlu0 %1169  ;;  %v1281_v21 = vsel %vm1244_vm2, %v1278_v45, %v1280_v61  ;;  %v1279_v59 = vsel %vm1244_vm2, %v1276_v43, %v1278_v45 }
 0x12e   : > { %11253 = vst [vmem:[#allocation74_spill] sm:$0xff] %v7524_v4 }
 0x12f   : > { %11254 = vst [vmem:[#allocation75_spill] sm:$0xff] %v7526_v37 }
 0x132   : > { %1366 = vrot.lane.b32.xlu2 %v1277_v9, %s6643_s27  ;;  %1364 = vrot.lane.b32.xlu1 %v1275_v31, %s6643_s27  ;;  %v1286_v9 = vrot.slane %v6908_v53, 2  ;;  %v1288_v31 = vrot.slane %v6905_v27, 2 }
 0x133   : > { %1362 = vrot.lane.b32.xlu0 %v1273_v15, %s6643_s27  ;;  %v1284_v15 = vrot.slane %v6889_v54, 2 }
 0x134   : > { %v7537_v52 = vpop.permute.xlu2 %1197  ;;  %v7539_v4 = vpop.permute.xlu1 %1177  ;;  %v1289_v43 = vsel %vm1244_vm2, %v1286_v9, %v1288_v31 }
 0x135   : > { %11255 = vst [vmem:[#allocation76_spill] sm:$0xff] %v7537_v52  ;;  %v7541_v37 = vpop.permute.xlu0 %1175  ;;  %v1287_v61 = vsel %vm1244_vm2, %v1284_v15, %v1286_v9  ;;  %v1285_v45 = vsel %vm1244_vm2, %v1282_v42, %v1284_v15 }
 0x136   : > { %11256 = vst [vmem:[#allocation77_spill] sm:$0xff] %v7539_v4 }
 0x137   : > { %11257 = vst [vmem:[#allocation78_spill] sm:$0xff] %v7541_v37 }
 0x13a   : > { %1372 = vrot.lane.b32.xlu2 %v1283_v7, %s6643_s27  ;;  %1370 = vrot.lane.b32.xlu1 %v1281_v21, %s6643_s27  ;;  %v1292_v7 = vrot.slane %v6943_v25, 2  ;;  %v1294_v21 = vrot.slane %v6940_v32, 2 }
 0x13b   : > { %1368 = vrot.lane.b32.xlu0 %v1279_v59, %s6643_s27  ;;  %v1290_v59 = vrot.slane %v6924_v46, 2 }
 0x13c   : > { %v7552_v4 = vpop.permute.xlu2 %1203  ;;  %v7554_v52 = vpop.permute.xlu1 %1183  ;;  %v1295_v42 = vsel %vm1244_vm2, %v1292_v7, %v1294_v21 }
 0x13d   : > { %11258 = vst [vmem:[#allocation79_spill] sm:$0xff] %v7552_v4  ;;  %v7556_v37 = vpop.permute.xlu0 %1181  ;;  %v1293_v9 = vsel %vm1244_vm2, %v1290_v59, %v1292_v7  ;;  %v1291_v15 = vsel %vm1244_vm2, %v1288_v31, %v1290_v59 }
 0x13e   : > { %11259 = vst [vmem:[#allocation80_spill] sm:$0xff] %v7554_v52 }
 0x13f   : > { %11260 = vst [vmem:[#allocation81_spill] sm:$0xff] %v7556_v37 }
 0x142   : > { %1378 = vrot.lane.b32.xlu2 %v1289_v43, %s6643_s27  ;;  %1376 = vrot.lane.b32.xlu1 %v1287_v61, %s6643_s27  ;;  %v1298_v43 = vrot.slane %v6974_v49, 2  ;;  %v1300_v61 = vrot.slane %v6971_v20, 2 }
 0x143   : > { %1374 = vrot.lane.b32.xlu0 %v1285_v45, %s6643_s27  ;;  %v1296_v45 = vrot.slane %v6959_v58, 2 }
 0x144   : > { %v7567_v4 = vpop.permute.xlu2 %1209  ;;  %v7569_v52 = vpop.permute.xlu1 %1189  ;;  %v1301_v31 = vsel %vm1244_vm2, %v1298_v43, %v1300_v61 }
 0x145   : > { %11261 = vst [vmem:[#allocation82_spill] sm:$0xff] %v7567_v4  ;;  %v7571_v37 = vpop.permute.xlu0 %1187  ;;  %v1299_v7 = vsel %vm1244_vm2, %v1296_v45, %v1298_v43  ;;  %v1297_v59 = vsel %vm1244_vm2, %v1294_v21, %v1296_v45 }
 0x146   : > { %11262 = vst [vmem:[#allocation83_spill] sm:$0xff] %v7569_v52 }
 0x147   : > { %11263 = vst [vmem:[#allocation84_spill] sm:$0xff] %v7571_v37 }
 0x14a   : > { %1384 = vrot.lane.b32.xlu2 %v1295_v42, %s6643_s27  ;;  %1382 = vrot.lane.b32.xlu1 %v1293_v9, %s6643_s27  ;;  %v1304_v42 = vrot.slane %v7009_v57, 2  ;;  %v1306_v9 = vrot.slane %v7006_v34, 2 }
 0x14b   : > { %1380 = vrot.lane.b32.xlu0 %v1291_v15, %s6643_s27  ;;  %v1302_v15 = vrot.slane %v6990_v28, 2 }
 0x14c   : > { %v7582_v4 = vpop.permute.xlu2 %1215  ;;  %v7584_v37 = vpop.permute.xlu1 %1195  ;;  %v1307_v21 = vsel %vm1244_vm2, %v1304_v42, %v1306_v9 }
 0x14d   : > { %11264 = vst [vmem:[#allocation85_spill] sm:$0xff] %v7582_v4  ;;  %v7586_v52 = vpop.permute.xlu0 %1193  ;;  %v1305_v43 = vsel %vm1244_vm2, %v1302_v15, %v1304_v42  ;;  %v1303_v45 = vsel %vm1244_vm2, %v1300_v61, %v1302_v15 }
 0x14e   : > { %11265 = vst [vmem:[#allocation86_spill] sm:$0xff] %v7584_v37 }
 0x14f   : > { %11266 = vst [vmem:[#allocation87_spill] sm:$0xff] %v7586_v52 }
 0x152   : > { %1390 = vrot.lane.b32.xlu2 %v1301_v31, %s6643_s27  ;;  %1388 = vrot.lane.b32.xlu1 %v1299_v7, %s6643_s27  ;;  %v1310_v31 = vrot.slane %v7040_v24, 2  ;;  %v1312_v7 = vrot.slane %v7037_v63, 2 }
 0x153   : > { %1386 = vrot.lane.b32.xlu0 %v1297_v59, %s6643_s27  ;;  %v1308_v59 = vrot.slane %v7025_v36, 2 }
 0x154   : > { %v7597_v37 = vpop.permute.xlu2 %1221  ;;  %v7599_v4 = vpop.permute.xlu1 %1201  ;;  %v1313_v61 = vsel %vm1244_vm2, %v1310_v31, %v1312_v7 }
 0x155   : > { %11267 = vst [vmem:[#allocation88_spill] sm:$0xff] %v7597_v37  ;;  %v7601_v52 = vpop.permute.xlu0 %1199  ;;  %v1311_v42 = vsel %vm1244_vm2, %v1308_v59, %v1310_v31  ;;  %v1309_v15 = vsel %vm1244_vm2, %v1306_v9, %v1308_v59 }
 0x156   : > { %11268 = vst [vmem:[#allocation89_spill] sm:$0xff] %v7599_v4 }
 0x157   : > { %11269 = vst [vmem:[#allocation90_spill] sm:$0xff] %v7601_v52 }
 0x15a   : > { %1396 = vrot.lane.b32.xlu2 %v1307_v21, %s6643_s27  ;;  %1394 = vrot.lane.b32.xlu1 %v1305_v43, %s6643_s27  ;;  %v1316_v21 = vrot.slane %v7075_v38, 2  ;;  %v1318_v43 = vrot.slane %v7072_v62, 2 }
 0x15b   : > { %1392 = vrot.lane.b32.xlu0 %v1303_v45, %s6643_s27  ;;  %v1314_v45 = vrot.slane %v7056_v13, 2 }
 0x15c   : > { %v7612_v4 = vpop.permute.xlu2 %1227  ;;  %v7614_v37 = vpop.permute.xlu1 %1207  ;;  %v1319_v9 = vsel %vm1244_vm2, %v1316_v21, %v1318_v43 }
 0x15d   : > { %11270 = vst [vmem:[#allocation91_spill] sm:$0xff] %v7612_v4  ;;  %v7616_v52 = vpop.permute.xlu0 %1205  ;;  %v1317_v59 = vsel %vm1244_vm2, %v1314_v45, %v1316_v21 }
 0x15e   : > { %11271 = vst [vmem:[#allocation92_spill] sm:$0xff] %v7614_v37 }
 0x15f   : > { %11272 = vst [vmem:[#allocation93_spill] sm:$0xff] %v7616_v52 }
 0x162   : > { %1402 = vrot.lane.b32.xlu2 %v1313_v61, %s6643_s27  ;;  %1400 = vrot.lane.b32.xlu1 %v1311_v42, %s6643_s27  ;;  %v1315_v61 = vsel %vm1244_vm2, %v1312_v7, %v1314_v45  ;;  %v1322_v42 = vrot.slane %v7106_v35, 2  ;;  %v346_v45 = vld [vmem:[%s6696_s24 + $0x170] sm:$0xf] }
 0x163   : > { %1398 = vrot.lane.b32.xlu0 %v1309_v15, %s6643_s27  ;;  %v1324_v15 = vrot.slane %v7103_v19, 2 }
 0x164   : > { %v7627_v37 = vpop.permute.xlu2 %1336  ;;  %v7629_v52 = vpop.permute.xlu1 %1213 }
 0x165   : > { %11273 = vst [vmem:[#allocation94_spill] sm:$0xff] %v7627_v37  ;;  %v7631_v31 = vpop.permute.xlu0 %1211  ;;  %v1325_v7 = vsel %vm1244_vm2, %v1322_v42, %v1324_v15 }
 0x166   : > { %11274 = vst [vmem:[#allocation95_spill] sm:$0xff] %v7629_v52  ;;  %v1320_v52 = vrot.slane %v7091_v12, 2 }
 0x167   : > { %11275 = vst [vmem:[#allocation96_spill] sm:$0xff] %v7631_v31 }
 0x168   : > { %v1323_v21 = vsel %vm1244_vm2, %v1320_v52, %v1322_v42 }
 0x16a   : > { %1408 = vrot.lane.b32.xlu2 %v1319_v9, %s6643_s27  ;;  %1406 = vrot.lane.b32.xlu1 %v1317_v59, %s6643_s27  ;;  %v347_v9 = vld [vmem:[%s6696_s24 + $0x174] sm:$0x1]  ;;  %v1321_v59 = vsel %vm1244_vm2, %v1318_v43, %v1320_v52 }
 0x16b   : > { %1404 = vrot.lane.b32.xlu0 %v1315_v61, %s6643_s27  ;;  %v7655_v61 = vunpack.c.l.b16 %v346_v45  ;;  %v1240_v47 = vunpack.c.l.b16 %v347_v9 }
 0x16c   : > { %v7642_v31 = vpop.permute.xlu2 %1342  ;;  %v7644_v4 = vpop.permute.xlu1 %1219 }
 0x16d   : > { %11276 = vst [vmem:[#allocation97_spill] sm:$0xff] %v7642_v31  ;;  %v7646_v37 = vpop.permute.xlu0 %1217  ;;  %v1326_v31 = vrot.slane %v7122_v5, 2  ;;  %v1243_v43 = vpack.c.b16 %v1240_v47, %v7655_v61  ;;  %v1433_v47 = vshrl.u32 %v7424_v26, 16 }
 0x16e   : > { %11277 = vst [vmem:[#allocation98_spill] sm:$0xff] %v7644_v4  ;;  %v1328_v4 = vrot.slane %v7149_v60, 2 }
 0x16f   : > { %11278 = vst [vmem:[#allocation99_spill] sm:$0xff] %v7646_v37  ;;  %v1330_v37 = vrot.slane %v7146_v10, 2  ;;  %v1327_v45 = vsel %vm1244_vm2, %v1324_v15, %v1326_v31  ;;  %v1334_v9 = vrot.slane %v1243_v43, 2  ;;  %v11285_v15 = vshrl.u32 %v6711_v6, 16 }
 0x170   : > { %v11286_v43 = vshll.u32 %v6711_v6, 16  ;;  %v1435_v11 = vrot.slane %v1433_v47, 2  ;;  %v11296_v47 = vshrl.u32 %v6744_v30, 16 }
 0x172   : > { %1414 = vrot.lane.b32.xlu2 %v1325_v7, %s6643_s27  ;;  %1412 = vrot.lane.b32.xlu1 %v1323_v21, %s6643_s27  ;;  %v1331_v7 = vsel %vm1244_vm2, %v1328_v4, %v1330_v37  ;;  %v1329_v21 = vsel %vm1244_vm2, %v1326_v31, %v1328_v4 }
 0x173   : > { %1410 = vrot.lane.b32.xlu0 %v1321_v59, %s6643_s27  ;;  %v1332_v59 = vrot.slane %v7129_v50, 2  ;;  %v1445_v50 = vrot.slane %v11286_v43, 3 }
 0x174   : > { %v7661_v42 = vpop.permute.xlu2 %1348  ;;  %v7663_v22 = vpop.permute.xlu1 %1225 }
 0x175   : > { %11279 = vst [vmem:[#allocation100_spill] sm:$0xff] %v7661_v42  ;;  %v7665_v52 = vpop.permute.xlu0 %1223  ;;  %v1436_v42 = vshll.u32 %v7424_v26, 16  ;;  %v1335_v31 = vsel %vm1244_vm2, %v1332_v59, %v1334_v9  ;;  %v11290_v26 = vshll.u32 %v6705_v2, 16  ;;  %v1333_v8 = vsel %vm1244_vm2, %v1330_v37, %v1332_v59 }
 0x176   : > { %11280 = vst [vmem:[#allocation101_spill] sm:$0xff] %v7663_v22  ;;  %v11294_v37 = vshrl.u32 %v6721_v14, 16 }
 0x177   : > { %11281 = vst [vmem:[#allocation102_spill] sm:$0xff] %v7665_v52  ;;  %v1438_v10 = vrot.slane %v1436_v42, 3 }
 0x178   : > { %v1456_v42 = vrot.slane %v11294_v37, 2 }
 0x179   : > { %v1439_v2 = vor.u32 %v1438_v10, %v1435_v11 }
 0x17a   : > { %1420 = vrot.lane.b32.xlu2 %v1331_v7, %s6643_s27  ;;  %1418 = vrot.lane.b32.xlu1 %v1329_v21, %s6643_s27  ;;  %v1444_v7 = vrot.slane %v11285_v15, 2  ;;  %v11287_v21 = vshrl.u32 %v6699_v0, 16 }
 0x17b   : > { %1416 = vrot.lane.b32.xlu0 %v1327_v45, %s6643_s27 }
 0x17c   : > { %v7675_v22 = vpop.permute.xlu2 %1354  ;;  %v7677_v52 = vpop.permute.xlu1 %1231  ;;  %v1448_v45 = vrot.slane %v11287_v21, 2  ;;  %v1446_v6 = vor.u32 %v1445_v50, %v1444_v7  ;;  %v11299_v7 = vshll.u32 %v6702_v1, 16 }
 0x17d   : > { %11282 = vst [vmem:[#allocation103_spill] sm:$0xff] %v7675_v22  ;;  %v7681_v4 = vpop.permute.xlu0 %1229  ;;  %v11288_v22 = vshll.u32 %v6699_v0, 16 }
 0x17e   : > { %11283 = vst [vmem:[#allocation104_spill] sm:$0xff] %v7677_v52  ;;  %v1453_v10 = vrot.slane %v11299_v7, 3  ;;  %v11308_v7 = vshll.u32 %v6741_v29, 16 }
 0x17f   : > { %11284 = vst [vmem:[#allocation105_spill] sm:$0xff] %v7681_v4  ;;  %v1449_v52 = vrot.slane %v11288_v22, 3  ;;  %v1441_v4 = vrot.slane %v11290_v26, 3 }
 0x181   : > { %v1450_v15 = vor.u32 %v1449_v52, %v1448_v45  ;;  %v1442_v0 = vor.u32 %v1441_v4, %v1440_v3  ;;  %v11297_v52 = vshll.u32 %v6744_v30, 16  ;;  %v11298_v4 = vshrl.u32 %v6702_v1, 16 }
 0x182   : > { %1426 = vrot.lane.b32.xlu2 %v1334_v9, %s6643_s27  ;;  %1424 = vrot.lane.b32.xlu1 %v1335_v31, %s6643_s27  ;;  %v11295_v9 = vshll.u32 %v6721_v14, 16 }
 0x183   : > { %1422 = vrot.lane.b32.xlu0 %v1333_v8, %s6643_s27  ;;  %v1460_v8 = vrot.slane %v11296_v47, 2  ;;  %v1461_v3 = vrot.slane %v11297_v52, 3  ;;  %v1452_v31 = vrot.slane %v11298_v4, 2  ;;  %v1451_v11 = vsel %vm1431_vm3, %v1446_v6, %v1450_v15 }
 0x184   : > { %v7700_v22 = vpop.permute.xlu2 %1360  ;;  %v7702_v43 = vpop.permute.xlu1 %1340  ;;  %v1457_v59 = vrot.slane %v11295_v9, 3  ;;  %v1447_v50 = vsel %vm1431_vm3, %v1442_v0, %v1446_v6  ;;  %v1443_v21 = vsel %vm1431_vm3, %v1439_v2, %v1442_v0  ;;  %v11303_v2 = vshrl.u32 %v6761_v40, 16 }
 0x185   : > { %11291 = vst [vmem:[#allocation106_spill] sm:$0xff] %v7700_v22  ;;  %v7704_v18 = vpop.permute.xlu0 %1338  ;;  %v1462_v30 = vor.u32 %v1461_v3, %v1460_v8  ;;  %v1454_v45 = vor.u32 %v1453_v10, %v1452_v31  ;;  %v11304_v47 = vshll.u32 %v6761_v40, 16  ;;  %v11306_v52 = vshll.u32 %v6778_v51, 16 }
 0x186   : > { %11292 = vst [vmem:[#allocation107_spill] sm:$0xff] %v7702_v43  ;;  %v1458_v14 = vor.u32 %v1457_v59, %v1456_v42  ;;  %v1468_v9 = vrot.slane %v11303_v2, 2  ;;  %v11305_v59 = vshrl.u32 %v6778_v51, 16  ;;  %v11307_v4 = vshrl.u32 %v6741_v29, 16  ;;  %v8608_v43 = vld [vmem:[%s6696_s24 + $0x174] sm:$0xff] }
 0x187   : > { %11293 = vst [vmem:[#allocation108_spill] sm:$0xff] %v7704_v18  ;;  %v1469_v42 = vrot.slane %v11304_v47, 3  ;;  %v1473_v3 = vrot.slane %v11306_v52, 3  ;;  %v1465_v10 = vrot.slane %v11308_v7, 3  ;;  %v11312_v29 = vshrl.u32 %v6791_v56, 16 }
 0x188   : > { %v1463_v6 = vsel %vm1431_vm3, %v1458_v14, %v1462_v30  ;;  %v1459_v0 = vsel %vm1431_vm3, %v1454_v45, %v1458_v14  ;;  %v1472_v8 = vrot.slane %v11305_v59, 2  ;;  %v1464_v31 = vrot.slane %v11307_v4, 2 }
 0x189   : > { %v1470_v40 = vor.u32 %v1469_v42, %v1468_v9  ;;  %v1480_v47 = vrot.slane %v11312_v29, 2  ;;  %v11315_v59 = vshll.u32 %v6811_v17, 16  ;;  %v11316_v42 = vshrl.u32 %v6773_v48, 16 }
 0x18a   : > { %1634 = vrot.lane.b32.xlu2 %v1451_v11, %s6644_s28  ;;  %1632 = vrot.lane.b32.xlu1 %v1447_v50, %s6644_s28  ;;  %v1455_v11 = vsel %vm1431_vm3, %v1450_v15, %v1454_v45  ;;  %v1474_v50 = vor.u32 %v1473_v3, %v1472_v8  ;;  %v11313_v15 = vshll.u32 %v6791_v56, 16  ;;  %v11317_v52 = vshll.u32 %v6773_v48, 16 }
 0x18b   : > { %1630 = vrot.lane.b32.xlu0 %v1443_v21, %s6644_s28  ;;  %v1466_v21 = vor.u32 %v1465_v10, %v1464_v31  ;;  %v1485_v9 = vrot.slane %v11315_v59, 3  ;;  %v1476_v8 = vrot.slane %v11316_v42, 2  ;;  %v11324_v59 = vshll.u32 %v6844_v44, 16 }
 0x18c   : > { %v7724_v26 = vpop.permute.xlu2 %1366  ;;  %v7726_v1 = vpop.permute.xlu1 %1346  ;;  %v1481_v45 = vrot.slane %v11313_v15, 3  ;;  %v1477_v3 = vrot.slane %v11317_v52, 3  ;;  %v1475_v4 = vsel %vm1431_vm3, %v1470_v40, %v1474_v50  ;;  %v11325_v42 = vshrl.u32 %v6808_v16, 16 }
 0x18d   : > { %11300 = vst [vmem:[#allocation109_spill] sm:$0xff] %v7724_v26  ;;  %v7728_v37 = vpop.permute.xlu0 %1344  ;;  %v1471_v31 = vsel %vm1431_vm3, %v1466_v21, %v1470_v40  ;;  %v1467_v7 = vsel %vm1431_vm3, %v1462_v30, %v1466_v21  ;;  %v11321_v30 = vshrl.u32 %v6823_v23, 16  ;;  %v11326_v52 = vshll.u32 %v6808_v16, 16  ;;  %v8518_v26 = vld [vmem:[%s6696_s24 + $0x11c] sm:$0xff]  }
 0x18e   : > { %11301 = vst [vmem:[#allocation110_spill] sm:$0xff] %v7726_v1  ;;  %v1482_v56 = vor.u32 %v1481_v45, %v1480_v47  ;;  %v11323_v45 = vshrl.u32 %v6844_v44, 16  ;;  %v11330_v16 = vshrl.u32 %v6857_v55, 16  ;;  %v8503_v1 = vld [vmem:[%s6696_s24 + $0xf4] sm:$0xff]  }
 0x18f   : > { %11302 = vst [vmem:[#allocation111_spill] sm:$0xff] %v7728_v37  ;;  %v1492_v21 = vrot.slane %v11321_v30, 2  ;;  %v8566_v37 = vld [vmem:[%s6696_s24 + $0x13c] sm:$0xff]  }
 0x192   : > { %1640 = vrot.lane.b32.xlu2 %v1463_v6, %s6644_s28  ;;  %1638 = vrot.lane.b32.xlu1 %v1459_v0, %s6644_s28  ;;  %v11314_v6 = vshrl.u32 %v6811_v17, 16  ;;  %v1478_v17 = vor.u32 %v1477_v3, %v1476_v8  ;;  %v1488_v8 = vrot.slane %v11325_v42, 2  ;;  %v1489_v3 = vrot.slane %v11326_v52, 3 }
 0x193   : > { %1636 = vrot.lane.b32.xlu0 %v1455_v11, %s6644_s28 }
 0x194   : > { %v7748_v14 = vpop.permute.xlu2 %1372  ;;  %v7750_v51 = vpop.permute.xlu1 %1352  ;;  %v1484_v0 = vrot.slane %v11314_v6, 2  ;;  %v1483_v40 = vsel %vm1431_vm3, %v1478_v17, %v1482_v56  ;;  %v11322_v6 = vshll.u32 %v6823_v23, 16 }
 0x195   : > { %11309 = vst [vmem:[#allocation112_spill] sm:$0xff] %v7748_v14  ;;  %v7752_v2 = vpop.permute.xlu0 %1350  ;;  %v8281_v14 = vld [vmem:[%s6696_s24 + $0x18] sm:$0xff]  }
 0x196   : > { %11310 = vst [vmem:[#allocation113_spill] sm:$0xff] %v7750_v51  ;;  %v1486_v10 = vor.u32 %v1485_v9, %v1484_v0  ;;  %v1493_v47 = vrot.slane %v11322_v6, 3  ;;  %v1496_v0 = vrot.slane %v11323_v45, 2  ;;  %v1497_v9 = vrot.slane %v11324_v59, 3 }
 0x197   : > { %11311 = vst [vmem:[#allocation114_spill] sm:$0xff] %v7752_v2  ;;  %v1504_v6 = vrot.slane %v11330_v16, 2  ;;  %v11333_v45 = vshll.u32 %v6877_v41, 16  ;;  %v11335_v59 = vshll.u32 %v6839_v39, 16  ;;  %v8398_v2 = vld [vmem:[%s6696_s24 + $0x7c] sm:$0xff]  }
 0x198   : > { %v1487_v15 = vsel %vm1431_vm3, %v1482_v56, %v1486_v10  ;;  %v1494_v23 = vor.u32 %v1493_v47, %v1492_v21  ;;  %v11334_v47 = vshrl.u32 %v6839_v39, 16  ;;  %11469 = vst [vmem:[#allocation189_spill] sm:$0xff] %v8281_v14 }
 0x199   : > { %v1509_v21 = vrot.slane %v11333_v45, 3  ;;  %v11342_v45 = vshll.u32 %v6908_v53, 16 }
 0x19a   : > { %1646 = vrot.lane.b32.xlu2 %v1475_v4, %s6644_s28  ;;  %1644 = vrot.lane.b32.xlu1 %v1471_v31, %s6644_s28  ;;  %v1479_v4 = vsel %vm1431_vm3, %v1474_v50, %v1478_v17  ;;  %v1498_v31 = vor.u32 %v1497_v9, %v1496_v0  ;;  %v11331_v50 = vshll.u32 %v6857_v55, 16  ;;  %v1500_v0 = vrot.slane %v11334_v47, 2 }
 0x19b   : > { %1642 = vrot.lane.b32.xlu0 %v1467_v7, %s6644_s28  ;;  %v1490_v7 = vor.u32 %v1489_v3, %v1488_v8  ;;  %v1501_v9 = vrot.slane %v11335_v59, 3  ;;  %v11343_v47 = vshrl.u32 %v6874_v33, 16  ;;  %v11344_v59 = vshll.u32 %v6874_v33, 16 }
 0x19c   : > { %v7772_v11 = vpop.permute.xlu2 %1378  ;;  %v7774_v29 = vpop.permute.xlu1 %1358  ;;  %v1505_v17 = vrot.slane %v11331_v50, 3  ;;  %v1499_v42 = vsel %vm1431_vm3, %v1494_v23, %v1498_v31  ;;  %v11348_v33 = vshrl.u32 %v6924_v46, 16 }
 0x19d   : > { %11318 = vst [vmem:[#allocation115_spill] sm:$0xff] %v7772_v11  ;;  %v7776_v48 = vpop.permute.xlu0 %1356  ;;  %v1495_v8 = vsel %vm1431_vm3, %v1490_v7, %v1494_v23  ;;  %v1491_v52 = vsel %vm1431_vm3, %v1486_v10, %v1490_v7  ;;  %v11339_v10 = vshrl.u32 %v6889_v54, 16 }
 0x19e   : > { %11319 = vst [vmem:[#allocation116_spill] sm:$0xff] %v7774_v29  ;;  %v1506_v55 = vor.u32 %v1505_v17, %v1504_v6  ;;  %v11341_v17 = vshrl.u32 %v6908_v53, 16 }
 0x19f   : > { %11320 = vst [vmem:[#allocation117_spill] sm:$0xff] %v7776_v48  ;;  %v1516_v7 = vrot.slane %v11339_v10, 2 }
 0x1a2   : > { %1652 = vrot.lane.b32.xlu2 %v1487_v15, %s6644_s28  ;;  %1650 = vrot.lane.b32.xlu1 %v1483_v40, %s6644_s28  ;;  %v11332_v15 = vshrl.u32 %v6877_v41, 16  ;;  %v1502_v41 = vor.u32 %v1501_v9, %v1500_v0  ;;  %v1512_v0 = vrot.slane %v11343_v47, 2  ;;  %v1513_v9 = vrot.slane %v11344_v59, 3 }
 0x1a3   : > { %1648 = vrot.lane.b32.xlu0 %v1479_v4, %s6644_s28 }
 0x1a4   : > { %v7796_v56 = vpop.permute.xlu2 %1384  ;;  %v7798_v44 = vpop.permute.xlu1 %1364  ;;  %v1508_v40 = vrot.slane %v11332_v15, 2  ;;  %v1507_v23 = vsel %vm1431_vm3, %v1502_v41, %v1506_v55  ;;  %v11340_v15 = vshll.u32 %v6889_v54, 16 }
 0x1a5   : > { %11327 = vst [vmem:[#allocation118_spill] sm:$0xff] %v7796_v56  ;;  %v7800_v30 = vpop.permute.xlu0 %1362  ;;  %v8563_v56 = vld [vmem:[%s6696_s24 + $0x144] sm:$0xff]  }
 0x1a6   : > { %11328 = vst [vmem:[#allocation119_spill] sm:$0xff] %v7798_v44  ;;  %v1510_v3 = vor.u32 %v1509_v21, %v1508_v40  ;;  %v1517_v6 = vrot.slane %v11340_v15, 3  ;;  %v1520_v40 = vrot.slane %v11341_v17, 2  ;;  %v1521_v21 = vrot.slane %v11342_v45, 3  ;;  %v8560_v44 = vld [vmem:[%s6696_s24 + $0x14c] sm:$0xff]  }
 0x1a7   : > { %11329 = vst [vmem:[#allocation120_spill] sm:$0xff] %v7800_v30  ;;  %v1528_v15 = vrot.slane %v11348_v33, 2  ;;  %v11351_v17 = vshll.u32 %v6943_v25, 16  ;;  %v11353_v45 = vshll.u32 %v6905_v27, 16  ;;  %v8588_v30 = vld [vmem:[%s6696_s24 + $0x154] sm:$0xff]  }
 0x1a8   : > { %v1511_v50 = vsel %vm1431_vm3, %v1506_v55, %v1510_v3  ;;  %v1518_v54 = vor.u32 %v1517_v6, %v1516_v7  ;;  %v11352_v6 = vshrl.u32 %v6905_v27, 16 }
 0x1a9   : > { %v1533_v7 = vrot.slane %v11351_v17, 3  ;;  %v11360_v17 = vshll.u32 %v6974_v49, 16 }
 0x1aa   : > { %1658 = vrot.lane.b32.xlu2 %v1499_v42, %s6644_s28  ;;  %1656 = vrot.lane.b32.xlu1 %v1495_v8, %s6644_s28  ;;  %v1503_v42 = vsel %vm1431_vm3, %v1498_v31, %v1502_v41  ;;  %v1522_v8 = vor.u32 %v1521_v21, %v1520_v40  ;;  %v11349_v31 = vshll.u32 %v6924_v46, 16  ;;  %v1524_v40 = vrot.slane %v11352_v6, 2 }
 0x1ab   : > { %1654 = vrot.lane.b32.xlu0 %v1491_v52, %s6644_s28  ;;  %v1514_v52 = vor.u32 %v1513_v9, %v1512_v0  ;;  %v1525_v21 = vrot.slane %v11353_v45, 3  ;;  %v11361_v6 = vshrl.u32 %v6940_v32, 16  ;;  %v11362_v45 = vshll.u32 %v6940_v32, 16 }
 0x1ac   : > { %v7820_v4 = vpop.permute.xlu2 %1390  ;;  %v7822_v16 = vpop.permute.xlu1 %1370  ;;  %v1529_v41 = vrot.slane %v11349_v31, 3  ;;  %v1523_v47 = vsel %vm1431_vm3, %v1518_v54, %v1522_v8  ;;  %v11366_v32 = vshrl.u32 %v6990_v28, 16 }
 0x1ad   : > { %11336 = vst [vmem:[#allocation121_spill] sm:$0xff] %v7820_v4  ;;  %v7824_v39 = vpop.permute.xlu0 %1368  ;;  %v1519_v0 = vsel %vm1431_vm3, %v1514_v52, %v1518_v54  ;;  %v1515_v59 = vsel %vm1431_vm3, %v1510_v3, %v1514_v52  ;;  %v11357_v3 = vshrl.u32 %v6959_v58, 16  ;;  %v8395_v4 = vld [vmem:[%s6696_s24 + $0x84] sm:$0xff]  }
 0x1ae   : > { %11337 = vst [vmem:[#allocation122_spill] sm:$0xff] %v7822_v16  ;;  %v1530_v46 = vor.u32 %v1529_v41, %v1528_v15  ;;  %v11359_v41 = vshrl.u32 %v6974_v49, 16  ;;  %v8392_v16 = vld [vmem:[%s6696_s24 + $0x8c] sm:$0xff]  }
 0x1af   : > { %11338 = vst [vmem:[#allocation123_spill] sm:$0xff] %v7824_v39  ;;  %v1540_v52 = vrot.slane %v11357_v3, 2  ;;  %v8440_v39 = vld [vmem:[%s6696_s24 + $0xac] sm:$0xff]  }
 0x1b2   : > { %1664 = vrot.lane.b32.xlu2 %v1511_v50, %s6644_s28  ;;  %1662 = vrot.lane.b32.xlu1 %v1507_v23, %s6644_s28  ;;  %v11350_v50 = vshrl.u32 %v6943_v25, 16  ;;  %v1526_v25 = vor.u32 %v1525_v21, %v1524_v40  ;;  %v1536_v40 = vrot.slane %v11361_v6, 2  ;;  %v1537_v21 = vrot.slane %v11362_v45, 3 }
 0x1b3   : > { %1660 = vrot.lane.b32.xlu0 %v1503_v42, %s6644_s28 }
 0x1b4   : > { %v7844_v55 = vpop.permute.xlu2 %1396  ;;  %v7846_v53 = vpop.permute.xlu1 %1376  ;;  %v1532_v23 = vrot.slane %v11350_v50, 2  ;;  %v1531_v54 = vsel %vm1431_vm3, %v1526_v25, %v1530_v46  ;;  %v11358_v50 = vshll.u32 %v6959_v58, 16 }
 0x1b5   : > { %11345 = vst [vmem:[#allocation124_spill] sm:$0xff] %v7844_v55  ;;  %v7848_v10 = vpop.permute.xlu0 %1374 }
 0x1b6   : > { %11346 = vst [vmem:[#allocation125_spill] sm:$0xff] %v7846_v53  ;;  %v1534_v9 = vor.u32 %v1533_v7, %v1532_v23  ;;  %v1541_v15 = vrot.slane %v11358_v50, 3  ;;  %v1544_v23 = vrot.slane %v11359_v41, 2  ;;  %v1545_v7 = vrot.slane %v11360_v17, 3  ;;  %v6553_v53 = vld [vmem:[%s6696_s24 + $0xb0] sm:$0xff]  }
 0x1b7   : > { %11347 = vst [vmem:[#allocation126_spill] sm:$0xff] %v7848_v10  ;;  %v1552_v50 = vrot.slane %v11366_v32, 2  ;;  %v11369_v41 = vshll.u32 %v7009_v57, 16  ;;  %v11371_v17 = vshll.u32 %v6971_v20, 16 }
 0x1b8   : > { %v1535_v31 = vsel %vm1431_vm3, %v1530_v46, %v1534_v9  ;;  %v1542_v58 = vor.u32 %v1541_v15, %v1540_v52  ;;  %v11370_v15 = vshrl.u32 %v6971_v20, 16 }
 0x1b9   : > { %v1557_v52 = vrot.slane %v11369_v41, 3  ;;  %v11378_v41 = vshll.u32 %v7040_v24, 16 }
 0x1ba   : > { %1670 = vrot.lane.b32.xlu2 %v1523_v47, %s6644_s28  ;;  %1668 = vrot.lane.b32.xlu1 %v1519_v0, %s6644_s28  ;;  %v1527_v47 = vsel %vm1431_vm3, %v1522_v8, %v1526_v25  ;;  %v1546_v0 = vor.u32 %v1545_v7, %v1544_v23  ;;  %v11367_v8 = vshll.u32 %v6990_v28, 16  ;;  %v1548_v23 = vrot.slane %v11370_v15, 2 }
 0x1bb   : > { %1666 = vrot.lane.b32.xlu0 %v1515_v59, %s6644_s28  ;;  %v1538_v59 = vor.u32 %v1537_v21, %v1536_v40  ;;  %v1549_v7 = vrot.slane %v11371_v17, 3  ;;  %v11379_v15 = vshrl.u32 %v7006_v34, 16  ;;  %v11380_v17 = vshll.u32 %v7006_v34, 16 }
 0x1bc   : > { %v7868_v42 = vpop.permute.xlu2 %1402  ;;  %v7870_v33 = vpop.permute.xlu1 %1382  ;;  %v1553_v25 = vrot.slane %v11367_v8, 3  ;;  %v1547_v6 = vsel %vm1431_vm3, %v1542_v58, %v1546_v0  ;;  %v11384_v34 = vshrl.u32 %v7056_v13, 16 }
 0x1bd   : > { %11354 = vst [vmem:[#allocation127_spill] sm:$0xff] %v7868_v42  ;;  %v7872_v27 = vpop.permute.xlu0 %1380  ;;  %v1543_v40 = vsel %vm1431_vm3, %v1538_v59, %v1542_v58  ;;  %v1539_v45 = vsel %vm1431_vm3, %v1534_v9, %v1538_v59  ;;  %v11375_v9 = vshrl.u32 %v7025_v36, 16 }
 0x1be   : > { %11355 = vst [vmem:[#allocation128_spill] sm:$0xff] %v7870_v33  ;;  %v1554_v28 = vor.u32 %v1553_v25, %v1552_v50  ;;  %v11377_v25 = vshrl.u32 %v7040_v24, 16 }
 0x1bf   : > { %11356 = vst [vmem:[#allocation129_spill] sm:$0xff] %v7872_v27  ;;  %v1564_v59 = vrot.slane %v11375_v9, 2  ;;  %v6541_v27 = vld [vmem:[%s6696_s24 + $0x50] sm:$0xff]  }
 0x1c0   : > { %v1743_v42 = vrot.slane %v6541_v27, 3  ;;  %v6542_v27 = vld [vmem:[%s6696_s24 + $0x70] sm:$0xff]  }
 0x1c2   : > { %1676 = vrot.lane.b32.xlu2 %v1535_v31, %s6644_s28  ;;  %1674 = vrot.lane.b32.xlu1 %v1531_v54, %s6644_s28  ;;  %v11368_v31 = vshrl.u32 %v7009_v57, 16  ;;  %v1550_v57 = vor.u32 %v1549_v7, %v1548_v23  ;;  %v1560_v23 = vrot.slane %v11379_v15, 2  ;;  %v1561_v7 = vrot.slane %v11380_v17, 3 }
 0x1c3   : > { %1672 = vrot.lane.b32.xlu0 %v1527_v47, %s6644_s28 }
 0x1c4   : > { %v7892_v46 = vpop.permute.xlu2 %1408  ;;  %v7894_v49 = vpop.permute.xlu1 %1388  ;;  %v1556_v54 = vrot.slane %v11368_v31, 2  ;;  %v1555_v58 = vsel %vm1431_vm3, %v1550_v57, %v1554_v28  ;;  %v11376_v31 = vshll.u32 %v7025_v36, 16 }
 0x1c5   : > { %11363 = vst [vmem:[#allocation130_spill] sm:$0xff] %v7892_v46  ;;  %v7896_v3 = vpop.permute.xlu0 %1386  ;;  %v8437_v46 = vld [vmem:[%s6696_s24 + $0xb4] sm:$0xff]  }
 0x1c6   : > { %11364 = vst [vmem:[#allocation131_spill] sm:$0xff] %v7894_v49  ;;  %v1558_v21 = vor.u32 %v1557_v52, %v1556_v54  ;;  %v1565_v50 = vrot.slane %v11376_v31, 3  ;;  %v1568_v54 = vrot.slane %v11377_v25, 2  ;;  %v1569_v52 = vrot.slane %v11378_v41, 3  ;;  %v8434_v49 = vld [vmem:[%s6696_s24 + $0xbc] sm:$0xff]  }
 0x1c7   : > { %11365 = vst [vmem:[#allocation132_spill] sm:$0xff] %v7896_v3  ;;  %v1576_v31 = vrot.slane %v11384_v34, 2  ;;  %v11387_v25 = vshll.u32 %v7075_v38, 16  ;;  %v11389_v41 = vshll.u32 %v7037_v63, 16  ;;  %v8500_v3 = vld [vmem:[%s6696_s24 + $0xfc] sm:$0xff]  }
 0x1c8   : > { %v1559_v8 = vsel %vm1431_vm3, %v1554_v28, %v1558_v21  ;;  %v1566_v36 = vor.u32 %v1565_v50, %v1564_v59  ;;  %v11388_v50 = vshrl.u32 %v7037_v63, 16 }
 0x1c9   : > { %v1581_v59 = vrot.slane %v11387_v25, 3  ;;  %v11396_v25 = vshll.u32 %v7106_v35, 16 }
 0x1ca   : > { %1682 = vrot.lane.b32.xlu2 %v1547_v6, %s6644_s28  ;;  %1680 = vrot.lane.b32.xlu1 %v1543_v40, %s6644_s28  ;;  %v1551_v6 = vsel %vm1431_vm3, %v1546_v0, %v1550_v57  ;;  %v1570_v40 = vor.u32 %v1569_v52, %v1568_v54  ;;  %v11385_v0 = vshll.u32 %v7056_v13, 16  ;;  %v1572_v54 = vrot.slane %v11388_v50, 2 }
 0x1cb   : > { %1678 = vrot.lane.b32.xlu0 %v1539_v45, %s6644_s28  ;;  %v1562_v45 = vor.u32 %v1561_v7, %v1560_v23  ;;  %v1573_v52 = vrot.slane %v11389_v41, 3  ;;  %v11397_v50 = vshrl.u32 %v7072_v62, 16  ;;  %v11398_v41 = vshll.u32 %v7072_v62, 16 }
 0x1cc   : > { %v7916_v47 = vpop.permute.xlu2 %1414  ;;  %v7918_v32 = vpop.permute.xlu1 %1394  ;;  %v1577_v57 = vrot.slane %v11385_v0, 3  ;;  %v1571_v15 = vsel %vm1431_vm3, %v1566_v36, %v1570_v40  ;;  %v11402_v62 = vshrl.u32 %v7122_v5, 16 }
 0x1cd   : > { %11372 = vst [vmem:[#allocation133_spill] sm:$0xff] %v7916_v47  ;;  %v7920_v20 = vpop.permute.xlu0 %1392  ;;  %v1567_v23 = vsel %vm1431_vm3, %v1562_v45, %v1566_v36  ;;  %v1563_v17 = vsel %vm1431_vm3, %v1558_v21, %v1562_v45  ;;  %v1574_v7 = vor.u32 %v1573_v52, %v1572_v54  ;;  %v11393_v45 = vshrl.u32 %v7091_v12, 16  ;;  %v6562_v47 = vld [vmem:[%s6696_s24 + $0xf8] sm:$0xff]  }
 0x1ce   : > { %11373 = vst [vmem:[#allocation134_spill] sm:$0xff] %v7918_v32  ;;  %v1578_v13 = vor.u32 %v1577_v57, %v1576_v31  ;;  %v11395_v57 = vshrl.u32 %v7106_v35, 16  ;;  %v1584_v54 = vrot.slane %v11397_v50, 2  ;;  %v1585_v52 = vrot.slane %v11398_v41, 3 }
 0x1cf   : > { %11374 = vst [vmem:[#allocation135_spill] sm:$0xff] %v7920_v20  ;;  %v1588_v0 = vrot.slane %v11393_v45, 2  ;;  %v11407_v50 = vshll.u32 %v7103_v19, 16  ;;  %v1785_v10 = vrot.slane %v6562_v47, 3  ;;  %v6563_v47 = vld [vmem:[%s6696_s24 + $0x118] sm:$0xff]  }
 0x1d0   : > { %v1579_v21 = vsel %vm1431_vm3, %v1574_v7, %v1578_v13  ;;  %v1586_v35 = vor.u32 %v1585_v52, %v1584_v54 }
 0x1d1   : > { %v1597_v54 = vrot.slane %v11407_v50, 3  ;;  %v11411_v50 = vld [vmem:[#allocation5_spill] sm:$0xff] }
 0x1d2   : > { %1688 = vrot.lane.b32.xlu2 %v1559_v8, %s6644_s28  ;;  %1686 = vrot.lane.b32.xlu1 %v1555_v58, %s6644_s28  ;;  %v11386_v8 = vshrl.u32 %v7075_v38, 16 }
 0x1d3   : > { %1684 = vrot.lane.b32.xlu0 %v1551_v6, %s6644_s28 }
 0x1d4   : > { %v7940_v28 = vpop.permute.xlu2 %1420  ;;  %v7942_v24 = vpop.permute.xlu1 %1400  ;;  %v1580_v58 = vrot.slane %v11386_v8, 2  ;;  %v11394_v8 = vshll.u32 %v7091_v12, 16 }
 0x1d5   : > { %11381 = vst [vmem:[#allocation136_spill] sm:$0xff] %v7940_v28  ;;  %v7944_v9 = vpop.permute.xlu0 %1398 }
 0x1d6   : > { %11382 = vst [vmem:[#allocation137_spill] sm:$0xff] %v7942_v24  ;;  %v1582_v38 = vor.u32 %v1581_v59, %v1580_v58  ;;  %v1589_v31 = vrot.slane %v11394_v8, 3  ;;  %v1592_v58 = vrot.slane %v11395_v57, 2  ;;  %v1593_v59 = vrot.slane %v11396_v25, 3 }
 0x1d7   : > { %11383 = vst [vmem:[#allocation138_spill] sm:$0xff] %v7944_v9  ;;  %v6544_v9 = vld [vmem:[%s6696_s24 + $0x68] sm:$0xff]  }
 0x1d8   : > { %v1583_v36 = vsel %vm1431_vm3, %v1578_v13, %v1582_v38  ;;  %v1594_v13 = vor.u32 %v1593_v59, %v1592_v58  ;;  %v11406_v58 = vshrl.u32 %v7103_v19, 16  ;;  %v1749_v29 = vrot.slane %v6544_v9, 3  ;;  %v6545_v9 = vld [vmem:[%s6696_s24 + $0x88] sm:$0xff]  }
 0x1da   : > { %1694 = vrot.lane.b32.xlu2 %v1571_v15, %s6644_s28  ;;  %1692 = vrot.lane.b32.xlu1 %v1567_v23, %s6644_s28  ;;  %v348_v15 = vld [vmem:[%s6696_s24 + $0x174] sm:$0x3]  ;;  %v1575_v23 = vsel %vm1431_vm3, %v1570_v40, %v1574_v7  ;;  %v1600_v40 = vrot.slane %v11402_v62, 2  ;;  %v11403_v7 = vshll.u32 %v7122_v5, 16  ;;  %v1596_v59 = vrot.slane %v11406_v58, 2 }
 0x1db   : > { %1690 = vrot.lane.b32.xlu0 %v1563_v17, %s6644_s28  ;;  %v1429_v12 = vunpack.c.l.b16 %v348_v15  ;;  %v1590_v17 = vor.u32 %v1589_v31, %v1588_v0  ;;  %v11405_v0 = vshll.u32 %v7149_v60, 16  ;;  %v1587_v15 = vsel %vm1431_vm3, %v1582_v38, %v1586_v35 }
 0x1dc   : > { %v7964_v6 = vpop.permute.xlu2 %1426  ;;  %v7966_v63 = vpop.permute.xlu1 %1406  ;;  %v1598_v62 = vor.u32 %v1597_v54, %v1596_v59  ;;  %v11412_v54 = vshrl.u32 %v11411_v50, 16 }
 0x1dd   : > { %11390 = vst [vmem:[#allocation139_spill] sm:$0xff] %v7964_v6  ;;  %v7968_v34 = vpop.permute.xlu0 %1404  ;;  %v1605_v31 = vrot.slane %v11405_v0, 3  ;;  %v8008_v41 = vpack.c.b16 %v1429_v12, %v7655_v61  ;;  %v1595_v52 = vsel %vm1431_vm3, %v1590_v17, %v1594_v13  ;;  %v1591_v5 = vsel %vm1431_vm3, %v1586_v35, %v1590_v17  ;;  %v8335_v6 = vld [vmem:[%s6696_s24 + $0x34] sm:$0xff]  }
 0x1de   : > { %11391 = vst [vmem:[#allocation140_spill] sm:$0xff] %v7966_v63  ;;  %v1599_v63 = vsel %vm1431_vm3, %v1594_v13, %v1598_v62 }
 0x1df   : > { %11392 = vst [vmem:[#allocation141_spill] sm:$0xff] %v7968_v34  ;;  %v1622_v17 = vshrl.u32 %v8008_v41, 16  ;;  %v1625_v38 = vshll.u32 %v8008_v41, 16  ;;  %v349_v34 = vld [vmem:[%s6696_s24 + $0x8] sm:$0x8] }
 0x1e1   : > { %v1624_v58 = vrot.slane %v1622_v17, 2  ;;  %v1627_v59 = vrot.slane %v1625_v38, 3  ;;  %v1723_v17 = vunpack.c.l.b16 %v349_v34 }
 0x1e2   : > { %1700 = vrot.lane.b32.xlu2 %v1583_v36, %s6644_s28  ;;  %1698 = vrot.lane.b32.xlu1 %v1579_v21, %s6644_s28  ;;  %v1601_v36 = vrot.slane %v11403_v7, 3  ;;  %v11404_v21 = vshrl.u32 %v7149_v60, 16  ;;  %v8016_v7 = vld [vmem:[%s6696_s24 + $0x168] sm:$0xff]  }
 0x1e3   : > { %1696 = vrot.lane.b32.xlu0 %v1575_v23, %s6644_s28  ;;  %v1613_v19 = vshrl.u32 %v8016_v7, 16  ;;  %v1616_v12 = vshll.u32 %v8016_v7, 16 }
 0x1e4   : > { %v7989_v45 = vpop.permute.xlu2 %1634  ;;  %v7991_v8 = vpop.permute.xlu1 %1412  ;;  %v1604_v25 = vrot.slane %v11404_v21, 2  ;;  %v1602_v23 = vor.u32 %v1601_v36, %v1600_v40 }
 0x1e5   : > { %11399 = vst [vmem:[#allocation142_spill] sm:$0xff] %v7989_v45  ;;  %v7993_v57 = vpop.permute.xlu0 %1410  ;;  %v1615_v0 = vrot.slane %v1613_v19, 2  ;;  %v1628_v19 = vor.u32 %v1627_v59, %v1624_v58 }
 0x1e6   : > { %11400 = vst [vmem:[#allocation143_spill] sm:$0xff] %v7991_v8  ;;  %v1606_v60 = vor.u32 %v1605_v31, %v1604_v25  ;;  %v1603_v25 = vsel %vm1431_vm3, %v1598_v62, %v1602_v23  ;;  %v1618_v31 = vrot.slane %v1616_v12, 3  ;;  %v11417_v62 = vld [vmem:[#allocation2_spill] sm:$0xff] }
 0x1e7   : > { %11401 = vst [vmem:[#allocation144_spill] sm:$0xff] %v7993_v57  ;;  %v8377_v57 = vld [vmem:[%s6696_s24 + $0x64] sm:$0xff]  }
 0x1e8   : > { %v1607_v21 = vsel %vm1431_vm3, %v1602_v23, %v1606_v60  ;;  %v1619_v23 = vor.u32 %v1618_v31, %v1615_v0  ;;  %v11420_v0 = vld [vmem:[#allocation59_spill] sm:$0xff] }
 0x1e9   : > { %v1729_v31 = vrot.slane %v11420_v0, 3 }
 0x1ea   : > { %1706 = vrot.lane.b32.xlu2 %v1595_v52, %s6644_s28  ;;  %1704 = vrot.lane.b32.xlu1 %v1591_v5, %s6644_s28  ;;  %v1608_v52 = vrot.slane %v11412_v54, 2  ;;  %v11413_v5 = vshll.u32 %v11411_v50, 16  ;;  %v1629_v50 = vsel %vm1431_vm3, %v1619_v23, %v1628_v19 }
 0x1eb   : > { %1702 = vrot.lane.b32.xlu0 %v1587_v15, %s6644_s28 }
 0x1ec   : > { %v8023_v35 = vpop.permute.xlu2 %1640  ;;  %v8025_v40 = vpop.permute.xlu1 %1418  ;;  %v1609_v15 = vrot.slane %v11413_v5, 3 }
 0x1ed   : > { %11408 = vst [vmem:[#allocation145_spill] sm:$0xff] %v8023_v35  ;;  %v8027_v36 = vpop.permute.xlu0 %1416  ;;  %v8497_v35 = vld [vmem:[%s6696_s24 + $0x104] sm:$0xff]  }
 0x1ee   : > { %11409 = vst [vmem:[#allocation146_spill] sm:$0xff] %v8025_v40  ;;  %v1610_v12 = vor.u32 %v1609_v15, %v1608_v52  ;;  %v8374_v40 = vld [vmem:[%s6696_s24 + $0x6c] sm:$0xff]  }
 0x1ef   : > { %11410 = vst [vmem:[#allocation147_spill] sm:$0xff] %v8027_v36  ;;  %v6550_v36 = vld [vmem:[%s6696_s24 + $0x98] sm:$0xff]  }
 0x1f0   : > { %v1620_v13 = vsel %vm1431_vm3, %v1610_v12, %v1619_v23  ;;  %v1761_v55 = vrot.slane %v6550_v36, 3  ;;  %v6551_v36 = vld [vmem:[%s6696_s24 + $0xb8] sm:$0xff]  }
 0x1f2   : > { %1712 = vrot.lane.b32.xlu2 %v1607_v21, %s6644_s28  ;;  %1710 = vrot.lane.b32.xlu1 %v1603_v25, %s6644_s28  ;;  %v11418_v21 = vunpack.c.h.b16 %v11417_v62  ;;  %v1611_v25 = vsel %vm1431_vm3, %v1606_v60, %v1610_v12  ;;  %v11424_v12 = vld [vmem:[#allocation58_spill] sm:$0xff]  ;;  %v11426_v62 = vld [vmem:[#allocation57_spill] sm:$0xff] }
 0x1f3   : > { %1708 = vrot.lane.b32.xlu0 %v1599_v63, %s6644_s28  ;;  %v11419_v63 = vld [vmem:[#allocation53_spill] sm:$0xff] }
 0x1f4   : > { %v8040_v38 = vpop.permute.xlu2 %1646  ;;  %v8042_v33 = vpop.permute.xlu1 %1424  ;;  %v1724_v5 = vpack.c.b16 %v11418_v21, %v1723_v17  ;;  %v1727_v34 = vrot.slane %v11419_v63, 3  ;;  %v1733_v17 = vrot.slane %v11424_v12, 3  ;;  %v1731_v21 = vrot.slane %v11426_v62, 3 }
 0x1f5   : > { %11414 = vst [vmem:[#allocation5_spill] sm:$0xff] %v8040_v38  ;;  %v8044_v54 = vpop.permute.xlu0 %1422  ;;  %v6571_v38 = vld [vmem:[%s6696_s24 + $0x140] sm:$0xff]  }
 0x1f6   : > { %11415 = vst [vmem:[#allocation148_spill] sm:$0xff] %v8042_v33  ;;  %v1726_v58 = vrot.slane %v1724_v5, 3  ;;  %v1730_v60 = vsel %vm1725_vm4, %v1727_v34, %v1729_v31  ;;  %v1734_v0 = vsel %vm1725_vm4, %v1731_v21, %v1733_v17  ;;  %v1803_v8 = vrot.slane %v6571_v38, 3  ;;  %v8263_v38 = vld [vmem:[%s6696_s24 + $0x160] sm:$0xff]  }
 0x1f7   : > { %11416 = vst [vmem:[#allocation149_spill] sm:$0xff] %v8044_v54  ;;  %v8332_v33 = vld [vmem:[%s6696_s24 + $0x3c] sm:$0xff]   ;;  %v8458_v54 = vld [vmem:[%s6696_s24 + $0xcc] sm:$0xff]  }
 0x1f8   : > { %v1728_v23 = vsel %vm1725_vm4, %v1726_v58, %v1727_v34  ;;  %v1732_v58 = vsel %vm1725_vm4, %v1729_v31, %v1731_v21 }
 0x1fa   : > { %1718 = vrot.lane.b32.xlu2 %v1629_v50, %s6644_s28  ;;  %1716 = vrot.lane.b32.xlu1 %v1620_v13, %s6644_s28  ;;  %v11425_v50 = vld [vmem:[#allocation63_spill] sm:$0xff] }
 0x1fb   : > { %1714 = vrot.lane.b32.xlu0 %v1611_v25, %s6644_s28  ;;  %v1735_v13 = vrot.slane %v11425_v50, 3  ;;  %v6538_v50 = vld [vmem:[%s6696_s24 + $0x38] sm:$0xff]  }
 0x1fc   : > { %v8056_v59 = vpop.permute.xlu2 %1652  ;;  %v8058_v52 = vpop.permute.xlu1 %1632  ;;  %v1737_v62 = vrot.slane %v6538_v50, 3 }
 0x1fd   : > { %11421 = vst [vmem:[#allocation2_spill] sm:$0xff] %v8056_v59  ;;  %v8060_v15 = vpop.permute.xlu0 %1630  ;;  %v1736_v34 = vsel %vm1725_vm4, %v1733_v17, %v1735_v13 }
 0x1fe   : > { %11422 = vst [vmem:[#allocation53_spill] sm:$0xff] %v8058_v52 }
 0x1ff   : > { %11423 = vst [vmem:[#allocation59_spill] sm:$0xff] %v8060_v15 }
 0x202   : > { %1819 = vrot.lane.b32.xlu2 %v1730_v60, %s6645_s29  ;;  %1817 = vrot.lane.b32.xlu1 %v1728_v23, %s6645_s29  ;;  %v6537_v23 = vld [vmem:[%s6696_s24 + $0x48] sm:$0xff]  }
 0x203   : > { %1720 = vrot.lane.b32.xlu0 %v1628_v19, %s6644_s28  ;;  %v6536_v19 = vld [vmem:[%s6696_s24 + $0x40] sm:$0xff]   ;;  %v1741_v12 = vrot.slane %v6537_v23, 3 }
 0x204   : > { %v8070_v5 = vpop.permute.xlu2 %1658  ;;  %v8072_v25 = vpop.permute.xlu1 %1638  ;;  %v1739_v60 = vrot.slane %v6536_v19, 3  ;;  %v6540_v23 = vld [vmem:[%s6696_s24 + $0x60] sm:$0xff]  }
 0x205   : > { %11427 = vst [vmem:[#allocation58_spill] sm:$0xff] %v8070_v5  ;;  %v8074_v63 = vpop.permute.xlu0 %1636  ;;  %v1747_v50 = vrot.slane %v6540_v23, 3 }
 0x206   : > { %11428 = vst [vmem:[#allocation63_spill] sm:$0xff] %v8072_v25  ;;  %v1742_v21 = vsel %vm1725_vm4, %v1739_v60, %v1741_v12  ;;  %v8545_v25 = vld [vmem:[%s6696_s24 + $0x124] sm:$0xff]  }
 0x207   : > { %11429 = vst [vmem:[#allocation57_spill] sm:$0xff] %v8074_v63  ;;  %v8585_v63 = vld [vmem:[%s6696_s24 + $0x15c] sm:$0xff]  }
 0x20a   : > { %1825 = vrot.lane.b32.xlu2 %v1736_v34, %s6645_s29  ;;  %1823 = vrot.lane.b32.xlu1 %v1734_v0, %s6645_s29  ;;  %v1740_v34 = vsel %vm1725_vm4, %v1737_v62, %v1739_v60  ;;  %v1738_v0 = vsel %vm1725_vm4, %v1735_v13, %v1737_v62 }
 0x20b   : > { %1821 = vrot.lane.b32.xlu0 %v1732_v58, %s6645_s29  ;;  %v6539_v58 = vld [vmem:[%s6696_s24 + $0x58] sm:$0xff]  }
 0x20c   : > { %v8085_v24 = vpop.permute.xlu2 %1664  ;;  %v8087_v17 = vpop.permute.xlu1 %1644  ;;  %v1745_v19 = vrot.slane %v6539_v58, 3  ;;  %v6543_v58 = vld [vmem:[%s6696_s24 + $0x78] sm:$0xff]  }
 0x20d   : > { %11430 = vst [vmem:[#allocation150_spill] sm:$0xff] %v8085_v24  ;;  %v8089_v31 = vpop.permute.xlu0 %1642  ;;  %v1753_v23 = vrot.slane %v6543_v58, 3  ;;  %v8371_v24 = vld [vmem:[%s6696_s24 + $0x74] sm:$0xff]  }
 0x20e   : > { %11431 = vst [vmem:[#allocation151_spill] sm:$0xff] %v8087_v17  ;;  %v1748_v62 = vsel %vm1725_vm4, %v1745_v19, %v1747_v50  ;;  %v8356_v17 = vld [vmem:[%s6696_s24 + $0x4c] sm:$0xff]  }
 0x20f   : > { %11432 = vst [vmem:[#allocation152_spill] sm:$0xff] %v8089_v31  ;;  %v8419_v31 = vld [vmem:[%s6696_s24 + $0x94] sm:$0xff]  }
 0x212   : > { %1831 = vrot.lane.b32.xlu2 %v1742_v21, %s6645_s29  ;;  %1829 = vrot.lane.b32.xlu1 %v1740_v34, %s6645_s29  ;;  %v1746_v21 = vsel %vm1725_vm4, %v1743_v42, %v1745_v19  ;;  %v1744_v34 = vsel %vm1725_vm4, %v1741_v12, %v1743_v42 }
 0x213   : > { %1827 = vrot.lane.b32.xlu0 %v1738_v0, %s6645_s29  ;;  %v1751_v0 = vrot.slane %v6542_v27, 3  ;;  %v6546_v27 = vld [vmem:[%s6696_s24 + $0x90] sm:$0xff]  }
 0x214   : > { %v8100_v59 = vpop.permute.xlu2 %1670  ;;  %v8102_v60 = vpop.permute.xlu1 %1650  ;;  %v1759_v58 = vrot.slane %v6546_v27, 3 }
 0x215   : > { %11433 = vst [vmem:[#allocation153_spill] sm:$0xff] %v8100_v59  ;;  %v8104_v13 = vpop.permute.xlu0 %1648  ;;  %v1754_v12 = vsel %vm1725_vm4, %v1751_v0, %v1753_v23 }
 0x216   : > { %11434 = vst [vmem:[#allocation154_spill] sm:$0xff] %v8102_v60 }
 0x217   : > { %11435 = vst [vmem:[#allocation155_spill] sm:$0xff] %v8104_v13 }
 0x21a   : > { %1837 = vrot.lane.b32.xlu2 %v1748_v62, %s6645_s29  ;;  %1835 = vrot.lane.b32.xlu1 %v1746_v21, %s6645_s29  ;;  %v1752_v62 = vsel %vm1725_vm4, %v1749_v29, %v1751_v0  ;;  %v1750_v21 = vsel %vm1725_vm4, %v1747_v50, %v1749_v29 }
 0x21b   : > { %1833 = vrot.lane.b32.xlu0 %v1744_v34, %s6645_s29  ;;  %v1757_v34 = vrot.slane %v6545_v9, 3  ;;  %v6549_v9 = vld [vmem:[%s6696_s24 + $0xa8] sm:$0xff]  }
 0x21c   : > { %v8115_v11 = vpop.permute.xlu2 %1676  ;;  %v8117_v19 = vpop.permute.xlu1 %1656  ;;  %v1765_v27 = vrot.slane %v6549_v9, 3 }
 0x21d   : > { %11436 = vst [vmem:[#allocation156_spill] sm:$0xff] %v8115_v11  ;;  %v8119_v42 = vpop.permute.xlu0 %1654  ;;  %v6547_v11 = vld [vmem:[%s6696_s24 + $0x80] sm:$0xff]   ;;  %v1760_v50 = vsel %vm1725_vm4, %v1757_v34, %v1759_v58 }
 0x21e   : > { %11437 = vst [vmem:[#allocation157_spill] sm:$0xff] %v8117_v19  ;;  %v1755_v60 = vrot.slane %v6547_v11, 3  ;;  %v6548_v11 = vld [vmem:[%s6696_s24 + $0xa0] sm:$0xff]  }
 0x21f   : > { %11438 = vst [vmem:[#allocation158_spill] sm:$0xff] %v8119_v42 }
 0x222   : > { %1843 = vrot.lane.b32.xlu2 %v1754_v12, %s6645_s29  ;;  %1841 = vrot.lane.b32.xlu1 %v1752_v62, %s6645_s29  ;;  %v1758_v12 = vsel %vm1725_vm4, %v1755_v60, %v1757_v34  ;;  %v1756_v62 = vsel %vm1725_vm4, %v1753_v23, %v1755_v60 }
 0x223   : > { %1839 = vrot.lane.b32.xlu0 %v1750_v21, %s6645_s29  ;;  %v1763_v21 = vrot.slane %v6548_v11, 3  ;;  %v6552_v11 = vld [vmem:[%s6696_s24 + $0xc0] sm:$0xff]  }
 0x224   : > { %v8130_v59 = vpop.permute.xlu2 %1682  ;;  %v8132_v0 = vpop.permute.xlu1 %1662  ;;  %v1771_v9 = vrot.slane %v6552_v11, 3 }
 0x225   : > { %11439 = vst [vmem:[#allocation159_spill] sm:$0xff] %v8130_v59  ;;  %v8134_v29 = vpop.permute.xlu0 %1660  ;;  %v1766_v23 = vsel %vm1725_vm4, %v1763_v21, %v1765_v27  ;;  %v8416_v59 = vld [vmem:[%s6696_s24 + $0x9c] sm:$0xff]  }
 0x226   : > { %11440 = vst [vmem:[#allocation160_spill] sm:$0xff] %v8132_v0  ;;  %v8413_v0 = vld [vmem:[%s6696_s24 + $0xa4] sm:$0xff]  }
 0x227   : > { %11441 = vst [vmem:[#allocation161_spill] sm:$0xff] %v8134_v29  ;;  %v8482_v29 = vld [vmem:[%s6696_s24 + $0xdc] sm:$0xff]  }
 0x22a   : > { %1849 = vrot.lane.b32.xlu2 %v1760_v50, %s6645_s29  ;;  %1847 = vrot.lane.b32.xlu1 %v1758_v12, %s6645_s29  ;;  %v1764_v50 = vsel %vm1725_vm4, %v1761_v55, %v1763_v21  ;;  %v1762_v12 = vsel %vm1725_vm4, %v1759_v58, %v1761_v55 }
 0x22b   : > { %1845 = vrot.lane.b32.xlu0 %v1756_v62, %s6645_s29  ;;  %v1769_v62 = vrot.slane %v6551_v36, 3  ;;  %v6555_v36 = vld [vmem:[%s6696_s24 + $0xd8] sm:$0xff]  }
 0x22c   : > { %v8145_v48 = vpop.permute.xlu2 %1688  ;;  %v8147_v34 = vpop.permute.xlu1 %1668  ;;  %v1777_v11 = vrot.slane %v6555_v36, 3 }
 0x22d   : > { %11442 = vst [vmem:[#allocation162_spill] sm:$0xff] %v8145_v48  ;;  %v8149_v60 = vpop.permute.xlu0 %1666  ;;  %v1772_v58 = vsel %vm1725_vm4, %v1769_v62, %v1771_v9 }
 0x22e   : > { %11443 = vst [vmem:[#allocation163_spill] sm:$0xff] %v8147_v34  ;;  %v1767_v34 = vrot.slane %v6553_v53, 3  ;;  %v6554_v53 = vld [vmem:[%s6696_s24 + $0xd0] sm:$0xff]  }
 0x22f   : > { %11444 = vst [vmem:[#allocation164_spill] sm:$0xff] %v8149_v60 }
 0x232   : > { %1855 = vrot.lane.b32.xlu2 %v1766_v23, %s6645_s29  ;;  %1853 = vrot.lane.b32.xlu1 %v1764_v50, %s6645_s29  ;;  %v1770_v23 = vsel %vm1725_vm4, %v1767_v34, %v1769_v62  ;;  %v1768_v50 = vsel %vm1725_vm4, %v1765_v27, %v1767_v34 }
 0x233   : > { %1851 = vrot.lane.b32.xlu0 %v1762_v12, %s6645_s29  ;;  %v1775_v12 = vrot.slane %v6554_v53, 3  ;;  %v6558_v53 = vld [vmem:[%s6696_s24 + $0xf0] sm:$0xff]  }
 0x234   : > { %v8160_v48 = vpop.permute.xlu2 %1694  ;;  %v8162_v21 = vpop.permute.xlu1 %1674  ;;  %v1783_v36 = vrot.slane %v6558_v53, 3 }
 0x235   : > { %11445 = vst [vmem:[#allocation165_spill] sm:$0xff] %v8160_v48  ;;  %v8164_v55 = vpop.permute.xlu0 %1672  ;;  %v1778_v34 = vsel %vm1725_vm4, %v1775_v12, %v1777_v11 }
 0x236   : > { %11446 = vst [vmem:[#allocation166_spill] sm:$0xff] %v8162_v21  ;;  %v6556_v21 = vld [vmem:[%s6696_s24 + $0xc8] sm:$0xff]  }
 0x237   : > { %11447 = vst [vmem:[#allocation167_spill] sm:$0xff] %v8164_v55  ;;  %v1773_v48 = vrot.slane %v6556_v21, 3  ;;  %v6557_v21 = vld [vmem:[%s6696_s24 + $0xe8] sm:$0xff]  }
 0x23a   : > { %1861 = vrot.lane.b32.xlu2 %v1772_v58, %s6645_s29  ;;  %1859 = vrot.lane.b32.xlu1 %v1770_v23, %s6645_s29  ;;  %v1776_v58 = vsel %vm1725_vm4, %v1773_v48, %v1775_v12  ;;  %v1774_v23 = vsel %vm1725_vm4, %v1771_v9, %v1773_v48 }
 0x23b   : > { %1857 = vrot.lane.b32.xlu0 %v1768_v50, %s6645_s29  ;;  %v1781_v50 = vrot.slane %v6557_v21, 3  ;;  %v6561_v21 = vld [vmem:[%s6696_s24 + $0x108] sm:$0xff]  }
 0x23c   : > { %v8175_v55 = vpop.permute.xlu2 %1700  ;;  %v8177_v62 = vpop.permute.xlu1 %1680  ;;  %v1789_v53 = vrot.slane %v6561_v21, 3 }
 0x23d   : > { %11448 = vst [vmem:[#allocation168_spill] sm:$0xff] %v8175_v55  ;;  %v8179_v27 = vpop.permute.xlu0 %1678  ;;  %v6559_v55 = vld [vmem:[%s6696_s24 + $0xe0] sm:$0xff]   ;;  %v1784_v9 = vsel %vm1725_vm4, %v1781_v50, %v1783_v36 }
 0x23e   : > { %11449 = vst [vmem:[#allocation169_spill] sm:$0xff] %v8177_v62  ;;  %v1779_v13 = vrot.slane %v6559_v55, 3  ;;  %v6560_v55 = vld [vmem:[%s6696_s24 + $0x100] sm:$0xff]  }
 0x23f   : > { %11450 = vst [vmem:[#allocation170_spill] sm:$0xff] %v8179_v27  ;;  %v8479_v62 = vld [vmem:[%s6696_s24 + $0xe4] sm:$0xff]   ;;  %v8542_v27 = vld [vmem:[%s6696_s24 + $0x12c] sm:$0xff]  }
 0x242   : > { %1867 = vrot.lane.b32.xlu2 %v1778_v34, %s6645_s29  ;;  %1865 = vrot.lane.b32.xlu1 %v1776_v58, %s6645_s29  ;;  %v1782_v34 = vsel %vm1725_vm4, %v1779_v13, %v1781_v50  ;;  %v1780_v58 = vsel %vm1725_vm4, %v1777_v11, %v1779_v13 }
 0x243   : > { %1863 = vrot.lane.b32.xlu0 %v1774_v23, %s6645_s29  ;;  %v1787_v23 = vrot.slane %v6560_v55, 3  ;;  %v6564_v55 = vld [vmem:[%s6696_s24 + $0x120] sm:$0xff]  }
 0x244   : > { %v8190_v32 = vpop.permute.xlu2 %1706  ;;  %v8192_v12 = vpop.permute.xlu1 %1686  ;;  %v1795_v21 = vrot.slane %v6564_v55, 3 }
 0x245   : > { %11451 = vst [vmem:[#allocation171_spill] sm:$0xff] %v8190_v32  ;;  %v8194_v48 = vpop.permute.xlu0 %1684  ;;  %v1790_v11 = vsel %vm1725_vm4, %v1787_v23, %v1789_v53 }
 0x246   : > { %11452 = vst [vmem:[#allocation172_spill] sm:$0xff] %v8192_v12 }
 0x247   : > { %11453 = vst [vmem:[#allocation173_spill] sm:$0xff] %v8194_v48  ;;  %v8353_v48 = vld [vmem:[%s6696_s24 + $0x54] sm:$0xff]  }
 0x24a   : > { %1873 = vrot.lane.b32.xlu2 %v1784_v9, %s6645_s29  ;;  %1871 = vrot.lane.b32.xlu1 %v1782_v34, %s6645_s29  ;;  %v1788_v9 = vsel %vm1725_vm4, %v1785_v10, %v1787_v23  ;;  %v1786_v34 = vsel %vm1725_vm4, %v1783_v36, %v1785_v10 }
 0x24b   : > { %1869 = vrot.lane.b32.xlu0 %v1780_v58, %s6645_s29  ;;  %v1793_v58 = vrot.slane %v6563_v47, 3  ;;  %v6567_v47 = vld [vmem:[%s6696_s24 + $0x138] sm:$0xff]  }
 0x24c   : > { %v8205_v12 = vpop.permute.xlu2 %1712  ;;  %v8207_v50 = vpop.permute.xlu1 %1692  ;;  %v1801_v55 = vrot.slane %v6567_v47, 3 }
 0x24d   : > { %11454 = vst [vmem:[#allocation174_spill] sm:$0xff] %v8205_v12  ;;  %v8209_v13 = vpop.permute.xlu0 %1690  ;;  %v1796_v36 = vsel %vm1725_vm4, %v1793_v58, %v1795_v21  ;;  %v8350_v12 = vld [vmem:[%s6696_s24 + $0x5c] sm:$0xff]  }
 0x24e   : > { %11455 = vst [vmem:[#allocation175_spill] sm:$0xff] %v8207_v50  ;;  %v6565_v50 = vld [vmem:[%s6696_s24 + $0x110] sm:$0xff]  }
 0x24f   : > { %11456 = vst [vmem:[#allocation176_spill] sm:$0xff] %v8209_v13  ;;  %v1791_v13 = vrot.slane %v6565_v50, 3  ;;  %v6566_v50 = vld [vmem:[%s6696_s24 + $0x130] sm:$0xff]  }
 0x252   : > { %1879 = vrot.lane.b32.xlu2 %v1790_v11, %s6645_s29  ;;  %1877 = vrot.lane.b32.xlu1 %v1788_v9, %s6645_s29  ;;  %v1794_v11 = vsel %vm1725_vm4, %v1791_v13, %v1793_v58  ;;  %v1792_v9 = vsel %vm1725_vm4, %v1789_v53, %v1791_v13 }
 0x253   : > { %1875 = vrot.lane.b32.xlu0 %v1786_v34, %s6645_s29  ;;  %v1799_v34 = vrot.slane %v6566_v50, 3  ;;  %v6570_v50 = vld [vmem:[%s6696_s24 + $0x150] sm:$0xff]  }
 0x254   : > { %v8220_v32 = vpop.permute.xlu2 %1718  ;;  %v8222_v23 = vpop.permute.xlu1 %1698  ;;  %v1807_v47 = vrot.slane %v6570_v50, 3 }
 0x255   : > { %11457 = vst [vmem:[#allocation177_spill] sm:$0xff] %v8220_v32  ;;  %v8224_v10 = vpop.permute.xlu0 %1696  ;;  %v1802_v13 = vsel %vm1725_vm4, %v1799_v34, %v1801_v55 }
 0x256   : > { %11458 = vst [vmem:[#allocation178_spill] sm:$0xff] %v8222_v23  ;;  %v6568_v23 = vld [vmem:[%s6696_s24 + $0x128] sm:$0xff]  }
 0x257   : > { %11459 = vst [vmem:[#allocation179_spill] sm:$0xff] %v8224_v10  ;;  %v1797_v10 = vrot.slane %v6568_v23, 3  ;;  %v6569_v23 = vld [vmem:[%s6696_s24 + $0x148] sm:$0xff]  }
 0x25a   : > { %1885 = vrot.lane.b32.xlu2 %v1796_v36, %s6645_s29  ;;  %1883 = vrot.lane.b32.xlu1 %v1794_v11, %s6645_s29  ;;  %v1800_v36 = vsel %vm1725_vm4, %v1797_v10, %v1799_v34  ;;  %v1798_v11 = vsel %vm1725_vm4, %v1795_v21, %v1797_v10 }
 0x25b   : > { %1881 = vrot.lane.b32.xlu0 %v1792_v9, %s6645_s29  ;;  %v1805_v9 = vrot.slane %v6569_v23, 3  ;;  %v6573_v23 = vld [vmem:[%s6696_s24 + $0x158] sm:$0xff]  }
 0x25c   : > { %v8235_v60 = vpop.permute.xlu2 %1819  ;;  %v8237_v58 = vpop.permute.xlu1 %1704  ;;  %v1809_v50 = vrot.slane %v6573_v23, 3  ;;  %v11177_v23 = vunpack.c.l.b16 %v8281_v14 }
 0x25d   : > { %11460 = vst [vmem:[#allocation180_spill] sm:$0xff] %v8235_v60  ;;  %v8239_v53 = vpop.permute.xlu0 %1702  ;;  %v1808_v21 = vsel %vm1725_vm4, %v1805_v9, %v1807_v47  ;;  %v1806_v10 = vsel %vm1725_vm4, %v1803_v8, %v1805_v9 }
 0x25e   : > { %11461 = vst [vmem:[#allocation181_spill] sm:$0xff] %v8237_v58 }
 0x25f   : > { %11462 = vst [vmem:[#allocation182_spill] sm:$0xff] %v8239_v53 }
 0x262   : > { %1891 = vrot.lane.b32.xlu2 %v1802_v13, %s6645_s29  ;;  %1889 = vrot.lane.b32.xlu1 %v1800_v36, %s6645_s29  ;;  %v1804_v13 = vsel %vm1725_vm4, %v1801_v55, %v1803_v8  ;;  %v1811_v36 = vrot.slane %v8263_v38, 3 }
 0x263   : > { %1887 = vrot.lane.b32.xlu0 %v1798_v11, %s6645_s29  ;;  %v1813_v11 = vrot.slane %v8016_v7, 3 }
 0x264   : > { %v8250_v20 = vpop.permute.xlu2 %1825  ;;  %v8252_v51 = vpop.permute.xlu1 %1710 }
 0x265   : > { %11463 = vst [vmem:[#allocation183_spill] sm:$0xff] %v8250_v20  ;;  %v8254_v34 = vpop.permute.xlu0 %1708  ;;  %v1814_v55 = vsel %vm1725_vm4, %v1811_v36, %v1813_v11  ;;  %v8539_v20 = vld [vmem:[%s6696_s24 + $0x134] sm:$0xff]  }
 0x266   : > { %11464 = vst [vmem:[#allocation184_spill] sm:$0xff] %v8252_v51 }
 0x267   : > { %11465 = vst [vmem:[#allocation185_spill] sm:$0xff] %v8254_v34 }
 0x26a   : > { %1897 = vrot.lane.b32.xlu2 %v1808_v21, %s6645_s29  ;;  %1895 = vrot.lane.b32.xlu1 %v1806_v10, %s6645_s29  ;;  %v1812_v21 = vsel %vm1725_vm4, %v1809_v50, %v1811_v36  ;;  %v1810_v10 = vsel %vm1725_vm4, %v1807_v47, %v1809_v50  ;;  %v1815_v47 = vrot.slane %v8008_v41, 3 }
 0x26b   : > { %1893 = vrot.lane.b32.xlu0 %v1804_v13, %s6645_s29  ;;  %v6574_v13 = vld [vmem:[%s6696_s24 + $0x10] sm:$0xff]  }
 0x26c   : > { %v8268_v51 = vpop.permute.xlu2 %1831  ;;  %v8270_v9 = vpop.permute.xlu1 %1716  ;;  %v5991_v34 = vunpack.c.h.b16 %v6574_v13 }
 0x26d   : > { %11466 = vst [vmem:[#allocation186_spill] sm:$0xff] %v8268_v51  ;;  %v8272_v8 = vpop.permute.xlu0 %1714 }
 0x26e   : > { %11467 = vst [vmem:[#allocation187_spill] sm:$0xff] %v8270_v9  ;;  %v8455_v9 = vld [vmem:[%s6696_s24 + $0xd4] sm:$0xff]  }
 0x26f   : > { %11468 = vst [vmem:[#allocation188_spill] sm:$0xff] %v8272_v8 }
 0x272   : > { %1903 = vrot.lane.b32.xlu2 %v1814_v55, %s6645_s29  ;;  %1901 = vrot.lane.b32.xlu1 %v1812_v21, %s6645_s29  ;;  %v8294_v55 = vpack.c.b16 %v11177_v23, %v5991_v34  ;;  %v1816_v21 = vsel %vm1725_vm4, %v1813_v11, %v1815_v47  ;;  %v8308_v34 = vld [vmem:[%s6696_s24 + $0x2c] sm:$0xff]   ;;  %v8311_v11 = vld [vmem:[%s6696_s24 + $0x24] sm:$0xff]  }
 0x273   : > { %1899 = vrot.lane.b32.xlu0 %v1810_v10, %s6645_s29  ;;  %11476 = vst [vmem:[#allocation196_spill] sm:$0xff] %v8311_v11  ;;  %v8314_v23 = vld [vmem:[%s6696_s24 + $0x1c] sm:$0xff]   ;;  %v2076_v22 = vshrl.u32 %v8311_v11, 16  ;;  %v2080_v60 = vshll.u32 %v8308_v34, 16 }
 0x274   : > { %v8285_v32 = vpop.permute.xlu2 %1837  ;;  %v8287_v36 = vpop.permute.xlu1 %1817  ;;  %11477 = vst [vmem:[#allocation197_spill] sm:$0xff] %v8314_v23 }
 0x275   : > { %11470 = vst [vmem:[#allocation190_spill] sm:$0xff] %v8285_v32  ;;  %v8290_v50 = vpop.permute.xlu0 %1720 }
 0x276   : > { %11471 = vst [vmem:[#allocation191_spill] sm:$0xff] %v8287_v36 }
 0x277   : > { %11472 = vst [vmem:[#allocation192_spill] sm:$0xff] %v8290_v50  ;;  %v8329_v50 = vld [vmem:[%s6696_s24 + $0x44] sm:$0xff]  }
 0x278   : > { %v2104_v15 = vshll.u32 %v8329_v50, 16 }
 0x27a   : > { %1961 = vrot.lane.b32.xlu2 %v8294_v55, %s6646_s30  ;;  %1907 = vrot.lane.b32.xlu1 %v1815_v47, %s6645_s29 }
 0x27b   : > { %1905 = vrot.lane.b32.xlu0 %v1816_v21, %s6645_s29 }
 0x27c   : > { %v8301_v41 = vpop.permute.xlu2 %1843  ;;  %v8303_v10 = vpop.permute.xlu1 %1823 }
 0x27d   : > { %11473 = vst [vmem:[#allocation193_spill] sm:$0xff] %v8301_v41  ;;  %v8305_v13 = vpop.permute.xlu0 %1821  ;;  %v11517_v41 = vld [vmem:[#allocation4_spill] sm:$0xff] }
 0x27e   : > { %11474 = vst [vmem:[#allocation194_spill] sm:$0xff] %v8303_v10  ;;  %v6159_v10 = vunpack.c.h.b16 %v8263_v38 }
 0x27f   : > { %11475 = vst [vmem:[#allocation195_spill] sm:$0xff] %v8305_v13  ;;  %v2059_v13 = vshll.u32 %v8294_v55, 16 }
 0x280   : > { %v8582_v19 = vpack.c.b16 %v11517_v41, %v6159_v10  ;;  %v2064_v41 = vshll.u32 %v8314_v23, 16 }
 0x281   : > { %v2061_v18 = vrot.slane %v2059_v13, 1 }
 0x282   : > { %1967 = vrot.lane.b32.xlu2 %v8308_v34, %s6646_s30  ;;  %1965 = vrot.lane.b32.xlu1 %v8311_v11, %s6646_s30  ;;  %v2066_v52 = vrot.slane %v2064_v41, 1 }
 0x283   : > { %1963 = vrot.lane.b32.xlu0 %v8314_v23, %s6646_s30 }
 0x284   : > { %v8322_v47 = vpop.permute.xlu2 %1849  ;;  %v8324_v21 = vpop.permute.xlu1 %1829 }
 0x285   : > { %11478 = vst [vmem:[#allocation198_spill] sm:$0xff] %v8322_v47  ;;  %v8326_v32 = vpop.permute.xlu0 %1827 }
 0x286   : > { %11479 = vst [vmem:[#allocation199_spill] sm:$0xff] %v8324_v21 }
 0x287   : > { %11480 = vst [vmem:[#allocation200_spill] sm:$0xff] %v8326_v32  ;;  %v8476_v32 = vld [vmem:[%s6696_s24 + $0xec] sm:$0xff]  }
 0x28a   : > { %1973 = vrot.lane.b32.xlu2 %v8329_v50, %s6646_s30  ;;  %1971 = vrot.lane.b32.xlu1 %v8332_v33, %s6646_s30 }
 0x28b   : > { %1969 = vrot.lane.b32.xlu0 %v8335_v6, %s6646_s30 }
 0x28c   : > { %v8343_v8 = vpop.permute.xlu2 %1855  ;;  %v8345_v51 = vpop.permute.xlu1 %1835 }
 0x28d   : > { %11481 = vst [vmem:[#allocation201_spill] sm:$0xff] %v8343_v8  ;;  %v8347_v58 = vpop.permute.xlu0 %1833 }
 0x28e   : > { %11482 = vst [vmem:[#allocation202_spill] sm:$0xff] %v8345_v51 }
 0x28f   : > { %11483 = vst [vmem:[#allocation203_spill] sm:$0xff] %v8347_v58 }
 0x292   : > { %1979 = vrot.lane.b32.xlu2 %v8350_v12, %s6646_s30  ;;  %1977 = vrot.lane.b32.xlu1 %v8353_v48, %s6646_s30 }
 0x293   : > { %1975 = vrot.lane.b32.xlu0 %v8356_v17, %s6646_s30 }
 0x294   : > { %v8364_v51 = vpop.permute.xlu2 %1861  ;;  %v8366_v8 = vpop.permute.xlu1 %1841 }
 0x295   : > { %11484 = vst [vmem:[#allocation204_spill] sm:$0xff] %v8364_v51  ;;  %v8368_v58 = vpop.permute.xlu0 %1839 }
 0x296   : > { %11485 = vst [vmem:[#allocation205_spill] sm:$0xff] %v8366_v8  ;;  %v352_v8 = vld [vmem:[%s6696_s24 + $0x17c] sm:$0x7] }
 0x297   : > { %11486 = vst [vmem:[#allocation206_spill] sm:$0xff] %v8368_v58  ;;  %v1914_v38 = vunpack.c.l.b16 %v352_v8 }
 0x299   : > { %v1960_v45 = vpack.c.b16 %v1914_v38, %v1914_v38 }
 0x29a   : > { %1985 = vrot.lane.b32.xlu2 %v8371_v24, %s6646_s30  ;;  %1983 = vrot.lane.b32.xlu1 %v8374_v40, %s6646_s30 }
 0x29b   : > { %1981 = vrot.lane.b32.xlu0 %v8377_v57, %s6646_s30 }
 0x29c   : > { %v8385_v51 = vpop.permute.xlu2 %1867  ;;  %v8387_v58 = vpop.permute.xlu1 %1847 }
 0x29d   : > { %11487 = vst [vmem:[#allocation207_spill] sm:$0xff] %v8385_v51  ;;  %v8389_v28 = vpop.permute.xlu0 %1845  ;;  %v8461_v51 = vld [vmem:[%s6696_s24 + $0xc4] sm:$0xff]  }
 0x29e   : > { %11488 = vst [vmem:[#allocation208_spill] sm:$0xff] %v8387_v58 }
 0x29f   : > { %11489 = vst [vmem:[#allocation209_spill] sm:$0xff] %v8389_v28  ;;  %v8524_v28 = vld [vmem:[%s6696_s24 + $0x10c] sm:$0xff]  }
 0x2a2   : > { %1991 = vrot.lane.b32.xlu2 %v8392_v16, %s6646_s30  ;;  %1989 = vrot.lane.b32.xlu1 %v8395_v4, %s6646_s30 }
 0x2a3   : > { %1987 = vrot.lane.b32.xlu0 %v8398_v2, %s6646_s30 }
 0x2a4   : > { %v8406_v21 = vpop.permute.xlu2 %1873  ;;  %v8408_v47 = vpop.permute.xlu1 %1853 }
 0x2a5   : > { %11490 = vst [vmem:[#allocation210_spill] sm:$0xff] %v8406_v21  ;;  %v8410_v53 = vpop.permute.xlu0 %1851 }
 0x2a6   : > { %11491 = vst [vmem:[#allocation211_spill] sm:$0xff] %v8408_v47 }
 0x2a7   : > { %11492 = vst [vmem:[#allocation212_spill] sm:$0xff] %v8410_v53 }
 0x2aa   : > { %1997 = vrot.lane.b32.xlu2 %v8413_v0, %s6646_s30  ;;  %1995 = vrot.lane.b32.xlu1 %v8416_v59, %s6646_s30 }
 0x2ab   : > { %1993 = vrot.lane.b32.xlu0 %v8419_v31, %s6646_s30 }
 0x2ac   : > { %v8427_v47 = vpop.permute.xlu2 %1879  ;;  %v8429_v21 = vpop.permute.xlu1 %1859 }
 0x2ad   : > { %11493 = vst [vmem:[#allocation213_spill] sm:$0xff] %v8427_v47  ;;  %v8431_v53 = vpop.permute.xlu0 %1857 }
 0x2ae   : > { %11494 = vst [vmem:[#allocation214_spill] sm:$0xff] %v8429_v21 }
 0x2af   : > { %11495 = vst [vmem:[#allocation215_spill] sm:$0xff] %v8431_v53 }
 0x2b2   : > { %2003 = vrot.lane.b32.xlu2 %v8434_v49, %s6646_s30  ;;  %2001 = vrot.lane.b32.xlu1 %v8437_v46, %s6646_s30 }
 0x2b3   : > { %1999 = vrot.lane.b32.xlu0 %v8440_v39, %s6646_s30 }
 0x2b4   : > { %v8448_v47 = vpop.permute.xlu2 %1885  ;;  %v8450_v21 = vpop.permute.xlu1 %1865 }
 0x2b5   : > { %11496 = vst [vmem:[#allocation216_spill] sm:$0xff] %v8448_v47  ;;  %v8452_v53 = vpop.permute.xlu0 %1863 }
 0x2b6   : > { %11497 = vst [vmem:[#allocation217_spill] sm:$0xff] %v8450_v21  ;;  %v8521_v21 = vld [vmem:[%s6696_s24 + $0x114] sm:$0xff]  }
 0x2b7   : > { %11498 = vst [vmem:[#allocation218_spill] sm:$0xff] %v8452_v53 }
 0x2ba   : > { %2009 = vrot.lane.b32.xlu2 %v8455_v9, %s6646_s30  ;;  %2007 = vrot.lane.b32.xlu1 %v8458_v54, %s6646_s30 }
 0x2bb   : > { %2005 = vrot.lane.b32.xlu0 %v8461_v51, %s6646_s30 }
 0x2bc   : > { %v8469_v47 = vpop.permute.xlu2 %1891  ;;  %v8471_v53 = vpop.permute.xlu1 %1871 }
 0x2bd   : > { %11499 = vst [vmem:[#allocation219_spill] sm:$0xff] %v8469_v47  ;;  %v8473_v58 = vpop.permute.xlu0 %1869 }
 0x2be   : > { %11500 = vst [vmem:[#allocation220_spill] sm:$0xff] %v8471_v53 }
 0x2bf   : > { %11501 = vst [vmem:[#allocation221_spill] sm:$0xff] %v8473_v58 }
 0x2c2   : > { %2015 = vrot.lane.b32.xlu2 %v8476_v32, %s6646_s30  ;;  %2013 = vrot.lane.b32.xlu1 %v8479_v62, %s6646_s30 }
 0x2c3   : > { %2011 = vrot.lane.b32.xlu0 %v8482_v29, %s6646_s30 }
 0x2c4   : > { %v8490_v53 = vpop.permute.xlu2 %1897  ;;  %v8492_v47 = vpop.permute.xlu1 %1877 }
 0x2c5   : > { %11502 = vst [vmem:[#allocation222_spill] sm:$0xff] %v8490_v53  ;;  %v8494_v58 = vpop.permute.xlu0 %1875 }
 0x2c6   : > { %11503 = vst [vmem:[#allocation223_spill] sm:$0xff] %v8492_v47 }
 0x2c7   : > { %11504 = vst [vmem:[#allocation224_spill] sm:$0xff] %v8494_v58 }
 0x2ca   : > { %2021 = vrot.lane.b32.xlu2 %v8497_v35, %s6646_s30  ;;  %2019 = vrot.lane.b32.xlu1 %v8500_v3, %s6646_s30 }
 0x2cb   : > { %2017 = vrot.lane.b32.xlu0 %v8503_v1, %s6646_s30 }
 0x2cc   : > { %v8511_v47 = vpop.permute.xlu2 %1903  ;;  %v8513_v53 = vpop.permute.xlu1 %1883 }
 0x2cd   : > { %11505 = vst [vmem:[#allocation225_spill] sm:$0xff] %v8511_v47  ;;  %v8515_v58 = vpop.permute.xlu0 %1881 }
 0x2ce   : > { %11506 = vst [vmem:[#allocation226_spill] sm:$0xff] %v8513_v53 }
 0x2cf   : > { %11507 = vst [vmem:[#allocation227_spill] sm:$0xff] %v8515_v58 }
 0x2d2   : > { %2027 = vrot.lane.b32.xlu2 %v8518_v26, %s6646_s30  ;;  %2025 = vrot.lane.b32.xlu1 %v8521_v21, %s6646_s30 }
 0x2d3   : > { %2023 = vrot.lane.b32.xlu0 %v8524_v28, %s6646_s30 }
 0x2d4   : > { %v8532_v53 = vpop.permute.xlu2 %1961  ;;  %v8534_v58 = vpop.permute.xlu1 %1889 }
 0x2d5   : > { %11508 = vst [vmem:[#allocation228_spill] sm:$0xff] %v8532_v53  ;;  %v8536_v47 = vpop.permute.xlu0 %1887  ;;  %v2096_v53 = vshll.u32 %v8332_v33, 16 }
 0x2d6   : > { %11509 = vst [vmem:[#allocation229_spill] sm:$0xff] %v8534_v58 }
 0x2d7   : > { %11510 = vst [vmem:[#allocation230_spill] sm:$0xff] %v8536_v47  ;;  %v2098_v36 = vrot.slane %v2096_v53, 1  ;;  %v2106_v53 = vrot.slane %v2104_v15, 1  ;;  %v2124_v15 = vshrl.u32 %v8353_v48, 16 }
 0x2da   : > { %2033 = vrot.lane.b32.xlu2 %v8539_v20, %s6646_s30  ;;  %2031 = vrot.lane.b32.xlu1 %v8542_v27, %s6646_s30 }
 0x2db   : > { %2029 = vrot.lane.b32.xlu0 %v8545_v25, %s6646_s30 }
 0x2dc   : > { %v8553_v58 = vpop.permute.xlu2 %1967  ;;  %v8555_v47 = vpop.permute.xlu1 %1895 }
 0x2dd   : > { %11511 = vst [vmem:[#allocation231_spill] sm:$0xff] %v8553_v58  ;;  %v8557_v5 = vpop.permute.xlu0 %1893 }
 0x2de   : > { %11512 = vst [vmem:[#allocation232_spill] sm:$0xff] %v8555_v47 }
 0x2df   : > { %11513 = vst [vmem:[#allocation233_spill] sm:$0xff] %v8557_v5 }
 0x2e2   : > { %2039 = vrot.lane.b32.xlu2 %v8560_v44, %s6646_s30  ;;  %2037 = vrot.lane.b32.xlu1 %v8563_v56, %s6646_s30 }
 0x2e3   : > { %2035 = vrot.lane.b32.xlu0 %v8566_v37, %s6646_s30 }
 0x2e4   : > { %v8575_v47 = vpop.permute.xlu2 %1973  ;;  %v8577_v5 = vpop.permute.xlu1 %1901 }
 0x2e5   : > { %11514 = vst [vmem:[#allocation234_spill] sm:$0xff] %v8575_v47  ;;  %v8579_v58 = vpop.permute.xlu0 %1899 }
 0x2e6   : > { %11515 = vst [vmem:[#allocation235_spill] sm:$0xff] %v8577_v5  ;;  %v6163_v5 = vunpack.c.h.b16 %v8016_v7 }
 0x2e7   : > { %11516 = vst [vmem:[#allocation236_spill] sm:$0xff] %v8579_v58  ;;  %v2072_v58 = vshll.u32 %v8311_v11, 16 }
 0x2e8   : > { %v8611_v7 = vpack.c.b16 %v7655_v61, %v6163_v5  ;;  %v2088_v61 = vshll.u32 %v8335_v6, 16 }
 0x2e9   : > { %v2074_v8 = vrot.slane %v2072_v58, 1  ;;  %v2082_v58 = vrot.slane %v2080_v60, 1 }
 0x2ea   : > { %2045 = vrot.lane.b32.xlu2 %v8582_v19, %s6646_s30  ;;  %2043 = vrot.lane.b32.xlu1 %v8585_v63, %s6646_s30  ;;  %v2090_v11 = vrot.slane %v2088_v61, 1  ;;  %v2120_v61 = vshll.u32 %v8353_v48, 16 }
 0x2eb   : > { %2041 = vrot.lane.b32.xlu0 %v8588_v30, %s6646_s30  ;;  %v2078_v5 = vor.u32 %v2076_v22, %v2074_v8 }
 0x2ec   : > { %v8600_v10 = vpop.permute.xlu2 %1979  ;;  %v8602_v47 = vpop.permute.xlu1 %1907 }
 0x2ed   : > { %11518 = vst [vmem:[#allocation4_spill] sm:$0xff] %v8600_v10  ;;  %v8605_v42 = vpop.permute.xlu0 %1905  ;;  %v2068_v10 = vshrl.u32 %v8314_v23, 16  ;;  %v2092_v23 = vshrl.u32 %v8335_v6, 16  ;;  %v2083_v14 = vsel %vm586_vm0, %v2078_v5, %v2082_v58  ;;  %v2112_v5 = vshll.u32 %v8356_v17, 16 }
 0x2ee   : > { %11519 = vst [vmem:[#allocation237_spill] sm:$0xff] %v8602_v47  ;;  %v2057_v47 = vshrl.u32 %v8294_v55, 16 }
 0x2ef   : > { %11520 = vst [vmem:[#allocation238_spill] sm:$0xff] %v8605_v42  ;;  %v2070_v38 = vor.u32 %v2068_v10, %v2066_v52  ;;  %v2084_v10 = vshrl.u32 %v8308_v34, 16 }
 0x2f0   : > { %v2062_v55 = vor.u32 %v2061_v18, %v2057_v47  ;;  %v2094_v47 = vor.u32 %v2092_v23, %v2090_v11  ;;  %v2128_v23 = vshll.u32 %v8350_v12, 16 }
 0x2f1   : > { %v2075_v22 = vsel %vm586_vm0, %v2070_v38, %v2074_v8 }
 0x2f2   : > { %2051 = vrot.lane.b32.xlu2 %v1960_v45, %s6646_s30  ;;  %2049 = vrot.lane.b32.xlu1 %v8608_v43, %s6646_s30  ;;  %v2100_v45 = vshrl.u32 %v8332_v33, 16  ;;  %v2067_v60 = vsel %vm586_vm0, %v2062_v55, %v2066_v52  ;;  %v2086_v52 = vor.u32 %v2084_v10, %v2082_v58  ;;  %v2099_v55 = vsel %vm586_vm0, %v2094_v47, %v2098_v36 }
 0x2f3   : > { %2047 = vrot.lane.b32.xlu0 %v8611_v7, %s6646_s30  ;;  %v2144_v58 = vshll.u32 %v8374_v40, 16 }
 0x2f4   : > { %v8624_v41 = vpop.permute.xlu2 %1985  ;;  %v8626_v42 = vpop.permute.xlu1 %1965  ;;  %v2102_v18 = vor.u32 %v2100_v45, %v2098_v36  ;;  %v2122_v45 = vrot.slane %v2120_v61, 1  ;;  %v2136_v36 = vshll.u32 %v8377_v57, 16 }
 0x2f5   : > { %11521 = vst [vmem:[#allocation239_spill] sm:$0xff] %v8624_v41  ;;  %v8628_v13 = vpop.permute.xlu0 %1963  ;;  %v2091_v41 = vsel %vm586_vm0, %v2086_v52, %v2090_v11 }
 0x2f6   : > { %11522 = vst [vmem:[#allocation240_spill] sm:$0xff] %v8626_v42  ;;  %v2126_v10 = vor.u32 %v2124_v15, %v2122_v45 }
 0x2f7   : > { %11523 = vst [vmem:[#allocation241_spill] sm:$0xff] %v8628_v13  ;;  %v2140_v13 = vshrl.u32 %v8377_v57, 16 }
 0x2fa   : > { %2427 = vrot.lane.b32.xlu2 %v2083_v14, %s6647_s6  ;;  %2425 = vrot.lane.b32.xlu1 %v2075_v22, %s6647_s6  ;;  %v2107_v14 = vsel %vm586_vm0, %v2102_v18, %v2106_v53  ;;  %v2114_v22 = vrot.slane %v2112_v5, 1  ;;  %v2130_v18 = vrot.slane %v2128_v23, 1 }
 0x2fb   : > { %2423 = vrot.lane.b32.xlu0 %v2067_v60, %s6647_s6  ;;  %v2116_v60 = vshrl.u32 %v8356_v17, 16 }
 0x2fc   : > { %v8642_v42 = vpop.permute.xlu2 %1991  ;;  %v8644_v8 = vpop.permute.xlu1 %1971 }
 0x2fd   : > { %11524 = vst [vmem:[#allocation242_spill] sm:$0xff] %v8642_v42  ;;  %v8646_v38 = vpop.permute.xlu0 %1969  ;;  %v2108_v42 = vshrl.u32 %v8329_v50, 16  ;;  %v2118_v47 = vor.u32 %v2116_v60, %v2114_v22  ;;  %v2132_v60 = vshrl.u32 %v8350_v12, 16 }
 0x2fe   : > { %11525 = vst [vmem:[#allocation243_spill] sm:$0xff] %v8644_v8  ;;  %v2146_v8 = vrot.slane %v2144_v58, 1 }
 0x2ff   : > { %11526 = vst [vmem:[#allocation244_spill] sm:$0xff] %v8646_v38  ;;  %v2110_v11 = vor.u32 %v2108_v42, %v2106_v53  ;;  %v2148_v38 = vshrl.u32 %v8374_v40, 16  ;;  %v2123_v15 = vsel %vm586_vm0, %v2118_v47, %v2122_v45 }
 0x301   : > { %v2115_v23 = vsel %vm586_vm0, %v2110_v11, %v2114_v22  ;;  %v2150_v42 = vor.u32 %v2148_v38, %v2146_v8  ;;  %v2134_v22 = vor.u32 %v2132_v60, %v2130_v18 }
 0x302   : > { %2433 = vrot.lane.b32.xlu2 %v2107_v14, %s6647_s6  ;;  %2431 = vrot.lane.b32.xlu1 %v2099_v55, %s6647_s6  ;;  %v2152_v14 = vshll.u32 %v8371_v24, 16  ;;  %v2138_v55 = vrot.slane %v2136_v36, 1  ;;  %v2160_v36 = vshll.u32 %v8398_v2, 16 }
 0x303   : > { %2429 = vrot.lane.b32.xlu0 %v2091_v41, %s6647_s6  ;;  %v2131_v41 = vsel %vm586_vm0, %v2126_v10, %v2130_v18  ;;  %v2192_v18 = vshll.u32 %v8416_v59, 16 }
 0x304   : > { %v8660_v61 = vpop.permute.xlu2 %1997  ;;  %v8662_v5 = vpop.permute.xlu1 %1977  ;;  %v2154_v53 = vrot.slane %v2152_v14, 1  ;;  %v2142_v58 = vor.u32 %v2140_v13, %v2138_v55  ;;  %v2172_v13 = vshrl.u32 %v8395_v4, 16  ;;  %v2176_v14 = vshll.u32 %v8392_v16, 16 }
 0x305   : > { %11527 = vst [vmem:[#allocation245_spill] sm:$0xff] %v8660_v61  ;;  %v8664_v52 = vpop.permute.xlu0 %1975  ;;  %v2139_v61 = vsel %vm586_vm0, %v2134_v22, %v2138_v55 }
 0x306   : > { %11528 = vst [vmem:[#allocation246_spill] sm:$0xff] %v8662_v5  ;;  %v2168_v5 = vshll.u32 %v8395_v4, 16  ;;  %v2155_v11 = vsel %vm586_vm0, %v2150_v42, %v2154_v53  ;;  %v2178_v60 = vrot.slane %v2176_v14, 1 }
 0x307   : > { %11529 = vst [vmem:[#allocation247_spill] sm:$0xff] %v8664_v52  ;;  %v2188_v52 = vshrl.u32 %v8419_v31, 16 }
 0x308   : > { %v2170_v38 = vrot.slane %v2168_v5, 1 }
 0x30a   : > { %2439 = vrot.lane.b32.xlu2 %v2131_v41, %s6647_s6  ;;  %2437 = vrot.lane.b32.xlu1 %v2123_v15, %s6647_s6  ;;  %v2147_v41 = vsel %vm586_vm0, %v2142_v58, %v2146_v8  ;;  %v2162_v15 = vrot.slane %v2160_v36, 1  ;;  %v2184_v8 = vshll.u32 %v8419_v31, 16  ;;  %v2174_v5 = vor.u32 %v2172_v13, %v2170_v38 }
 0x30b   : > { %2435 = vrot.lane.b32.xlu0 %v2115_v23, %s6647_s6  ;;  %v2164_v23 = vshrl.u32 %v8398_v2, 16 }
 0x30c   : > { %v8678_v10 = vpop.permute.xlu2 %2003  ;;  %v8680_v45 = vpop.permute.xlu1 %1983 }
 0x30d   : > { %11530 = vst [vmem:[#allocation248_spill] sm:$0xff] %v8678_v10  ;;  %v8682_v47 = vpop.permute.xlu0 %1981  ;;  %v2156_v10 = vshrl.u32 %v8371_v24, 16  ;;  %v2166_v42 = vor.u32 %v2164_v23, %v2162_v15  ;;  %v2180_v23 = vshrl.u32 %v8392_v16, 16 }
 0x30e   : > { %11531 = vst [vmem:[#allocation249_spill] sm:$0xff] %v8680_v45  ;;  %v2194_v45 = vrot.slane %v2192_v18, 1 }
 0x30f   : > { %11532 = vst [vmem:[#allocation250_spill] sm:$0xff] %v8682_v47  ;;  %v2158_v55 = vor.u32 %v2156_v10, %v2154_v53  ;;  %v2196_v47 = vshrl.u32 %v8416_v59, 16  ;;  %v2171_v13 = vsel %vm586_vm0, %v2166_v42, %v2170_v38 }
 0x311   : > { %v2163_v14 = vsel %vm586_vm0, %v2158_v55, %v2162_v15  ;;  %v2198_v53 = vor.u32 %v2196_v47, %v2194_v45  ;;  %v2182_v15 = vor.u32 %v2180_v23, %v2178_v60 }
 0x312   : > { %2445 = vrot.lane.b32.xlu2 %v2155_v11, %s6647_s6  ;;  %2443 = vrot.lane.b32.xlu1 %v2147_v41, %s6647_s6  ;;  %v2200_v11 = vshll.u32 %v8413_v0, 16  ;;  %v2186_v41 = vrot.slane %v2184_v8, 1  ;;  %v2208_v8 = vshll.u32 %v8440_v39, 16 }
 0x313   : > { %2441 = vrot.lane.b32.xlu0 %v2139_v61, %s6647_s6  ;;  %v2179_v61 = vsel %vm586_vm0, %v2174_v5, %v2178_v60  ;;  %v2240_v60 = vshll.u32 %v8458_v54, 16 }
 0x314   : > { %v8696_v58 = vpop.permute.xlu2 %2009  ;;  %v8698_v36 = vpop.permute.xlu1 %1989  ;;  %v2202_v10 = vrot.slane %v2200_v11, 1  ;;  %v2190_v18 = vor.u32 %v2188_v52, %v2186_v41  ;;  %v2220_v52 = vshrl.u32 %v8437_v46, 16  ;;  %v2224_v11 = vshll.u32 %v8434_v49, 16 }
 0x315   : > { %11533 = vst [vmem:[#allocation251_spill] sm:$0xff] %v8696_v58  ;;  %v8700_v22 = vpop.permute.xlu0 %1987  ;;  %v2187_v58 = vsel %vm586_vm0, %v2182_v15, %v2186_v41 }
 0x316   : > { %11534 = vst [vmem:[#allocation252_spill] sm:$0xff] %v8698_v36  ;;  %v2216_v36 = vshll.u32 %v8437_v46, 16  ;;  %v2203_v55 = vsel %vm586_vm0, %v2198_v53, %v2202_v10  ;;  %v2226_v23 = vrot.slane %v2224_v11, 1 }
 0x317   : > { %11535 = vst [vmem:[#allocation253_spill] sm:$0xff] %v8700_v22  ;;  %v2236_v22 = vshrl.u32 %v8461_v51, 16 }
 0x318   : > { %v2218_v47 = vrot.slane %v2216_v36, 1 }
 0x31a   : > { %2451 = vrot.lane.b32.xlu2 %v2179_v61, %s6647_s6  ;;  %2449 = vrot.lane.b32.xlu1 %v2171_v13, %s6647_s6  ;;  %v2195_v61 = vsel %vm586_vm0, %v2190_v18, %v2194_v45  ;;  %v2210_v13 = vrot.slane %v2208_v8, 1  ;;  %v2232_v45 = vshll.u32 %v8461_v51, 16  ;;  %v2222_v36 = vor.u32 %v2220_v52, %v2218_v47 }
 0x31b   : > { %2447 = vrot.lane.b32.xlu0 %v2163_v14, %s6647_s6  ;;  %v2212_v14 = vshrl.u32 %v8440_v39, 16 }
 0x31c   : > { %v8714_v5 = vpop.permute.xlu2 %2015  ;;  %v8716_v38 = vpop.permute.xlu1 %1995 }
 0x31d   : > { %11536 = vst [vmem:[#allocation254_spill] sm:$0xff] %v8714_v5  ;;  %v8718_v42 = vpop.permute.xlu0 %1993  ;;  %v2204_v5 = vshrl.u32 %v8413_v0, 16  ;;  %v2214_v53 = vor.u32 %v2212_v14, %v2210_v13  ;;  %v2228_v14 = vshrl.u32 %v8434_v49, 16 }
 0x31e   : > { %11537 = vst [vmem:[#allocation255_spill] sm:$0xff] %v8716_v38  ;;  %v2242_v38 = vrot.slane %v2240_v60, 1 }
 0x31f   : > { %11538 = vst [vmem:[#allocation256_spill] sm:$0xff] %v8718_v42  ;;  %v2206_v41 = vor.u32 %v2204_v5, %v2202_v10  ;;  %v2244_v42 = vshrl.u32 %v8458_v54, 16  ;;  %v2219_v52 = vsel %vm586_vm0, %v2214_v53, %v2218_v47 }
 0x321   : > { %v2211_v11 = vsel %vm586_vm0, %v2206_v41, %v2210_v13  ;;  %v2246_v10 = vor.u32 %v2244_v42, %v2242_v38  ;;  %v2230_v13 = vor.u32 %v2228_v14, %v2226_v23 }
 0x322   : > { %2457 = vrot.lane.b32.xlu2 %v2203_v55, %s6647_s6  ;;  %2455 = vrot.lane.b32.xlu1 %v2195_v61, %s6647_s6  ;;  %v2248_v55 = vshll.u32 %v8455_v9, 16  ;;  %v2234_v61 = vrot.slane %v2232_v45, 1  ;;  %v2256_v45 = vshll.u32 %v8482_v29, 16 }
 0x323   : > { %2453 = vrot.lane.b32.xlu0 %v2187_v58, %s6647_s6  ;;  %v2227_v58 = vsel %vm586_vm0, %v2222_v36, %v2226_v23  ;;  %v2288_v23 = vshll.u32 %v8500_v3, 16 }
 0x324   : > { %v8732_v18 = vpop.permute.xlu2 %2021  ;;  %v8734_v8 = vpop.permute.xlu1 %2001  ;;  %v2250_v5 = vrot.slane %v2248_v55, 1  ;;  %v2238_v60 = vor.u32 %v2236_v22, %v2234_v61  ;;  %v2268_v22 = vshrl.u32 %v8479_v62, 16  ;;  %v2272_v55 = vshll.u32 %v8476_v32, 16 }
 0x325   : > { %11539 = vst [vmem:[#allocation257_spill] sm:$0xff] %v8732_v18  ;;  %v8736_v15 = vpop.permute.xlu0 %1999  ;;  %v2235_v18 = vsel %vm586_vm0, %v2230_v13, %v2234_v61 }
 0x326   : > { %11540 = vst [vmem:[#allocation258_spill] sm:$0xff] %v8734_v8  ;;  %v2264_v8 = vshll.u32 %v8479_v62, 16  ;;  %v2251_v41 = vsel %vm586_vm0, %v2246_v10, %v2250_v5  ;;  %v2274_v14 = vrot.slane %v2272_v55, 1 }
 0x327   : > { %11541 = vst [vmem:[#allocation259_spill] sm:$0xff] %v8736_v15  ;;  %v2284_v15 = vshrl.u32 %v8503_v1, 16 }
 0x328   : > { %v2266_v42 = vrot.slane %v2264_v8, 1 }
 0x32a   : > { %2463 = vrot.lane.b32.xlu2 %v2227_v58, %s6647_s6  ;;  %2461 = vrot.lane.b32.xlu1 %v2219_v52, %s6647_s6  ;;  %v2243_v58 = vsel %vm586_vm0, %v2238_v60, %v2242_v38  ;;  %v2258_v52 = vrot.slane %v2256_v45, 1  ;;  %v2280_v38 = vshll.u32 %v8503_v1, 16  ;;  %v2270_v8 = vor.u32 %v2268_v22, %v2266_v42 }
 0x32b   : > { %2459 = vrot.lane.b32.xlu0 %v2211_v11, %s6647_s6  ;;  %v2260_v11 = vshrl.u32 %v8482_v29, 16 }
 0x32c   : > { %v8750_v36 = vpop.permute.xlu2 %2027  ;;  %v8752_v47 = vpop.permute.xlu1 %2007 }
 0x32d   : > { %11542 = vst [vmem:[#allocation260_spill] sm:$0xff] %v8750_v36  ;;  %v8754_v53 = vpop.permute.xlu0 %2005  ;;  %v2252_v36 = vshrl.u32 %v8455_v9, 16  ;;  %v2262_v10 = vor.u32 %v2260_v11, %v2258_v52  ;;  %v2276_v11 = vshrl.u32 %v8476_v32, 16 }
 0x32e   : > { %11543 = vst [vmem:[#allocation261_spill] sm:$0xff] %v8752_v47  ;;  %v2290_v47 = vrot.slane %v2288_v23, 1 }
 0x32f   : > { %11544 = vst [vmem:[#allocation262_spill] sm:$0xff] %v8754_v53  ;;  %v2254_v61 = vor.u32 %v2252_v36, %v2250_v5  ;;  %v2292_v53 = vshrl.u32 %v8500_v3, 16  ;;  %v2267_v22 = vsel %vm586_vm0, %v2262_v10, %v2266_v42 }
 0x331   : > { %v2259_v55 = vsel %vm586_vm0, %v2254_v61, %v2258_v52  ;;  %v2294_v5 = vor.u32 %v2292_v53, %v2290_v47  ;;  %v2278_v52 = vor.u32 %v2276_v11, %v2274_v14 }
 0x332   : > { %2469 = vrot.lane.b32.xlu2 %v2251_v41, %s6647_s6  ;;  %2467 = vrot.lane.b32.xlu1 %v2243_v58, %s6647_s6  ;;  %v2296_v41 = vshll.u32 %v8497_v35, 16  ;;  %v2282_v58 = vrot.slane %v2280_v38, 1  ;;  %v2304_v38 = vshll.u32 %v8524_v28, 16 }
 0x333   : > { %2465 = vrot.lane.b32.xlu0 %v2235_v18, %s6647_s6  ;;  %v2275_v18 = vsel %vm586_vm0, %v2270_v8, %v2274_v14  ;;  %v2336_v14 = vshll.u32 %v8542_v27, 16 }
 0x334   : > { %v8768_v60 = vpop.permute.xlu2 %2033  ;;  %v8770_v45 = vpop.permute.xlu1 %2013  ;;  %v2298_v36 = vrot.slane %v2296_v41, 1  ;;  %v2286_v23 = vor.u32 %v2284_v15, %v2282_v58  ;;  %v2316_v15 = vshrl.u32 %v8521_v21, 16  ;;  %v2320_v41 = vshll.u32 %v8518_v26, 16 }
 0x335   : > { %11545 = vst [vmem:[#allocation263_spill] sm:$0xff] %v8768_v60  ;;  %v8772_v13 = vpop.permute.xlu0 %2011  ;;  %v2283_v60 = vsel %vm586_vm0, %v2278_v52, %v2282_v58 }
 0x336   : > { %11546 = vst [vmem:[#allocation264_spill] sm:$0xff] %v8770_v45  ;;  %v2312_v45 = vshll.u32 %v8521_v21, 16  ;;  %v2299_v61 = vsel %vm586_vm0, %v2294_v5, %v2298_v36  ;;  %v2322_v11 = vrot.slane %v2320_v41, 1 }
 0x337   : > { %11547 = vst [vmem:[#allocation265_spill] sm:$0xff] %v8772_v13  ;;  %v2332_v13 = vshrl.u32 %v8545_v25, 16 }
 0x338   : > { %v2314_v53 = vrot.slane %v2312_v45, 1 }
 0x33a   : > { %2475 = vrot.lane.b32.xlu2 %v2275_v18, %s6647_s6  ;;  %2473 = vrot.lane.b32.xlu1 %v2267_v22, %s6647_s6  ;;  %v2291_v18 = vsel %vm586_vm0, %v2286_v23, %v2290_v47  ;;  %v2306_v22 = vrot.slane %v2304_v38, 1  ;;  %v2328_v47 = vshll.u32 %v8545_v25, 16  ;;  %v2318_v45 = vor.u32 %v2316_v15, %v2314_v53 }
 0x33b   : > { %2471 = vrot.lane.b32.xlu0 %v2259_v55, %s6647_s6  ;;  %v2308_v55 = vshrl.u32 %v8524_v28, 16 }
 0x33c   : > { %v8786_v8 = vpop.permute.xlu2 %2039  ;;  %v8788_v42 = vpop.permute.xlu1 %2019 }
 0x33d   : > { %11548 = vst [vmem:[#allocation266_spill] sm:$0xff] %v8786_v8  ;;  %v8790_v10 = vpop.permute.xlu0 %2017  ;;  %v2300_v8 = vshrl.u32 %v8497_v35, 16  ;;  %v2310_v5 = vor.u32 %v2308_v55, %v2306_v22  ;;  %v2324_v55 = vshrl.u32 %v8518_v26, 16 }
 0x33e   : > { %11549 = vst [vmem:[#allocation267_spill] sm:$0xff] %v8788_v42  ;;  %v2338_v42 = vrot.slane %v2336_v14, 1 }
 0x33f   : > { %11550 = vst [vmem:[#allocation268_spill] sm:$0xff] %v8790_v10  ;;  %v2302_v58 = vor.u32 %v2300_v8, %v2298_v36  ;;  %v2340_v10 = vshrl.u32 %v8542_v27, 16  ;;  %v2315_v15 = vsel %vm586_vm0, %v2310_v5, %v2314_v53 }
 0x341   : > { %v2307_v41 = vsel %vm586_vm0, %v2302_v58, %v2306_v22  ;;  %v2342_v36 = vor.u32 %v2340_v10, %v2338_v42  ;;  %v2326_v22 = vor.u32 %v2324_v55, %v2322_v11 }
 0x342   : > { %2481 = vrot.lane.b32.xlu2 %v2299_v61, %s6647_s6  ;;  %2479 = vrot.lane.b32.xlu1 %v2291_v18, %s6647_s6  ;;  %v2344_v61 = vshll.u32 %v8539_v20, 16  ;;  %v2330_v18 = vrot.slane %v2328_v47, 1  ;;  %v2352_v47 = vshll.u32 %v8566_v37, 16 }
 0x343   : > { %2477 = vrot.lane.b32.xlu0 %v2283_v60, %s6647_s6  ;;  %v2323_v60 = vsel %vm586_vm0, %v2318_v45, %v2322_v11  ;;  %v2384_v11 = vshll.u32 %v8585_v63, 16 }
 0x344   : > { %v8804_v23 = vpop.permute.xlu2 %2045  ;;  %v8806_v38 = vpop.permute.xlu1 %2025  ;;  %v2346_v8 = vrot.slane %v2344_v61, 1  ;;  %v2334_v14 = vor.u32 %v2332_v13, %v2330_v18  ;;  %v2364_v13 = vshrl.u32 %v8563_v56, 16  ;;  %v2368_v61 = vshll.u32 %v8560_v44, 16 }
 0x345   : > { %11551 = vst [vmem:[#allocation269_spill] sm:$0xff] %v8806_v38  ;;  %v8808_v52 = vpop.permute.xlu0 %2023  ;;  %v2360_v38 = vshll.u32 %v8563_v56, 16 }
 0x346   : > { %11552 = vst [vmem:[#allocation270_spill] sm:$0xff] %v8808_v52  ;;  %v2347_v26 = vsel %vm586_vm0, %v2342_v36, %v2346_v8  ;;  %v2339_v58 = vsel %vm586_vm0, %v2334_v14, %v2338_v42  ;;  %v2376_v42 = vshll.u32 %v8588_v30, 16  ;;  %v353_v14 = vld [vmem:[%s6696_s24 + $0x17c] sm:$0xf]  ;;  %v354_v52 = vld [vmem:[%s6696_s24 + $0x14] sm:$0xe] }
 0x347   : > { %v2362_v10 = vrot.slane %v2360_v38, 1  ;;  %v2370_v38 = vrot.slane %v2368_v61, 1 }
 0x349   : > { %v2366_v56 = vor.u32 %v2364_v13, %v2362_v10 }
 0x34a   : > { %2487 = vrot.lane.b32.xlu2 %v2323_v60, %s6647_s6  ;;  %2485 = vrot.lane.b32.xlu1 %v2315_v15, %s6647_s6  ;;  %v2354_v60 = vrot.slane %v2352_v47, 1  ;;  %v2356_v15 = vshrl.u32 %v8566_v37, 16  ;;  %v2386_v47 = vrot.slane %v2384_v11, 1 }
 0x34b   : > { %2483 = vrot.lane.b32.xlu0 %v2307_v41, %s6647_s6  ;;  %v2331_v41 = vsel %vm586_vm0, %v2326_v22, %v2330_v18  ;;  %v2388_v22 = vshrl.u32 %v8585_v63, 16  ;;  %v2371_v13 = vsel %vm586_vm0, %v2366_v56, %v2370_v38 }
 0x34c   : > { %v8822_v45 = vpop.permute.xlu2 %2051  ;;  %v8824_v53 = vpop.permute.xlu1 %2031  ;;  %v2358_v55 = vor.u32 %v2356_v15, %v2354_v60  ;;  %v2054_v15 = vunpack.c.l.b16 %v353_v14 }
 0x34d   : > { %11553 = vst [vmem:[#allocation271_spill] sm:$0xff] %v8824_v53  ;;  %v8826_v5 = vpop.permute.xlu0 %2029  ;;  %v2348_v53 = vshrl.u32 %v8539_v20, 16 }
 0x34e   : > { %11554 = vst [vmem:[#allocation272_spill] sm:$0xff] %v8826_v5  ;;  %v2380_v5 = vshrl.u32 %v8588_v30, 16  ;;  %v2363_v61 = vsel %vm586_vm0, %v2358_v55, %v2362_v10  ;;  %v8858_v30 = vpack.c.b16 %v2054_v15, %v2054_v15  ;;  %v2400_v10 = vshll.u32 %v8611_v7, 16 }
 0x34f   : > { %v2350_v18 = vor.u32 %v2348_v53, %v2346_v8  ;;  %v2372_v8 = vshrl.u32 %v8560_v44, 16  ;;  %v2390_v53 = vor.u32 %v2388_v22, %v2386_v47  ;;  %v2412_v22 = vshrl.u32 %v8608_v43, 16 }
 0x351   : > { %v2374_v44 = vor.u32 %v2372_v8, %v2370_v38 }
 0x352   : > { %2493 = vrot.lane.b32.xlu2 %v2347_v26, %s6647_s6  ;;  %2491 = vrot.lane.b32.xlu1 %v2339_v58, %s6647_s6  ;;  %v2392_v26 = vshll.u32 %v8582_v19, 16  ;;  %v2378_v58 = vrot.slane %v2376_v42, 1  ;;  %v2408_v42 = vshll.u32 %v8608_v43, 16  ;;  %v2516_v43 = vunpack.c.l.b16 %v354_v52  ;;  %v11558_v52 = vld [vmem:[#allocation197_spill] sm:$0xff] }
 0x353   : > { %2489 = vrot.lane.b32.xlu0 %v2331_v41, %s6647_s6  ;;  %v2355_v41 = vsel %vm586_vm0, %v2350_v18, %v2354_v60 }
 0x354   : > { %v8840_v36 = vpop.permute.xlu2 %2427  ;;  %v8842_v37 = vpop.permute.xlu1 %2037  ;;  %v2394_v63 = vrot.slane %v2392_v26, 1  ;;  %v2382_v11 = vor.u32 %v2380_v5, %v2378_v58  ;;  %v2410_v14 = vrot.slane %v2408_v42, 1  ;;  %v2416_v26 = vshll.u32 %v8858_v30, 16 }
 0x355   : > { %v8845_v20 = vpop.permute.xlu0 %2035  ;;  %v2379_v15 = vsel %vm586_vm0, %v2374_v44, %v2378_v58 }
 0x356   : > { %v2395_v18 = vsel %vm586_vm0, %v2390_v53, %v2394_v63  ;;  %v2387_v5 = vsel %vm586_vm0, %v2382_v11, %v2386_v47  ;;  %v2414_v38 = vor.u32 %v2412_v22, %v2410_v14  ;;  %v2418_v47 = vrot.slane %v2416_v26, 1 }
 0x357   : > { %v2519_v22 = vrot.slane %v11558_v52, 1 }
 0x358   : > { %v2419_v58 = vsel %vm586_vm0, %v2414_v38, %v2418_v47 }
 0x35a   : > { %2499 = vrot.lane.b32.xlu2 %v2371_v13, %s6647_s6  ;;  %2497 = vrot.lane.b32.xlu1 %v2363_v61, %s6647_s6  ;;  %v2402_v13 = vrot.slane %v2400_v10, 1  ;;  %v2404_v61 = vshrl.u32 %v8611_v7, 16 }
 0x35b   : > { %2495 = vrot.lane.b32.xlu0 %v2355_v41, %s6647_s6  ;;  %v2396_v41 = vshrl.u32 %v8582_v19, 16 }
 0x35c   : > { %v8861_v56 = vpop.permute.xlu2 %2433  ;;  %v8863_v60 = vpop.permute.xlu1 %2043  ;;  %v2406_v8 = vor.u32 %v2404_v61, %v2402_v13 }
 0x35d   : > { %v8865_v55 = vpop.permute.xlu0 %2041  ;;  %v2398_v42 = vor.u32 %v2396_v41, %v2394_v63  ;;  %v11559_v63 = vld [vmem:[#allocation196_spill] sm:$0xff]  ;;  %v2420_v41 = vshrl.u32 %v8858_v30, 16 }
 0x35e   : > { %11555 = vst [vmem:[#allocation273_spill] sm:$0xff] %v8865_v55  ;;  %v2411_v44 = vsel %vm586_vm0, %v2406_v8, %v2410_v14  ;;  %v2521_v26 = vrot.slane %v11559_v63, 1 }
 0x362   : > { %2505 = vrot.lane.b32.xlu2 %v2395_v18, %s6647_s6  ;;  %2503 = vrot.lane.b32.xlu1 %v2387_v5, %s6647_s6  ;;  %v11556_v18 = vld [vmem:[#allocation189_spill] sm:$0xff] }
 0x363   : > { %2501 = vrot.lane.b32.xlu0 %v2379_v15, %s6647_s6  ;;  %v11557_v55 = vunpack.c.l.b16 %v11556_v18  ;;  %v2403_v15 = vsel %vm586_vm0, %v2398_v42, %v2402_v13  ;;  %v2522_v13 = vsel %vm1049_vm1, %v2519_v22, %v2521_v26  ;;  %v2525_v42 = vrot.slane %v8335_v6, 1 }
 0x364   : > { %v8878_v53 = vpop.permute.xlu2 %2439  ;;  %v8880_v11 = vpop.permute.xlu1 %2049  ;;  %v2533_v6 = vrot.slane %v8353_v48, 1  ;;  %v2539_v48 = vrot.slane %v8374_v40, 1  ;;  %v2545_v40 = vrot.slane %v8395_v4, 1  ;;  %v2551_v4 = vrot.slane %v8416_v59, 1 }
 0x365   : > { %v8882_v10 = vpop.permute.xlu0 %2047  ;;  %v2517_v5 = vpack.c.b16 %v11557_v55, %v2516_v43  ;;  %v2422_v43 = vor.u32 %v2420_v41, %v2418_v47  ;;  %v2557_v59 = vrot.slane %v8437_v46, 1  ;;  %v2563_v46 = vrot.slane %v8458_v54, 1 }
 0x366   : > { %v2565_v54 = vrot.slane %v8455_v9, 1  ;;  %v2571_v9 = vrot.slane %v8476_v32, 1  ;;  %v2579_v32 = vrot.slane %v8524_v28, 1  ;;  %v5979_v28 = vld [vmem:[%s11076_s1 + $0x8] sm:$0xff]  ;;  %vm5038_vm0 = vsmask.f32 2304 }
 0x367   : > { %v2518_v61 = vrot.slane %v2517_v5, 1 }
 0x369   : > { %v2520_v8 = vsel %vm1049_vm1, %v2518_v61, %v2519_v22 }
 0x36a   : > { %2511 = vrot.lane.b32.xlu2 %v2419_v58, %s6647_s6  ;;  %2509 = vrot.lane.b32.xlu1 %v2411_v44, %s6647_s6  ;;  %v2527_v58 = vrot.slane %v8332_v33, 1  ;;  %v2523_v44 = vrot.slane %v8308_v34, 1  ;;  %v2531_v33 = vrot.slane %v8356_v17, 1  ;;  %v2529_v34 = vrot.slane %v8329_v50, 1 }
 0x36b   : > { %2507 = vrot.lane.b32.xlu0 %v2403_v15, %s6647_s6  ;;  %v2537_v17 = vrot.slane %v8377_v57, 1  ;;  %v2535_v50 = vrot.slane %v8350_v12, 1  ;;  %v2543_v57 = vrot.slane %v8398_v2, 1  ;;  %v2541_v12 = vrot.slane %v8371_v24, 1 }
 0x36c   : > { %v8895_v38 = vpop.permute.xlu2 %2445  ;;  %v8897_v14 = vpop.permute.xlu1 %2425  ;;  %v2528_v47 = vsel %vm1049_vm1, %v2525_v42, %v2527_v58  ;;  %v2526_v52 = vsel %vm1049_vm1, %v2523_v44, %v2525_v42  ;;  %v2524_v22 = vsel %vm1049_vm1, %v2521_v26, %v2523_v44  ;;  %v2534_v26 = vsel %vm1049_vm1, %v2531_v33, %v2533_v6 }
 0x36d   : > { %11560 = vst [vmem:[#allocation189_spill] sm:$0xff] %v8895_v38  ;;  %v8899_v55 = vpop.permute.xlu0 %2423  ;;  %v2549_v2 = vrot.slane %v8419_v31, 1  ;;  %v2547_v24 = vrot.slane %v8392_v16, 1  ;;  %v2555_v16 = vrot.slane %v8440_v39, 1  ;;  %v2553_v31 = vrot.slane %v8413_v0, 1 }
 0x36e   : > { %v2561_v39 = vrot.slane %v8461_v51, 1  ;;  %v2559_v0 = vrot.slane %v8434_v49, 1  ;;  %v2567_v51 = vrot.slane %v8482_v29, 1  ;;  %v2569_v49 = vrot.slane %v8479_v62, 1 }
 0x36f   : > { %v2573_v29 = vrot.slane %v8503_v1, 1  ;;  %v2575_v62 = vrot.slane %v8500_v3, 1 }
 0x370   : > { %v2572_v1 = vsel %vm1049_vm1, %v2569_v49, %v2571_v9 }
 0x372   : > { %2611 = vrot.lane.b32.xlu2 %v2522_v13, %s6648_s7  ;;  %2609 = vrot.lane.b32.xlu1 %v2520_v8, %s6648_s7  ;;  %v2532_v13 = vsel %vm1049_vm1, %v2529_v34, %v2531_v33  ;;  %v2530_v8 = vsel %vm1049_vm1, %v2527_v58, %v2529_v34  ;;  %v2540_v58 = vsel %vm1049_vm1, %v2537_v17, %v2539_v48 }
 0x373   : > { %2513 = vrot.lane.b32.xlu0 %v2422_v43, %s6647_s6 }
 0x374   : > { %v8909_v18 = vpop.permute.xlu2 %2451  ;;  %v8911_v5 = vpop.permute.xlu1 %2431 }
 0x375   : > { %v8913_v15 = vpop.permute.xlu0 %2429 }
 0x37a   : > { %2617 = vrot.lane.b32.xlu2 %v2528_v47, %s6648_s7  ;;  %2615 = vrot.lane.b32.xlu1 %v2526_v52, %s6648_s7  ;;  %v2538_v47 = vsel %vm1049_vm1, %v2535_v50, %v2537_v17  ;;  %v2536_v52 = vsel %vm1049_vm1, %v2533_v6, %v2535_v50  ;;  %v2546_v6 = vsel %vm1049_vm1, %v2543_v57, %v2545_v40 }
 0x37b   : > { %2613 = vrot.lane.b32.xlu0 %v2524_v22, %s6648_s7 }
 0x37c   : > { %v8924_v63 = vpop.permute.xlu2 %2457  ;;  %v8926_v61 = vpop.permute.xlu1 %2437 }
 0x37d   : > { %v8928_v41 = vpop.permute.xlu0 %2435 }
 0x382   : > { %2623 = vrot.lane.b32.xlu2 %v2534_v26, %s6648_s7  ;;  %2621 = vrot.lane.b32.xlu1 %v2532_v13, %s6648_s7  ;;  %v2544_v26 = vsel %vm1049_vm1, %v2541_v12, %v2543_v57  ;;  %v2542_v13 = vsel %vm1049_vm1, %v2539_v48, %v2541_v12  ;;  %v2552_v48 = vsel %vm1049_vm1, %v2549_v2, %v2551_v4 }
 0x383   : > { %2619 = vrot.lane.b32.xlu0 %v2530_v8, %s6648_s7 }
 0x384   : > { %v8939_v43 = vpop.permute.xlu2 %2463  ;;  %v8941_v42 = vpop.permute.xlu1 %2443 }
 0x385   : > { %11561 = vst [vmem:[#allocation197_spill] sm:$0xff] %v8939_v43  ;;  %v8943_v44 = vpop.permute.xlu0 %2441  ;;  %v11595_v43 = vld [vmem:[#allocation107_spill] sm:$0xff] }
 0x386   : > { %11562 = vst [vmem:[#allocation196_spill] sm:$0xff] %v8941_v42 }
 0x38a   : > { %2629 = vrot.lane.b32.xlu2 %v2540_v58, %s6648_s7  ;;  %2627 = vrot.lane.b32.xlu1 %v2538_v47, %s6648_s7  ;;  %v2550_v58 = vsel %vm1049_vm1, %v2547_v24, %v2549_v2  ;;  %v2548_v47 = vsel %vm1049_vm1, %v2545_v40, %v2547_v24  ;;  %v2558_v40 = vsel %vm1049_vm1, %v2555_v16, %v2557_v59 }
 0x38b   : > { %2625 = vrot.lane.b32.xlu0 %v2536_v52, %s6648_s7 }
 0x38c   : > { %v8954_v22 = vpop.permute.xlu2 %2469  ;;  %v8956_v33 = vpop.permute.xlu1 %2449 }
 0x38d   : > { %11563 = vst [vmem:[#allocation274_spill] sm:$0xff] %v8954_v22  ;;  %v8958_v34 = vpop.permute.xlu0 %2447 }
 0x392   : > { %2635 = vrot.lane.b32.xlu2 %v2546_v6, %s6648_s7  ;;  %2633 = vrot.lane.b32.xlu1 %v2544_v26, %s6648_s7  ;;  %v2556_v6 = vsel %vm1049_vm1, %v2553_v31, %v2555_v16  ;;  %v2554_v26 = vsel %vm1049_vm1, %v2551_v4, %v2553_v31  ;;  %v2564_v4 = vsel %vm1049_vm1, %v2561_v39, %v2563_v46 }
 0x393   : > { %2631 = vrot.lane.b32.xlu0 %v2542_v13, %s6648_s7 }
 0x394   : > { %v8969_v8 = vpop.permute.xlu2 %2475  ;;  %v8971_v17 = vpop.permute.xlu1 %2455 }
 0x395   : > { %v8973_v50 = vpop.permute.xlu0 %2453 }
 0x39a   : > { %2641 = vrot.lane.b32.xlu2 %v2552_v48, %s6648_s7  ;;  %2639 = vrot.lane.b32.xlu1 %v2550_v58, %s6648_s7  ;;  %v2562_v48 = vsel %vm1049_vm1, %v2559_v0, %v2561_v39  ;;  %v2560_v58 = vsel %vm1049_vm1, %v2557_v59, %v2559_v0  ;;  %v2570_v59 = vsel %vm1049_vm1, %v2567_v51, %v2569_v49 }
 0x39b   : > { %2637 = vrot.lane.b32.xlu0 %v2548_v47, %s6648_s7 }
 0x39c   : > { %v8984_v52 = vpop.permute.xlu2 %2481  ;;  %v8986_v57 = vpop.permute.xlu1 %2461 }
 0x39d   : > { %11564 = vst [vmem:[#allocation275_spill] sm:$0xff] %v8986_v57  ;;  %v8988_v12 = vpop.permute.xlu0 %2459 }
 0x3a2   : > { %2647 = vrot.lane.b32.xlu2 %v2558_v40, %s6648_s7  ;;  %2645 = vrot.lane.b32.xlu1 %v2556_v6, %s6648_s7  ;;  %v2568_v40 = vsel %vm1049_vm1, %v2565_v54, %v2567_v51  ;;  %v2566_v6 = vsel %vm1049_vm1, %v2563_v46, %v2565_v54  ;;  %v3450_v46 = vld [vmem:[%s11076_s1 + $0x10] sm:$0x3]  ;;  %v2581_v51 = vrot.slane %v8521_v21, 1  ;;  %v2577_v54 = vrot.slane %v8497_v35, 1 }
 0x3a3   : > { %2643 = vrot.lane.b32.xlu0 %v2554_v26, %s6648_s7 }
 0x3a4   : > { %v8999_v13 = vpop.permute.xlu2 %2487  ;;  %v9001_v2 = vpop.permute.xlu1 %2467  ;;  %v2582_v21 = vsel %vm1049_vm1, %v2579_v32, %v2581_v51  ;;  %v2580_v35 = vsel %vm1049_vm1, %v2577_v54, %v2579_v32 }
 0x3a5   : > { %11565 = vst [vmem:[#allocation276_spill] sm:$0xff] %v8999_v13  ;;  %v9003_v24 = vpop.permute.xlu0 %2465 }
 0x3a6   : > { %11566 = vst [vmem:[#allocation277_spill] sm:$0xff] %v9001_v2 }
 0x3a7   : > { %11567 = vst [vmem:[#allocation278_spill] sm:$0xff] %v9003_v24 }
 0x3aa   : > { %2653 = vrot.lane.b32.xlu2 %v2564_v4, %s6648_s7  ;;  %2651 = vrot.lane.b32.xlu1 %v2562_v48, %s6648_s7  ;;  %v2576_v4 = vsel %vm1049_vm1, %v2573_v29, %v2575_v62  ;;  %v2574_v48 = vsel %vm1049_vm1, %v2571_v9, %v2573_v29  ;;  %v2578_v29 = vsel %vm1049_vm1, %v2575_v62, %v2577_v54  ;;  %v5978_v9 = vld [vmem:[%s11076_s1] sm:$0xff]  ;;  %v6649_v54 = vmov 0  }
 0x3ab   : > { %2649 = vrot.lane.b32.xlu0 %v2560_v58, %s6648_s7  ;;  %v3460_v58 = vunpack.c.l.b16 %v3450_v46  ;;  %v2585_v46 = vrot.slane %v8545_v25, 1  ;;  %6525 = vset.pattern.permute.xlu2 %v6649_v54 }
 0x3ac   : > { %v9014_v47 = vpop.permute.xlu2 %2493  ;;  %v9016_v16 = vpop.permute.xlu1 %2473  ;;  %6527 = vset.pattern.permute.xlu1 %v6649_v54  ;;  %6526 = vset.pattern.permute.xlu0 %v6649_v54 }
 0x3ad   : > { %11568 = vst [vmem:[#allocation279_spill] sm:$0xff] %v9014_v47  ;;  %v9018_v31 = vpop.permute.xlu0 %2471  ;;  %v3463_v3 = vpack.c.b16 %v3460_v58, %v3460_v58 }
 0x3b2   : > { %2659 = vrot.lane.b32.xlu2 %v2570_v59, %s6648_s7  ;;  %2657 = vrot.lane.b32.xlu1 %v2568_v40, %s6648_s7  ;;  %v3561_v59 = vsel %vm3559_vm5, %v3463_v3, 0  ;;  %vm5457_vm5 = vmand %vm1244_vm2, %vm1431_vm3 }
 0x3b3   : > { %2655 = vrot.lane.b32.xlu0 %v2566_v6, %s6648_s7  ;;  %3568 = vmatpush.bf16.msra.mxu0 %v3561_v59 }
 0x3b4   : > { %v9029_v26 = vpop.permute.xlu2 %2499  ;;  %v9031_v39 = vpop.permute.xlu1 %2479  ;;  %6499 = vmatpush.bf16.msra.mxu1 %v3561_v59  ;;  %6500 = vmatpush.bf16.msra.mxu2 %v3561_v59 }
 0x3b5   : > { %v9033_v0 = vpop.permute.xlu0 %2477  ;;  %6501 = vmatpush.bf16.msra.mxu3 %v3561_v59  ;;  %v5463_v59 = vunpack.c.h.b16 %v6649_v54 }
 0x3b7   : > { %3569 = vmatpush.bf16.msra.mxu0 %v5979_v28 }
 0x3b8   : > { %6502 = vmatpush.bf16.msra.mxu1 %v5979_v28  ;;  %6503 = vmatpush.bf16.msra.mxu2 %v5979_v28 }
 0x3b9   : > { %6504 = vmatpush.bf16.msra.mxu3 %v5979_v28 }
 0x3ba   : > { %2665 = vrot.lane.b32.xlu2 %v2576_v4, %s6648_s7  ;;  %2663 = vrot.lane.b32.xlu1 %v2574_v48, %s6648_s7  ;;  %v2587_v4 = vrot.slane %v8542_v27, 1  ;;  %v6576_v48 = vld [vmem:[%s6696_s24 + $0x11c] sm:$0xff]   ;;  %v5462_v27 = vunpack.c.l.b16 %v6649_v54 }
 0x3bb   : > { %2661 = vrot.lane.b32.xlu0 %v2572_v1, %s6648_s7  ;;  %v2583_v62 = vrot.slane %v6576_v48, 1  ;;  %3570 = vmatpush.bf16.msra.mxu0 %v5978_v9  ;;  %v6579_v48 = vld [vmem:[%s6696_s24 + $0x134] sm:$0xff]  }
 0x3bc   : > { %v9047_v40 = vpop.permute.xlu2 %2505  ;;  %v9049_v6 = vpop.permute.xlu1 %2485  ;;  %6505 = vmatpush.bf16.msra.mxu1 %v5978_v9  ;;  %6506 = vmatpush.bf16.msra.mxu2 %v5978_v9  ;;  %v2588_v32 = vsel %vm1049_vm1, %v2585_v46, %v2587_v4 }
 0x3bd   : > { %11569 = vst [vmem:[#allocation280_spill] sm:$0xff] %v9049_v6  ;;  %v9051_v49 = vpop.permute.xlu0 %2483  ;;  %6507 = vmatpush.bf16.msra.mxu3 %v5978_v9  ;;  %v2586_v25 = vsel %vm1049_vm1, %v2583_v62, %v2585_v46  ;;  %v2584_v28 = vsel %vm1049_vm1, %v2581_v51, %v2583_v62  ;;  %v6577_v51 = vld [vmem:[%s6696_s24 + $0x13c] sm:$0xff]   ;;  %v6578_v9 = vld [vmem:[%s6696_s24 + $0x144] sm:$0xff]   ;;  %v2589_v62 = vrot.slane %v6579_v48, 1 }
 0x3be   : > { %11570 = vst [vmem:[#allocation281_spill] sm:$0xff] %v9051_v49  ;;  %v2593_v46 = vrot.slane %v6578_v9, 1  ;;  %v6581_v48 = vld [vmem:[%s6696_s24 + $0x15c] sm:$0xff]   ;;  %v11578_v6 = vld [vmem:[#allocation59_spill] sm:$0xff] }
 0x3bf   : > { %v2599_v47 = vrot.slane %v6581_v48, 1  ;;  %v2601_v48 = vrot.slane %v8582_v19, 1  ;;  %v11594_v49 = vld [vmem:[#allocation106_spill] sm:$0xff] }
 0x3c1   : > { %v2602_v13 = vsel %vm1049_vm1, %v2599_v47, %v2601_v48 }
 0x3c2   : > { %2671 = vrot.lane.b32.xlu2 %v2582_v21, %s6648_s7  ;;  %2669 = vrot.lane.b32.xlu1 %v2580_v35, %s6648_s7  ;;  %v5556_v21 = vpack.c.b16 %v5462_v27, %v5462_v27  ;;  %v5557_v35 = vpack.c.b16 %v5463_v59, %v5463_v59 }
 0x3c3   : > { %2667 = vrot.lane.b32.xlu0 %v2578_v29, %s6648_s7  ;;  %v2591_v29 = vrot.slane %v6577_v51, 1  ;;  %v6580_v51 = vld [vmem:[%s6696_s24 + $0x154] sm:$0xff]  }
 0x3c4   : > { %v9068_v58 = vpop.permute.xlu2 %2511  ;;  %v9070_v1 = vpop.permute.xlu1 %2491  ;;  %5745 = vst.msk [vmem:[%s9084_s16] sm:$0xf] %vm5744_vm6, %v5556_v21  ;;  %v2597_v9 = vrot.slane %v6580_v51, 1 }
 0x3c5   : > { %11571 = vst [vmem:[#allocation282_spill] sm:$0xff] %v9070_v1  ;;  %v9072_v3 = vpop.permute.xlu0 %2489  ;;  %v2594_v27 = vsel %vm1049_vm1, %v2591_v29, %v2593_v46  ;;  %v2592_v59 = vsel %vm1049_vm1, %v2589_v62, %v2591_v29 }
 0x3c6   : > { %11572 = vst [vmem:[#allocation283_spill] sm:$0xff] %v9072_v3 }
 0x3c7   : > { %5746 = vst.msk [vmem:[%s9084_s16 + $0x4] sm:$0xf] %vm5744_vm6, %v5557_v35 }
 0x3c8   : > { %5839 = vst.msk [vmem:[%s9084_s16 + $0x178] sm:$0xf] %vm5744_vm6, %v5556_v21  ;;  %v6582_v21 = vld [vmem:[%s6696_s24 + $0x14c] sm:$0xff]  }
 0x3c9   : > { %5840 = vst.msk [vmem:[%s9084_s16 + $0x17c] sm:$0xf] %vm5744_vm6, %v5557_v35  ;;  %v2595_v1 = vrot.slane %v6582_v21, 1 }
 0x3ca   : > { %2677 = vrot.lane.b32.xlu2 %v2588_v32, %s6648_s7  ;;  %2675 = vrot.lane.b32.xlu1 %v2586_v25, %s6648_s7 }
 0x3cb   : > { %2673 = vrot.lane.b32.xlu0 %v2584_v28, %s6648_s7  ;;  %v2590_v28 = vsel %vm1049_vm1, %v2587_v4, %v2589_v62  ;;  %v2600_v4 = vsel %vm1049_vm1, %v2597_v9, %v2599_v47  ;;  %v2598_v62 = vsel %vm1049_vm1, %v2595_v1, %v2597_v9  ;;  %v11575_v9 = vld [vmem:[#allocation10_spill] sm:$0xff] }
 0x3cc   : > { %v9092_v32 = vpop.permute.xlu2 %2611  ;;  %v9094_v25 = vpop.permute.xlu1 %2497 }
 0x3cd   : > { %v9098_v54 = vpop.permute.xlu0 %2495 }
 0x3d2   : > { %2683 = vrot.lane.b32.xlu2 %v2594_v27, %s6648_s7  ;;  %2681 = vrot.lane.b32.xlu1 %v2592_v59, %s6648_s7  ;;  %v2596_v27 = vsel %vm1049_vm1, %v2593_v46, %v2595_v1  ;;  %v2603_v59 = vrot.slane %v8611_v7, 1  ;;  %v6584_v46 = vld [vmem:[%s6696_s24] sm:$0xff]  }
 0x3d3   : > { %2679 = vrot.lane.b32.xlu0 %v2590_v28, %s6648_s7  ;;  %v6583_v28 = vld [vmem:[%s6696_s24 + $0x174] sm:$0xff] }
 0x3d4   : > { %v9113_v35 = vpop.permute.xlu2 %2617  ;;  %v9115_v3 = vpop.permute.xlu1 %2503  ;;  %v2605_v51 = vrot.slane %v6583_v28, 1  ;;  %v2604_v19 = vsel %vm1049_vm1, %v2601_v48, %v2603_v59  ;;  %v11577_v28 = vld [vmem:[#allocation94_spill] sm:$0xff] }
 0x3d5   : > { %11573 = vst [vmem:[#allocation284_spill] sm:$0xff] %v9115_v3  ;;  %v9117_v29 = vpop.permute.xlu0 %2501  ;;  %v4089_v3 = vld [vmem:[%s9161_s21 + $0x4d] sm:$0xff] }
 0x3d6   : > { %11574 = vst [vmem:[#allocation285_spill] sm:$0xff] %v9117_v29  ;;  %v11597_v29 = vld [vmem:[#allocation158_spill] sm:$0xff] }
 0x3da   : > { %2689 = vrot.lane.b32.xlu2 %v2600_v4, %s6648_s7  ;;  %2687 = vrot.lane.b32.xlu1 %v2598_v62, %s6648_s7  ;;  %v2703_v4 = vsel %vm2701_vm7, %v6584_v46, %v11575_v9  ;;  %v11576_v62 = vld [vmem:[#allocation55_spill] sm:$0xff] }
 0x3db   : > { %2685 = vrot.lane.b32.xlu0 %v2596_v27, %s6648_s7  ;;  %v2797_v7 = vsel %vm2795_vm9, %v2703_v4, %v11576_v62  ;;  %v2606_v27 = vsel %vm1049_vm1, %v2603_v59, %v2605_v51  ;;  %v11579_v46 = vld [vmem:[#allocation191_spill] sm:$0xff]  ;;  %v11580_v59 = vld [vmem:[#allocation228_spill] sm:$0xff] }
 0x3dc   : > { %v9128_v21 = vpop.permute.xlu2 %2623  ;;  %v9130_v22 = vpop.permute.xlu1 %2509  ;;  %v2890_v2 = vsel %vm2888_vm8, %v2797_v7, %v11577_v28  ;;  %v11582_v28 = vld [vmem:[#allocation13_spill] sm:$0xff] }
 0x3dd   : > { %v9132_v1 = vpop.permute.xlu0 %2507  ;;  %v2983_v24 = vsel %vm2981_vm10, %v2890_v2, %v11578_v6 }
 0x3de   : > { %v3076_v9 = vsel %vm3074_vm12, %v2983_v24, %v11579_v46  ;;  %v2607_v24 = vrot.slane %v8858_v30, 1 }
 0x3df   : > { %v3169_v4 = vsel %vm3167_vm11, %v3076_v9, %v11580_v59  ;;  %v11583_v9 = vld [vmem:[#allocation45_spill] sm:$0xff] }
 0x3e0   : > { %v3262_v47 = vsel %vm3260_vm13, %v3169_v4, %v8899_v55  ;;  %v4082_v55 = vld [vmem:[%s9161_s21 + $0x15] sm:$0xff]  ;;  %v2608_v62 = vsel %vm1049_vm1, %v2605_v51, %v2607_v24  ;;  %v4085_v4 = vld [vmem:[%s9161_s21 + $0x2d] sm:$0xff]  ;;  %v4084_v51 = vld [vmem:[%s9161_s21 + $0x25] sm:$0xff]  ;;  %vm5454_vm1 = vcmask 1042432  }
 0x3e1   : > { %vm5455_vm4 = vmand %vm5454_vm1, %vm5038_vm0 }
 0x3e2   : > { %2695 = vrot.lane.b32.xlu2 %v2606_v27, %s6648_s7  ;;  %2693 = vrot.lane.b32.xlu1 %v2604_v19, %s6648_s7  ;;  %v6585_v19 = vld [vmem:[%s6696_s24 + $0x8] sm:$0xff]  }
 0x3e3   : > { %2691 = vrot.lane.b32.xlu0 %v2602_v13, %s6648_s7  ;;  %v2705_v46 = vsel %vm2701_vm7, %v6585_v19, %v11582_v28  ;;  %v11587_v19 = vld [vmem:[#allocation241_spill] sm:$0xff] }
 0x3e4   : > { %v9156_v2 = vpop.permute.xlu2 %2629  ;;  %v2610_v6 = vpop.permute.xlu1 %2609  ;;  %v2799_v59 = vsel %vm2795_vm9, %v2705_v46, %v11583_v9 }
 0x3e5   : > { %11581 = vst [vmem:[#allocation10_spill] sm:$0xff] %v9156_v2  ;;  %v9164_v13 = vpop.permute.xlu0 %2513  ;;  %v3355_v48 = vsel %vm3353_vm15, %v3262_v47, %v2610_v6  ;;  %v11584_v47 = vld [vmem:[#allocation108_spill] sm:$0xff]  ;;  %v11593_v2 = vld [vmem:[#allocation71_spill] sm:$0xff] }
 0x3e6   : > { %5929 = vmatmul.msk.bf16.vlgmr.msra.gmra.mxu0 %vm3466_vm14, %v3355_v48  ;;  %v2892_v6 = vsel %vm2888_vm8, %v2799_v59, %v11584_v47  ;;  %v11585_v48 = vld [vmem:[#allocation53_spill] sm:$0xff] }
 0x3ea   : > { %4175 = vperm.xlu2 %6525, %v4082_v55   ;;  %2699 = vrot.lane.b32.xlu1 %v2607_v24, %s6648_s7  ;;  %v4083_v24 = vld [vmem:[%s9161_s21 + $0x1d] sm:$0xff]  ;;  %v2985_v55 = vsel %vm2981_vm10, %v2892_v6, %v11585_v48 }
 0x3eb   : > { %2697 = vrot.lane.b32.xlu0 %v2608_v62, %s6648_s7  ;;  %v11586_v62 = vld [vmem:[#allocation180_spill] sm:$0xff] }
 0x3ec   : > { %v9172_v7 = vpop.permute.xlu2 %2635  ;;  %v9174_v27 = vpop.permute.xlu1 %2615  ;;  %v3078_v38 = vsel %vm3074_vm12, %v2985_v55, %v11586_v62  ;;  %v6586_v55 = vld [vmem:[%s6696_s24 + $0x10] sm:$0xff]   ;;  %v11590_v62 = vld [vmem:[#allocation9_spill] sm:$0xff] }
 0x3ed   : > { %v2614_v30 = vpop.permute.xlu0 %2613  ;;  %v3171_v28 = vsel %vm3167_vm11, %v3078_v38, %v11587_v19  ;;  %v4086_v38 = vld [vmem:[%s9161_s21 + $0x35] sm:$0xff]  ;;  %v6587_v19 = vld [vmem:[%s6696_s24 + $0x60] sm:$0xff]  }
 0x3ee   : > { %v3264_v46 = vsel %vm3260_vm13, %v3171_v28, %v8897_v14  ;;  %v11591_v28 = vld [vmem:[#allocation22_spill] sm:$0xff] }
 0x3ef   : > { %v3357_v6 = vsel %vm3353_vm15, %v3264_v46, %v9092_v32  ;;  %v2707_v32 = vsel %vm2701_vm7, %v6586_v55, %v11590_v62  ;;  %v2727_v46 = vsel %vm2701_vm7, %v6587_v19, %v11591_v28  ;;  %v11596_v55 = vld [vmem:[#allocation142_spill] sm:$0xff]  ;;  %v11598_v28 = vld [vmem:[#allocation195_spill] sm:$0xff] }
 0x3f2   : > { %4190 = vperm.xlu2 %6525, %v4085_v4   ;;  %4185 = vperm.xlu1 %6527, %v4084_v51   ;;  %v4087_v4 = vld [vmem:[%s9161_s21 + $0x3d] sm:$0xff]  ;;  %v4088_v51 = vld [vmem:[%s9161_s21 + $0x45] sm:$0xff] }
 0x3f3   : > { %4180 = vperm.xlu0 %6526, %v4083_v24  }
 0x3f4   : > { %v9194_v9 = vpop.permute.xlu2 %2641  ;;  %v9196_v59 = vpop.permute.xlu1 %2621 }
 0x3f5   : > { %v9198_v47 = vpop.permute.xlu0 %2619 }
 0x3f6   : > { %5930 = vmatmul.msk.bf16.gmra.mxu0 %vm3466_vm14, %v3357_v6  ;;  %v11592_v6 = vld [vmem:[#allocation62_spill] sm:$0xff] }
 0x3fa   : > { %4200 = vperm.xlu2 %6525, %v4087_v4   ;;  %4195 = vperm.xlu1 %6527, %v4086_v38   ;;  %v2801_v4 = vsel %vm2795_vm9, %v2707_v32, %v11592_v6  ;;  %v2821_v38 = vsel %vm2795_vm9, %v2727_v46, %v11593_v2  ;;  %v11599_v6 = vld [vmem:[#allocation205_spill] sm:$0xff]  ;;  %v11601_v46 = vld [vmem:[#allocation240_spill] sm:$0xff] }
 0x3fb   : > { %4205 = vperm.xlu0 %6526, %v4088_v51   ;;  %v4090_v51 = vld [vmem:[%s9161_s21 + $0x55] sm:$0xff]  ;;  %v2914_v42 = vsel %vm2888_vm8, %v2821_v38, %v11594_v49  ;;  %v11600_v49 = vld [vmem:[#allocation239_spill] sm:$0xff] }
 0x3fc   : > { %v9206_v14 = vpop.permute.xlu2 %2647  ;;  %v9208_v24 = vpop.permute.xlu1 %2627  ;;  %v3007_v19 = vsel %vm2981_vm10, %v2914_v42, %v11597_v29 }
 0x3fd   : > { %11588 = vst [vmem:[#allocation55_spill] sm:$0xff] %v9206_v14  ;;  %v9210_v48 = vpop.permute.xlu0 %2625  ;;  %v2894_v14 = vsel %vm2888_vm8, %v2801_v4, %v11595_v43  ;;  %v3100_v2 = vsel %vm3074_vm12, %v3007_v19, %v11599_v6 }
 0x3fe   : > { %11589 = vst [vmem:[#allocation94_spill] sm:$0xff] %v9208_v24  ;;  %v4091_v24 = vld [vmem:[%s9161_s21 + $0x5d] sm:$0xff]  ;;  %v2987_v62 = vsel %vm2981_vm10, %v2894_v14, %v11596_v55  ;;  %v3193_v43 = vsel %vm3167_vm11, %v3100_v2, %v11600_v49  ;;  %v6589_v2 = vld [vmem:[%s6696_s24 + $0x68] sm:$0xff]  }
 0x3ff   : > { %v3080_v32 = vsel %vm3074_vm12, %v2987_v62, %v11598_v28  ;;  %v3286_v29 = vsel %vm3260_vm13, %v3193_v43, %v8958_v34  ;;  %v4094_v34 = vld [vmem:[%s9161_s21 + $0x75] sm:$0xff] }
 0x400   : > { %v3173_v14 = vsel %vm3167_vm11, %v3080_v32, %v11601_v46  ;;  %v6588_v28 = vld [vmem:[%s6696_s24 + $0x18] sm:$0xff]   ;;  %v11604_v32 = vld [vmem:[#allocation12_spill] sm:$0xff] }
 0x401   : > { %v3266_v42 = vsel %vm3260_vm13, %v3173_v14, %v8840_v36  ;;  %v4093_v36 = vld [vmem:[%s9161_s21 + $0x6d] sm:$0xff]  ;;  %v2709_v6 = vsel %vm2701_vm7, %v6588_v28, %v11604_v32  ;;  %v11605_v49 = vld [vmem:[#allocation21_spill] sm:$0xff] }
 0x402   : > { %4215 = vperm.xlu2 %6525, %v4090_v51   ;;  %4210 = vperm.xlu1 %6527, %v4089_v3   ;;  %v3359_v3 = vsel %vm3353_vm15, %v3266_v42, %v2614_v30  ;;  %v2729_v43 = vsel %vm2701_vm7, %v6589_v2, %v11605_v49  ;;  %v11606_v46 = vld [vmem:[#allocation60_spill] sm:$0xff]  ;;  %v11607_v42 = vld [vmem:[#allocation61_spill] sm:$0xff] }
 0x403   : > { %4220 = vperm.xlu0 %6526, %v4091_v24   ;;  %v4092_v24 = vld [vmem:[%s9161_s21 + $0x65] sm:$0xff]  ;;  %v2823_v14 = vsel %vm2795_vm9, %v2729_v43, %v11606_v46  ;;  %v11610_v28 = vld [vmem:[#allocation57_spill] sm:$0xff] }
 0x404   : > { %v9245_v4 = vpop.permute.xlu2 %2653  ;;  %v2634_v38 = vpop.permute.xlu1 %2633  ;;  %v11612_v49 = vld [vmem:[#allocation193_spill] sm:$0xff]  ;;  %v11613_v46 = vld [vmem:[#allocation194_spill] sm:$0xff] }
 0x405   : > { %11602 = vst [vmem:[#allocation59_spill] sm:$0xff] %v9245_v4  ;;  %v9247_v51 = vpop.permute.xlu0 %2631  ;;  %v3379_v55 = vsel %vm3353_vm15, %v3286_v29, %v2634_v38  ;;  %v2803_v29 = vsel %vm2795_vm9, %v2709_v6, %v11607_v42  ;;  %v4096_v38 = vld [vmem:[%s9161_s21 + $0x85] sm:$0xff]  ;;  %v4097_v4 = vld [vmem:[%s9161_s21 + $0x8d] sm:$0xff] }
 0x406   : > { %11603 = vst [vmem:[#allocation191_spill] sm:$0xff] %v9247_v51  ;;  %5931 = vmatmul.msk.bf16.gmra.mxu0 %vm3466_vm14, %v3359_v3  ;;  %5941 = vmatmul.msk.bf16.vlgmr.msra.gmra.mxu1 %vm3466_vm14, %v3379_v55  ;;  %v4095_v3 = vld [vmem:[%s9161_s21 + $0x7d] sm:$0xff]  ;;  %v11614_v42 = vld [vmem:[#allocation231_spill] sm:$0xff] }
 0x407   : > { %v11608_v55 = vld [vmem:[#allocation97_spill] sm:$0xff] }
 0x408   : > { %v11611_v51 = vld [vmem:[#allocation157_spill] sm:$0xff] }
 0x40a   : > { %4230 = vperm.xlu2 %6525, %v4093_v36   ;;  %4225 = vperm.xlu1 %6527, %v4092_v24   ;;  %v2896_v36 = vsel %vm2888_vm8, %v2803_v29, %v11608_v55  ;;  %v11609_v24 = vld [vmem:[#allocation120_spill] sm:$0xff]  ;;  %v11615_v29 = vld [vmem:[#allocation253_spill] sm:$0xff] }
 0x40b   : > { %4235 = vperm.xlu0 %6526, %v4094_v34   ;;  %v2916_v34 = vsel %vm2888_vm8, %v2823_v14, %v11609_v24  ;;  %v2989_v32 = vsel %vm2981_vm10, %v2896_v36, %v11610_v28  ;;  %v4100_v28 = vld [vmem:[%s9161_s21 + $0xa5] sm:$0xff] }
 0x40c   : > { %v9256_v62 = vpop.permute.xlu2 %2659  ;;  %v9258_v19 = vpop.permute.xlu1 %2639  ;;  %v3009_v2 = vsel %vm2981_vm10, %v2916_v34, %v11611_v51  ;;  %v3082_v6 = vsel %vm3074_vm12, %v2989_v32, %v11613_v46  ;;  %v6591_v46 = vld [vmem:[%s6696_s24 + $0x70] sm:$0xff]  }
 0x40d   : > { %v9260_v30 = vpop.permute.xlu0 %2637  ;;  %v3102_v43 = vsel %vm3074_vm12, %v3009_v2, %v11612_v49  ;;  %v3175_v14 = vsel %vm3167_vm11, %v3082_v6, %v11614_v42  ;;  %v11619_v49 = vld [vmem:[#allocation3_spill] sm:$0xff] }
 0x40e   : > { %v3195_v55 = vsel %vm3167_vm11, %v3102_v43, %v11615_v29  ;;  %v3268_v51 = vsel %vm3260_vm13, %v3175_v14, %v8913_v15  ;;  %v4099_v15 = vld [vmem:[%s9161_s21 + $0x9d] sm:$0xff]  ;;  %v11620_v6 = vld [vmem:[#allocation11_spill] sm:$0xff] }
 0x40f   : > { %v3288_v36 = vsel %vm3260_vm13, %v3195_v55, %v8956_v33  ;;  %v4098_v33 = vld [vmem:[%s9161_s21 + $0x95] sm:$0xff]  ;;  %v2731_v42 = vsel %vm2701_vm7, %v6591_v46, %v11620_v6  ;;  %v6592_v14 = vld [vmem:[%s6696_s24 + $0xc0] sm:$0xff]   ;;  %v11627_v6 = vld [vmem:[#allocation119_spill] sm:$0xff] }
 0x410   : > { %v11621_v29 = vld [vmem:[#allocation34_spill] sm:$0xff] }
 0x411   : > { %v2751_v55 = vsel %vm2701_vm7, %v6592_v14, %v11621_v29  ;;  %v4103_v29 = vld [vmem:[%s9161_s21 + $0xbd] sm:$0xff] }
 0x412   : > { %4245 = vperm.xlu2 %6525, %v4096_v38   ;;  %4240 = vperm.xlu1 %6527, %v4095_v3   ;;  %v3361_v3 = vsel %vm3353_vm15, %v3268_v51, %v9174_v27  ;;  %v11622_v51 = vld [vmem:[#allocation48_spill] sm:$0xff] }
 0x413   : > { %4250 = vperm.xlu0 %6526, %v4097_v4   ;;  %v3381_v4 = vsel %vm3353_vm15, %v3288_v36, %v9172_v7  ;;  %v6590_v7 = vld [vmem:[%s6696_s24 + $0x20] sm:$0xff]  }
 0x414   : > { %v9295_v24 = vpop.permute.xlu2 %2665  ;;  %v9297_v34 = vpop.permute.xlu1 %2645  ;;  %v2711_v43 = vsel %vm2701_vm7, %v6590_v7, %v11619_v49  ;;  %v11625_v7 = vld [vmem:[#allocation111_spill] sm:$0xff] }
 0x415   : > { %v9299_v38 = vpop.permute.xlu0 %2643  ;;  %v2805_v36 = vsel %vm2795_vm9, %v2711_v43, %v11622_v51  ;;  %v11629_v51 = vld [vmem:[#allocation63_spill] sm:$0xff] }
 0x416   : > { %5932 = vmatmul.msk.bf16.gmra.mxu0 %vm3466_vm14, %v3361_v3  ;;  %5942 = vmatmul.msk.bf16.gmra.mxu1 %vm3466_vm14, %v3381_v4  ;;  %v11623_v3 = vld [vmem:[#allocation75_spill] sm:$0xff]  ;;  %v2898_v49 = vsel %vm2888_vm8, %v2805_v36, %v11625_v7  ;;  %v11632_v36 = vld [vmem:[#allocation209_spill] sm:$0xff] }
 0x417   : > { %v2825_v4 = vsel %vm2795_vm9, %v2731_v42, %v11623_v3  ;;  %v2991_v42 = vsel %vm2981_vm10, %v2898_v49, %v11629_v51  ;;  %v11630_v3 = vld [vmem:[#allocation170_spill] sm:$0xff] }
 0x418   : > { %v2918_v14 = vsel %vm2888_vm8, %v2825_v4, %v11627_v6  ;;  %v11634_v4 = vld [vmem:[#allocation244_spill] sm:$0xff]  ;;  %v11635_v6 = vld [vmem:[#allocation251_spill] sm:$0xff] }
 0x41a   : > { %4260 = vperm.xlu2 %6525, %v4099_v15   ;;  %4255 = vperm.xlu1 %6527, %v4098_v33   ;;  %v11624_v15 = vld [vmem:[#allocation83_spill] sm:$0xff] }
 0x41b   : > { %4265 = vperm.xlu0 %6526, %v4100_v28   ;;  %v2845_v33 = vsel %vm2795_vm9, %v2751_v55, %v11624_v15  ;;  %v4102_v28 = vld [vmem:[%s9161_s21 + $0xb5] sm:$0xff]  ;;  %v11631_v15 = vld [vmem:[#allocation183_spill] sm:$0xff] }
 0x41c   : > { %v9310_v32 = vpop.permute.xlu2 %2671  ;;  %v9312_v2 = vpop.permute.xlu1 %2651  ;;  %v3084_v57 = vsel %vm3074_vm12, %v2991_v42, %v11631_v15 }
 0x41d   : > { %11616 = vst [vmem:[#allocation228_spill] sm:$0xff] %v9310_v32  ;;  %v9314_v27 = vpop.permute.xlu0 %2649  ;;  %v4101_v32 = vld [vmem:[%s9161_s21 + $0xad] sm:$0xff] }
 0x41e   : > { %11617 = vst [vmem:[#allocation13_spill] sm:$0xff] %v9312_v2  ;;  %v11626_v2 = vld [vmem:[#allocation118_spill] sm:$0xff] }
 0x41f   : > { %11618 = vst [vmem:[#allocation45_spill] sm:$0xff] %v9314_v27  ;;  %v2938_v46 = vsel %vm2888_vm8, %v2845_v33, %v11626_v2  ;;  %v11628_v27 = vld [vmem:[#allocation58_spill] sm:$0xff]  ;;  %v11633_v2 = vld [vmem:[#allocation217_spill] sm:$0xff] }
 0x420   : > { %v3011_v43 = vsel %vm2981_vm10, %v2918_v14, %v11628_v27  ;;  %v3031_v55 = vsel %vm2981_vm10, %v2938_v46, %v11630_v3  ;;  %v3177_v27 = vsel %vm3167_vm11, %v3084_v57, %v11634_v4  ;;  %v11636_v14 = vld [vmem:[#allocation252_spill] sm:$0xff]  ;;  %v11639_v4 = vld [vmem:[#allocation25_spill] sm:$0xff] }
 0x421   : > { %v3104_v7 = vsel %vm3074_vm12, %v3011_v43, %v11632_v36  ;;  %v3124_v33 = vsel %vm3074_vm12, %v3031_v55, %v11633_v2  ;;  %v4106_v55 = vld [vmem:[%s9161_s21 + $0xd5] sm:$0xff]  ;;  %v6593_v36 = vld [vmem:[%s6696_s24 + $0x28] sm:$0xff]  }
 0x422   : > { %4275 = vperm.xlu2 %6525, %v4102_v28   ;;  %4270 = vperm.xlu1 %6527, %v4101_v32   ;;  %v3217_v49 = vsel %vm3167_vm11, %v3124_v33, %v11635_v6  ;;  %v3197_v46 = vsel %vm3167_vm11, %v3104_v7, %v11636_v14  ;;  %v3270_v28 = vsel %vm3260_vm13, %v3177_v27, %v8911_v5  ;;  %v4105_v5 = vld [vmem:[%s9161_s21 + $0xcd] sm:$0xff]  ;;  %v11638_v7 = vld [vmem:[#allocation6_spill] sm:$0xff]  ;;  %v6594_v33 = vld [vmem:[%s6696_s24 + $0x78] sm:$0xff]  }
 0x423   : > { %4280 = vperm.xlu0 %6526, %v4103_v29   ;;  %v3290_v43 = vsel %vm3260_vm13, %v3197_v46, %v8909_v18  ;;  %v3310_v32 = vsel %vm3260_vm13, %v3217_v49, %v9018_v31  ;;  %v3363_v3 = vsel %vm3353_vm15, %v3270_v28, %v9113_v35  ;;  %v4104_v31 = vld [vmem:[%s9161_s21 + $0xc5] sm:$0xff]  ;;  %v2713_v2 = vsel %vm2701_vm7, %v6593_v36, %v11638_v7  ;;  %v11640_v49 = vld [vmem:[#allocation33_spill] sm:$0xff]  ;;  %v4109_v7 = vld [vmem:[%s9161_s21 + $0xed] sm:$0xff] }
 0x424   : > { %v9364_v57 = vpop.permute.xlu2 %2677  ;;  %v2658_v51 = vpop.permute.xlu1 %2657  ;;  %v3383_v29 = vsel %vm3353_vm15, %v3290_v43, %v9260_v30  ;;  %v2733_v27 = vsel %vm2701_vm7, %v6594_v33, %v11639_v4  ;;  %v6595_v6 = vld [vmem:[%s6696_s24 + $0xc8] sm:$0xff]   ;;  %v11641_v46 = vld [vmem:[#allocation66_spill] sm:$0xff]  ;;  %v11646_v33 = vld [vmem:[#allocation132_spill] sm:$0xff] }
 0x425   : > { %11637 = vst [vmem:[#allocation108_spill] sm:$0xff] %v9364_v57  ;;  %v9366_v42 = vpop.permute.xlu0 %2655  ;;  %v3403_v18 = vsel %vm3353_vm15, %v3310_v32, %v2658_v51  ;;  %v2753_v14 = vsel %vm2701_vm7, %v6595_v6, %v11640_v49  ;;  %v2807_v43 = vsel %vm2795_vm9, %v2713_v2, %v11641_v46  ;;  %v11642_v28 = vld [vmem:[#allocation74_spill] sm:$0xff]  ;;  %v11647_v6 = vld [vmem:[#allocation145_spill] sm:$0xff] }
 0x426   : > { %5933 = vmatmul.msk.bf16.gmra.mxu0 %vm3466_vm14, %v3363_v3  ;;  %5943 = vmatmul.msk.bf16.gmra.mxu1 %vm3466_vm14, %v3383_v29  ;;  %v2827_v32 = vsel %vm2795_vm9, %v2733_v27, %v11642_v28  ;;  %v4108_v51 = vld [vmem:[%s9161_s21 + $0xe5] sm:$0xff]  ;;  %v4107_v3 = vld [vmem:[%s9161_s21 + $0xdd] sm:$0xff] }
 0x427   : > { %5953 = vmatmul.msk.bf16.vlgmr.msra.gmra.mxu2 %vm3466_vm14, %v3403_v18  ;;  %v11643_v29 = vld [vmem:[#allocation73_spill] sm:$0xff] }
 0x428   : > { %v2847_v18 = vsel %vm2795_vm9, %v2753_v14, %v11643_v29  ;;  %v11648_v49 = vld [vmem:[#allocation161_spill] sm:$0xff]  ;;  %v11650_v14 = vld [vmem:[#allocation200_spill] sm:$0xff] }
 0x429   : > { %v2940_v4 = vsel %vm2888_vm8, %v2847_v18, %v11646_v33  ;;  %v11649_v46 = vld [vmem:[#allocation169_spill] sm:$0xff]  ;;  %v11654_v33 = vld [vmem:[#allocation243_spill] sm:$0xff] }
 0x42a   : > { %4290 = vperm.xlu2 %6525, %v4105_v5   ;;  %4285 = vperm.xlu1 %6527, %v4104_v31   ;;  %v11644_v5 = vld [vmem:[#allocation109_spill] sm:$0xff]  ;;  %v3033_v28 = vsel %vm2981_vm10, %v2940_v4, %v11649_v46 }
 0x42b   : > { %4295 = vperm.xlu0 %6526, %v4106_v55   ;;  %v2920_v31 = vsel %vm2888_vm8, %v2827_v32, %v11644_v5  ;;  %v11645_v55 = vld [vmem:[#allocation110_spill] sm:$0xff]  ;;  %v11651_v32 = vld [vmem:[#allocation208_spill] sm:$0xff]  ;;  %v11655_v4 = vld [vmem:[#allocation265_spill] sm:$0xff] }
 0x42c   : > { %v9379_v35 = vpop.permute.xlu2 %2683  ;;  %v9381_v30 = vpop.permute.xlu1 %2663  ;;  %v2900_v36 = vsel %vm2888_vm8, %v2807_v43, %v11645_v55  ;;  %v3013_v27 = vsel %vm2981_vm10, %v2920_v31, %v11648_v49  ;;  %v11652_v43 = vld [vmem:[#allocation207_spill] sm:$0xff]  ;;  %v11653_v55 = vld [vmem:[#allocation242_spill] sm:$0xff] }
 0x42d   : > { %v9383_v15 = vpop.permute.xlu0 %2661  ;;  %v2993_v2 = vsel %vm2981_vm10, %v2900_v36, %v11647_v6  ;;  %v3106_v5 = vsel %vm3074_vm12, %v3013_v27, %v11651_v32  ;;  %v3126_v18 = vsel %vm3074_vm12, %v3033_v28, %v11652_v43  ;;  %v6596_v28 = vld [vmem:[%s6696_s24 + $0x158] sm:$0xff]  }
 0x42e   : > { %v3086_v29 = vsel %vm3074_vm12, %v2993_v2, %v11650_v14  ;;  %v3199_v36 = vsel %vm3167_vm11, %v3106_v5, %v11653_v55  ;;  %v3219_v6 = vsel %vm3167_vm11, %v3126_v18, %v11655_v4  ;;  %v11656_v14 = vld [vmem:[#allocation50_spill] sm:$0xff]  ;;  %v4110_v5 = vld [vmem:[%s9161_s21 + $0xf5] sm:$0xff]  ;;  %v11659_v55 = vld [vmem:[#allocation187_spill] sm:$0xff] }
 0x42f   : > { %v3179_v31 = vsel %vm3167_vm11, %v3086_v29, %v11654_v33  ;;  %v3312_v27 = vsel %vm3260_vm13, %v3219_v6, %v9016_v16  ;;  %v11657_v16 = vld [vmem:[#allocation91_spill] sm:$0xff]  ;;  %v11660_v33 = vld [vmem:[#allocation225_spill] sm:$0xff] }
 0x430   : > { %v3272_v2 = vsel %vm3260_vm13, %v3179_v31, %v8861_v56  ;;  %v3405_v29 = vsel %vm3353_vm15, %v3312_v27, %v9256_v62  ;;  %v4112_v18 = vld [vmem:[%s9161_s21 + $0x105] sm:$0xff] }
 0x431   : > { %v3365_v46 = vsel %vm3353_vm15, %v3272_v2, %v9198_v47  ;;  %v4111_v47 = vld [vmem:[%s9161_s21 + $0xfd] sm:$0xff] }
 0x432   : > { %4305 = vperm.xlu2 %6525, %v4108_v51   ;;  %4300 = vperm.xlu1 %6527, %v4107_v3   ;;  %v3292_v51 = vsel %vm3260_vm13, %v3199_v36, %v8973_v50  ;;  %v2789_v50 = vsel %vm2701_vm7, %v6596_v28, %v11656_v14  ;;  %v6598_v14 = vld [vmem:[%s6696_s24 + $0xd0] sm:$0xff]  }
 0x433   : > { %4310 = vperm.xlu0 %6526, %v4109_v7   ;;  %v3385_v56 = vsel %vm3353_vm15, %v3292_v51, %v9258_v19  ;;  %v2883_v32 = vsel %vm2795_vm9, %v2789_v50, %v11657_v16  ;;  %v11658_v19 = vld [vmem:[#allocation149_spill] sm:$0xff] }
 0x434   : > { %v9431_v3 = vpop.permute.xlu2 %2689  ;;  %v9433_v49 = vpop.permute.xlu1 %2669  ;;  %v2976_v43 = vsel %vm2888_vm8, %v2883_v32, %v11658_v19  ;;  %v6600_v32 = vld [vmem:[%s6696_s24 + $0x120] sm:$0xff]   ;;  %v341_v19 = vld [vmem:[%s6696_s24 + $0x168] sm:$0x7] }
 0x435   : > { %v9437_v7 = vpop.permute.xlu0 %2667  ;;  %v3069_v36 = vsel %vm2981_vm10, %v2976_v43, %v11659_v55  ;;  %v11665_v43 = vld [vmem:[#allocation64_spill] sm:$0xff]  ;;  %v11666_v55 = vld [vmem:[#allocation65_spill] sm:$0xff] }
 0x436   : > { %5934 = vmatmul.msk.bf16.gmra.mxu0 %vm3466_vm14, %v3365_v46  ;;  %5944 = vmatmul.msk.bf16.gmra.mxu1 %vm3466_vm14, %v3385_v56  ;;  %v3162_v62 = vsel %vm3074_vm12, %v3069_v36, %v11660_v33  ;;  %v6597_v46 = vld [vmem:[%s6696_s24 + $0x30] sm:$0xff]   ;;  %v11667_v33 = vld [vmem:[#allocation87_spill] sm:$0xff] }
 0x437   : > { %5954 = vmatmul.msk.bf16.gmra.mxu2 %vm3466_vm14, %v3405_v29  ;;  %v3255_v31 = vsel %vm3167_vm11, %v3162_v62, %v8882_v10  ;;  %v11661_v56 = vld [vmem:[#allocation16_spill] sm:$0xff]  ;;  %v11662_v10 = vld [vmem:[#allocation23_spill] sm:$0xff] }
 0x438   : > { %v3348_v4 = vsel %vm3260_vm13, %v3255_v31, %v9130_v22  ;;  %v2715_v28 = vsel %vm2701_vm7, %v6597_v46, %v11661_v56  ;;  %v2755_v50 = vsel %vm2701_vm7, %v6598_v14, %v11662_v10  ;;  %v6599_v22 = vld [vmem:[%s6696_s24 + $0x80] sm:$0xff]   ;;  %v11663_v29 = vld [vmem:[#allocation24_spill] sm:$0xff]  ;;  %v11668_v31 = vld [vmem:[#allocation95_spill] sm:$0xff] }
 0x439   : > { %v2735_v16 = vsel %vm2701_vm7, %v6599_v22, %v11663_v29  ;;  %v2809_v36 = vsel %vm2795_vm9, %v2715_v28, %v11666_v55  ;;  %v2849_v62 = vsel %vm2795_vm9, %v2755_v50, %v11667_v33  ;;  %v4113_v46 = vld [vmem:[%s9161_s21 + $0x10d] sm:$0xff]  ;;  %v11671_v29 = vld [vmem:[#allocation130_spill] sm:$0xff] }
 0x43a   : > { %4320 = vperm.xlu2 %6525, %v4111_v47   ;;  %4315 = vperm.xlu1 %6527, %v4110_v5   ;;  %v11664_v47 = vld [vmem:[#allocation46_spill] sm:$0xff]  ;;  %v11669_v56 = vld [vmem:[#allocation100_spill] sm:$0xff]  ;;  %v11670_v10 = vld [vmem:[#allocation123_spill] sm:$0xff] }
 0x43b   : > { %4325 = vperm.xlu0 %6526, %v4112_v18   ;;  %v2775_v5 = vsel %vm2701_vm7, %v6600_v32, %v11664_v47  ;;  %v2829_v18 = vsel %vm2795_vm9, %v2735_v16, %v11665_v43  ;;  %v2902_v14 = vsel %vm2888_vm8, %v2809_v36, %v11669_v56  ;;  %v11672_v32 = vld [vmem:[#allocation131_spill] sm:$0xff]  ;;  %v4115_v47 = vld [vmem:[%s9161_s21 + $0x11d] sm:$0xff]  ;;  %v11673_v43 = vld [vmem:[#allocation152_spill] sm:$0xff] }
 0x43c   : > { %v2696_v6 = vpop.permute.xlu2 %2695  ;;  %v9466_v2 = vpop.permute.xlu1 %2675  ;;  %v2922_v22 = vsel %vm2888_vm8, %v2829_v18, %v11670_v10  ;;  %v2942_v28 = vsel %vm2888_vm8, %v2849_v62, %v11672_v32  ;;  %v2995_v50 = vsel %vm2981_vm10, %v2902_v14, %v11673_v43  ;;  %v11674_v55 = vld [vmem:[#allocation159_spill] sm:$0xff]  ;;  %v11675_v33 = vld [vmem:[#allocation160_spill] sm:$0xff]  ;;  %v11676_v36 = vld [vmem:[#allocation182_spill] sm:$0xff]  ;;  %v536_v18 = vunpack.c.l.b16 %v341_v19 }
 0x43d   : > { %v9468_v51 = vpop.permute.xlu0 %2673  ;;  %v9471_v27 = vsel %vm3353_vm15, %v3348_v4, %v2696_v6  ;;  %v2869_v4 = vsel %vm2795_vm9, %v2775_v5, %v11668_v31  ;;  %v4114_v6 = vld [vmem:[%s9161_s21 + $0x115] sm:$0xff]  ;;  %v3035_v5 = vsel %vm2981_vm10, %v2942_v28, %v11674_v55  ;;  %v3015_v31 = vsel %vm2981_vm10, %v2922_v22, %v11675_v33  ;;  %v11677_v10 = vld [vmem:[#allocation198_spill] sm:$0xff] }
 0x43e   : > { %v2962_v16 = vsel %vm2888_vm8, %v2869_v4, %v11671_v29  ;;  %v3108_v4 = vsel %vm3074_vm12, %v3015_v31, %v11677_v10  ;;  %v11678_v29 = vld [vmem:[#allocation199_spill] sm:$0xff]  ;;  %v11679_v32 = vld [vmem:[#allocation229_spill] sm:$0xff]  ;;  %v11681_v43 = vld [vmem:[#allocation234_spill] sm:$0xff] }
 0x43f   : > { %v3055_v56 = vsel %vm2981_vm10, %v2962_v16, %v11676_v36  ;;  %v3088_v62 = vsel %vm3074_vm12, %v2995_v50, %v11678_v29  ;;  %v11680_v14 = vld [vmem:[#allocation221_spill] sm:$0xff]  ;;  %v11682_v55 = vld [vmem:[#allocation256_spill] sm:$0xff]  ;;  %v11683_v16 = vld [vmem:[#allocation263_spill] sm:$0xff] }
 0x440   : > { %v3148_v57 = vsel %vm3074_vm12, %v3055_v56, %v11679_v32  ;;  %v3128_v28 = vsel %vm3074_vm12, %v3035_v5, %v11680_v14  ;;  %v3181_v22 = vsel %vm3167_vm11, %v3088_v62, %v11681_v43  ;;  %v3201_v19 = vsel %vm3167_vm11, %v3108_v4, %v11682_v55  ;;  %v11684_v31 = vld [vmem:[#allocation264_spill] sm:$0xff]  ;;  %v4116_v10 = vld [vmem:[%s9161_s21 + $0x125] sm:$0xff]  ;;  %v6602_v14 = vld [vmem:[%s6696_s24 + $0x38] sm:$0xff]  }
 0x441   : > { %v3241_v33 = vsel %vm3167_vm11, %v3148_v57, %v11683_v16  ;;  %v3221_v50 = vsel %vm3167_vm11, %v3128_v28, %v11684_v31  ;;  %v582_v4 = vpack.c.b16 %v536_v18, %v536_v18  ;;  %v6601_v29 = vld [vmem:[%s6696_s24 + $0x88] sm:$0xff]   ;;  %v11685_v62 = vld [vmem:[#allocation14_spill] sm:$0xff]  ;;  %v11689_v31 = vld [vmem:[#allocation44_spill] sm:$0xff] }
 0x442   : > { %4335 = vperm.xlu2 %6525, %v4114_v6   ;;  %4330 = vperm.xlu1 %6527, %v4113_v46   ;;  %v3274_v6 = vsel %vm3260_vm13, %v3181_v22, %v8928_v41  ;;  %v3294_v46 = vsel %vm3260_vm13, %v3201_v19, %v8971_v17  ;;  %v3334_v5 = vsel %vm3260_vm13, %v3241_v33, %v9098_v54  ;;  %v11686_v28 = vld [vmem:[#allocation15_spill] sm:$0xff]  ;;  %v6603_v22 = vld [vmem:[%s6696_s24 + $0xd8] sm:$0xff]   ;;  %v11688_v16 = vld [vmem:[#allocation38_spill] sm:$0xff] }
 0x443   : > { %4340 = vperm.xlu0 %6526, %v4115_v47   ;;  %v3314_v47 = vsel %vm3260_vm13, %v3221_v50, %v8969_v8  ;;  %v3367_v41 = vsel %vm3353_vm15, %v3274_v6, %v9196_v59  ;;  %v3387_v17 = vsel %vm3353_vm15, %v3294_v46, %v9194_v9  ;;  %v4117_v59 = vld [vmem:[%s9161_s21 + $0x12d] sm:$0xff]  ;;  %v4118_v9 = vld [vmem:[%s9161_s21 + $0x135] sm:$0xff]  ;;  %v2737_v32 = vsel %vm2701_vm7, %v6601_v29, %v11685_v62  ;;  %v11695_v29 = vld [vmem:[#allocation86_spill] sm:$0xff] }
 0x444   : > { %v9535_v36 = vpop.permute.xlu2 %4175  ;;  %v2682_v57 = vpop.permute.xlu1 %2681  ;;  %v3407_v8 = vsel %vm3353_vm15, %v3314_v47, %v9383_v15  ;;  %v2717_v43 = vsel %vm2701_vm7, %v6602_v14, %v11686_v28  ;;  %v11687_v15 = vld [vmem:[#allocation37_spill] sm:$0xff]  ;;  %v6604_v19 = vld [vmem:[%s6696_s24 + $0x148] sm:$0xff]  }
 0x445   : > { %v9539_v56 = vpop.permute.xlu0 %2679  ;;  %v3427_v54 = vsel %vm3353_vm15, %v3334_v5, %v2682_v57  ;;  %v2757_v55 = vsel %vm2701_vm7, %v6603_v22, %v11687_v15  ;;  %v2785_v33 = vsel %vm2701_vm7, %v6604_v19, %v11688_v16  ;;  %v6605_v18 = vld [vmem:[%s6696_s24 + $0x128] sm:$0xff]   ;;  %v6606_v5 = vld [vmem:[%s6696_s24 + $0x150] sm:$0xff]   ;;  %v11697_v22 = vld [vmem:[#allocation102_spill] sm:$0xff] }
 0x446   : > { %5935 = vmatmul.msk.bf16.gmra.mxu0 %vm3466_vm14, %v3367_v41  ;;  %5945 = vmatmul.msk.bf16.gmra.mxu1 %vm3466_vm14, %v3387_v17  ;;  %v2777_v50 = vsel %vm2701_vm7, %v6605_v18, %v11689_v31  ;;  %v11690_v6 = vld [vmem:[#allocation51_spill] sm:$0xff]  ;;  %v11691_v57 = vld [vmem:[#allocation52_spill] sm:$0xff]  ;;  %v2851_v62 = vsel %vm2795_vm9, %v2757_v55, %v11695_v29  ;;  %v11698_v15 = vld [vmem:[#allocation114_spill] sm:$0xff] }
 0x447   : > { %5955 = vmatmul.msk.bf16.gmra.mxu2 %vm3466_vm14, %v3407_v8  ;;  %5965 = vmatmul.msk.bf16.vlgmr.msra.gmra.mxu3 %vm3466_vm14, %v3427_v54  ;;  %v2811_v46 = vsel %vm2795_vm9, %v2717_v43, %v11690_v6  ;;  %v2787_v47 = vsel %vm2701_vm7, %v6606_v5, %v11691_v57  ;;  %v11692_v41 = vld [vmem:[#allocation56_spill] sm:$0xff]  ;;  %v11693_v54 = vld [vmem:[#allocation78_spill] sm:$0xff]  ;;  %v11696_v43 = vld [vmem:[#allocation101_spill] sm:$0xff] }
 0x448   : > { %v2794_v17 = vsel %vm2701_vm7, %v582_v4, %v11692_v41  ;;  %v2831_v8 = vsel %vm2795_vm9, %v2737_v32, %v11693_v54  ;;  %v2879_v4 = vsel %vm2795_vm9, %v2785_v33, %v11697_v22  ;;  %v2904_v32 = vsel %vm2888_vm8, %v2811_v46, %v11698_v15  ;;  %v11699_v19 = vld [vmem:[#allocation121_spill] sm:$0xff]  ;;  %v11700_v18 = vld [vmem:[#allocation122_spill] sm:$0xff]  ;;  %v11702_v5 = vld [vmem:[#allocation144_spill] sm:$0xff] }
 0x449   : > { %v2944_v16 = vsel %vm2888_vm8, %v2851_v62, %v11699_v19  ;;  %v2924_v31 = vsel %vm2888_vm8, %v2831_v8, %v11700_v18  ;;  %v11704_v41 = vld [vmem:[#allocation150_spill] sm:$0xff]  ;;  %v11705_v54 = vld [vmem:[#allocation151_spill] sm:$0xff]  ;;  %v11706_v29 = vld [vmem:[#allocation173_spill] sm:$0xff] }
 0x44a   : > { %4350 = vperm.xlu2 %6525, %v4117_v59   ;;  %4345 = vperm.xlu1 %6527, %v4116_v10   ;;  %v11694_v59 = vld [vmem:[#allocation85_spill] sm:$0xff]  ;;  %v3017_v46 = vsel %vm2981_vm10, %v2924_v31, %v11704_v41  ;;  %v3037_v62 = vsel %vm2981_vm10, %v2944_v16, %v11706_v29  ;;  %v4120_v22 = vld [vmem:[%s9161_s21 + $0x145] sm:$0xff]  ;;  %v11710_v18 = vld [vmem:[#allocation188_spill] sm:$0xff] }
 0x44b   : > { %4355 = vperm.xlu0 %6526, %v4118_v9   ;;  %v2871_v10 = vsel %vm2795_vm9, %v2777_v50, %v11694_v59  ;;  %v2881_v9 = vsel %vm2795_vm9, %v2787_v47, %v11696_v43  ;;  %v11701_v50 = vld [vmem:[#allocation136_spill] sm:$0xff]  ;;  %v11703_v47 = vld [vmem:[#allocation146_spill] sm:$0xff]  ;;  %v2997_v59 = vsel %vm2981_vm10, %v2904_v32, %v11705_v54  ;;  %v11708_v15 = vld [vmem:[#allocation181_spill] sm:$0xff] }
 0x44c   : > { %v9583_v14 = vpop.permute.xlu2 %4190  ;;  %v9585_v28 = vpop.permute.xlu1 %2687  ;;  %v2974_v6 = vsel %vm2888_vm8, %v2881_v9, %v11701_v50  ;;  %v2964_v57 = vsel %vm2888_vm8, %v2871_v10, %v11702_v5  ;;  %v2972_v33 = vsel %vm2888_vm8, %v2879_v4, %v11703_v47  ;;  %v11707_v43 = vld [vmem:[#allocation174_spill] sm:$0xff]  ;;  %v11711_v50 = vld [vmem:[#allocation212_spill] sm:$0xff]  ;;  %v11712_v47 = vld [vmem:[#allocation219_spill] sm:$0xff] }
 0x44d   : > { %v9595_v55 = vpop.permute.xlu0 %2685  ;;  %v3065_v8 = vsel %vm2981_vm10, %v2972_v33, %v11707_v43  ;;  %v4119_v9 = vld [vmem:[%s9161_s21 + $0x13d] sm:$0xff]  ;;  %v3057_v10 = vsel %vm2981_vm10, %v2964_v57, %v11708_v15  ;;  %v3067_v31 = vsel %vm2981_vm10, %v2974_v6, %v11710_v18  ;;  %v3110_v32 = vsel %vm3074_vm12, %v3017_v46, %v11711_v50  ;;  %v4121_v5 = vld [vmem:[%s9161_s21 + $0x14d] sm:$0xff] }
 0x44e   : > { %v11709_v19 = vld [vmem:[#allocation186_spill] sm:$0xff]  ;;  %v3150_v16 = vsel %vm3074_vm12, %v3057_v10, %v11712_v47  ;;  %v11713_v41 = vld [vmem:[#allocation220_spill] sm:$0xff]  ;;  %v11714_v54 = vld [vmem:[#allocation235_spill] sm:$0xff] }
 0x44f   : > { %v3090_v4 = vsel %vm3074_vm12, %v2997_v59, %v11709_v19  ;;  %v3130_v33 = vsel %vm3074_vm12, %v3037_v62, %v11713_v41  ;;  %v3160_v29 = vsel %vm3074_vm12, %v3067_v31, %v11714_v54  ;;  %v11715_v57 = vld [vmem:[#allocation236_spill] sm:$0xff]  ;;  %v11716_v59 = vld [vmem:[#allocation247_spill] sm:$0xff]  ;;  %v11717_v6 = vld [vmem:[#allocation254_spill] sm:$0xff]  ;;  %v3243_v10 = vsel %vm3167_vm11, %v3150_v16, %v8845_v20 }
 0x450   : > { %v3158_v43 = vsel %vm3074_vm12, %v3065_v8, %v11715_v57  ;;  %v3183_v15 = vsel %vm3167_vm11, %v3090_v4, %v11716_v59  ;;  %v3223_v19 = vsel %vm3167_vm11, %v3130_v33, %v11717_v6  ;;  %v11718_v46 = vld [vmem:[#allocation255_spill] sm:$0xff]  ;;  %v3253_v62 = vsel %vm3167_vm11, %v3160_v29, %v8804_v23  ;;  %v11720_v47 = vld [vmem:[#allocation104_spill] sm:$0xff]  ;;  %v4123_v41 = vld [vmem:[%s9161_s21 + $0x15d] sm:$0xff] }
 0x451   : > { %v3203_v18 = vsel %vm3167_vm11, %v3110_v32, %v11718_v46  ;;  %v3251_v8 = vsel %vm3167_vm11, %v3158_v43, %v8863_v60  ;;  %v3276_v31 = vsel %vm3260_vm13, %v3183_v15, %v8926_v61  ;;  %v3346_v20 = vsel %vm3260_vm13, %v3253_v62, %v9132_v1  ;;  %v4122_v33 = vld [vmem:[%s9161_s21 + $0x155] sm:$0xff]  ;;  %v4124_v57 = vld [vmem:[%s9161_s21 + $0x165] sm:$0xff] }
 0x452   : > { %4365 = vperm.xlu2 %6525, %v4120_v22   ;;  %4360 = vperm.xlu1 %6527, %v4119_v9   ;;  %v3296_v4 = vsel %vm3260_vm13, %v3203_v18, %v8924_v63  ;;  %v3316_v22 = vsel %vm3260_vm13, %v3223_v19, %v9033_v0  ;;  %v3344_v23 = vsel %vm3260_vm13, %v3251_v8, %v9047_v40  ;;  %v11723_v43 = vld [vmem:[#allocation148_spill] sm:$0xff]  ;;  %v11725_v6 = vld [vmem:[#allocation177_spill] sm:$0xff]  ;;  %v11727_v62 = vld [vmem:[#allocation238_spill] sm:$0xff] }
 0x453   : > { %4370 = vperm.xlu0 %6526, %v4121_v5   ;;  %v3336_v63 = vsel %vm3260_vm13, %v3243_v10, %v9094_v25  ;;  %v3369_v61 = vsel %vm3353_vm15, %v3276_v31, %v9128_v21  ;;  %v3389_v0 = vsel %vm3353_vm15, %v3296_v4, %v9299_v38  ;;  %v3409_v1 = vsel %vm3353_vm15, %v3316_v22, %v9381_v30  ;;  %v6607_v21 = vld [vmem:[%s6696_s24 + $0x160] sm:$0xff]   ;;  %v11719_v5 = vld [vmem:[#allocation41_spill] sm:$0xff]  ;;  %v11724_v15 = vld [vmem:[#allocation192_spill] sm:$0xff] }
 0x454   : > { %v9654_v9 = vpop.permute.xlu2 %4200  ;;  %v2694_v60 = vpop.permute.xlu1 %2693  ;;  %v3429_v25 = vsel %vm3353_vm15, %v3336_v63, %v9379_v35  ;;  %v2791_v38 = vsel %vm2701_vm7, %v6607_v21, %v11719_v5  ;;  %v2887_v16 = vsel %vm2795_vm9, %v2794_v17, %v11720_v47  ;;  %v11721_v30 = vld [vmem:[#allocation105_spill] sm:$0xff]  ;;  %v11722_v35 = vld [vmem:[#allocation139_spill] sm:$0xff]  ;;  %v6611_v5 = vld [vmem:[%s6696_s24 + $0xe0] sm:$0xff]  }
 0x455   : > { %v2692_v50 = vpop.permute.xlu0 %2691  ;;  %v9663_v40 = vsel %vm3353_vm15, %v3346_v20, %v2694_v60  ;;  %v2885_v54 = vsel %vm2795_vm9, %v2791_v38, %v11721_v30  ;;  %v2980_v29 = vsel %vm2888_vm8, %v2887_v16, %v11722_v35  ;;  %v11726_v46 = vld [vmem:[#allocation237_spill] sm:$0xff]  ;;  %v6608_v20 = vld [vmem:[%s6696_s24 + $0x40] sm:$0xff]   ;;  %v11728_v60 = vld [vmem:[#allocation7_spill] sm:$0xff] }
 0x456   : > { %5936 = vmatmul.msk.bf16.gmra.mxu0 %vm3466_vm14, %v3369_v61  ;;  %5946 = vmatmul.msk.bf16.gmra.mxu1 %vm3466_vm14, %v3389_v0  ;;  %v9672_v32 = vsel %vm3353_vm15, %v3344_v23, %v2692_v50  ;;  %v2978_v59 = vsel %vm2888_vm8, %v2885_v54, %v11723_v43  ;;  %v3073_v17 = vsel %vm2981_vm10, %v2980_v29, %v11724_v15  ;;  %v11729_v0 = vld [vmem:[#allocation28_spill] sm:$0xff]  ;;  %v11734_v54 = vld [vmem:[#allocation77_spill] sm:$0xff]  ;;  %v11735_v29 = vld [vmem:[#allocation99_spill] sm:$0xff] }
 0x457   : > { %5956 = vmatmul.msk.bf16.gmra.mxu2 %vm3466_vm14, %v3409_v1  ;;  %5966 = vmatmul.msk.bf16.gmra.mxu3 %vm3466_vm14, %v3429_v25  ;;  %v3071_v19 = vsel %vm2981_vm10, %v2978_v59, %v11725_v6  ;;  %v3166_v18 = vsel %vm3074_vm12, %v3073_v17, %v11726_v46  ;;  %v2719_v63 = vsel %vm2701_vm7, %v6608_v20, %v11728_v60  ;;  %v6610_v1 = vld [vmem:[%s6696_s24 + $0x130] sm:$0xff]   ;;  %v11730_v25 = vld [vmem:[#allocation35_spill] sm:$0xff]  ;;  %v11737_v6 = vld [vmem:[#allocation113_spill] sm:$0xff] }
 0x458   : > { %v3164_v10 = vsel %vm3074_vm12, %v3071_v19, %v11727_v62  ;;  %v3259_v8 = vsel %vm3167_vm11, %v3166_v18, %v8822_v45  ;;  %v2779_v21 = vsel %vm2701_vm7, %v6610_v1, %v11730_v25  ;;  %v11731_v38 = vld [vmem:[#allocation36_spill] sm:$0xff]  ;;  %v11738_v46 = vld [vmem:[#allocation135_spill] sm:$0xff]  ;;  %v11745_v1 = vld [vmem:[#allocation210_spill] sm:$0xff] }
 0x459   : > { %v3257_v4 = vsel %vm3167_vm11, %v3164_v10, %v8880_v11  ;;  %v3352_v31 = vsel %vm3260_vm13, %v3259_v8, %v9164_v13  ;;  %v6609_v11 = vld [vmem:[%s6696_s24 + $0x90] sm:$0xff]   ;;  %v2759_v47 = vsel %vm2701_vm7, %v6611_v5, %v11731_v38  ;;  %v11739_v62 = vld [vmem:[#allocation143_spill] sm:$0xff]  ;;  %v4127_v8 = vld [vmem:[%s9161_s21 + $0x17d] sm:$0xff] }
 0x45a   : > { %4380 = vperm.xlu2 %6525, %v4123_v41   ;;  %4375 = vperm.xlu1 %6527, %v4122_v33   ;;  %v3350_v50 = vsel %vm3260_vm13, %v3257_v4, %v9068_v58  ;;  %v2739_v13 = vsel %vm2701_vm7, %v6609_v11, %v11729_v0  ;;  %v11732_v58 = vld [vmem:[#allocation69_spill] sm:$0xff]  ;;  %v11733_v33 = vld [vmem:[#allocation76_spill] sm:$0xff]  ;;  %v9748_v4 = vld [vmem:[%s11077_s2] ss:$0 sm:$0xff] }
 0x45b   : > { %4385 = vperm.xlu0 %6526, %v4124_v57   ;;  %v2813_v41 = vsel %vm2795_vm9, %v2719_v63, %v11732_v58  ;;  %v2853_v30 = vsel %vm2795_vm9, %v2759_v47, %v11733_v33  ;;  %v2833_v35 = vsel %vm2795_vm9, %v2739_v13, %v11734_v54  ;;  %v2873_v57 = vsel %vm2795_vm9, %v2779_v21, %v11735_v29  ;;  %v4126_v43 = vld [vmem:[%s9161_s21 + $0x175] sm:$0xff]  ;;  %v4125_v59 = vld [vmem:[%s9161_s21 + $0x16d] sm:$0xff]  ;;  %v9767_v38 = vld [vmem:[%s11078_s3] ss:$0 sm:$0xff] }
 0x45c   : > { %v9704_v22 = vpop.permute.xlu2 %4215  ;;  %v2700_v23 = vpop.permute.xlu1 %2699  ;;  %v11736_v15 = vld [vmem:[#allocation112_spill] sm:$0xff]  ;;  %v2906_v19 = vsel %vm2888_vm8, %v2813_v41, %v11737_v6  ;;  %v2946_v18 = vsel %vm2888_vm8, %v2853_v30, %v11738_v46  ;;  %v2966_v10 = vsel %vm2888_vm8, %v2873_v57, %v11739_v62  ;;  %v11742_v63 = vld [vmem:[#allocation171_spill] sm:$0xff]  ;;  %v11747_v47 = vld [vmem:[#allocation233_spill] sm:$0xff] }
 0x45d   : > { %v2698_v45 = vpop.permute.xlu0 %2697  ;;  %v9712_v61 = vsel %vm3353_vm15, %v3352_v31, %v2700_v23  ;;  %v2926_v17 = vsel %vm2888_vm8, %v2833_v35, %v11736_v15  ;;  %v11740_v31 = vld [vmem:[#allocation5_spill] sm:$0xff]  ;;  %v11741_v20 = vld [vmem:[#allocation164_spill] sm:$0xff]  ;;  %v11744_v0 = vld [vmem:[#allocation203_spill] sm:$0xff] }
 0x45e   : > { %v9724_v16 = vsel %vm3353_vm15, %v3350_v50, %v2698_v45  ;;  %v2999_v23 = vsel %vm2981_vm10, %v2906_v19, %v11740_v31  ;;  %v3019_v60 = vsel %vm2981_vm10, %v2926_v17, %v11741_v20  ;;  %v3059_v50 = vsel %vm2981_vm10, %v2966_v10, %v11742_v63  ;;  %v11743_v45 = vld [vmem:[#allocation172_spill] sm:$0xff]  ;;  %v11746_v21 = vld [vmem:[#allocation211_spill] sm:$0xff]  ;;  %v11748_v41 = vld [vmem:[#allocation245_spill] sm:$0xff] }
 0x45f   : > { %v3039_v11 = vsel %vm2981_vm10, %v2946_v18, %v11743_v45  ;;  %v3092_v13 = vsel %vm3074_vm12, %v2999_v23, %v11744_v0  ;;  %v3112_v5 = vsel %vm3074_vm12, %v3019_v60, %v11746_v21  ;;  %v3152_v58 = vsel %vm3074_vm12, %v3059_v50, %v11747_v47  ;;  %v11749_v30 = vld [vmem:[#allocation246_spill] sm:$0xff]  ;;  %v11750_v35 = vld [vmem:[#allocation268_spill] sm:$0xff]  ;;  %v6612_v23 = vld [vmem:[%s6696_s24 + $0x48] sm:$0xff]  }
 0x460   : > { %v3132_v25 = vsel %vm3074_vm12, %v3039_v11, %v11745_v1  ;;  %v3205_v33 = vsel %vm3167_vm11, %v3112_v5, %v11748_v41  ;;  %v3185_v54 = vsel %vm3167_vm11, %v3092_v13, %v11749_v30  ;;  %v4130_v10 = vld [vmem:[%s9161_s21 + $0x195] sm:$0xff]  ;;  %v11751_v20 = vld [vmem:[#allocation19_spill] sm:$0xff]  ;;  %v11752_v63 = vld [vmem:[#allocation26_spill] sm:$0xff] }
 0x461   : > { %v3225_v29 = vsel %vm3167_vm11, %v3132_v25, %v11750_v35  ;;  %v3298_v15 = vsel %vm3260_vm13, %v3205_v33, %v8988_v12  ;;  %v6613_v60 = vld [vmem:[%s6696_s24 + $0xe8] sm:$0xff]   ;;  %v6614_v50 = vld [vmem:[%s6696_s24 + $0x98] sm:$0xff]   ;;  %v11756_v41 = vld [vmem:[#allocation68_spill] sm:$0xff] }
 0x462   : > { %4395 = vperm.xlu2 %6525, %v4126_v43   ;;  %4390 = vperm.xlu1 %6527, %v4125_v59   ;;  %v3245_v43 = vsel %vm3167_vm11, %v3152_v58, %v8842_v37  ;;  %v3278_v59 = vsel %vm3260_vm13, %v3185_v54, %v8878_v53  ;;  %v3318_v37 = vsel %vm3260_vm13, %v3225_v29, %v9031_v39  ;;  %v11753_v45 = vld [vmem:[#allocation27_spill] sm:$0xff]  ;;  %v6615_v25 = vld [vmem:[%s6696_s24 + $0x138] sm:$0xff]   ;;  %v11757_v30 = vld [vmem:[#allocation90_spill] sm:$0xff] }
 0x463   : > { %4400 = vperm.xlu0 %6526, %v4127_v8   ;;  %v3572_v57 = vpop.f32.mrf.mxu0  ;;  %v3338_v46 = vsel %vm3260_vm13, %v3245_v43, %v9029_v26  ;;  %v3371_v53 = vsel %vm3353_vm15, %v3278_v59, %v9210_v48  ;;  %v3391_v12 = vsel %vm3353_vm15, %v3298_v15, %v9297_v34  ;;  %v3411_v26 = vsel %vm3353_vm15, %v3318_v37, %v9295_v24  ;;  %v4129_v48 = vld [vmem:[%s9161_s21 + $0x18d] sm:$0xff]  ;;  %v4128_v34 = vld [vmem:[%s9161_s21 + $0x185] sm:$0xff]  ;;  %v11754_v21 = vld [vmem:[#allocation49_spill] sm:$0xff] }
 0x464   : > { %v3805_v17 = vmul.f32 %v9748_v4, %v3572_v57  ;;  %v9784_v6 = vpop.permute.xlu2 %4230  ;;  %v9786_v19 = vpop.permute.xlu1 %4185  ;;  %v3431_v39 = vsel %vm3353_vm15, %v3338_v46, %v9595_v55  ;;  %v2721_v24 = vsel %vm2701_vm7, %v6612_v23, %v11751_v20  ;;  %v2761_v55 = vsel %vm2701_vm7, %v6613_v60, %v11752_v63  ;;  %v11755_v47 = vld [vmem:[#allocation67_spill] sm:$0xff]  ;;  %v11758_v29 = vld [vmem:[#allocation98_spill] sm:$0xff]  ;;  %v11766_v20 = vld [vmem:[#allocation185_spill] sm:$0xff] }
 0x465   : > { %v4181_v18 = vpop.permute.xlu0 %4180  ;;  %v2741_v11 = vsel %vm2701_vm7, %v6614_v50, %v11753_v45  ;;  %v2781_v5 = vsel %vm2701_vm7, %v6615_v25, %v11754_v21  ;;  %v2815_v33 = vsel %vm2795_vm9, %v2721_v24, %v11756_v41  ;;  %v2855_v54 = vsel %vm2795_vm9, %v2761_v55, %v11757_v30  ;;  %v11759_v43 = vld [vmem:[#allocation103_spill] sm:$0xff]  ;;  %v11760_v46 = vld [vmem:[#allocation126_spill] sm:$0xff]  ;;  %v11767_v55 = vld [vmem:[#allocation201_spill] sm:$0xff] }
 0x466   : > { %v3900_v62 = vadd.f32 %v9767_v38, %v3805_v17  ;;  %5937 = vmatmul.msk.bf16.gmra.mxu0 %vm3466_vm14, %v3371_v53  ;;  %5947 = vmatmul.msk.bf16.gmra.mxu1 %vm3466_vm14, %v3391_v12  ;;  %v2835_v58 = vsel %vm2795_vm9, %v2741_v11, %v11755_v47  ;;  %v2875_v57 = vsel %vm2795_vm9, %v2781_v5, %v11758_v29  ;;  %v11761_v53 = vld [vmem:[#allocation133_spill] sm:$0xff]  ;;  %v4133_v63 = vld [vmem:[%s9161_s21 + $0x1ad] sm:$0xff]  ;;  %v11768_v45 = vld [vmem:[#allocation202_spill] sm:$0xff] }
 0x467   : > { %5957 = vmatmul.msk.bf16.gmra.mxu2 %vm3466_vm14, %v3411_v26  ;;  %5967 = vmatmul.msk.bf16.gmra.mxu3 %vm3466_vm14, %v3431_v39  ;;  %v2908_v59 = vsel %vm2888_vm8, %v2815_v33, %v11759_v43  ;;  %v2928_v37 = vsel %vm2888_vm8, %v2835_v58, %v11760_v46  ;;  %v2968_v12 = vsel %vm2888_vm8, %v2875_v57, %v11761_v53  ;;  %v11763_v39 = vld [vmem:[#allocation155_spill] sm:$0xff]  ;;  %v11770_v21 = vld [vmem:[#allocation232_spill] sm:$0xff]  ;;  %v11773_v29 = vld [vmem:[#allocation266_spill] sm:$0xff] }
 0x468   : > { %v3991_v8 = vmax.f32 %v3900_v62, 0.0  ;;  %v11762_v62 = vld [vmem:[#allocation134_spill] sm:$0xff]  ;;  %v3061_v24 = vsel %vm2981_vm10, %v2968_v12, %v11766_v20  ;;  %v11771_v47 = vld [vmem:[#allocation4_spill] sm:$0xff]  ;;  %v11772_v30 = vld [vmem:[#allocation259_spill] sm:$0xff] }
 0x469   : > { %v2948_v26 = vsel %vm2888_vm8, %v2855_v54, %v11762_v62  ;;  %v3154_v5 = vsel %vm3074_vm12, %v3061_v24, %v11770_v21  ;;  %v11774_v43 = vld [vmem:[#allocation267_spill] sm:$0xff] }
 0x46a   : > { %4410 = vperm.xlu2 %6525, %v4129_v48   ;;  %4405 = vperm.xlu1 %6527, %v4128_v34   ;;  %v4628_v15 = vmul.f32 %v9535_v36, %v3991_v8  ;;  %v3001_v48 = vsel %vm2981_vm10, %v2908_v59, %v11763_v39  ;;  %v4132_v34 = vld [vmem:[%s9161_s21 + $0x1a5] sm:$0xff]  ;;  %v3247_v57 = vsel %vm3167_vm11, %v3154_v5, %v11773_v29  ;;  %v11776_v39 = vld [vmem:[#allocation285_spill] sm:$0xff]  ;;  %v6618_v5 = vld [vmem:[%s6696_s24 + $0xf0] sm:$0xff]  }
 0x46b   : > { %4415 = vperm.xlu0 %6526, %v4130_v10   ;;  %v3574_v31 = vpop.f32.mrf.mxu0  ;;  %v4131_v10 = vld [vmem:[%s9161_s21 + $0x19d] sm:$0xff]  ;;  %v11765_v36 = vld [vmem:[#allocation163_spill] sm:$0xff]  ;;  %v3094_v11 = vsel %vm3074_vm12, %v3001_v48, %v11768_v45 }
 0x46c   : > { %v3806_v0 = vmul.f32 %v9748_v4, %v3574_v31  ;;  %v9818_v13 = vpop.permute.xlu2 %4245  ;;  %v9820_v1 = vpop.permute.xlu1 %4195  ;;  %v11764_v31 = vld [vmem:[#allocation162_spill] sm:$0xff]  ;;  %v3021_v8 = vsel %vm2981_vm10, %v2928_v37, %v11765_v36  ;;  %v3187_v58 = vsel %vm3167_vm11, %v3094_v11, %v11771_v47  ;;  %v4719_v41 = vpack.c.bf16 %v4628_v15, %v4628_v15  ;;  %v11781_v47 = vld [vmem:[#allocation40_spill] sm:$0xff] }
 0x46d   : > { %v9831_v35 = vpop.permute.xlu0 %4205  ;;  %v3041_v23 = vsel %vm2981_vm10, %v2948_v26, %v11764_v31  ;;  %v3114_v50 = vsel %vm3074_vm12, %v3021_v8, %v11767_v55  ;;  %v11779_v55 = vld [vmem:[#allocation17_spill] sm:$0xff]  ;;  %v4136_v11 = vld [vmem:[%s9161_s21 + $0x1c5] sm:$0xff] }
 0x46e   : > { %v3901_v17 = vadd.f32 %v9767_v38, %v3806_v0  ;;  %v11769_v0 = vld [vmem:[#allocation224_spill] sm:$0xff]  ;;  %v3207_v54 = vsel %vm3167_vm11, %v3114_v50, %v11772_v30  ;;  %v4901_v36 = vunpack.c.l.b16 %v4719_v41  ;;  %v11782_v41 = vld [vmem:[#allocation47_spill] sm:$0xff] }
 0x46f   : > { %v3134_v25 = vsel %vm3074_vm12, %v3041_v23, %v11769_v0  ;;  %v6617_v0 = vld [vmem:[%s6696_s24 + $0x50] sm:$0xff]  }
 0x470   : > { %v3992_v60 = vmax.f32 %v3901_v17, 0.0  ;;  %v3227_v59 = vsel %vm3167_vm11, %v3134_v25, %v11774_v43  ;;  %v3280_v17 = vsel %vm3260_vm13, %v3187_v58, %v8943_v44  ;;  %v3340_v44 = vsel %vm3260_vm13, %v3247_v57, %v11776_v39  ;;  %v11780_v25 = vld [vmem:[#allocation18_spill] sm:$0xff] }
 0x471   : > { %v3320_v15 = vsel %vm3260_vm13, %v3227_v59, %v8984_v52  ;;  %v3433_v24 = vsel %vm3353_vm15, %v3340_v44, %v9585_v28  ;;  %v2723_v21 = vsel %vm2701_vm7, %v6617_v0, %v11780_v25  ;;  %v2763_v28 = vsel %vm2701_vm7, %v6618_v5, %v11781_v47  ;;  %v6619_v58 = vld [vmem:[%s6696_s24 + $0x140] sm:$0xff]   ;;  %v11784_v59 = vld [vmem:[#allocation81_spill] sm:$0xff]  ;;  %v11794_v47 = vld [vmem:[#allocation184_spill] sm:$0xff] }
 0x472   : > { %v4629_v33 = vmul.f32 %v4181_v18, %v3992_v60  ;;  %4425 = vperm.xlu2 %6525, %v4132_v34   ;;  %4420 = vperm.xlu1 %6527, %v4131_v10   ;;  %v11775_v18 = vld [vmem:[#allocation275_spill] sm:$0xff]  ;;  %v11777_v34 = vld [vmem:[#allocation94_spill] sm:$0xff]  ;;  %v3413_v23 = vsel %vm3353_vm15, %v3320_v15, %v9437_v7 }
 0x473   : > { %4430 = vperm.xlu0 %6526, %v4133_v63   ;;  %v3577_v46 = vpop.f32.mrf.mxu0  ;;  %v3300_v37 = vsel %vm3260_vm13, %v3207_v54, %v11775_v18  ;;  %v3373_v52 = vsel %vm3353_vm15, %v3280_v17, %v11777_v34  ;;  %v11778_v10 = vld [vmem:[#allocation55_spill] sm:$0xff]  ;;  %v4135_v60 = vld [vmem:[%s9161_s21 + $0x1bd] sm:$0xff]  ;;  %v4134_v63 = vld [vmem:[%s9161_s21 + $0x1b5] sm:$0xff] }
 0x474   : > { %v4720_v53 = vpack.c.bf16 %v4629_v33, %v4629_v33  ;;  %v3807_v12 = vmul.f32 %v9748_v4, %v3577_v46  ;;  %v9879_v62 = vpop.permute.xlu2 %4260  ;;  %v9881_v26 = vpop.permute.xlu1 %4210  ;;  %v3393_v31 = vsel %vm3353_vm15, %v3300_v37, %v11778_v10  ;;  %v6616_v7 = vld [vmem:[%s6696_s24 + $0xa0] sm:$0xff]   ;;  %v2783_v33 = vsel %vm2701_vm7, %v6619_v58, %v11782_v41  ;;  %v11785_v46 = vld [vmem:[#allocation88_spill] sm:$0xff]  ;;  %v11786_v18 = vld [vmem:[#allocation89_spill] sm:$0xff] }
 0x475   : > { %v9885_v48 = vpop.permute.xlu0 %4220  ;;  %v2743_v50 = vsel %vm2701_vm7, %v6616_v7, %v11779_v55  ;;  %v11783_v57 = vld [vmem:[#allocation54_spill] sm:$0xff]  ;;  %v2877_v15 = vsel %vm2795_vm9, %v2783_v33, %v11785_v46  ;;  %v2857_v37 = vsel %vm2795_vm9, %v2763_v28, %v11786_v18  ;;  %v11796_v33 = vld [vmem:[#allocation215_spill] sm:$0xff] }
 0x476   : > { %v4902_v8 = vunpack.c.l.b16 %v4720_v53  ;;  %v3902_v20 = vadd.f32 %v9767_v38, %v3807_v12  ;;  %5938 = vmatmul.msk.bf16.gmra.mxu0 %vm3466_vm14, %v3373_v52  ;;  %5948 = vmatmul.msk.bf16.gmra.mxu1 %vm3466_vm14, %v3393_v31  ;;  %v2817_v43 = vsel %vm2795_vm9, %v2723_v21, %v11783_v57  ;;  %v2837_v17 = vsel %vm2795_vm9, %v2743_v50, %v11784_v59  ;;  %v11787_v12 = vld [vmem:[#allocation125_spill] sm:$0xff]  ;;  %v11792_v50 = vld [vmem:[#allocation154_spill] sm:$0xff]  ;;  %v11793_v21 = vld [vmem:[#allocation176_spill] sm:$0xff] }
 0x477   : > { %5958 = vmatmul.msk.bf16.gmra.mxu2 %vm3466_vm14, %v3413_v23  ;;  %5968 = vmatmul.msk.bf16.gmra.mxu3 %vm3466_vm14, %v3433_v24  ;;  %v2930_v39 = vsel %vm2888_vm8, %v2837_v17, %v11787_v12  ;;  %v11788_v23 = vld [vmem:[#allocation117_spill] sm:$0xff]  ;;  %v11790_v24 = vld [vmem:[#allocation147_spill] sm:$0xff]  ;;  %v11795_v58 = vld [vmem:[#allocation190_spill] sm:$0xff] }
 0x478   : > { %v4992_v45 = vpack.c.b16 %v4902_v8, %v4901_v36  ;;  %v3993_v29 = vmax.f32 %v3902_v20, 0.0  ;;  %v2910_v36 = vsel %vm2888_vm8, %v2817_v43, %v11788_v23  ;;  %v11789_v8 = vld [vmem:[#allocation124_spill] sm:$0xff]  ;;  %v11797_v43 = vld [vmem:[#allocation222_spill] sm:$0xff] }
 0x479   : > { %v2950_v20 = vsel %vm2888_vm8, %v2857_v37, %v11789_v8  ;;  %v4137_v57 = vld [vmem:[%s9161_s21 + $0x1cd] sm:$0xff]  ;;  %v11799_v18 = vld [vmem:[#allocation250_spill] sm:$0xff]  ;;  %v11802_v8 = vld [vmem:[#allocation273_spill] sm:$0xff] }
 0x47a   : > { %v5040_v30 = vshrl.u32 %v4992_v45, 16  ;;  %v5043_v54 = vshll.u32 %v4992_v45, 16  ;;  %4440 = vperm.xlu2 %6525, %v4135_v60   ;;  %4435 = vperm.xlu1 %6527, %v4134_v63   ;;  %v2970_v60 = vsel %vm2888_vm8, %v2877_v15, %v11790_v24  ;;  %v11791_v63 = vld [vmem:[#allocation153_spill] sm:$0xff]  ;;  %v3003_v45 = vsel %vm2981_vm10, %v2910_v36, %v11792_v50 }
 0x47b   : > { %4445 = vperm.xlu0 %6526, %v4136_v11   ;;  %v3579_v53 = vpop.f32.mrf.mxu0  ;;  %v3023_v7 = vsel %vm2981_vm10, %v2930_v39, %v11791_v63  ;;  %v4630_v0 = vmul.f32 %v9786_v19, %v3993_v29  ;;  %v3043_v5 = vsel %vm2981_vm10, %v2950_v20, %v11793_v21  ;;  %v3063_v28 = vsel %vm2981_vm10, %v2970_v60, %v11794_v47  ;;  %v11798_v19 = vld [vmem:[#allocation223_spill] sm:$0xff]  ;;  %v4139_v15 = vld [vmem:[%s9161_s21 + $0x1dd] sm:$0xff] }
 0x47c   : > { %v5042_v44 = vrot.slane %v5040_v30, 5  ;;  %v5045_v34 = vrot.slane %v5043_v54, 6  ;;  %v3808_v52 = vmul.f32 %v9748_v4, %v3579_v53  ;;  %v9926_v10 = vpop.permute.xlu2 %4275  ;;  %v9928_v31 = vpop.permute.xlu1 %4225  ;;  %v3096_v41 = vsel %vm3074_vm12, %v3003_v45, %v11795_v58  ;;  %v4138_v54 = vld [vmem:[%s9161_s21 + $0x1d5] sm:$0xff] }
 0x47d   : > { %v9940_v55 = vpop.permute.xlu0 %4235  ;;  %v3116_v30 = vsel %vm3074_vm12, %v3023_v7, %v11796_v33  ;;  %v3156_v59 = vsel %vm3074_vm12, %v3063_v28, %v11797_v43  ;;  %v3136_v29 = vsel %vm3074_vm12, %v3043_v5, %v11798_v19  ;;  %v3189_v37 = vsel %vm3167_vm11, %v3096_v41, %v11799_v18  ;;  %v11800_v53 = vld [vmem:[#allocation257_spill] sm:$0xff]  ;;  %v11806_v41 = vld [vmem:[#allocation284_spill] sm:$0xff]  ;;  %v4140_v18 = vld [vmem:[%s9161_s21 + $0x1e5] sm:$0xff] }
 0x47e   : > { %v9944_v11 = vor.u32 %v5045_v34, %v5042_v44  ;;  %v3903_v25 = vadd.f32 %v9767_v38, %v3808_v52  ;;  %v3229_v12 = vsel %vm3167_vm11, %v3136_v29, %v11800_v53  ;;  %v11801_v34 = vld [vmem:[#allocation258_spill] sm:$0xff]  ;;  %v4721_v23 = vpack.c.bf16 %v4630_v0, %v4630_v0  ;;  %v11803_v24 = vld [vmem:[#allocation197_spill] sm:$0xff] }
 0x47f   : > { %v3209_v52 = vsel %vm3167_vm11, %v3116_v30, %v11801_v34  ;;  %v3249_v20 = vsel %vm3167_vm11, %v3156_v59, %v11802_v8  ;;  %v11808_v43 = vld [vmem:[#allocation45_spill] sm:$0xff] }
 0x480   : > { %v5456_v17 = vsel %vm5455_vm4, 0, %v9944_v11  ;;  %v3994_v46 = vmax.f32 %v3903_v25, 0.0  ;;  %v3302_v60 = vsel %vm3260_vm13, %v3209_v52, %v11803_v24  ;;  %v11804_v25 = vld [vmem:[#allocation196_spill] sm:$0xff]  ;;  %v3342_v33 = vsel %vm3260_vm13, %v3249_v20, %v11806_v41  ;;  %v6622_v20 = vld [vmem:[%s6696_s24 + $0xf8] sm:$0xff]   ;;  %v11811_v24 = vld [vmem:[#allocation39_spill] sm:$0xff] }
 0x481   : > { %v5464_v39 = vunpack.c.l.b16 %v5456_v17  ;;  %v5465_v44 = vunpack.c.h.b16 %v5456_v17  ;;  %v3282_v0 = vsel %vm3260_vm13, %v3189_v37, %v11804_v25  ;;  %v3395_v59 = vsel %vm3353_vm15, %v3302_v60, %v11808_v43  ;;  %v4142_v53 = vld [vmem:[%s9161_s21 + $0x1f5] sm:$0xff]  ;;  %v11815_v43 = vld [vmem:[#allocation115_spill] sm:$0xff] }
 0x482   : > { %v4631_v36 = vmul.f32 %v9583_v14, %v3994_v46  ;;  %4455 = vperm.xlu2 %6525, %v4138_v54   ;;  %4450 = vperm.xlu1 %6527, %v4137_v57   ;;  %v11805_v14 = vld [vmem:[#allocation281_spill] sm:$0xff]  ;;  %v11807_v54 = vld [vmem:[#allocation10_spill] sm:$0xff]  ;;  %v4903_v29 = vunpack.c.l.b16 %v4721_v23  ;;  %v2765_v60 = vsel %vm2701_vm7, %v6622_v20, %v11811_v24 }
 0x483   : > { %v5558_v63 = vpack.c.b16 %v5464_v39, %v5464_v39  ;;  %v5559_v7 = vpack.c.b16 %v5465_v44, %v5465_v44  ;;  %4460 = vperm.xlu0 %6526, %v4139_v15   ;;  %v3582_v50 = vpop.f32.mrf.mxu0  ;;  %v9975_v45 = vpop.f32.mrf.mxu1  ;;  %v3322_v21 = vsel %vm3260_vm13, %v3229_v12, %v11805_v14  ;;  %v3375_v57 = vsel %vm3353_vm15, %v3282_v0, %v11807_v54  ;;  %v6620_v12 = vld [vmem:[%s6696_s24 + $0x58] sm:$0xff]   ;;  %v11809_v39 = vld [vmem:[#allocation8_spill] sm:$0xff]  ;;  %v11814_v54 = vld [vmem:[#allocation79_spill] sm:$0xff] }
 0x484   : > { %v4722_v5 = vpack.c.bf16 %v4631_v36, %v4631_v36  ;;  %v3809_v47 = vmul.f32 %v9748_v4, %v3582_v50  ;;  %v9982_v28 = vpop.permute.xlu2 %4290  ;;  %v9984_v58 = vpop.permute.xlu1 %4240  ;;  %v3415_v19 = vsel %vm3353_vm15, %v3322_v21, %v9433_v49  ;;  %v3435_v15 = vsel %vm3353_vm15, %v3342_v33, %v9431_v3  ;;  %v4141_v49 = vld [vmem:[%s9161_s21 + $0x1ed] sm:$0xff]  ;;  %v11822_v24 = vld [vmem:[#allocation214_spill] sm:$0xff] }
 0x485   : > { %5747 = vst.msk [vmem:[%s9084_s16 + $0x8] sm:$0xf] %vm5744_vm6, %v5558_v63  ;;  %v9990_v30 = vpop.permute.xlu0 %4250  ;;  %v2725_v44 = vsel %vm2701_vm7, %v6620_v12, %v11809_v39  ;;  %v6621_v36 = vld [vmem:[%s6696_s24 + $0xa8] sm:$0xff]   ;;  %v11812_v63 = vld [vmem:[#allocation72_spill] sm:$0xff] }
 0x486   : > { %5748 = vst.msk [vmem:[%s9084_s16 + $0xc] sm:$0xf] %vm5744_vm6, %v5559_v7  ;;  %v4904_v17 = vunpack.c.l.b16 %v4722_v5  ;;  %v3904_v46 = vadd.f32 %v9767_v38, %v3809_v47  ;;  %5939 = vmatmul.msk.bf16.gmra.mxu0 %vm3466_vm14, %v3375_v57  ;;  %5949 = vmatmul.msk.bf16.gmra.mxu1 %vm3466_vm14, %v3395_v59  ;;  %v11810_v3 = vld [vmem:[#allocation31_spill] sm:$0xff]  ;;  %v2819_v7 = vsel %vm2795_vm9, %v2725_v44, %v11812_v63  ;;  %v11813_v0 = vld [vmem:[#allocation80_spill] sm:$0xff] }
 0x487   : > { %5959 = vmatmul.msk.bf16.gmra.mxu2 %vm3466_vm14, %v3415_v19  ;;  %5969 = vmatmul.msk.bf16.gmra.mxu3 %vm3466_vm14, %v3435_v15  ;;  %v2745_v8 = vsel %vm2701_vm7, %v6621_v36, %v11810_v3  ;;  %v2859_v57 = vsel %vm2795_vm9, %v2765_v60, %v11814_v54  ;;  %v11816_v19 = vld [vmem:[#allocation116_spill] sm:$0xff]  ;;  %v11819_v39 = vld [vmem:[#allocation167_spill] sm:$0xff]  ;;  %v4143_v3 = vld [vmem:[%s9161_s21 + $0x1fd] sm:$0xff] }
 0x488   : > { %v4993_v37 = vpack.c.b16 %v4904_v17, %v4903_v29  ;;  %v3995_v23 = vmax.f32 %v3904_v46, 0.0  ;;  %v2839_v14 = vsel %vm2795_vm9, %v2745_v8, %v11813_v0  ;;  %v2912_v29 = vsel %vm2888_vm8, %v2819_v7, %v11816_v19  ;;  %v11817_v46 = vld [vmem:[#allocation138_spill] sm:$0xff]  ;;  %v4145_v63 = vld [vmem:[%s9161_s21 + $0x20d] sm:$0xff]  ;;  %v11823_v7 = vld [vmem:[#allocation213_spill] sm:$0xff] }
 0x489   : > { %v2932_v59 = vsel %vm2888_vm8, %v2839_v14, %v11815_v43  ;;  %v2952_v15 = vsel %vm2888_vm8, %v2859_v57, %v11817_v46  ;;  %v4144_v36 = vld [vmem:[%s9161_s21 + $0x205] sm:$0xff]  ;;  %v11824_v0 = vld [vmem:[#allocation248_spill] sm:$0xff]  ;;  %v11827_v19 = vld [vmem:[#allocation189_spill] sm:$0xff] }
 0x48a   : > { %v5048_v34 = vshrl.u32 %v4993_v37, 16  ;;  %v5051_v52 = vshll.u32 %v4993_v37, 16  ;;  %4470 = vperm.xlu2 %6525, %v4141_v49   ;;  %4465 = vperm.xlu1 %6527, %v4140_v18   ;;  %v4632_v18 = vmul.f32 %v9820_v1, %v3995_v23  ;;  %v3025_v44 = vsel %vm2981_vm10, %v2932_v59, %v11819_v39  ;;  %v11821_v8 = vld [vmem:[#allocation206_spill] sm:$0xff] }
 0x48b   : > { %4475 = vperm.xlu0 %6526, %v4142_v53   ;;  %v3584_v50 = vpop.f32.mrf.mxu0  ;;  %v10021_v25 = vpop.f32.mrf.mxu1  ;;  %v11818_v53 = vld [vmem:[#allocation2_spill] sm:$0xff]  ;;  %v3118_v60 = vsel %vm3074_vm12, %v3025_v44, %v11822_v24 }
 0x48c   : > { %v5050_v21 = vrot.slane %v5048_v34, 5  ;;  %v5053_v5 = vrot.slane %v5051_v52, 6  ;;  %v3810_v47 = vmul.f32 %v9748_v4, %v3584_v50  ;;  %v10026_v41 = vpop.permute.xlu2 %4305  ;;  %v10028_v33 = vpop.permute.xlu1 %4255  ;;  %v3005_v12 = vsel %vm2981_vm10, %v2912_v29, %v11818_v53  ;;  %v11820_v34 = vld [vmem:[#allocation175_spill] sm:$0xff] }
 0x48d   : > { %v10036_v17 = vpop.permute.xlu0 %4265  ;;  %v3045_v52 = vsel %vm2981_vm10, %v2952_v15, %v11820_v34  ;;  %v3098_v20 = vsel %vm3074_vm12, %v3005_v12, %v11821_v8  ;;  %v3211_v14 = vsel %vm3167_vm11, %v3118_v60, %v11824_v0  ;;  %v4723_v57 = vpack.c.bf16 %v4632_v18, %v4632_v18  ;;  %v11828_v12 = vld [vmem:[#allocation278_spill] sm:$0xff]  ;;  %v11831_v60 = vld [vmem:[#allocation13_spill] sm:$0xff] }
 0x48e   : > { %v10040_v49 = vor.u32 %v5053_v5, %v5050_v21  ;;  %v3905_v37 = vadd.f32 %v9767_v38, %v3810_v47  ;;  %v3138_v50 = vsel %vm3074_vm12, %v3045_v52, %v11823_v7  ;;  %v11825_v47 = vld [vmem:[#allocation249_spill] sm:$0xff]  ;;  %v3304_v18 = vsel %vm3260_vm13, %v3211_v14, %v11828_v12  ;;  %v11832_v7 = vld [vmem:[#allocation228_spill] sm:$0xff] }
 0x48f   : > { %v3191_v54 = vsel %vm3167_vm11, %v3098_v20, %v11825_v47  ;;  %v11830_v20 = vld [vmem:[#allocation191_spill] sm:$0xff]  ;;  %v6623_v0 = vld [vmem:[%s6696_s24 + $0xb8] sm:$0xff]   ;;  %v11833_v14 = vld [vmem:[#allocation20_spill] sm:$0xff] }
 0x490   : > { %v5055_v1 = vsel %vm5038_vm0, %v9944_v11, %v10040_v49  ;;  %v3996_v23 = vmax.f32 %v3905_v37, 0.0  ;;  %v11826_v11 = vld [vmem:[#allocation270_spill] sm:$0xff]  ;;  %v3284_v29 = vsel %vm3260_vm13, %v3191_v54, %v11827_v19  ;;  %v6625_v19 = vld [vmem:[%s6696_s24 + $0x108] sm:$0xff]   ;;  %v11836_v12 = vld [vmem:[#allocation29_spill] sm:$0xff] }
 0x491   : > { %v5466_v21 = vunpack.c.l.b16 %v5055_v1  ;;  %v5467_v5 = vunpack.c.h.b16 %v5055_v1  ;;  %v3231_v59 = vsel %vm3167_vm11, %v3138_v50, %v11826_v11  ;;  %v3377_v24 = vsel %vm3353_vm15, %v3284_v29, %v11830_v20  ;;  %v4147_v54 = vld [vmem:[%s9161_s21 + $0x21d] sm:$0xff]  ;;  %v11835_v29 = vld [vmem:[#allocation43_spill] sm:$0xff] }
 0x492   : > { %v4633_v43 = vmul.f32 %v9654_v9, %v3996_v23  ;;  %4485 = vperm.xlu2 %6525, %v4144_v36   ;;  %4480 = vperm.xlu1 %6527, %v4143_v3   ;;  %v11829_v36 = vld [vmem:[#allocation280_spill] sm:$0xff]  ;;  %v3397_v1 = vsel %vm3353_vm15, %v3304_v18, %v11831_v60  ;;  %v4905_v23 = vunpack.c.l.b16 %v4723_v57  ;;  %v11834_v11 = vld [vmem:[#allocation30_spill] sm:$0xff] }
 0x493   : > { %v5560_v46 = vpack.c.b16 %v5466_v21, %v5466_v21  ;;  %v5561_v15 = vpack.c.b16 %v5467_v5, %v5467_v5  ;;  %4490 = vperm.xlu0 %6526, %v4145_v63   ;;  %v3587_v37 = vpop.f32.mrf.mxu0  ;;  %v3637_v53 = vpop.f32.mrf.mxu1  ;;  %v3324_v3 = vsel %vm3260_vm13, %v3231_v59, %v11829_v36  ;;  %v2749_v21 = vsel %vm2701_vm7, %v6623_v0, %v11833_v14  ;;  %v4146_v57 = vld [vmem:[%s9161_s21 + $0x215] sm:$0xff] }
 0x494   : > { %v4724_v39 = vpack.c.bf16 %v4633_v43, %v4633_v43  ;;  %v3811_v9 = vmul.f32 %v9748_v4, %v3587_v37  ;;  %v3831_v44 = vmul.f32 %v9748_v4, %v3637_v53  ;;  %v10075_v34 = vpop.permute.xlu2 %4320  ;;  %v10077_v52 = vpop.permute.xlu1 %4270  ;;  %v3417_v50 = vsel %vm3353_vm15, %v3324_v3, %v11832_v7  ;;  %v6624_v43 = vld [vmem:[%s6696_s24 + $0xb0] sm:$0xff]   ;;  %v4148_v37 = vld [vmem:[%s9161_s21 + $0x225] sm:$0xff] }
 0x495   : > { %5749 = vst.msk [vmem:[%s9084_s16 + $0x10] sm:$0xf] %vm5744_vm6, %v5560_v46  ;;  %v10083_v8 = vpop.permute.xlu0 %4280  ;;  %v3829_v5 = vmul.f32 %v9748_v4, %v9975_v45  ;;  %v2747_v59 = vsel %vm2701_vm7, %v6624_v43, %v11834_v11  ;;  %v2769_v46 = vsel %vm2701_vm7, %v6625_v19, %v11835_v29  ;;  %v6626_v53 = vld [vmem:[%s6696_s24 + $0x100] sm:$0xff]   ;;  %v11839_v3 = vld [vmem:[#allocation92_spill] sm:$0xff] }
 0x496   : > { %5750 = vst.msk [vmem:[%s9084_s16 + $0x14] sm:$0xf] %vm5744_vm6, %v5561_v15  ;;  %v4906_v63 = vunpack.c.l.b16 %v4724_v39  ;;  %5940 = vmatmul.msk.bf16.gmra.mxu0 %vm3466_vm14, %v3377_v24  ;;  %5950 = vmatmul.msk.bf16.gmra.mxu1 %vm3466_vm14, %v3397_v1  ;;  %v3906_v47 = vadd.f32 %v9767_v38, %v3811_v9  ;;  %v3926_v45 = vadd.f32 %v9767_v38, %v3831_v44  ;;  %v11837_v39 = vld [vmem:[#allocation70_spill] sm:$0xff]  ;;  %v11838_v9 = vld [vmem:[#allocation84_spill] sm:$0xff]  ;;  %v11840_v24 = vld [vmem:[#allocation93_spill] sm:$0xff] }
 0x497   : > { %5960 = vmatmul.msk.bf16.gmra.mxu2 %vm3466_vm14, %v3417_v50  ;;  %5970 = vmatmul.msk.bf16.gmra.mxu3 %vm3466_vm14, %v9672_v32  ;;  %v2767_v18 = vsel %vm2701_vm7, %v6626_v53, %v11836_v12  ;;  %v2841_v32 = vsel %vm2795_vm9, %v2747_v59, %v11837_v39  ;;  %v2843_v36 = vsel %vm2795_vm9, %v2749_v21, %v11838_v9  ;;  %v11842_v50 = vld [vmem:[#allocation129_spill] sm:$0xff]  ;;  %v11846_v39 = vld [vmem:[#allocation204_spill] sm:$0xff] }
 0x498   : > { %v4994_v15 = vpack.c.b16 %v4906_v63, %v4905_v23  ;;  %v2863_v20 = vsel %vm2795_vm9, %v2769_v46, %v11839_v3  ;;  %v2861_v60 = vsel %vm2795_vm9, %v2767_v18, %v11840_v24  ;;  %v3830_v44 = vmul.f32 %v9748_v4, %v10021_v25  ;;  %v11841_v63 = vld [vmem:[#allocation127_spill] sm:$0xff]  ;;  %v11843_v59 = vld [vmem:[#allocation137_spill] sm:$0xff]  ;;  %v11848_v24 = vld [vmem:[#allocation262_spill] sm:$0xff] }
 0x499   : > { %v10129_v7 = vsel %vm2888_vm8, %v2863_v20, %v11841_v63  ;;  %v2934_v0 = vsel %vm2888_vm8, %v2841_v32, %v11842_v50  ;;  %v3924_v14 = vadd.f32 %v9767_v38, %v3829_v5  ;;  %v3997_v21 = vmax.f32 %v3906_v47, 0.0  ;;  %v11845_v5 = vld [vmem:[#allocation166_spill] sm:$0xff]  ;;  %v11847_v32 = vld [vmem:[#allocation227_spill] sm:$0xff]  ;;  %v4150_v50 = vld [vmem:[%s9161_s21 + $0x235] sm:$0xff] }
 0x49a   : > { %v5057_v1 = vshrl.u32 %v4994_v15, 16  ;;  %v5060_v23 = vshll.u32 %v4994_v15, 16  ;;  %4500 = vperm.xlu2 %6525, %v4147_v54   ;;  %4495 = vperm.xlu1 %6527, %v4146_v57   ;;  %v2954_v19 = vsel %vm2888_vm8, %v2861_v60, %v11843_v59  ;;  %v4017_v54 = vmax.f32 %v3926_v45, 0.0  ;;  %v11844_v15 = vld [vmem:[#allocation165_spill] sm:$0xff] }
 0x49b   : > { %4505 = vperm.xlu0 %6526, %v4148_v37   ;;  %v3589_v43 = vpop.f32.mrf.mxu0  ;;  %v3639_v11 = vpop.f32.mrf.mxu1  ;;  %v3047_v53 = vsel %vm2981_vm10, %v2954_v19, %v11844_v15  ;;  %v3027_v47 = vsel %vm2981_vm10, %v2934_v0, %v11845_v5  ;;  %v3925_v20 = vadd.f32 %v9767_v38, %v3830_v44  ;;  %v4015_v63 = vmax.f32 %v3924_v14, 0.0  ;;  %v4149_v0 = vld [vmem:[%s9161_s21 + $0x22d] sm:$0xff] }
 0x49c   : > { %v5059_v29 = vrot.slane %v5057_v1, 5  ;;  %v5062_v25 = vrot.slane %v5060_v23, 6  ;;  %v10136_v57 = vpop.permute.xlu2 %4335  ;;  %v10138_v46 = vpop.permute.xlu1 %4285  ;;  %v3812_v37 = vmul.f32 %v9748_v4, %v3589_v43  ;;  %v3832_v12 = vmul.f32 %v9748_v4, %v3639_v11  ;;  %v11849_v43 = vld [vmem:[#allocation269_spill] sm:$0xff]  ;;  %v11851_v5 = vld [vmem:[#allocation276_spill] sm:$0xff] }
 0x49d   : > { %v4296_v18 = vpop.permute.xlu0 %4295  ;;  %v3120_v45 = vsel %vm3074_vm12, %v3027_v47, %v11846_v39  ;;  %v3140_v9 = vsel %vm3074_vm12, %v3047_v53, %v11847_v32  ;;  %v4634_v1 = vmul.f32 %v9831_v35, %v3997_v21  ;;  %v4654_v19 = vmul.f32 %v10026_v41, %v4017_v54  ;;  %v11850_v53 = vld [vmem:[#allocation128_spill] sm:$0xff] }
 0x49e   : > { %v10150_v3 = vor.u32 %v5062_v25, %v5059_v29  ;;  %v3213_v60 = vsel %vm3167_vm11, %v3120_v45, %v11848_v24  ;;  %v3907_v23 = vadd.f32 %v9767_v38, %v3812_v37  ;;  %v3233_v11 = vsel %vm3167_vm11, %v3140_v9, %v11849_v43  ;;  %v4151_v29 = vld [vmem:[%s9161_s21 + $0x23d] sm:$0xff] }
 0x49f   : > { %v3927_v44 = vadd.f32 %v9767_v38, %v3832_v12  ;;  %v4652_v21 = vmul.f32 %v4296_v18, %v4015_v63  ;;  %v2936_v14 = vsel %vm2888_vm8, %v2843_v36, %v11850_v53  ;;  %v3326_v47 = vsel %vm3260_vm13, %v3233_v11, %v11851_v5  ;;  %v11852_v37 = vld [vmem:[#allocation277_spill] sm:$0xff]  ;;  %v11855_v53 = vld [vmem:[#allocation179_spill] sm:$0xff] }
 0x4a0   : > { %v5064_v59 = vsel %vm5038_vm0, %v10040_v49, %v10150_v3  ;;  %v3998_v35 = vmax.f32 %v3907_v23, 0.0  ;;  %v3306_v39 = vsel %vm3260_vm13, %v3213_v60, %v11852_v37  ;;  %v4016_v41 = vmax.f32 %v3925_v20, 0.0  ;;  %v11853_v60 = vld [vmem:[#allocation59_spill] sm:$0xff] }
 0x4a1   : > { %v5468_v25 = vunpack.c.l.b16 %v5064_v59  ;;  %v5469_v15 = vunpack.c.h.b16 %v5064_v59  ;;  %v4725_v12 = vpack.c.bf16 %v4634_v1, %v4634_v1  ;;  %v4018_v23 = vmax.f32 %v3927_v44, 0.0 }
 0x4a2   : > { %4515 = vperm.xlu2 %6525, %v4150_v50   ;;  %4510 = vperm.xlu1 %6527, %v4149_v0   ;;  %v4635_v45 = vmul.f32 %v9881_v26, %v3998_v35  ;;  %v3399_v63 = vsel %vm3353_vm15, %v3306_v39, %v11853_v60  ;;  %v3419_v20 = vsel %vm3353_vm15, %v3326_v47, %v9468_v51  ;;  %v11854_v51 = vld [vmem:[#allocation156_spill] sm:$0xff]  ;;  %v11856_v47 = vld [vmem:[#allocation218_spill] sm:$0xff] }
 0x4a3   : > { %v5562_v49 = vpack.c.b16 %v5468_v25, %v5468_v25  ;;  %v5563_v54 = vpack.c.b16 %v5469_v15, %v5469_v15  ;;  %4520 = vperm.xlu0 %6526, %v4151_v29   ;;  %v3592_v18 = vpop.f32.mrf.mxu0  ;;  %v3642_v32 = vpop.f32.mrf.mxu1  ;;  %v4745_v1 = vpack.c.bf16 %v4654_v19, %v4654_v19  ;;  %v4743_v50 = vpack.c.bf16 %v4652_v21, %v4652_v21  ;;  %v4153_v35 = vld [vmem:[%s9161_s21 + $0x24d] sm:$0xff]  ;;  %v4152_v21 = vld [vmem:[%s9161_s21 + $0x245] sm:$0xff] }
 0x4a4   : > { %v3813_v36 = vmul.f32 %v9748_v4, %v3592_v18  ;;  %v10175_v9 = vpop.permute.xlu2 %4350  ;;  %v4301_v24 = vpop.permute.xlu1 %4300  ;;  %v4726_v26 = vpack.c.bf16 %v4635_v45, %v4635_v45  ;;  %v3833_v59 = vmul.f32 %v9748_v4, %v3642_v32  ;;  %v3029_v29 = vsel %vm2981_vm10, %v2936_v14, %v11854_v51  ;;  %v11857_v14 = vld [vmem:[#allocation226_spill] sm:$0xff] }
 0x4a5   : > { %5751 = vst.msk [vmem:[%s9084_s16 + $0x18] sm:$0xf] %vm5744_vm6, %v5562_v49  ;;  %v4653_v0 = vmul.f32 %v4301_v24, %v4016_v41  ;;  %v4311_v43 = vpop.permute.xlu0 %4310  ;;  %v4907_v19 = vunpack.c.l.b16 %v4725_v12  ;;  %v3049_v5 = vsel %vm2981_vm10, %v10129_v7, %v11855_v53  ;;  %v3122_v37 = vsel %vm3074_vm12, %v3029_v29, %v11856_v47  ;;  %v4154_v41 = vld [vmem:[%s9161_s21 + $0x255] sm:$0xff] }
 0x4a6   : > { %5752 = vst.msk [vmem:[%s9084_s16 + $0x1c] sm:$0xf] %vm5744_vm6, %v5563_v54  ;;  %v3908_v11 = vadd.f32 %v9767_v38, %v3813_v36  ;;  %v4655_v44 = vmul.f32 %v4311_v43, %v4018_v23  ;;  %5951 = vmatmul.msk.bf16.gmra.mxu1 %vm3466_vm14, %v3399_v63  ;;  %v4908_v25 = vunpack.c.l.b16 %v4726_v26  ;;  %v3142_v49 = vsel %vm3074_vm12, %v3049_v5, %v11857_v14  ;;  %v11858_v7 = vld [vmem:[#allocation260_spill] sm:$0xff] }
 0x4a7   : > { %v4744_v15 = vpack.c.bf16 %v4653_v0, %v4653_v0  ;;  %5961 = vmatmul.msk.bf16.gmra.mxu2 %vm3466_vm14, %v3419_v20  ;;  %5971 = vmatmul.msk.bf16.gmra.mxu3 %vm3466_vm14, %v9663_v40  ;;  %v4925_v12 = vunpack.c.l.b16 %v4743_v50  ;;  %v3928_v40 = vadd.f32 %v9767_v38, %v3833_v59  ;;  %v4927_v32 = vunpack.c.l.b16 %v4745_v1  ;;  %v11859_v50 = vld [vmem:[#allocation261_spill] sm:$0xff] }
 0x4a8   : > { %v4746_v39 = vpack.c.bf16 %v4655_v44, %v4655_v44  ;;  %v4995_v54 = vpack.c.b16 %v4908_v25, %v4907_v19  ;;  %v3999_v18 = vmax.f32 %v3908_v11, 0.0  ;;  %v3235_v23 = vsel %vm3167_vm11, %v3142_v49, %v11858_v7  ;;  %v4156_v49 = vld [vmem:[%s9161_s21 + $0x265] sm:$0xff]  ;;  %v4157_v7 = vld [vmem:[%s9161_s21 + $0x26d] sm:$0xff] }
 0x4a9   : > { %v4926_v45 = vunpack.c.l.b16 %v4744_v15  ;;  %v3215_v43 = vsel %vm3167_vm11, %v3122_v37, %v11859_v50  ;;  %v4019_v47 = vmax.f32 %v3928_v40, 0.0 }
 0x4aa   : > { %v4928_v36 = vunpack.c.l.b16 %v4746_v39  ;;  %v10204_v24 = vpop.f32.mrf.mxu2  ;;  %4530 = vperm.xlu2 %6525, %v4153_v35   ;;  %4525 = vperm.xlu1 %6527, %v4152_v21   ;;  %v5066_v60 = vshrl.u32 %v4995_v54, 16  ;;  %v5069_v63 = vshll.u32 %v4995_v54, 16  ;;  %v4636_v21 = vmul.f32 %v9704_v22, %v3999_v18  ;;  %v4155_v54 = vld [vmem:[%s9161_s21 + $0x25d] sm:$0xff] }
 0x4ab   : > { %v5004_v20 = vpack.c.b16 %v4926_v45, %v4925_v12  ;;  %4535 = vperm.xlu0 %6526, %v4154_v41   ;;  %v3594_v26 = vpop.f32.mrf.mxu0  ;;  %v3644_v0 = vpop.f32.mrf.mxu1 }
 0x4ac   : > { %v5005_v11 = vpack.c.b16 %v4928_v36, %v4927_v32  ;;  %v3814_v1 = vmul.f32 %v9748_v4, %v3594_v26  ;;  %v3834_v59 = vmul.f32 %v9748_v4, %v3644_v0  ;;  %v10212_v44 = vpop.permute.xlu2 %4365  ;;  %v4316_v51 = vpop.permute.xlu1 %4315  ;;  %v5068_v29 = vrot.slane %v5066_v60, 5  ;;  %v11860_v60 = vld [vmem:[#allocation274_spill] sm:$0xff] }
 0x4ad   : > { %v5071_v19 = vrot.slane %v5069_v63, 6  ;;  %v5147_v25 = vshrl.u32 %v5004_v20, 16  ;;  %v5150_v15 = vshll.u32 %v5004_v20, 16  ;;  %v10214_v35 = vpop.permute.xlu0 %4325  ;;  %v4656_v36 = vmul.f32 %v4316_v51, %v4019_v47 }
 0x4ae   : > { %v5156_v53 = vshrl.u32 %v5005_v11, 16  ;;  %v5159_v5 = vshll.u32 %v5005_v11, 16  ;;  %v3909_v14 = vadd.f32 %v9767_v38, %v3814_v1  ;;  %v3929_v32 = vadd.f32 %v9767_v38, %v3834_v59  ;;  %v11861_v1 = vld [vmem:[#allocation283_spill] sm:$0xff] }
 0x4af   : > { %v10217_v37 = vor.u32 %v5071_v19, %v5068_v29  ;;  %v5149_v39 = vrot.slane %v5147_v25, 5  ;;  %v5152_v41 = vrot.slane %v5150_v15, 6  ;;  %v3308_v22 = vsel %vm3260_vm13, %v3215_v43, %v11860_v60  ;;  %v4158_v60 = vld [vmem:[%s9161_s21 + $0x275] sm:$0xff] }
 0x4b0   : > { %v5158_v12 = vrot.slane %v5156_v53, 5  ;;  %v5161_v45 = vrot.slane %v5159_v5, 6  ;;  %v4000_v63 = vmax.f32 %v3909_v14, 0.0  ;;  %v4020_v50 = vmax.f32 %v3929_v32, 0.0 }
 0x4b1   : > { %v5073_v18 = vsel %vm5038_vm0, %v10150_v3, %v10217_v37  ;;  %v10229_v40 = vor.u32 %v5152_v41, %v5149_v39  ;;  %v3328_v59 = vsel %vm3260_vm13, %v3235_v23, %v11861_v1  ;;  %v4727_v43 = vpack.c.bf16 %v4636_v21, %v4636_v21 }
 0x4b2   : > { %v5470_v20 = vunpack.c.l.b16 %v5073_v18  ;;  %v5471_v26 = vunpack.c.h.b16 %v5073_v18  ;;  %v10231_v0 = vor.u32 %v5161_v45, %v5158_v12  ;;  %v10233_v11 = vpop.f32.mrf.mxu2  ;;  %4545 = vperm.xlu2 %6525, %v4156_v49   ;;  %4540 = vperm.xlu1 %6527, %v4155_v54   ;;  %v4637_v51 = vmul.f32 %v9885_v48, %v4000_v63 }
 0x4b3   : > { %v4747_v3 = vpack.c.bf16 %v4656_v36, %v4656_v36  ;;  %4550 = vperm.xlu0 %6526, %v4157_v7   ;;  %v3597_v29 = vpop.f32.mrf.mxu0  ;;  %v3647_v19 = vpop.f32.mrf.mxu1  ;;  %v4657_v5 = vmul.f32 %v10075_v34, %v4020_v50  ;;  %v3401_v14 = vsel %vm3353_vm15, %v3308_v22, %v9366_v42  ;;  %v3421_v12 = vsel %vm3353_vm15, %v3328_v59, %v9466_v2  ;;  %v4159_v42 = vld [vmem:[%s9161_s21 + $0x27d] sm:$0xff] }
 0x4b4   : > { %v5564_v25 = vpack.c.b16 %v5470_v20, %v5470_v20  ;;  %v5565_v15 = vpack.c.b16 %v5471_v26, %v5471_v26  ;;  %v5163_v53 = vsel %vm5038_vm0, %v10229_v40, %v10231_v0  ;;  %v10242_v47 = vpop.permute.xlu2 %4380  ;;  %v10244_v23 = vpop.permute.xlu1 %4330  ;;  %v4728_v39 = vpack.c.bf16 %v4637_v51, %v4637_v51  ;;  %v4160_v20 = vld [vmem:[%s9161_s21 + $0x285] sm:$0xff]  ;;  %v11862_v51 = vld [vmem:[#allocation32_spill] sm:$0xff] }
 0x4b5   : > { %v5490_v21 = vunpack.c.l.b16 %v5163_v53  ;;  %v5491_v48 = vunpack.c.h.b16 %v5163_v53  ;;  %v10246_v41 = vpop.permute.xlu0 %4340  ;;  %v4748_v49 = vpack.c.bf16 %v4657_v5, %v4657_v5  ;;  %v3815_v54 = vmul.f32 %v9748_v4, %v3597_v29  ;;  %v6628_v29 = vld [vmem:[%s6696_s24 + $0x110] sm:$0xff]  }
 0x4b6   : > { %5753 = vst.msk [vmem:[%s9084_s16 + $0x20] sm:$0xf] %vm5744_vm6, %v5564_v25  ;;  %v3835_v34 = vmul.f32 %v9748_v4, %v3647_v19  ;;  %v4909_v45 = vunpack.c.l.b16 %v4727_v43  ;;  %v4910_v7 = vunpack.c.l.b16 %v4728_v39  ;;  %5952 = vmatmul.msk.bf16.gmra.mxu1 %vm3466_vm14, %v3401_v14  ;;  %v4929_v22 = vunpack.c.l.b16 %v4747_v3  ;;  %v6627_v43 = vld [vmem:[%s6696_s24 + $0x118] sm:$0xff]   ;;  %v11863_v19 = vld [vmem:[#allocation42_spill] sm:$0xff] }
 0x4b7   : > { %5754 = vst.msk [vmem:[%s9084_s16 + $0x24] sm:$0xf] %vm5744_vm6, %v5565_v15  ;;  %v5584_v32 = vpack.c.b16 %v5490_v21, %v5490_v21  ;;  %v5585_v36 = vpack.c.b16 %v5491_v48, %v5491_v48  ;;  %5962 = vmatmul.msk.bf16.gmra.mxu2 %vm3466_vm14, %v3421_v12  ;;  %v4930_v18 = vunpack.c.l.b16 %v4748_v49  ;;  %v3910_v2 = vadd.f32 %v9767_v38, %v3815_v54  ;;  %v11864_v21 = vld [vmem:[#allocation82_spill] sm:$0xff]  ;;  %v11865_v12 = vld [vmem:[#allocation141_spill] sm:$0xff] }
 0x4b8   : > { %v3930_v63 = vadd.f32 %v9767_v38, %v3835_v34  ;;  %5972 = vmatmul.msk.bf16.gmra.mxu3 %vm3466_vm14, %v9471_v27  ;;  %v4996_v26 = vpack.c.b16 %v4910_v7, %v4909_v45  ;;  %v2773_v3 = vsel %vm2701_vm7, %v6627_v43, %v11862_v51  ;;  %v2771_v27 = vsel %vm2701_vm7, %v6628_v29, %v11863_v19  ;;  %v4162_v29 = vld [vmem:[%s9161_s21 + $0x295] sm:$0xff]  ;;  %v4161_v19 = vld [vmem:[%s9161_s21 + $0x28d] sm:$0xff] }
 0x4b9   : > { %5773 = vst.msk [vmem:[%s9084_s16 + $0x70] sm:$0xf] %vm5744_vm6, %v5584_v32  ;;  %v5006_v50 = vpack.c.b16 %v4930_v18, %v4929_v22  ;;  %v4001_v1 = vmax.f32 %v3910_v2, 0.0  ;;  %v2865_v48 = vsel %vm2795_vm9, %v2771_v27, %v11864_v21  ;;  %v11868_v27 = vld [vmem:[#allocation96_spill] sm:$0xff] }
 0x4ba   : > { %5774 = vst.msk [vmem:[%s9084_s16 + $0x74] sm:$0xf] %vm5744_vm6, %v5585_v36  ;;  %v10271_v59 = vpop.f32.mrf.mxu2  ;;  %4560 = vperm.xlu2 %6525, %v4159_v42   ;;  %4555 = vperm.xlu1 %6527, %v4158_v60   ;;  %v5075_v25 = vshrl.u32 %v4996_v26, 16  ;;  %v5078_v15 = vshll.u32 %v4996_v26, 16  ;;  %v4021_v49 = vmax.f32 %v3930_v63, 0.0  ;;  %v2958_v45 = vsel %vm2888_vm8, %v2865_v48, %v11865_v12  ;;  %v11866_v60 = vld [vmem:[#allocation178_spill] sm:$0xff] }
 0x4bb   : > { %4565 = vperm.xlu0 %6526, %v4160_v20   ;;  %v3599_v53 = vpop.f32.mrf.mxu0  ;;  %v3649_v5 = vpop.f32.mrf.mxu1  ;;  %v5165_v39 = vshrl.u32 %v5006_v50, 16  ;;  %v5168_v14 = vshll.u32 %v5006_v50, 16  ;;  %v3051_v22 = vsel %vm2981_vm10, %v2958_v45, %v11866_v60  ;;  %v4638_v63 = vmul.f32 %v9928_v31, %v4001_v1  ;;  %v11867_v20 = vld [vmem:[#allocation216_spill] sm:$0xff]  ;;  %v4163_v1 = vld [vmem:[%s9161_s21 + $0x29d] sm:$0xff] }
 0x4bc   : > { %v10281_v54 = vpop.permute.xlu2 %4395  ;;  %v10283_v34 = vpop.permute.xlu1 %4345  ;;  %v5077_v32 = vrot.slane %v5075_v25, 5  ;;  %v5080_v36 = vrot.slane %v5078_v15, 6  ;;  %v3816_v7 = vmul.f32 %v9748_v4, %v3599_v53  ;;  %v3144_v26 = vsel %vm3074_vm12, %v3051_v22, %v11867_v20  ;;  %v11869_v15 = vld [vmem:[#allocation272_spill] sm:$0xff]  ;;  %v11870_v48 = vld [vmem:[#allocation282_spill] sm:$0xff] }
 0x4bd   : > { %v10288_v42 = vpop.permute.xlu0 %4355  ;;  %v5167_v18 = vrot.slane %v5165_v39, 5  ;;  %v5170_v2 = vrot.slane %v5168_v14, 6  ;;  %v3836_v51 = vmul.f32 %v9748_v4, %v3649_v5  ;;  %v2867_v25 = vsel %vm2795_vm9, %v2773_v3, %v11868_v27 }
 0x4be   : > { %v10295_v50 = vor.u32 %v5080_v36, %v5077_v32  ;;  %v3911_v43 = vadd.f32 %v9767_v38, %v3816_v7  ;;  %v3237_v53 = vsel %vm3167_vm11, %v3144_v26, %v11869_v15  ;;  %v4658_v31 = vmul.f32 %v10214_v35, %v4021_v49  ;;  %v10341_v15 = vld [vmem:[%s11078_s3] ss:$0 sm:$0xff] }
 0x4bf   : > { %v10305_v21 = vor.u32 %v5170_v2, %v5167_v18  ;;  %v3330_v39 = vsel %vm3260_vm13, %v3237_v53, %v11870_v48  ;;  %v3931_v14 = vadd.f32 %v9767_v38, %v3836_v51  ;;  %v4729_v32 = vpack.c.bf16 %v4638_v63, %v4638_v63  ;;  %v11872_v48 = vld [vmem:[#allocation140_spill] sm:$0xff] }
 0x4c0   : > { %v5082_v4 = vsel %vm5038_vm0, %v10217_v37, %v10295_v50  ;;  %v4002_v5 = vmax.f32 %v3911_v43, 0.0  ;;  %v4749_v2 = vpack.c.bf16 %v4658_v31, %v4658_v31  ;;  %v11871_v31 = vld [vmem:[#allocation108_spill] sm:$0xff] }
 0x4c1   : > { %v5472_v12 = vunpack.c.l.b16 %v5082_v4  ;;  %v5473_v3 = vunpack.c.h.b16 %v5082_v4  ;;  %v5172_v45 = vsel %vm5038_vm0, %v10231_v0, %v10305_v21  ;;  %v4022_v60 = vmax.f32 %v3931_v14, 0.0  ;;  %v10324_v0 = vld [vmem:[%s11077_s2] ss:$0 sm:$0xff] }
 0x4c2   : > { %v10318_v36 = vpop.f32.mrf.mxu2  ;;  %4575 = vperm.xlu2 %6525, %v4162_v29   ;;  %4570 = vperm.xlu1 %6527, %v4161_v19   ;;  %v5492_v35 = vunpack.c.l.b16 %v5172_v45  ;;  %v5493_v49 = vunpack.c.h.b16 %v5172_v45  ;;  %v4639_v7 = vmul.f32 %v9784_v6, %v4002_v5  ;;  %v3853_v27 = vmul.f32 %v10324_v0, %v10204_v24  ;;  %v11873_v45 = vld [vmem:[#allocation168_spill] sm:$0xff] }
 0x4c3   : > { %4580 = vperm.xlu0 %6526, %v4163_v1   ;;  %v3602_v37 = vpop.f32.mrf.mxu0  ;;  %v3652_v38 = vpop.f32.mrf.mxu1  ;;  %v5566_v22 = vpack.c.b16 %v5472_v12, %v5472_v12  ;;  %v5567_v18 = vpack.c.b16 %v5473_v3, %v5473_v3  ;;  %v4659_v51 = vmul.f32 %v10244_v23, %v4022_v60  ;;  %v3423_v1 = vsel %vm3353_vm15, %v3330_v39, %v11871_v31  ;;  %v4171_v12 = vld [vmem:[%s9161_s21 + $0x2dd] sm:$0xff]  ;;  %v4170_v3 = vld [vmem:[%s9161_s21 + $0x2d5] sm:$0xff] }
 0x4c4   : > { %v3817_v63 = vmul.f32 %v10324_v0, %v3602_v37  ;;  %v10327_v20 = vpop.permute.xlu1 %4360  ;;  %v5586_v26 = vpack.c.b16 %v5492_v35, %v5492_v35  ;;  %v5587_v6 = vpack.c.b16 %v5493_v49, %v5493_v49  ;;  %v4730_v43 = vpack.c.bf16 %v4639_v7, %v4639_v7  ;;  %v10330_v29 = vpop.permute.xlu2 %4410  ;;  %v11874_v7 = vld [vmem:[#allocation230_spill] sm:$0xff] }
 0x4c5   : > { %v10332_v19 = vpop.permute.xlu0 %4370  ;;  %5755 = vst.msk [vmem:[%s9084_s16 + $0x28] sm:$0xf] %vm5744_vm6, %v5566_v22  ;;  %v3837_v23 = vmul.f32 %v10324_v0, %v3652_v38  ;;  %v2960_v4 = vsel %vm2888_vm8, %v2867_v25, %v11872_v48  ;;  %v4911_v24 = vunpack.c.l.b16 %v4729_v32  ;;  %v4750_v14 = vpack.c.bf16 %v4659_v51, %v4659_v51  ;;  %v4172_v32 = vld [vmem:[%s9161_s21 + $0x2e5] sm:$0x3f] }
 0x4c6   : > { %v3912_v53 = vadd.f32 %v10341_v15, %v3817_v63  ;;  %5756 = vst.msk [vmem:[%s9084_s16 + $0x2c] sm:$0xf] %vm5744_vm6, %v5567_v18  ;;  %v4912_v5 = vunpack.c.l.b16 %v4730_v43  ;;  %v3053_v35 = vsel %vm2981_vm10, %v2960_v4, %v11873_v45  ;;  %v3855_v39 = vmul.f32 %v10324_v0, %v10271_v59  ;;  %v11875_v18 = vld [vmem:[#allocation271_spill] sm:$0xff] }
 0x4c7   : > { %5963 = vmatmul.msk.bf16.gmra.mxu2 %vm3466_vm14, %v3423_v1  ;;  %5775 = vst.msk [vmem:[%s9084_s16 + $0x78] sm:$0xf] %vm5744_vm6, %v5586_v26  ;;  %v3932_v25 = vadd.f32 %v10341_v15, %v3837_v23  ;;  %v3146_v60 = vsel %vm3074_vm12, %v3053_v35, %v11874_v7  ;;  %v4931_v37 = vunpack.c.l.b16 %v4749_v2  ;;  %v4932_v22 = vunpack.c.l.b16 %v4750_v14 }
 0x4c8   : > { %v4003_v49 = vmax.f32 %v3912_v53, 0.0  ;;  %5973 = vmatmul.msk.bf16.gmra.mxu3 %vm3466_vm14, %v9724_v16  ;;  %5776 = vst.msk [vmem:[%s9084_s16 + $0x7c] sm:$0xf] %vm5744_vm6, %v5587_v6  ;;  %v4997_v38 = vpack.c.b16 %v4912_v5, %v4911_v24  ;;  %v3239_v63 = vsel %vm3167_vm11, %v3146_v60, %v11875_v18  ;;  %v10371_v59 = vadd.f32 %v10341_v15, %v3853_v27  ;;  %v11876_v16 = vld [vmem:[#allocation279_spill] sm:$0xff] }
 0x4c9   : > { %v3332_v53 = vsel %vm3260_vm13, %v3239_v63, %v11876_v16  ;;  %v5007_v23 = vpack.c.b16 %v4932_v22, %v4931_v37  ;;  %v3854_v27 = vmul.f32 %v10324_v0, %v10233_v11  ;;  %v3950_v48 = vadd.f32 %v10341_v15, %v3855_v39  ;;  %v4165_v37 = vld [vmem:[%s9161_s21 + $0x2ad] sm:$0xff] }
 0x4ca   : > { %v4640_v26 = vmul.f32 %v9940_v55, %v4003_v49  ;;  %v3702_v43 = vpop.f32.mrf.mxu2  ;;  %v10374_v51 = vpop.f32.mrf.mxu3  ;;  %4620 = vperm.xlu2 %6525, %v4171_v12   ;;  %4615 = vperm.xlu1 %6527, %v4170_v3   ;;  %v5084_v6 = vshrl.u32 %v4997_v38, 16  ;;  %v5087_v2 = vshll.u32 %v4997_v38, 16  ;;  %v4023_v55 = vmax.f32 %v3932_v25, 0.0  ;;  %v4164_v38 = vld [vmem:[%s9161_s21 + $0x2a5] sm:$0xff] }
 0x4cb   : > { %4625 = vperm.xlu0 %6526, %v4172_v32   ;;  %v3604_v31 = vpop.f32.mrf.mxu0  ;;  %v3654_v1 = vpop.f32.mrf.mxu1  ;;  %v5174_v12 = vshrl.u32 %v5007_v23, 16  ;;  %v5177_v3 = vshll.u32 %v5007_v23, 16  ;;  %v3425_v11 = vsel %vm3353_vm15, %v3332_v53, %v9539_v56  ;;  %v4039_v39 = vmax.f32 %v10371_v59, 0.0 }
 0x4cc   : > { %v3818_v4 = vmul.f32 %v10324_v0, %v3604_v31  ;;  %v10382_v24 = vpop.permute.xlu1 %4375  ;;  %v5086_v5 = vrot.slane %v5084_v6, 5  ;;  %v5089_v14 = vrot.slane %v5087_v2, 6  ;;  %v4731_v35 = vpack.c.bf16 %v4640_v26, %v4640_v26  ;;  %v4426_v60 = vpop.permute.xlu2 %4425  ;;  %v4166_v26 = vld [vmem:[%s9161_s21 + $0x2b5] sm:$0xff] }
 0x4cd   : > { %v10384_v45 = vpop.permute.xlu0 %4385  ;;  %v5176_v25 = vrot.slane %v5174_v12, 5  ;;  %v5179_v32 = vrot.slane %v5177_v3, 6  ;;  %v10395_v22 = vadd.f32 %v10341_v15, %v3854_v27  ;;  %v3856_v18 = vmul.f32 %v10324_v0, %v10318_v36 }
 0x4ce   : > { %v10389_v49 = vor.u32 %v5089_v14, %v5086_v5  ;;  %v3913_v7 = vadd.f32 %v10341_v15, %v3818_v4  ;;  %v3838_v63 = vmul.f32 %v10324_v0, %v3654_v1  ;;  %v4041_v56 = vmax.f32 %v3950_v48, 0.0 }
 0x4cf   : > { %v10404_v53 = vor.u32 %v5179_v32, %v5176_v25  ;;  %v4660_v6 = vmul.f32 %v10136_v57, %v4023_v55  ;;  %v3857_v27 = vmul.f32 %v10324_v0, %v3702_v43 }
 0x4d0   : > { %v5091_v16 = vsel %vm5038_vm0, %v10295_v50, %v10389_v49  ;;  %v4004_v2 = vmax.f32 %v3913_v7, 0.0  ;;  %v3933_v4 = vadd.f32 %v10341_v15, %v3838_v63  ;;  %v4913_v50 = vunpack.c.l.b16 %v4731_v35 }
 0x4d1   : > { %v5474_v23 = vunpack.c.l.b16 %v5091_v16  ;;  %v5475_v31 = vunpack.c.h.b16 %v5091_v16  ;;  %v5181_v1 = vsel %vm5038_vm0, %v10305_v21, %v10404_v53  ;;  %v4751_v7 = vpack.c.bf16 %v4660_v6, %v4660_v6 }
 0x4d2   : > { %v3704_v36 = vpop.f32.mrf.mxu2  ;;  %v3754_v5 = vpop.f32.mrf.mxu3  ;;  %4590 = vperm.xlu2 %6525, %v4165_v37   ;;  %4585 = vperm.xlu1 %6527, %v4164_v38   ;;  %v4641_v48 = vmul.f32 %v9984_v58, %v4004_v2  ;;  %v5494_v3 = vunpack.c.l.b16 %v5181_v1  ;;  %v5495_v25 = vunpack.c.h.b16 %v5181_v1  ;;  %v4024_v21 = vmax.f32 %v3933_v4, 0.0  ;;  %v4168_v4 = vld [vmem:[%s9161_s21 + $0x2c5] sm:$0xff] }
 0x4d3   : > { %v3858_v57 = vmul.f32 %v10324_v0, %v3704_v36  ;;  %4595 = vperm.xlu0 %6526, %v4166_v26   ;;  %v3607_v55 = vpop.f32.mrf.mxu0  ;;  %v3657_v14 = vpop.f32.mrf.mxu1  ;;  %v5568_v43 = vpack.c.b16 %v5474_v23, %v5474_v23  ;;  %v5569_v12 = vpack.c.b16 %v5475_v31, %v5475_v31  ;;  %v4678_v26 = vmul.f32 %v4426_v60, %v4041_v56  ;;  %v4167_v36 = vld [vmem:[%s9161_s21 + $0x2bd] sm:$0xff] }
 0x4d4   : > { %v10414_v32 = vpop.permute.xlu1 %4390  ;;  %v4732_v37 = vpack.c.bf16 %v4641_v48, %v4641_v48  ;;  %v5588_v38 = vpack.c.b16 %v5494_v3, %v5494_v3  ;;  %v5589_v63 = vpack.c.b16 %v5495_v25, %v5495_v25  ;;  %v3819_v16 = vmul.f32 %v10324_v0, %v3607_v55 }
 0x4d5   : > { %v3953_v58 = vadd.f32 %v10341_v15, %v3858_v57  ;;  %v10417_v35 = vpop.permute.xlu0 %4400  ;;  %5757 = vst.msk [vmem:[%s9084_s16 + $0x30] sm:$0xf] %vm5744_vm6, %v5568_v43  ;;  %v4661_v2 = vmul.f32 %v10246_v41, %v4024_v21  ;;  %v3839_v23 = vmul.f32 %v10324_v0, %v3657_v14  ;;  %v10432_v1 = vadd.f32 %v10341_v15, %v3856_v18  ;;  %v4169_v41 = vld [vmem:[%s9161_s21 + $0x2cd] sm:$0xff]  ;;  %v4441_v14 = vpop.permute.xlu2 %4440 }
 0x4d6   : > { %5758 = vst.msk [vmem:[%s9084_s16 + $0x34] sm:$0xf] %vm5744_vm6, %v5569_v12  ;;  %v4914_v6 = vunpack.c.l.b16 %v4732_v37  ;;  %v3877_v60 = vmul.f32 %v10324_v0, %v10374_v51  ;;  %v3914_v56 = vadd.f32 %v10341_v15, %v3819_v16  ;;  %v4040_v48 = vmax.f32 %v10395_v22, 0.0 }
 0x4d7   : > { %v4044_v31 = vmax.f32 %v3953_v58, 0.0  ;;  %5964 = vmatmul.msk.bf16.gmra.mxu2 %vm3466_vm14, %v3425_v11  ;;  %5777 = vst.msk [vmem:[%s9084_s16 + $0x80] sm:$0xf] %vm5744_vm6, %v5588_v38  ;;  %v10444_v11 = vadd.f32 %v10341_v15, %v3857_v27  ;;  %v4752_v55 = vpack.c.bf16 %v4661_v2, %v4661_v2  ;;  %v3934_v18 = vadd.f32 %v10341_v15, %v3839_v23 }
 0x4d8   : > { %5974 = vmatmul.msk.bf16.gmra.mxu3 %vm3466_vm14, %v9712_v61  ;;  %5778 = vst.msk [vmem:[%s9084_s16 + $0x84] sm:$0xf] %vm5744_vm6, %v5589_v63  ;;  %v4998_v57 = vpack.c.b16 %v4914_v6, %v4913_v50  ;;  %v4769_v43 = vpack.c.bf16 %v4678_v26, %v4678_v26  ;;  %v3878_v51 = vmul.f32 %v10324_v0, %v3754_v5  ;;  %v4005_v12 = vmax.f32 %v3914_v56, 0.0 }
 0x4d9   : > { %v4681_v3 = vmul.f32 %v4441_v14, %v4044_v31  ;;  %v4933_v37 = vunpack.c.l.b16 %v4751_v7  ;;  %v4934_v38 = vunpack.c.l.b16 %v4752_v55  ;;  %v10449_v63 = vadd.f32 %v10341_v15, %v3877_v60 }
 0x4da   : > { %v3707_v25 = vpop.f32.mrf.mxu2  ;;  %v3757_v61 = vpop.f32.mrf.mxu3  ;;  %4605 = vperm.xlu2 %6525, %v4168_v4   ;;  %4600 = vperm.xlu1 %6527, %v4167_v36   ;;  %v5093_v21 = vshrl.u32 %v4998_v57, 16  ;;  %v5096_v58 = vshll.u32 %v4998_v57, 16  ;;  %v10452_v26 = vmul.f32 %v9818_v13, %v4005_v12  ;;  %v4025_v5 = vmax.f32 %v3934_v18, 0.0 }
 0x4db   : > { %4610 = vperm.xlu0 %6526, %v4169_v41   ;;  %v3609_v27 = vpop.f32.mrf.mxu0  ;;  %v3659_v50 = vpop.f32.mrf.mxu1  ;;  %v4042_v6 = vmax.f32 %v10432_v1, 0.0  ;;  %v5008_v7 = vpack.c.b16 %v4934_v38, %v4933_v37  ;;  %v4043_v4 = vmax.f32 %v10444_v11, 0.0  ;;  %v10458_v36 = vunpack.c.l.b16 %v4769_v43 }
 0x4dc   : > { %v10454_v16 = vpop.permute.xlu1 %4405  ;;  %v5095_v2 = vrot.slane %v5093_v21, 5  ;;  %v5098_v23 = vrot.slane %v5096_v58, 6  ;;  %v10461_v56 = vadd.f32 %v10341_v15, %v3878_v51  ;;  %v4772_v60 = vpack.c.bf16 %v4681_v3, %v4681_v3 }
 0x4dd   : > { %v4416_v31 = vpop.permute.xlu0 %4415  ;;  %v3859_v13 = vmul.f32 %v10324_v0, %v3707_v25  ;;  %v5183_v57 = vshrl.u32 %v5008_v7, 16  ;;  %v5186_v55 = vshll.u32 %v5008_v7, 16  ;;  %v3879_v1 = vmul.f32 %v10324_v0, %v3757_v61 }
 0x4de   : > { %v10464_v41 = vor.u32 %v5098_v23, %v5095_v2  ;;  %v4733_v18 = vpack.c.bf16 %v10452_v26, %v10452_v26  ;;  %v4662_v14 = vmul.f32 %v10283_v34, %v4025_v5  ;;  %v3820_v43 = vmul.f32 %v10324_v0, %v3609_v27 }
 0x4df   : > { %v3840_v12 = vmul.f32 %v10324_v0, %v3659_v50  ;;  %v5185_v3 = vrot.slane %v5183_v57, 5  ;;  %v5188_v25 = vrot.slane %v5186_v55, 6  ;;  %v4676_v37 = vmul.f32 %v4416_v31, %v4039_v39 }
 0x4e0   : > { %v5100_v51 = vsel %vm5038_vm0, %v10389_v49, %v10464_v41  ;;  %v3915_v58 = vadd.f32 %v10341_v15, %v3820_v43  ;;  %v10481_v27 = vunpack.c.l.b16 %v4772_v60  ;;  %v10484_v50 = vadd.f32 %v10341_v15, %v3859_v13 }
 0x4e1   : > { %v5476_v21 = vunpack.c.l.b16 %v5100_v51  ;;  %v5477_v61 = vunpack.c.h.b16 %v5100_v51  ;;  %v3935_v38 = vadd.f32 %v10341_v15, %v3840_v12  ;;  %v10479_v26 = vor.u32 %v5188_v25, %v5185_v3 }
 0x4e2   : > { %v3709_v34 = vpop.f32.mrf.mxu2  ;;  %v10487_v49 = vadd.f32 %v10341_v15, %v3879_v1  ;;  %v3759_v59 = vpop.f32.mrf.mxu3  ;;  %v4006_v23 = vmax.f32 %v3915_v58, 0.0  ;;  %v4753_v55 = vpack.c.bf16 %v4662_v14, %v4662_v14  ;;  %v4767_v43 = vpack.c.bf16 %v4676_v37, %v4676_v37 }
 0x4e3   : > { %v3612_v39 = vpop.f32.mrf.mxu0  ;;  %v5570_v5 = vpack.c.b16 %v5476_v21, %v5476_v21  ;;  %v5571_v2 = vpack.c.b16 %v5477_v61, %v5477_v61  ;;  %v4026_v7 = vmax.f32 %v3935_v38, 0.0  ;;  %v3662_v31 = vpop.f32.mrf.mxu1  ;;  %v5190_v60 = vsel %vm5038_vm0, %v10404_v53, %v10479_v26 }
 0x4e4   : > { %v4421_v57 = vpop.permute.xlu1 %4420  ;;  %v3860_v13 = vmul.f32 %v10324_v0, %v3709_v34  ;;  %v5496_v1 = vunpack.c.l.b16 %v5190_v60  ;;  %v5497_v51 = vunpack.c.h.b16 %v5190_v60  ;;  %v4643_v3 = vmul.f32 %v9990_v30, %v4006_v23  ;;  %v10499_v21 = vpop.permute.xlu2 %4455 }
 0x4e5   : > { %v4431_v12 = vpop.permute.xlu0 %4430  ;;  %5759 = vst.msk [vmem:[%s9084_s16 + $0x38] sm:$0xf] %vm5744_vm6, %v5570_v5  ;;  %v4663_v25 = vmul.f32 %v10175_v9, %v4026_v7  ;;  %v3821_v53 = vmul.f32 %v10324_v0, %v3612_v39  ;;  %v3841_v14 = vmul.f32 %v10324_v0, %v3662_v31  ;;  %v4677_v37 = vmul.f32 %v4421_v57, %v4040_v48 }
 0x4e6   : > { %5760 = vst.msk [vmem:[%s9084_s16 + $0x3c] sm:$0xf] %vm5744_vm6, %v5571_v2  ;;  %v4679_v61 = vmul.f32 %v4431_v12, %v4042_v6  ;;  %v5590_v58 = vpack.c.b16 %v5496_v1, %v5496_v1  ;;  %v5591_v38 = vpack.c.b16 %v5497_v51, %v5497_v51  ;;  %v4734_v34 = vpack.c.bf16 %v4643_v3, %v4643_v3 }
 0x4e7   : > { %v4754_v30 = vpack.c.bf16 %v4663_v25, %v4663_v25  ;;  %v10506_v5 = vadd.f32 %v10341_v15, %v3860_v13  ;;  %v3916_v9 = vadd.f32 %v10341_v15, %v3821_v53  ;;  %v4768_v2 = vpack.c.bf16 %v4677_v37, %v4677_v37 }
 0x4e8   : > { %v4770_v23 = vpack.c.bf16 %v4679_v61, %v4679_v61  ;;  %5779 = vst.msk [vmem:[%s9084_s16 + $0x88] sm:$0xf] %vm5744_vm6, %v5590_v58  ;;  %v4915_v39 = vunpack.c.l.b16 %v4733_v18  ;;  %v4935_v7 = vunpack.c.l.b16 %v4753_v55  ;;  %v4916_v31 = vunpack.c.l.b16 %v4734_v34 }
 0x4e9   : > { %v4936_v22 = vunpack.c.l.b16 %v4754_v30  ;;  %5780 = vst.msk [vmem:[%s9084_s16 + $0x8c] sm:$0xf] %vm5744_vm6, %v5591_v38  ;;  %v4949_v48 = vunpack.c.l.b16 %v4767_v43  ;;  %v3936_v6 = vadd.f32 %v10341_v15, %v3841_v14  ;;  %v4950_v57 = vunpack.c.l.b16 %v4768_v2 }
 0x4ea   : > { %v4952_v60 = vunpack.c.l.b16 %v4770_v23  ;;  %v3712_v12 = vpop.f32.mrf.mxu2  ;;  %v4999_v13 = vpack.c.b16 %v4916_v31, %v4915_v39  ;;  %v10515_v51 = vmul.f32 %v10324_v0, %v3759_v59  ;;  %v4045_v3 = vmax.f32 %v10484_v50, 0.0  ;;  %v3762_v58 = vpop.f32.mrf.mxu3 }
 0x4eb   : > { %v5009_v1 = vpack.c.b16 %v4936_v22, %v4935_v7  ;;  %v4007_v25 = vmax.f32 %v3916_v9, 0.0  ;;  %v5016_v18 = vpack.c.b16 %v4950_v57, %v4949_v48  ;;  %v4046_v53 = vmax.f32 %v10506_v5, 0.0  ;;  %v3614_v9 = vpop.f32.mrf.mxu0  ;;  %v3664_v31 = vpop.f32.mrf.mxu1 }
 0x4ec   : > { %v5017_v55 = vpack.c.b16 %v4952_v60, %v10458_v36  ;;  %v5102_v37 = vshrl.u32 %v4999_v13, 16  ;;  %v5105_v43 = vshll.u32 %v4999_v13, 16  ;;  %v4027_v38 = vmax.f32 %v3936_v6, 0.0  ;;  %v10522_v22 = vpop.permute.xlu2 %4470  ;;  %v4436_v6 = vpop.permute.xlu1 %4435 }
 0x4ed   : > { %v5192_v61 = vshrl.u32 %v5009_v1, 16  ;;  %v5195_v14 = vshll.u32 %v5009_v1, 16  ;;  %v5255_v34 = vshrl.u32 %v5016_v18, 16  ;;  %v5258_v30 = vshll.u32 %v5016_v18, 16 }
 0x4ee   : > { %v3861_v2 = vmul.f32 %v10324_v0, %v3712_v12  ;;  %v5104_v59 = vrot.slane %v5102_v37, 5  ;;  %v5107_v23 = vrot.slane %v5105_v43, 6  ;;  %v4644_v36 = vmul.f32 %v10028_v33, %v4007_v25 }
 0x4ef   : > { %v5194_v39 = vrot.slane %v5192_v61, 5  ;;  %v5197_v7 = vrot.slane %v5195_v14, 6  ;;  %v5257_v48 = vrot.slane %v5255_v34, 5  ;;  %v5260_v57 = vrot.slane %v5258_v30, 6 }
 0x4f0   : > { %v10525_v60 = vmul.f32 %v10324_v0, %v3762_v58  ;;  %v10527_v13 = vor.u32 %v5107_v23, %v5104_v59  ;;  %v5264_v12 = vshrl.u32 %v5017_v55, 16  ;;  %v5267_v18 = vshll.u32 %v5017_v55, 16 }
 0x4f1   : > { %v10529_v1 = vor.u32 %v5197_v7, %v5194_v39  ;;  %v4664_v37 = vmul.f32 %v10288_v42, %v4027_v38  ;;  %v10532_v43 = vor.u32 %v5260_v57, %v5257_v48  ;;  %v3956_v33 = vadd.f32 %v10341_v15, %v3861_v2 }
 0x4f2   : > { %v3822_v25 = vmul.f32 %v10324_v0, %v3614_v9  ;;  %v5109_v61 = vsel %vm5038_vm0, %v10464_v41, %v10527_v13  ;;  %v5266_v58 = vrot.slane %v5264_v12, 5  ;;  %v5269_v34 = vrot.slane %v5267_v18, 6  ;;  %v3714_v38 = vpop.f32.mrf.mxu2 }
 0x4f3   : > { %v5199_v14 = vsel %vm5038_vm0, %v10479_v26, %v10529_v1  ;;  %v5478_v30 = vunpack.c.l.b16 %v5109_v61  ;;  %v5479_v55 = vunpack.c.h.b16 %v5109_v61  ;;  %v4047_v2 = vmax.f32 %v3956_v33, 0.0 }
 0x4f4   : > { %v5498_v59 = vunpack.c.l.b16 %v5199_v14  ;;  %v5499_v42 = vunpack.c.h.b16 %v5199_v14  ;;  %v10542_v23 = vor.u32 %v5269_v34, %v5266_v58  ;;  %v3917_v39 = vadd.f32 %v10341_v15, %v3822_v25  ;;  %v4446_v14 = vpop.permute.xlu0 %4445 }
 0x4f5   : > { %v3842_v7 = vmul.f32 %v10324_v0, %v3664_v31  ;;  %v5572_v41 = vpack.c.b16 %v5478_v30, %v5478_v30  ;;  %v5573_v9 = vpack.c.b16 %v5479_v55, %v5479_v55  ;;  %v4735_v26 = vpack.c.bf16 %v4644_v36, %v4644_v36  ;;  %v3764_v36 = vpop.f32.mrf.mxu3 }
 0x4f6   : > { %v5592_v48 = vpack.c.b16 %v5498_v59, %v5498_v59  ;;  %v5593_v57 = vpack.c.b16 %v5499_v42, %v5499_v42  ;;  %v5271_v12 = vsel %vm5038_vm0, %v10532_v43, %v10542_v23  ;;  %v4008_v18 = vmax.f32 %v3917_v39, 0.0  ;;  %v3617_v42 = vpop.f32.mrf.mxu0 }
 0x4f7   : > { %v3937_v61 = vadd.f32 %v10341_v15, %v3842_v7  ;;  %5761 = vst.msk [vmem:[%s9084_s16 + $0x40] sm:$0xf] %vm5744_vm6, %v5572_v41  ;;  %v4755_v33 = vpack.c.bf16 %v4664_v37, %v4664_v37  ;;  %v5514_v25 = vunpack.c.l.b16 %v5271_v12  ;;  %v5515_v31 = vunpack.c.h.b16 %v5271_v12  ;;  %v3667_v37 = vpop.f32.mrf.mxu1 }
 0x4f8   : > { %v4680_v58 = vmul.f32 %v4436_v6, %v4043_v4  ;;  %5762 = vst.msk [vmem:[%s9084_s16 + $0x44] sm:$0xf] %vm5744_vm6, %v5573_v9  ;;  %v10557_v34 = vmul.f32 %v10499_v21, %v4047_v2  ;;  %v4645_v30 = vmul.f32 %v9879_v62, %v4008_v18  ;;  %v3862_v59 = vmul.f32 %v10324_v0, %v3714_v38  ;;  %v10563_v4 = vpop.permute.xlu2 %4485  ;;  %v4451_v2 = vpop.permute.xlu1 %4450 }
 0x4f9   : > { %v4028_v55 = vmax.f32 %v3937_v61, 0.0  ;;  %5781 = vst.msk [vmem:[%s9084_s16 + $0x90] sm:$0xf] %vm5744_vm6, %v5592_v48  ;;  %v5608_v39 = vpack.c.b16 %v5514_v25, %v5514_v25  ;;  %v5609_v11 = vpack.c.b16 %v5515_v31, %v5515_v31  ;;  %v4682_v21 = vmul.f32 %v4446_v14, %v4045_v3 }
 0x4fa   : > { %v4771_v6 = vpack.c.bf16 %v4680_v58, %v4680_v58  ;;  %5782 = vst.msk [vmem:[%s9084_s16 + $0x94] sm:$0xf] %vm5744_vm6, %v5593_v57  ;;  %v4917_v62 = vunpack.c.l.b16 %v4735_v26  ;;  %v4736_v7 = vpack.c.bf16 %v4645_v30, %v4645_v30  ;;  %v3957_v41 = vadd.f32 %v10341_v15, %v3862_v59  ;;  %v3717_v25 = vpop.f32.mrf.mxu2 }
 0x4fb   : > { %v4665_v38 = vmul.f32 %v10327_v20, %v4028_v55  ;;  %v4937_v9 = vunpack.c.l.b16 %v4755_v33  ;;  %5797 = vst.msk [vmem:[%s9084_s16 + $0xd0] sm:$0xf] %vm5744_vm6, %v5608_v39  ;;  %v3823_v12 = vmul.f32 %v10324_v0, %v3617_v42  ;;  %v3843_v18 = vmul.f32 %v10324_v0, %v3667_v37 }
 0x4fc   : > { %v4953_v48 = vunpack.c.l.b16 %v4771_v6  ;;  %5798 = vst.msk [vmem:[%s9084_s16 + $0xd4] sm:$0xf] %vm5744_vm6, %v5609_v11  ;;  %v4775_v50 = vpack.c.bf16 %v10557_v34, %v10557_v34  ;;  %v4918_v3 = vunpack.c.l.b16 %v4736_v7  ;;  %v4683_v20 = vmul.f32 %v4451_v2, %v4046_v53  ;;  %v4461_v7 = vpop.permute.xlu0 %4460 }
 0x4fd   : > { %v4756_v26 = vpack.c.bf16 %v4665_v38, %v4665_v38  ;;  %v4773_v61 = vpack.c.bf16 %v4682_v21, %v4682_v21  ;;  %v3918_v14 = vadd.f32 %v10341_v15, %v3823_v12  ;;  %v3938_v33 = vadd.f32 %v10341_v15, %v3843_v18  ;;  %v10585_v38 = vpop.f32.mrf.mxu3 }
 0x4fe   : > { %v5018_v57 = vpack.c.b16 %v10481_v27, %v4953_v48  ;;  %v5000_v31 = vpack.c.b16 %v4918_v3, %v4917_v62  ;;  %v4774_v30 = vpack.c.bf16 %v4683_v20, %v4683_v20  ;;  %v4048_v55 = vmax.f32 %v3957_v41, 0.0 }
 0x4ff   : > { %v4938_v58 = vunpack.c.l.b16 %v4756_v26  ;;  %v4009_v34 = vmax.f32 %v3918_v14, 0.0  ;;  %v4029_v37 = vmax.f32 %v3938_v33, 0.0  ;;  %v4955_v21 = vunpack.c.l.b16 %v4773_v61 }
 0x500   : > { %v5273_v59 = vshrl.u32 %v5018_v57, 16  ;;  %v5276_v42 = vshll.u32 %v5018_v57, 16  ;;  %v5111_v39 = vshrl.u32 %v5000_v31, 16  ;;  %v5114_v11 = vshll.u32 %v5000_v31, 16  ;;  %v3619_v57 = vpop.f32.mrf.mxu0 }
 0x501   : > { %v5010_v5 = vpack.c.b16 %v4938_v58, %v4937_v9  ;;  %v4956_v53 = vunpack.c.l.b16 %v4774_v30  ;;  %v4646_v2 = vmul.f32 %v10036_v17, %v4009_v34  ;;  %v10588_v3 = vmul.f32 %v10324_v0, %v3764_v36  ;;  %v10591_v9 = vpop.permute.xlu2 %4500 }
 0x502   : > { %v5275_v6 = vrot.slane %v5273_v59, 5  ;;  %v5278_v27 = vrot.slane %v5276_v42, 6  ;;  %v5113_v62 = vrot.slane %v5111_v39, 5  ;;  %v5116_v48 = vrot.slane %v5114_v11, 6 }
 0x503   : > { %v5201_v12 = vshrl.u32 %v5010_v5, 16  ;;  %v5204_v41 = vshll.u32 %v5010_v5, 16  ;;  %v4666_v26 = vmul.f32 %v10212_v44, %v4029_v37  ;;  %v5019_v20 = vpack.c.b16 %v4956_v53, %v4955_v21  ;;  %v3669_v37 = vpop.f32.mrf.mxu1  ;;  %v3719_v53 = vpop.f32.mrf.mxu2 }
 0x504   : > { %v5279_v18 = vor.u32 %v5278_v27, %v5275_v6  ;;  %v10593_v61 = vor.u32 %v5116_v48, %v5113_v62  ;;  %v4685_v33 = vmul.f32 %v4461_v7, %v4048_v55  ;;  %v4737_v58 = vpack.c.bf16 %v4646_v2, %v4646_v2 }
 0x505   : > { %v5203_v17 = vrot.slane %v5201_v12, 5  ;;  %v5206_v14 = vrot.slane %v5204_v41, 6  ;;  %v5282_v30 = vshrl.u32 %v5019_v20, 16  ;;  %v4957_v59 = vunpack.c.l.b16 %v4775_v50 }
 0x506   : > { %v5280_v31 = vsel %vm5038_vm0, %v10542_v23, %v5279_v18  ;;  %v5118_v36 = vsel %vm5038_vm0, %v10527_v13, %v10593_v61  ;;  %v4757_v5 = vpack.c.bf16 %v4666_v26, %v4666_v26  ;;  %v5285_v55 = vshll.u32 %v5019_v20, 16  ;;  %v4466_v26 = vpop.permute.xlu1 %4465 }
 0x507   : > { %v10600_v44 = vor.u32 %v5206_v14, %v5203_v17  ;;  %v5516_v42 = vunpack.c.l.b16 %v5280_v31  ;;  %v5517_v34 = vunpack.c.h.b16 %v5280_v31  ;;  %v5480_v39 = vunpack.c.l.b16 %v5118_v36  ;;  %v10614_v31 = vpop.f32.mrf.mxu3 }
 0x508   : > { %v5481_v11 = vunpack.c.h.b16 %v5118_v36  ;;  %v5284_v6 = vrot.slane %v5282_v30, 5  ;;  %v4776_v27 = vpack.c.bf16 %v4685_v33, %v4685_v33  ;;  %v5287_v48 = vrot.slane %v5285_v55, 6  ;;  %v10612_v33 = vpop.permute.xlu0 %4475  ;;  %v3622_v55 = vpop.f32.mrf.mxu0 }
 0x509   : > { %v5208_v23 = vsel %vm5038_vm0, %v10529_v1, %v10600_v44  ;;  %v5610_v50 = vpack.c.b16 %v5516_v42, %v5516_v42  ;;  %v5574_v13 = vpack.c.b16 %v5480_v39, %v5480_v39  ;;  %v5611_v62 = vpack.c.b16 %v5517_v34, %v5517_v34 }
 0x50a   : > { %v5575_v21 = vpack.c.b16 %v5481_v11, %v5481_v11  ;;  %v5500_v2 = vunpack.c.l.b16 %v5208_v23  ;;  %v5501_v7 = vunpack.c.h.b16 %v5208_v23  ;;  %v4958_v12 = vunpack.c.l.b16 %v4776_v27 }
 0x50b   : > { %5799 = vst.msk [vmem:[%s9084_s16 + $0xd8] sm:$0xf] %vm5744_vm6, %v5610_v50  ;;  %v3863_v41 = vmul.f32 %v10324_v0, %v3717_v25  ;;  %v3824_v17 = vmul.f32 %v10324_v0, %v3619_v57  ;;  %v3844_v14 = vmul.f32 %v10324_v0, %v3669_v37  ;;  %v4919_v30 = vunpack.c.l.b16 %v4737_v58  ;;  %v10623_v37 = vpop.permute.xlu2 %4515 }
 0x50c   : > { %5763 = vst.msk [vmem:[%s9084_s16 + $0x48] sm:$0xf] %vm5744_vm6, %v5574_v13  ;;  %v5594_v1 = vpack.c.b16 %v5500_v2, %v5500_v2  ;;  %v5595_v20 = vpack.c.b16 %v5501_v7, %v5501_v7  ;;  %v5288_v36 = vor.u32 %v5287_v48, %v5284_v6  ;;  %v5020_v25 = vpack.c.b16 %v4958_v12, %v4957_v59  ;;  %v3672_v48 = vpop.f32.mrf.mxu1 }
 0x50d   : > { %5764 = vst.msk [vmem:[%s9084_s16 + $0x4c] sm:$0xf] %vm5744_vm6, %v5575_v21  ;;  %v3958_v42 = vadd.f32 %v10341_v15, %v3863_v41  ;;  %v4939_v34 = vunpack.c.l.b16 %v4757_v5  ;;  %v3919_v57 = vadd.f32 %v10341_v15, %v3824_v17  ;;  %v3939_v39 = vadd.f32 %v10341_v15, %v3844_v14 }
 0x50e   : > { %5783 = vst.msk [vmem:[%s9084_s16 + $0x98] sm:$0xf] %vm5744_vm6, %v5594_v1  ;;  %v3864_v11 = vmul.f32 %v10324_v0, %v3719_v53  ;;  %v5289_v58 = vsel %vm5038_vm0, %v5279_v18, %v5288_v36  ;;  %v5291_v23 = vshrl.u32 %v5020_v25, 16  ;;  %v5294_v59 = vshll.u32 %v5020_v25, 16 }
 0x50f   : > { %5784 = vst.msk [vmem:[%s9084_s16 + $0x9c] sm:$0xf] %vm5744_vm6, %v5595_v20  ;;  %v4049_v50 = vmax.f32 %v3958_v42, 0.0  ;;  %v5518_v6 = vunpack.c.l.b16 %v5289_v58  ;;  %v5519_v5 = vunpack.c.h.b16 %v5289_v58  ;;  %v4010_v27 = vmax.f32 %v3919_v57, 0.0  ;;  %v3722_v20 = vpop.f32.mrf.mxu2  ;;  %v10647_v58 = vpop.permute.xlu1 %4480 }
 0x510   : > { %5800 = vst.msk [vmem:[%s9084_s16 + $0xdc] sm:$0xf] %vm5744_vm6, %v5611_v62  ;;  %v4030_v13 = vmax.f32 %v3939_v39, 0.0  ;;  %v5293_v21 = vrot.slane %v5291_v23, 5  ;;  %v5296_v2 = vrot.slane %v5294_v59, 6  ;;  %v3959_v53 = vadd.f32 %v10341_v15, %v3864_v11 }
 0x511   : > { %v4686_v7 = vmul.f32 %v4466_v26, %v4049_v50  ;;  %v5612_v12 = vpack.c.b16 %v5518_v6, %v5518_v6  ;;  %v5613_v41 = vpack.c.b16 %v5519_v5, %v5519_v5  ;;  %v4647_v18 = vmul.f32 %v10077_v52, %v4010_v27  ;;  %v10650_v5 = vpop.permute.xlu0 %4490 }
 0x512   : > { %v4667_v1 = vmul.f32 %v10332_v19, %v4030_v13  ;;  %v10634_v62 = vor.u32 %v5296_v2, %v5293_v21  ;;  %v3883_v17 = vmul.f32 %v10324_v0, %v10585_v38  ;;  %v4050_v25 = vmax.f32 %v3959_v53, 0.0 }
 0x513   : > { %v4777_v14 = vpack.c.bf16 %v4686_v7, %v4686_v7  ;;  %5801 = vst.msk [vmem:[%s9084_s16 + $0xe0] sm:$0xf] %vm5744_vm6, %v5612_v12  ;;  %v4738_v26 = vpack.c.bf16 %v4647_v18, %v4647_v18  ;;  %v3825_v57 = vmul.f32 %v10324_v0, %v3622_v55  ;;  %v3845_v39 = vmul.f32 %v10324_v0, %v3672_v48  ;;  %v10652_v55 = vpop.f32.mrf.mxu3  ;;  %v10657_v48 = vpop.permute.xlu2 %4530 }
 0x514   : > { %v4758_v42 = vpack.c.bf16 %v4667_v1, %v4667_v1  ;;  %5802 = vst.msk [vmem:[%s9084_s16 + $0xe4] sm:$0xf] %vm5744_vm6, %v5613_v41  ;;  %v5298_v52 = vsel %vm5038_vm0, %v5288_v36, %v10634_v62  ;;  %v4687_v11 = vmul.f32 %v10522_v22, %v4050_v25  ;;  %v3865_v38 = vmul.f32 %v10324_v0, %v3722_v20  ;;  %v3624_v12 = vpop.f32.mrf.mxu0 }
 0x515   : > { %v4959_v19 = vunpack.c.l.b16 %v4777_v14  ;;  %v5520_v23 = vunpack.c.l.b16 %v5298_v52  ;;  %v5521_v59 = vunpack.c.h.b16 %v5298_v52  ;;  %v4920_v50 = vunpack.c.l.b16 %v4738_v26 }
 0x516   : > { %v4940_v6 = vunpack.c.l.b16 %v4758_v42  ;;  %v4778_v27 = vpack.c.bf16 %v4687_v11, %v4687_v11  ;;  %v3920_v13 = vadd.f32 %v10341_v15, %v3825_v57  ;;  %v3940_v36 = vadd.f32 %v10341_v15, %v3845_v39 }
 0x517   : > { %v3960_v22 = vadd.f32 %v10341_v15, %v3865_v38  ;;  %v5614_v21 = vpack.c.b16 %v5520_v23, %v5520_v23  ;;  %v5615_v2 = vpack.c.b16 %v5521_v59, %v5521_v59  ;;  %v5001_v7 = vpack.c.b16 %v4920_v50, %v4919_v30  ;;  %v3674_v59 = vpop.f32.mrf.mxu1 }
 0x518   : > { %v5011_v53 = vpack.c.b16 %v4940_v6, %v4939_v34  ;;  %v4960_v41 = vunpack.c.l.b16 %v4778_v27  ;;  %v4011_v18 = vmax.f32 %v3920_v13, 0.0  ;;  %v4031_v1 = vmax.f32 %v3940_v36, 0.0 }
 0x519   : > { %v4051_v20 = vmax.f32 %v3960_v22, 0.0  ;;  %5803 = vst.msk [vmem:[%s9084_s16 + $0xe8] sm:$0xf] %vm5744_vm6, %v5614_v21  ;;  %v5120_v14 = vshrl.u32 %v5001_v7, 16  ;;  %v5123_v25 = vshll.u32 %v5001_v7, 16  ;;  %v3884_v30 = vmul.f32 %v10324_v0, %v10614_v31  ;;  %v10694_v21 = vpop.permute.xlu1 %4495 }
 0x51a   : > { %v5210_v26 = vshrl.u32 %v5011_v53, 16  ;;  %v5213_v42 = vshll.u32 %v5011_v53, 16  ;;  %5804 = vst.msk [vmem:[%s9084_s16 + $0xec] sm:$0xf] %vm5744_vm6, %v5615_v2  ;;  %v5021_v57 = vpack.c.b16 %v4960_v41, %v4959_v19  ;;  %v4648_v34 = vmul.f32 %v9926_v10, %v4011_v18  ;;  %v3724_v2 = vpop.f32.mrf.mxu2  ;;  %v10704_v53 = vpop.permute.xlu0 %4505 }
 0x51b   : > { %v10667_v39 = vmul.f32 %v10382_v24, %v4031_v1  ;;  %v5122_v52 = vrot.slane %v5120_v14, 5  ;;  %v5125_v11 = vrot.slane %v5123_v25, 6  ;;  %v10671_v50 = vadd.f32 %v10341_v15, %v10515_v51  ;;  %v3774_v41 = vpop.f32.mrf.mxu3 }
 0x51c   : > { %v5212_v38 = vrot.slane %v5210_v26, 5  ;;  %v5215_v23 = vrot.slane %v5213_v42, 6  ;;  %v10675_v19 = vadd.f32 %v10341_v15, %v10525_v60  ;;  %v5300_v6 = vshrl.u32 %v5021_v57, 16  ;;  %v4546_v42 = vpop.permute.xlu2 %4545 }
 0x51d   : > { %v5303_v31 = vshll.u32 %v5021_v57, 16  ;;  %v10679_v10 = vadd.f32 %v10341_v15, %v10588_v3  ;;  %v10681_v24 = vor.u32 %v5125_v11, %v5122_v52  ;;  %v10686_v13 = vmul.f32 %v10612_v33, %v4051_v20  ;;  %v3627_v57 = vpop.f32.mrf.mxu0 }
 0x51e   : > { %v10683_v27 = vor.u32 %v5215_v23, %v5212_v38  ;;  %v10689_v51 = vadd.f32 %v10341_v15, %v3883_v17  ;;  %v5302_v36 = vrot.slane %v5300_v6, 5  ;;  %v10692_v60 = vadd.f32 %v10341_v15, %v3884_v30 }
 0x51f   : > { %v5305_v22 = vrot.slane %v5303_v31, 6  ;;  %v5127_v3 = vsel %vm5038_vm0, %v10593_v61, %v10681_v24  ;;  %v4739_v7 = vpack.c.bf16 %v4648_v34, %v4648_v34  ;;  %v4759_v17 = vpack.c.bf16 %v10667_v39, %v10667_v39 }
 0x520   : > { %v5217_v33 = vsel %vm5038_vm0, %v10600_v44, %v10683_v27  ;;  %v5482_v18 = vunpack.c.l.b16 %v5127_v3  ;;  %v5483_v1 = vunpack.c.h.b16 %v5127_v3  ;;  %v4779_v61 = vpack.c.bf16 %v10686_v13, %v10686_v13 }
 0x521   : > { %v5502_v20 = vunpack.c.l.b16 %v5217_v33  ;;  %v5503_v14 = vunpack.c.h.b16 %v5217_v33  ;;  %v10706_v25 = vor.u32 %v5305_v22, %v5302_v36  ;;  %v3826_v26 = vmul.f32 %v10324_v0, %v3624_v12  ;;  %v3677_v33 = vpop.f32.mrf.mxu1 }
 0x522   : > { %v3846_v44 = vmul.f32 %v10324_v0, %v3674_v59  ;;  %v5576_v30 = vpack.c.b16 %v5482_v18, %v5482_v18  ;;  %v5577_v34 = vpack.c.b16 %v5483_v1, %v5483_v1  ;;  %v4065_v52 = vmax.f32 %v10487_v49, 0.0  ;;  %v3727_v1 = vpop.f32.mrf.mxu2 }
 0x523   : > { %v5596_v39 = vpack.c.b16 %v5502_v20, %v5502_v20  ;;  %v5597_v11 = vpack.c.b16 %v5503_v14, %v5503_v14  ;;  %v5307_v38 = vsel %vm5038_vm0, %v10634_v62, %v10706_v25  ;;  %v3921_v23 = vadd.f32 %v10341_v15, %v3826_v26  ;;  %v10728_v62 = vld [vmem:[%s11077_s2] ss:$0 sm:$0xff] }
 0x524   : > { %v3941_v12 = vadd.f32 %v10341_v15, %v3846_v44  ;;  %5765 = vst.msk [vmem:[%s9084_s16 + $0x50] sm:$0xf] %vm5744_vm6, %v5576_v30  ;;  %v5522_v59 = vunpack.c.l.b16 %v5307_v38  ;;  %v5523_v6 = vunpack.c.h.b16 %v5307_v38  ;;  %v3885_v31 = vmul.f32 %v10324_v0, %v10652_v55  ;;  %v10741_v44 = vld [vmem:[%s11078_s3] ss:$0 sm:$0xff]  ;;  %v10748_v30 = vpop.permute.xlu1 %4510 }
 0x525   : > { %v3866_v49 = vmul.f32 %v10324_v0, %v3724_v2  ;;  %5766 = vst.msk [vmem:[%s9084_s16 + $0x54] sm:$0xf] %vm5744_vm6, %v5577_v34  ;;  %v4012_v13 = vmax.f32 %v3921_v23, 0.0  ;;  %v4702_v22 = vmul.f32 %v4546_v42, %v4065_v52  ;;  %v3827_v3 = vmul.f32 %v10728_v62, %v3627_v57  ;;  %v10753_v52 = vpop.permute.xlu0 %4520 }
 0x526   : > { %v4032_v36 = vmax.f32 %v3941_v12, 0.0  ;;  %5785 = vst.msk [vmem:[%s9084_s16 + $0xa0] sm:$0xf] %vm5744_vm6, %v5596_v39  ;;  %v5616_v18 = vpack.c.b16 %v5522_v59, %v5522_v59  ;;  %v5617_v55 = vpack.c.b16 %v5523_v6, %v5523_v6  ;;  %v4921_v0 = vunpack.c.l.b16 %v4739_v7 }
 0x527   : > { %v3961_v2 = vadd.f32 %v10341_v15, %v3866_v49  ;;  %5786 = vst.msk [vmem:[%s9084_s16 + $0xa4] sm:$0xf] %vm5744_vm6, %v5597_v11  ;;  %v4941_v20 = vunpack.c.l.b16 %v4759_v17  ;;  %v4649_v14 = vmul.f32 %v10083_v8, %v4012_v13  ;;  %v3922_v42 = vadd.f32 %v10741_v44, %v3827_v3  ;;  %v3777_v11 = vpop.f32.mrf.mxu3  ;;  %v4561_v13 = vpop.permute.xlu2 %4560 }
 0x528   : > { %v4669_v26 = vmul.f32 %v10242_v47, %v4032_v36  ;;  %5805 = vst.msk [vmem:[%s9084_s16 + $0xf0] sm:$0xf] %vm5744_vm6, %v5616_v18  ;;  %v3886_v15 = vmul.f32 %v10728_v62, %v3774_v41  ;;  %v3847_v57 = vmul.f32 %v10728_v62, %v3677_v33  ;;  %v3867_v8 = vmul.f32 %v10728_v62, %v3727_v1 }
 0x529   : > { %v4052_v7 = vmax.f32 %v3961_v2, 0.0  ;;  %5806 = vst.msk [vmem:[%s9084_s16 + $0xf4] sm:$0xf] %vm5744_vm6, %v5617_v55  ;;  %v4740_v47 = vpack.c.bf16 %v4649_v14, %v4649_v14  ;;  %v4793_v34 = vpack.c.bf16 %v4702_v22, %v4702_v22  ;;  %v4013_v39 = vmax.f32 %v3922_v42, 0.0  ;;  %v3629_v22 = vpop.f32.mrf.mxu0 }
 0x52a   : > { %v4760_v17 = vpack.c.bf16 %v4669_v26, %v4669_v26  ;;  %v4961_v38 = vunpack.c.l.b16 %v4779_v61  ;;  %v3942_v41 = vadd.f32 %v10741_v44, %v3847_v57  ;;  %v3962_v12 = vadd.f32 %v10741_v44, %v3867_v8 }
 0x52b   : > { %v4689_v23 = vmul.f32 %v10647_v58, %v4052_v7  ;;  %v10759_v59 = vadd.f32 %v10741_v44, %v3885_v31  ;;  %v4922_v6 = vunpack.c.l.b16 %v4740_v47  ;;  %v4068_v36 = vmax.f32 %v10679_v10, 0.0 }
 0x52c   : > { %v4942_v49 = vunpack.c.l.b16 %v4760_v17  ;;  %v4650_v33 = vmul.f32 %v10138_v46, %v4013_v39  ;;  %v4033_v18 = vmax.f32 %v3942_v41, 0.0  ;;  %v3887_v61 = vmul.f32 %v10728_v62, %v3777_v11  ;;  %v3679_v17 = vpop.f32.mrf.mxu1 }
 0x52d   : > { %v4780_v3 = vpack.c.bf16 %v4689_v23, %v4689_v23  ;;  %v5002_v58 = vpack.c.b16 %v4922_v6, %v4921_v0  ;;  %v10764_v2 = vunpack.c.l.b16 %v4793_v34  ;;  %v10767_v1 = vadd.f32 %v10741_v44, %v3886_v15 }
 0x52e   : > { %v5012_v55 = vpack.c.b16 %v4942_v49, %v4941_v20  ;;  %v10769_v14 = vmul.f32 %v4561_v13, %v4068_v36  ;;  %v4053_v26 = vmax.f32 %v3962_v12, 0.0  ;;  %v3828_v10 = vmul.f32 %v10728_v62, %v3629_v22  ;;  %v10779_v49 = vpop.permute.xlu1 %4525  ;;  %v4536_v22 = vpop.permute.xlu0 %4535 }
 0x52f   : > { %v4962_v31 = vunpack.c.l.b16 %v4780_v3  ;;  %v5129_v42 = vshrl.u32 %v5002_v58, 16  ;;  %v5132_v7 = vshll.u32 %v5002_v58, 16  ;;  %v4741_v47 = vpack.c.bf16 %v4650_v33, %v4650_v33  ;;  %v3729_v3 = vpop.f32.mrf.mxu2 }
 0x530   : > { %v5219_v57 = vshrl.u32 %v5012_v55, 16  ;;  %v5222_v46 = vshll.u32 %v5012_v55, 16  ;;  %v4670_v0 = vmul.f32 %v10384_v45, %v4033_v18  ;;  %v10774_v20 = vadd.f32 %v10741_v44, %v3887_v61 }
 0x531   : > { %v5022_v8 = vpack.c.b16 %v4962_v31, %v4961_v38  ;;  %v5131_v15 = vrot.slane %v5129_v42, 5  ;;  %v5134_v34 = vrot.slane %v5132_v7, 6  ;;  %v4796_v12 = vpack.c.bf16 %v10769_v14, %v10769_v14 }
 0x532   : > { %v5221_v39 = vrot.slane %v5219_v57, 5  ;;  %v5224_v11 = vrot.slane %v5222_v46, 6  ;;  %v4690_v6 = vmul.f32 %v10563_v4, %v4053_v26  ;;  %v3923_v13 = vadd.f32 %v10741_v44, %v3828_v10 }
 0x533   : > { %v5309_v23 = vshrl.u32 %v5022_v8, 16  ;;  %v5312_v41 = vshll.u32 %v5022_v8, 16  ;;  %v10781_v38 = vor.u32 %v5134_v34, %v5131_v15  ;;  %v3848_v36 = vmul.f32 %v10728_v62, %v3679_v17 }
 0x534   : > { %v10783_v45 = vor.u32 %v5224_v11, %v5221_v39  ;;  %v4923_v61 = vunpack.c.l.b16 %v4741_v47  ;;  %v4761_v58 = vpack.c.bf16 %v4670_v0, %v4670_v0  ;;  %v4014_v31 = vmax.f32 %v3923_v13, 0.0 }
 0x535   : > { %v5311_v33 = vrot.slane %v5309_v23, 5  ;;  %v5314_v18 = vrot.slane %v5312_v41, 6  ;;  %v5136_v4 = vsel %vm5038_vm0, %v10681_v24, %v10781_v38  ;;  %v3943_v26 = vadd.f32 %v10741_v44, %v3848_v36 }
 0x536   : > { %v5226_v55 = vsel %vm5038_vm0, %v10683_v27, %v10783_v45  ;;  %v5484_v10 = vunpack.c.l.b16 %v5136_v4  ;;  %v5485_v42 = vunpack.c.h.b16 %v5136_v4  ;;  %v4781_v8 = vpack.c.bf16 %v4690_v6, %v4690_v6  ;;  %v4576_v6 = vpop.permute.xlu2 %4575 }
 0x537   : > { %v5504_v7 = vunpack.c.l.b16 %v5226_v55  ;;  %v5505_v57 = vunpack.c.h.b16 %v5226_v55  ;;  %v10794_v46 = vor.u32 %v5314_v18, %v5311_v33  ;;  %v4651_v47 = vmul.f32 %v9982_v28, %v4014_v31  ;;  %v3682_v33 = vpop.f32.mrf.mxu1  ;;  %v3779_v55 = vpop.f32.mrf.mxu3 }
 0x538   : > { %v4034_v0 = vmax.f32 %v3943_v26, 0.0  ;;  %v5578_v24 = vpack.c.b16 %v5484_v10, %v5484_v10  ;;  %v5579_v17 = vpack.c.b16 %v5485_v42, %v5485_v42  ;;  %v4063_v27 = vmax.f32 %v10449_v63, 0.0  ;;  %v4541_v10 = vpop.permute.xlu1 %4540 }
 0x539   : > { %v5598_v15 = vpack.c.b16 %v5504_v7, %v5504_v7  ;;  %v5599_v34 = vpack.c.b16 %v5505_v57, %v5505_v57  ;;  %v5316_v39 = vsel %vm5038_vm0, %v10706_v25, %v10794_v46  ;;  %v4742_v11 = vpack.c.bf16 %v4651_v47, %v4651_v47  ;;  %v4551_v57 = vpop.permute.xlu0 %4550 }
 0x53a   : > { %v4671_v23 = vmul.f32 %v10414_v32, %v4034_v0  ;;  %5767 = vst.msk [vmem:[%s9084_s16 + $0x58] sm:$0xf] %vm5744_vm6, %v5578_v24  ;;  %v5524_v41 = vunpack.c.l.b16 %v5316_v39  ;;  %v5525_v28 = vunpack.c.h.b16 %v5316_v39  ;;  %v4700_v13 = vmul.f32 %v4536_v22, %v4063_v27 }
 0x53b   : > { %v3868_v36 = vmul.f32 %v10728_v62, %v3729_v3  ;;  %5768 = vst.msk [vmem:[%s9084_s16 + $0x5c] sm:$0xf] %vm5744_vm6, %v5579_v17  ;;  %v4943_v63 = vunpack.c.l.b16 %v4761_v58  ;;  %v4924_v18 = vunpack.c.l.b16 %v4742_v11  ;;  %v4071_v25 = vmax.f32 %v10759_v59, 0.0  ;;  %v3732_v59 = vpop.f32.mrf.mxu2 }
 0x53c   : > { %v4762_v4 = vpack.c.bf16 %v4671_v23, %v4671_v23  ;;  %5787 = vst.msk [vmem:[%s9084_s16 + $0xa8] sm:$0xf] %vm5744_vm6, %v5598_v15  ;;  %v5618_v32 = vpack.c.b16 %v5524_v41, %v5524_v41  ;;  %v5619_v31 = vpack.c.b16 %v5525_v28, %v5525_v28  ;;  %v4963_v26 = vunpack.c.l.b16 %v4781_v8 }
 0x53d   : > { %v3963_v22 = vadd.f32 %v10741_v44, %v3868_v36  ;;  %5788 = vst.msk [vmem:[%s9084_s16 + $0xac] sm:$0xf] %vm5744_vm6, %v5599_v34  ;;  %v5003_v3 = vpack.c.b16 %v4924_v18, %v4923_v61  ;;  %v10813_v58 = vmul.f32 %v4576_v6, %v4071_v25  ;;  %v3849_v7 = vmul.f32 %v10728_v62, %v3682_v33 }
 0x53e   : > { %v4944_v42 = vunpack.c.l.b16 %v4762_v4  ;;  %5807 = vst.msk [vmem:[%s9084_s16 + $0xf8] sm:$0xf] %vm5744_vm6, %v5618_v32  ;;  %v4791_v47 = vpack.c.bf16 %v4700_v13, %v4700_v13  ;;  %v4064_v24 = vmax.f32 %v10461_v56, 0.0  ;;  %v4066_v8 = vmax.f32 %v10671_v50, 0.0 }
 0x53f   : > { %v4054_v0 = vmax.f32 %v3963_v22, 0.0  ;;  %5808 = vst.msk [vmem:[%s9084_s16 + $0xfc] sm:$0xf] %vm5744_vm6, %v5619_v31  ;;  %v5138_v17 = vshrl.u32 %v5003_v3, 16  ;;  %v5141_v15 = vshll.u32 %v5003_v3, 16  ;;  %v3944_v27 = vadd.f32 %v10741_v44, %v3849_v7  ;;  %v3782_v7 = vpop.f32.mrf.mxu3 }
 0x540   : > { %v5013_v61 = vpack.c.b16 %v4944_v42, %v4943_v63  ;;  %v4701_v39 = vmul.f32 %v4541_v10, %v4064_v24  ;;  %v4703_v11 = vmul.f32 %v4551_v57, %v4066_v8  ;;  %v3869_v23 = vmul.f32 %v10728_v62, %v3732_v59 }
 0x541   : > { %v4691_v34 = vmul.f32 %v10650_v5, %v4054_v0  ;;  %v5140_v41 = vrot.slane %v5138_v17, 5  ;;  %v5143_v28 = vrot.slane %v5141_v15, 6  ;;  %v3888_v50 = vmul.f32 %v10728_v62, %v3779_v55 }
 0x542   : > { %v5228_v6 = vshrl.u32 %v5013_v61, 16  ;;  %v5231_v13 = vshll.u32 %v5013_v61, 16  ;;  %v4792_v36 = vpack.c.bf16 %v4701_v39, %v4701_v39  ;;  %v4794_v33 = vpack.c.bf16 %v4703_v11, %v4703_v11 }
 0x543   : > { %v4782_v56 = vpack.c.bf16 %v4691_v34, %v4691_v34  ;;  %v5144_v18 = vor.u32 %v5143_v28, %v5140_v41  ;;  %v4035_v25 = vmax.f32 %v3944_v27, 0.0  ;;  %v4973_v32 = vunpack.c.l.b16 %v4791_v47  ;;  %v10837_v41 = vpop.permute.xlu2 %4620  ;;  %v3684_v28 = vpop.f32.mrf.mxu1 }
 0x544   : > { %v5230_v4 = vrot.slane %v5228_v6, 5  ;;  %v5233_v63 = vrot.slane %v5231_v13, 6  ;;  %v4974_v5 = vunpack.c.l.b16 %v4792_v36  ;;  %v3964_v22 = vadd.f32 %v10741_v44, %v3869_v23 }
 0x545   : > { %v4964_v31 = vunpack.c.l.b16 %v4782_v56  ;;  %v5145_v10 = vsel %vm5038_vm0, %v10781_v38, %v5144_v18  ;;  %v5154_v3 = vsel %vm5038_vm0, %v5144_v18, %v10229_v40  ;;  %v4976_v55 = vunpack.c.l.b16 %v4794_v33  ;;  %v3734_v18 = vpop.f32.mrf.mxu2 }
 0x546   : > { %v10831_v42 = vor.u32 %v5233_v63, %v5230_v4  ;;  %v5486_v57 = vunpack.c.l.b16 %v5145_v10  ;;  %v5487_v59 = vunpack.c.h.b16 %v5145_v10  ;;  %v5488_v0 = vunpack.c.l.b16 %v5154_v3 }
 0x547   : > { %v5489_v24 = vunpack.c.h.b16 %v5154_v3  ;;  %v5023_v8 = vpack.c.b16 %v4964_v31, %v4963_v26  ;;  %v4672_v17 = vmul.f32 %v10281_v54, %v4035_v25  ;;  %v5028_v38 = vpack.c.b16 %v4974_v5, %v4973_v32  ;;  %v4556_v31 = vpop.permute.xlu1 %4555  ;;  %v4566_v5 = vpop.permute.xlu0 %4565 }
 0x548   : > { %v5235_v47 = vsel %vm5038_vm0, %v10783_v45, %v10831_v42  ;;  %v5580_v15 = vpack.c.b16 %v5486_v57, %v5486_v57  ;;  %v5581_v40 = vpack.c.b16 %v5487_v59, %v5487_v59  ;;  %v5582_v61 = vpack.c.b16 %v5488_v0, %v5488_v0 }
 0x549   : > { %v5583_v27 = vpack.c.b16 %v5489_v24, %v5489_v24  ;;  %v5506_v34 = vunpack.c.l.b16 %v5235_v47  ;;  %v5507_v39 = vunpack.c.h.b16 %v5235_v47  ;;  %v5318_v11 = vshrl.u32 %v5023_v8, 16 }
 0x54a   : > { %v5321_v23 = vshll.u32 %v5023_v8, 16  ;;  %5769 = vst.msk [vmem:[%s9084_s16 + $0x60] sm:$0xf] %vm5744_vm6, %v5580_v15  ;;  %v5363_v45 = vshrl.u32 %v5028_v38, 16  ;;  %v5366_v26 = vshll.u32 %v5028_v38, 16  ;;  %v5029_v54 = vpack.c.b16 %v4976_v55, %v10764_v2 }
 0x54b   : > { %v4055_v6 = vmax.f32 %v3964_v22, 0.0  ;;  %5770 = vst.msk [vmem:[%s9084_s16 + $0x64] sm:$0xf] %vm5744_vm6, %v5581_v40  ;;  %v5600_v13 = vpack.c.b16 %v5506_v34, %v5506_v34  ;;  %v5601_v56 = vpack.c.b16 %v5507_v39, %v5507_v39  ;;  %v5320_v36 = vrot.slane %v5318_v11, 5 }
 0x54c   : > { %v5323_v33 = vrot.slane %v5321_v23, 6  ;;  %5771 = vst.msk [vmem:[%s9084_s16 + $0x68] sm:$0xf] %vm5744_vm6, %v5582_v61  ;;  %v5365_v4 = vrot.slane %v5363_v45, 5  ;;  %v5368_v63 = vrot.slane %v5366_v26, 6  ;;  %v5372_v25 = vshrl.u32 %v5029_v54, 16  ;;  %v4591_v45 = vpop.permute.xlu2 %4590  ;;  %v3687_v26 = vpop.f32.mrf.mxu1 }
 0x54d   : > { %v5375_v32 = vshll.u32 %v5029_v54, 16  ;;  %5772 = vst.msk [vmem:[%s9084_s16 + $0x6c] sm:$0xf] %vm5744_vm6, %v5583_v27  ;;  %v4799_v2 = vpack.c.bf16 %v10813_v58, %v10813_v58  ;;  %v4763_v10 = vpack.c.bf16 %v4672_v17, %v4672_v17  ;;  %v3850_v3 = vmul.f32 %v10728_v62, %v3684_v28  ;;  %v10868_v17 = vpop.f32.mrf.mxu3 }
 0x54e   : > { %v10850_v22 = vor.u32 %v5323_v33, %v5320_v36  ;;  %5789 = vst.msk [vmem:[%s9084_s16 + $0xb0] sm:$0xf] %vm5744_vm6, %v5600_v13  ;;  %v3983_v55 = vadd.f32 %v10741_v44, %v3888_v50  ;;  %v10856_v57 = vor.u32 %v5368_v63, %v5365_v4  ;;  %v5374_v59 = vrot.slane %v5372_v25, 5  ;;  %v3737_v4 = vpop.f32.mrf.mxu2 }
 0x54f   : > { %v5377_v0 = vrot.slane %v5375_v32, 6  ;;  %v4978_v24 = vunpack.c.l.b16 %v4796_v12  ;;  %5790 = vst.msk [vmem:[%s9084_s16 + $0xb4] sm:$0xf] %vm5744_vm6, %v5601_v56  ;;  %v4692_v47 = vmul.f32 %v10694_v21, %v4055_v6  ;;  %v3945_v8 = vadd.f32 %v10741_v44, %v3850_v3 }
 0x550   : > { %v5325_v58 = vsel %vm5038_vm0, %v10794_v46, %v10850_v22  ;;  %v3889_v14 = vmul.f32 %v10728_v62, %v3782_v7  ;;  %v10873_v12 = vunpack.c.l.b16 %v4799_v2  ;;  %v4945_v40 = vunpack.c.l.b16 %v4763_v10  ;;  %v4571_v2 = vpop.permute.xlu1 %4570  ;;  %v4581_v10 = vpop.permute.xlu0 %4580 }
 0x551   : > { %v5526_v50 = vunpack.c.l.b16 %v5325_v58  ;;  %v5527_v38 = vunpack.c.h.b16 %v5325_v58  ;;  %v10870_v15 = vor.u32 %v5377_v0, %v5374_v59  ;;  %v4036_v61 = vmax.f32 %v3945_v8, 0.0 }
 0x552   : > { %v4067_v27 = vmax.f32 %v10675_v19, 0.0  ;;  %v4074_v39 = vmax.f32 %v3983_v55, 0.0  ;;  %v4783_v54 = vpack.c.bf16 %v4692_v47, %v4692_v47  ;;  %v10883_v19 = vadd.f32 %v10741_v44, %v3889_v14 }
 0x553   : > { %v5620_v46 = vpack.c.b16 %v5526_v50, %v5526_v50  ;;  %v5621_v21 = vpack.c.b16 %v5527_v38, %v5527_v38  ;;  %v5379_v34 = vsel %vm5038_vm0, %v10856_v57, %v10870_v15  ;;  %v4673_v28 = vmul.f32 %v10417_v35, %v4036_v61 }
 0x554   : > { %v5538_v11 = vunpack.c.l.b16 %v5379_v34  ;;  %v5539_v23 = vunpack.c.h.b16 %v5379_v34  ;;  %v4704_v7 = vmul.f32 %v4556_v31, %v4067_v27  ;;  %v4069_v6 = vmax.f32 %v10689_v51, 0.0 }
 0x555   : > { %5809 = vst.msk [vmem:[%s9084_s16 + $0x100] sm:$0xf] %vm5744_vm6, %v5620_v46  ;;  %v3870_v13 = vmul.f32 %v10728_v62, %v3734_v18  ;;  %v4764_v35 = vpack.c.bf16 %v4673_v28, %v4673_v28  ;;  %v10889_v63 = vmul.f32 %v4591_v45, %v4074_v39  ;;  %v3851_v31 = vmul.f32 %v10728_v62, %v3687_v26  ;;  %v3787_v14 = vpop.f32.mrf.mxu3 }
 0x556   : > { %5810 = vst.msk [vmem:[%s9084_s16 + $0x104] sm:$0xf] %vm5744_vm6, %v5621_v21  ;;  %v5632_v56 = vpack.c.b16 %v5538_v11, %v5538_v11  ;;  %v5633_v36 = vpack.c.b16 %v5539_v23, %v5539_v23  ;;  %v4795_v33 = vpack.c.bf16 %v4704_v7, %v4704_v7  ;;  %v4706_v25 = vmul.f32 %v4566_v5, %v4069_v6 }
 0x557   : > { %v3965_v32 = vadd.f32 %v10741_v44, %v3870_v13  ;;  %v4946_v51 = vunpack.c.l.b16 %v4764_v35  ;;  %v4070_v3 = vmax.f32 %v10692_v60, 0.0  ;;  %v4072_v55 = vmax.f32 %v10767_v1, 0.0 }
 0x558   : > { %5821 = vst.msk [vmem:[%s9084_s16 + $0x130] sm:$0xf] %vm5744_vm6, %v5632_v56  ;;  %v4977_v18 = vunpack.c.l.b16 %v4795_v33  ;;  %v4965_v59 = vunpack.c.l.b16 %v4783_v54  ;;  %v3946_v5 = vadd.f32 %v10741_v44, %v3851_v31  ;;  %v3871_v58 = vmul.f32 %v10728_v62, %v3737_v4 }
 0x559   : > { %5822 = vst.msk [vmem:[%s9084_s16 + $0x134] sm:$0xf] %vm5744_vm6, %v5633_v36  ;;  %v4056_v0 = vmax.f32 %v3965_v32, 0.0  ;;  %v5014_v47 = vpack.c.b16 %v4946_v51, %v4945_v40  ;;  %v4707_v50 = vmul.f32 %v4571_v2, %v4070_v3  ;;  %v4709_v38 = vmul.f32 %v4581_v10, %v4072_v55 }
 0x55a   : > { %v5030_v8 = vpack.c.b16 %v4978_v24, %v4977_v18  ;;  %v4797_v61 = vpack.c.bf16 %v4706_v25, %v4706_v25  ;;  %v4037_v46 = vmax.f32 %v3946_v5, 0.0  ;;  %v3966_v60 = vadd.f32 %v10741_v44, %v3871_v58 }
 0x55b   : > { %v4693_v27 = vmul.f32 %v10591_v9, %v4056_v0  ;;  %v5237_v1 = vshrl.u32 %v5014_v47, 16  ;;  %v5240_v21 = vshll.u32 %v5014_v47, 16  ;;  %v4798_v23 = vpack.c.bf16 %v4707_v50, %v4707_v50  ;;  %v10922_v47 = vpop.permute.xlu1 %4615 }
 0x55c   : > { %v5381_v34 = vshrl.u32 %v5030_v8, 16  ;;  %v5384_v39 = vshll.u32 %v5030_v8, 16  ;;  %v4800_v28 = vpack.c.bf16 %v4709_v38, %v4709_v38  ;;  %v3891_v45 = vmul.f32 %v10728_v62, %v3787_v14  ;;  %v3689_v38 = vpop.f32.mrf.mxu1  ;;  %v3739_v14 = vpop.f32.mrf.mxu2 }
 0x55d   : > { %v4784_v11 = vpack.c.bf16 %v4693_v27, %v4693_v27  ;;  %v5239_v40 = vrot.slane %v5237_v1, 5  ;;  %v5242_v24 = vrot.slane %v5240_v21, 6  ;;  %v4979_v54 = vunpack.c.l.b16 %v4797_v61  ;;  %v3789_v1 = vpop.f32.mrf.mxu3 }
 0x55e   : > { %v5383_v7 = vrot.slane %v5381_v34, 5  ;;  %v5386_v26 = vrot.slane %v5384_v39, 6  ;;  %v4980_v13 = vunpack.c.l.b16 %v4798_v23  ;;  %v4982_v9 = vunpack.c.l.b16 %v4800_v28 }
 0x55f   : > { %v4966_v6 = vunpack.c.l.b16 %v4784_v11  ;;  %v10904_v56 = vor.u32 %v5242_v24, %v5239_v40  ;;  %v4802_v36 = vpack.c.bf16 %v10889_v63, %v10889_v63  ;;  %v3890_v33 = vmul.f32 %v10728_v62, %v10868_v17 }
 0x560   : > { %v5387_v35 = vor.u32 %v5386_v26, %v5383_v7  ;;  %v10911_v25 = vmul.f32 %v10454_v16, %v4037_v46  ;;  %v5031_v32 = vpack.c.b16 %v4980_v13, %v4979_v54  ;;  %v4057_v31 = vmax.f32 %v3966_v60, 0.0 }
 0x561   : > { %v5024_v4 = vpack.c.b16 %v4966_v6, %v4965_v59  ;;  %v5244_v2 = vsel %vm5038_vm0, %v10831_v42, %v10904_v56  ;;  %v5032_v51 = vpack.c.b16 %v4982_v9, %v10873_v12  ;;  %v10920_v18 = vadd.f32 %v10741_v44, %v3891_v45  ;;  %v10924_v42 = vpop.permute.xlu0 %4625 }
 0x562   : > { %v5388_v10 = vsel %vm5038_vm0, %v10870_v15, %v5387_v35  ;;  %v5508_v3 = vunpack.c.l.b16 %v5244_v2  ;;  %v5509_v17 = vunpack.c.h.b16 %v5244_v2  ;;  %v5390_v5 = vshrl.u32 %v5031_v32, 16 }
 0x563   : > { %v5540_v55 = vunpack.c.l.b16 %v5388_v10  ;;  %v5541_v59 = vunpack.c.h.b16 %v5388_v10  ;;  %v5327_v16 = vshrl.u32 %v5024_v4, 16  ;;  %v5330_v0 = vshll.u32 %v5024_v4, 16 }
 0x564   : > { %v5393_v58 = vshll.u32 %v5031_v32, 16  ;;  %v5602_v8 = vpack.c.b16 %v5508_v3, %v5508_v3  ;;  %v5603_v15 = vpack.c.b16 %v5509_v17, %v5509_v17  ;;  %v5392_v46 = vrot.slane %v5390_v5, 5 }
 0x565   : > { %v5634_v12 = vpack.c.b16 %v5540_v55, %v5540_v55  ;;  %v5635_v50 = vpack.c.b16 %v5541_v59, %v5541_v59  ;;  %v5329_v61 = vrot.slane %v5327_v16, 5  ;;  %v5332_v27 = vrot.slane %v5330_v0, 6  ;;  %v3742_v55 = vpop.f32.mrf.mxu2 }
 0x566   : > { %v5395_v60 = vrot.slane %v5393_v58, 6  ;;  %5791 = vst.msk [vmem:[%s9084_s16 + $0xb8] sm:$0xf] %vm5744_vm6, %v5602_v8  ;;  %v10929_v21 = vadd.f32 %v10741_v44, %v3890_v33  ;;  %v5399_v34 = vshrl.u32 %v5032_v51, 16  ;;  %v5402_v39 = vshll.u32 %v5032_v51, 16  ;;  %v3792_v8 = vpop.f32.mrf.mxu3 }
 0x567   : > { %v4694_v11 = vmul.f32 %v10704_v53, %v4057_v31  ;;  %5792 = vst.msk [vmem:[%s9084_s16 + $0xbc] sm:$0xf] %vm5744_vm6, %v5603_v15  ;;  %v10934_v23 = vor.u32 %v5332_v27, %v5329_v61  ;;  %v3852_v45 = vmul.f32 %v10728_v62, %v3689_v38  ;;  %v3872_v40 = vmul.f32 %v10728_v62, %v3739_v14 }
 0x568   : > { %v5396_v28 = vor.u32 %v5395_v60, %v5392_v46  ;;  %5823 = vst.msk [vmem:[%s9084_s16 + $0x138] sm:$0xf] %vm5744_vm6, %v5634_v12  ;;  %v4765_v24 = vpack.c.bf16 %v10911_v25, %v10911_v25  ;;  %v5401_v7 = vrot.slane %v5399_v34, 5  ;;  %v5404_v26 = vrot.slane %v5402_v39, 6 }
 0x569   : > { %v4077_v54 = vmax.f32 %v10920_v18, 0.0  ;;  %5824 = vst.msk [vmem:[%s9084_s16 + $0x13c] sm:$0xf] %vm5744_vm6, %v5635_v50  ;;  %v5334_v53 = vsel %vm5038_vm0, %v10850_v22, %v10934_v23  ;;  %v3947_v13 = vadd.f32 %v10741_v44, %v3852_v45  ;;  %v3967_v9 = vadd.f32 %v10741_v44, %v3872_v40  ;;  %v4586_v18 = vpop.permute.xlu1 %4585  ;;  %v4596_v58 = vpop.permute.xlu0 %4595 }
 0x56a   : > { %v5397_v6 = vsel %vm5038_vm0, %v5387_v35, %v5396_v28  ;;  %v5528_v33 = vunpack.c.l.b16 %v5334_v53  ;;  %v5529_v4 = vunpack.c.h.b16 %v5334_v53  ;;  %v10951_v31 = vor.u32 %v5404_v26, %v5401_v7 }
 0x56b   : > { %v5542_v32 = vunpack.c.l.b16 %v5397_v6  ;;  %v5543_v25 = vunpack.c.h.b16 %v5397_v6  ;;  %v4785_v2 = vpack.c.bf16 %v4694_v11, %v4694_v11  ;;  %v4038_v10 = vmax.f32 %v3947_v13, 0.0 }
 0x56c   : > { %v4058_v51 = vmax.f32 %v3967_v9, 0.0  ;;  %v5622_v3 = vpack.c.b16 %v5528_v33, %v5528_v33  ;;  %v5623_v22 = vpack.c.b16 %v5529_v4, %v5529_v4  ;;  %v3892_v35 = vmul.f32 %v10728_v62, %v3789_v1 }
 0x56d   : > { %v5636_v17 = vpack.c.b16 %v5542_v32, %v5542_v32  ;;  %v5637_v59 = vpack.c.b16 %v5543_v25, %v5543_v25  ;;  %v5406_v16 = vsel %vm5038_vm0, %v5396_v28, %v10951_v31  ;;  %v4675_v0 = vmul.f32 %v10330_v29, %v4038_v10  ;;  %v3744_v32 = vpop.f32.mrf.mxu2 }
 0x56e   : > { %v4695_v5 = vmul.f32 %v10748_v30, %v4058_v51  ;;  %5811 = vst.msk [vmem:[%s9084_s16 + $0x108] sm:$0xf] %vm5744_vm6, %v5622_v3  ;;  %v5544_v15 = vunpack.c.l.b16 %v5406_v16  ;;  %v5545_v12 = vunpack.c.h.b16 %v5406_v16  ;;  %v4073_v50 = vmax.f32 %v10774_v20, 0.0  ;;  %v4606_v20 = vpop.permute.xlu2 %4605 }
 0x56f   : > { %v4075_v38 = vmax.f32 %v10883_v19, 0.0  ;;  %5812 = vst.msk [vmem:[%s9084_s16 + $0x10c] sm:$0xf] %vm5744_vm6, %v5623_v22  ;;  %v4766_v14 = vpack.c.bf16 %v4675_v0, %v4675_v0  ;;  %v3873_v29 = vmul.f32 %v10728_v62, %v3742_v55  ;;  %v3893_v30 = vmul.f32 %v10728_v62, %v3792_v8 }
 0x570   : > { %v4786_v61 = vpack.c.bf16 %v4695_v5, %v4695_v5  ;;  %5825 = vst.msk [vmem:[%s9084_s16 + $0x140] sm:$0xf] %vm5744_vm6, %v5636_v17  ;;  %v5638_v27 = vpack.c.b16 %v5544_v15, %v5544_v15  ;;  %v5639_v46 = vpack.c.b16 %v5545_v12, %v5545_v12  ;;  %v4710_v60 = vmul.f32 %v4586_v18, %v4073_v50 }
 0x571   : > { %v4712_v1 = vmul.f32 %v4596_v58, %v4075_v38  ;;  %v4947_v34 = vunpack.c.l.b16 %v4765_v24  ;;  %5826 = vst.msk [vmem:[%s9084_s16 + $0x144] sm:$0xf] %vm5744_vm6, %v5637_v59  ;;  %v4967_v19 = vunpack.c.l.b16 %v4785_v2  ;;  %v4948_v39 = vunpack.c.l.b16 %v4766_v14  ;;  %v4601_v13 = vpop.permute.xlu1 %4600  ;;  %v4611_v55 = vpop.permute.xlu0 %4610 }
 0x572   : > { %v4968_v11 = vunpack.c.l.b16 %v4786_v61  ;;  %5827 = vst.msk [vmem:[%s9084_s16 + $0x148] sm:$0xf] %vm5744_vm6, %v5638_v27  ;;  %v10972_v28 = vmul.f32 %v4606_v20, %v4077_v54  ;;  %v4801_v45 = vpack.c.bf16 %v4710_v60, %v4710_v60  ;;  %v3968_v40 = vadd.f32 %v10741_v44, %v3873_v29  ;;  %v3794_v60 = vpop.f32.mrf.mxu3 }
 0x573   : > { %v4076_v7 = vmax.f32 %v10929_v21, 0.0  ;;  %v4984_v26 = vunpack.c.l.b16 %v4802_v36  ;;  %5828 = vst.msk [vmem:[%s9084_s16 + $0x14c] sm:$0xf] %vm5744_vm6, %v5639_v46  ;;  %v5015_v24 = vpack.c.b16 %v4948_v39, %v4947_v34  ;;  %v3987_v6 = vadd.f32 %v10741_v44, %v3892_v35 }
 0x574   : > { %v5025_v53 = vpack.c.b16 %v4968_v11, %v4967_v19  ;;  %v4983_v9 = vunpack.c.l.b16 %v4801_v45  ;;  %v4803_v33 = vpack.c.bf16 %v4712_v1, %v4712_v1  ;;  %v3988_v54 = vadd.f32 %v10741_v44, %v3893_v30 }
 0x575   : > { %v4713_v4 = vmul.f32 %v4601_v13, %v4076_v7  ;;  %v5246_v25 = vshrl.u32 %v5015_v24, 16  ;;  %v5249_v2 = vshll.u32 %v5015_v24, 16  ;;  %v4805_v63 = vpack.c.bf16 %v10972_v28, %v10972_v28 }
 0x576   : > { %v5336_v21 = vshrl.u32 %v5025_v53, 16  ;;  %v5339_v10 = vshll.u32 %v5025_v53, 16  ;;  %v5033_v36 = vpack.c.b16 %v4984_v26, %v4983_v9  ;;  %v4059_v51 = vmax.f32 %v3968_v40, 0.0 }
 0x577   : > { %v4804_v18 = vpack.c.bf16 %v4713_v4, %v4713_v4  ;;  %v5248_v3 = vrot.slane %v5246_v25, 5  ;;  %v5251_v22 = vrot.slane %v5249_v2, 6  ;;  %v4079_v0 = vmax.f32 %v3988_v54, 0.0 }
 0x578   : > { %v5338_v17 = vrot.slane %v5336_v21, 5  ;;  %v5341_v35 = vrot.slane %v5339_v10, 6  ;;  %v5408_v59 = vshrl.u32 %v5033_v36, 16  ;;  %v5411_v16 = vshll.u32 %v5033_v36, 16 }
 0x579   : > { %v4078_v5 = vmax.f32 %v3987_v6, 0.0  ;;  %v5252_v58 = vor.u32 %v5251_v22, %v5248_v3  ;;  %v4985_v15 = vunpack.c.l.b16 %v4803_v33  ;;  %v4986_v12 = vunpack.c.l.b16 %v4804_v18 }
 0x57a   : > { %v10985_v8 = vor.u32 %v5341_v35, %v5338_v17  ;;  %v5410_v50 = vrot.slane %v5408_v59, 5  ;;  %v5413_v38 = vrot.slane %v5411_v16, 6  ;;  %v10988_v14 = vmul.f32 %v10623_v37, %v4059_v51 }
 0x57b   : > { %v4715_v61 = vmul.f32 %v4611_v55, %v4078_v5  ;;  %v5253_v29 = vsel %vm5038_vm0, %v10904_v56, %v5252_v58  ;;  %v5262_v30 = vsel %vm5038_vm0, %v5252_v58, %v10532_v43  ;;  %v5034_v46 = vpack.c.b16 %v4986_v12, %v4985_v15  ;;  %v3747_v56 = vpop.f32.mrf.mxu2 }
 0x57c   : > { %v5343_v27 = vsel %vm5038_vm0, %v10934_v23, %v10985_v8  ;;  %v5510_v1 = vunpack.c.l.b16 %v5253_v29  ;;  %v5511_v34 = vunpack.c.h.b16 %v5253_v29  ;;  %v5512_v20 = vunpack.c.l.b16 %v5262_v30 }
 0x57d   : > { %v5513_v19 = vunpack.c.h.b16 %v5262_v30  ;;  %v5530_v37 = vunpack.c.l.b16 %v5343_v27  ;;  %v5531_v39 = vunpack.c.h.b16 %v5343_v27  ;;  %v5414_v11 = vor.u32 %v5413_v38, %v5410_v50 }
 0x57e   : > { %v5417_v28 = vshrl.u32 %v5034_v46, 16  ;;  %v5604_v45 = vpack.c.b16 %v5510_v1, %v5510_v1  ;;  %v5605_v40 = vpack.c.b16 %v5511_v34, %v5511_v34  ;;  %v5606_v43 = vpack.c.b16 %v5512_v20, %v5512_v20 }
 0x57f   : > { %v4716_v7 = vmul.f32 %v10922_v47, %v4079_v0  ;;  %v5607_v23 = vpack.c.b16 %v5513_v19, %v5513_v19  ;;  %v5624_v26 = vpack.c.b16 %v5530_v37, %v5530_v37  ;;  %v5415_v24 = vsel %vm5038_vm0, %v10951_v31, %v5414_v11 }
 0x580   : > { %v5419_v53 = vrot.slane %v5417_v28, 5  ;;  %5793 = vst.msk [vmem:[%s9084_s16 + $0xc0] sm:$0xf] %vm5744_vm6, %v5604_v45  ;;  %v5546_v6 = vunpack.c.l.b16 %v5415_v24  ;;  %v5547_v13 = vunpack.c.h.b16 %v5415_v24  ;;  %v5420_v9 = vshll.u32 %v5034_v46, 16 }
 0x581   : > { %v4806_v33 = vpack.c.bf16 %v4715_v61, %v4715_v61  ;;  %5794 = vst.msk [vmem:[%s9084_s16 + $0xc4] sm:$0xf] %vm5744_vm6, %v5605_v40  ;;  %v5625_v54 = vpack.c.b16 %v5531_v39, %v5531_v39  ;;  %v3874_v4 = vmul.f32 %v10728_v62, %v3744_v32  ;;  %v3894_v47 = vmul.f32 %v10728_v62, %v3794_v60  ;;  %v3797_v32 = vpop.f32.mrf.mxu3 }
 0x582   : > { %v3875_v25 = vmul.f32 %v10728_v62, %v3747_v56  ;;  %5795 = vst.msk [vmem:[%s9084_s16 + $0xc8] sm:$0xf] %vm5744_vm6, %v5606_v43  ;;  %v5640_v31 = vpack.c.b16 %v5546_v6, %v5546_v6  ;;  %v5422_v2 = vrot.slane %v5420_v9, 6  ;;  %v4987_v21 = vunpack.c.l.b16 %v4805_v63 }
 0x583   : > { %v4988_v10 = vunpack.c.l.b16 %v4806_v33  ;;  %5796 = vst.msk [vmem:[%s9084_s16 + $0xcc] sm:$0xf] %vm5744_vm6, %v5607_v23  ;;  %v5641_v36 = vpack.c.b16 %v5547_v13, %v5547_v13  ;;  %v3969_v51 = vadd.f32 %v10741_v44, %v3874_v4  ;;  %v3989_v18 = vadd.f32 %v10741_v44, %v3894_v47  ;;  %v3749_v61 = vpop.f32.mrf.mxu2 }
 0x584   : > { %5813 = vst.msk [vmem:[%s9084_s16 + $0x110] sm:$0xf] %vm5744_vm6, %v5624_v26  ;;  %v5423_v3 = vor.u32 %v5422_v2, %v5419_v53  ;;  %v3970_v17 = vadd.f32 %v10741_v44, %v3875_v25  ;;  %v3895_v35 = vmul.f32 %v10728_v62, %v3797_v32  ;;  %v4787_v63 = vpack.c.bf16 %v10988_v14, %v10988_v14 }
 0x585   : > { %v5035_v22 = vpack.c.b16 %v4988_v10, %v4987_v21  ;;  %5814 = vst.msk [vmem:[%s9084_s16 + $0x114] sm:$0xf] %vm5744_vm6, %v5625_v54  ;;  %v4807_v55 = vpack.c.bf16 %v4716_v7, %v4716_v7  ;;  %v4060_v59 = vmax.f32 %v3969_v51, 0.0  ;;  %v4080_v16 = vmax.f32 %v3989_v18, 0.0 }
 0x586   : > { %5829 = vst.msk [vmem:[%s9084_s16 + $0x150] sm:$0xf] %vm5744_vm6, %v5640_v31  ;;  %v5424_v0 = vsel %vm5038_vm0, %v5414_v11, %v5423_v3  ;;  %v3990_v15 = vadd.f32 %v10741_v44, %v3895_v35  ;;  %v4061_v27 = vmax.f32 %v3970_v17, 0.0  ;;  %v3876_v39 = vmul.f32 %v10728_v62, %v3749_v61 }
 0x587   : > { %v5426_v5 = vshrl.u32 %v5035_v22, 16  ;;  %v5429_v58 = vshll.u32 %v5035_v22, 16  ;;  %5830 = vst.msk [vmem:[%s9084_s16 + $0x154] sm:$0xf] %vm5744_vm6, %v5641_v36  ;;  %v5548_v12 = vunpack.c.l.b16 %v5424_v0  ;;  %v5549_v50 = vunpack.c.h.b16 %v5424_v0 }
 0x588   : > { %v4697_v38 = vmul.f32 %v10753_v52, %v4060_v59  ;;  %v4717_v14 = vmul.f32 %v10837_v41, %v4080_v16  ;;  %v4081_v46 = vmax.f32 %v3990_v15, 0.0  ;;  %v4969_v11 = vunpack.c.l.b16 %v4787_v63 }
 0x589   : > { %v5428_v29 = vrot.slane %v5426_v5, 5  ;;  %v5431_v30 = vrot.slane %v5429_v58, 6  ;;  %v5642_v60 = vpack.c.b16 %v5548_v12, %v5548_v12  ;;  %v5643_v1 = vpack.c.b16 %v5549_v50, %v5549_v50  ;;  %v3799_v56 = vpop.f32.mrf.mxu3 }
 0x58a   : > { %v4788_v34 = vpack.c.bf16 %v4697_v38, %v4697_v38  ;;  %v4808_v20 = vpack.c.bf16 %v4717_v14, %v4717_v14  ;;  %v4718_v37 = vmul.f32 %v10924_v42, %v4081_v46  ;;  %v4989_v52 = vunpack.c.l.b16 %v4807_v55 }
 0x58b   : > { %v5432_v19 = vor.u32 %v5431_v30, %v5428_v29  ;;  %5831 = vst.msk [vmem:[%s9084_s16 + $0x158] sm:$0xf] %vm5744_vm6, %v5642_v60  ;;  %v4698_v40 = vmul.f32 %v10779_v49, %v4061_v27  ;;  %v3971_v7 = vadd.f32 %v10741_v44, %v3876_v39 }
 0x58c   : > { %v4970_v41 = vunpack.c.l.b16 %v4788_v34  ;;  %v4990_v28 = vunpack.c.l.b16 %v4808_v20  ;;  %5832 = vst.msk [vmem:[%s9084_s16 + $0x15c] sm:$0xf] %vm5744_vm6, %v5643_v1  ;;  %v4809_v43 = vpack.c.bf16 %v4718_v37, %v4718_v37 }
 0x58d   : > { %v5433_v45 = vsel %vm5038_vm0, %v5423_v3, %v5432_v19  ;;  %v4062_v53 = vmax.f32 %v3971_v7, 0.0  ;;  %v4789_v31 = vpack.c.bf16 %v4698_v40, %v4698_v40 }
 0x58e   : > { %v5550_v42 = vunpack.c.l.b16 %v5433_v45  ;;  %v5551_v23 = vunpack.c.h.b16 %v5433_v45  ;;  %v5026_v62 = vpack.c.b16 %v4970_v41, %v4969_v11  ;;  %v5036_v26 = vpack.c.b16 %v4990_v28, %v4989_v52 }
 0x58f   : > { %v4991_v24 = vunpack.c.l.b16 %v4809_v43  ;;  %v4699_v49 = vmul.f32 %v10657_v48, %v4062_v53  ;;  %v4971_v48 = vunpack.c.l.b16 %v4789_v31 }
 0x590   : > { %v5644_v6 = vpack.c.b16 %v5550_v42, %v5550_v42  ;;  %v5645_v13 = vpack.c.b16 %v5551_v23, %v5551_v23  ;;  %v5345_v9 = vshrl.u32 %v5026_v62, 16  ;;  %v5348_v33 = vshll.u32 %v5026_v62, 16 }
 0x591   : > { %v5435_v54 = vshrl.u32 %v5036_v26, 16  ;;  %v5438_v4 = vshll.u32 %v5036_v26, 16  ;;  %v5037_v47 = vpack.c.b16 %v4991_v24, %v4991_v24  ;;  %v4790_v18 = vpack.c.bf16 %v4699_v49, %v4699_v49 }
 0x592   : > { %5833 = vst.msk [vmem:[%s9084_s16 + $0x160] sm:$0xf] %vm5744_vm6, %v5644_v6  ;;  %v5347_v25 = vrot.slane %v5345_v9, 5  ;;  %v5350_v44 = vrot.slane %v5348_v33, 6 }
 0x593   : > { %5834 = vst.msk [vmem:[%s9084_s16 + $0x164] sm:$0xf] %vm5744_vm6, %v5645_v13  ;;  %v5437_v2 = vrot.slane %v5435_v54, 5  ;;  %v5440_v21 = vrot.slane %v5438_v4, 6  ;;  %v5444_v10 = vshrl.u32 %v5037_v47, 16  ;;  %v5447_v36 = vshll.u32 %v5037_v47, 16 }
 0x594   : > { %v5351_v51 = vor.u32 %v5350_v44, %v5347_v25  ;;  %v4972_v35 = vunpack.c.l.b16 %v4790_v18 }
 0x595   : > { %v5441_v32 = vor.u32 %v5440_v21, %v5437_v2  ;;  %v5446_v3 = vrot.slane %v5444_v10, 5  ;;  %v5449_v22 = vrot.slane %v5447_v36, 6 }
 0x596   : > { %v5352_v17 = vsel %vm5038_vm0, %v10985_v8, %v5351_v51  ;;  %v5027_v58 = vpack.c.b16 %v4972_v35, %v4971_v48 }
 0x597   : > { %v5532_v63 = vunpack.c.l.b16 %v5352_v17  ;;  %v5533_v55 = vunpack.c.h.b16 %v5352_v17  ;;  %v5442_v59 = vsel %vm5038_vm0, %v5432_v19, %v5441_v32  ;;  %v5450_v16 = vor.u32 %v5449_v22, %v5446_v3 }
 0x598   : > { %v5552_v0 = vunpack.c.l.b16 %v5442_v59  ;;  %v5553_v5 = vunpack.c.h.b16 %v5442_v59  ;;  %v5354_v61 = vshrl.u32 %v5027_v58, 16  ;;  %v5357_v27 = vshll.u32 %v5027_v58, 16 }
 0x599   : > { %v5626_v15 = vpack.c.b16 %v5532_v63, %v5532_v63  ;;  %v5627_v12 = vpack.c.b16 %v5533_v55, %v5533_v55  ;;  %v5451_v8 = vsel %vm5038_vm0, %v5441_v32, %v5450_v16 }
 0x59a   : > { %v5646_v50 = vpack.c.b16 %v5552_v0, %v5552_v0  ;;  %v5647_v38 = vpack.c.b16 %v5553_v5, %v5553_v5  ;;  %v5458_v14 = vsel %vm5457_vm5, %v5451_v8, 0  ;;  %v5356_v46 = vrot.slane %v5354_v61, 5 }
 0x59b   : > { %5815 = vst.msk [vmem:[%s9084_s16 + $0x118] sm:$0xf] %vm5744_vm6, %v5626_v15  ;;  %v5554_v29 = vunpack.c.l.b16 %v5458_v14  ;;  %v5555_v30 = vunpack.c.h.b16 %v5458_v14  ;;  %v5359_v34 = vrot.slane %v5357_v27, 6 }
 0x59c   : > { %5816 = vst.msk [vmem:[%s9084_s16 + $0x11c] sm:$0xf] %vm5744_vm6, %v5627_v12 }
 0x59d   : > { %5835 = vst.msk [vmem:[%s9084_s16 + $0x168] sm:$0xf] %vm5744_vm6, %v5646_v50  ;;  %v5648_v60 = vpack.c.b16 %v5554_v29, %v5554_v29  ;;  %v5649_v1 = vpack.c.b16 %v5555_v30, %v5555_v30  ;;  %v5360_v20 = vor.u32 %v5359_v34, %v5356_v46 }
 0x59e   : > { %5836 = vst.msk [vmem:[%s9084_s16 + $0x16c] sm:$0xf] %vm5744_vm6, %v5647_v38 }
 0x59f   : > { %5837 = vst.msk [vmem:[%s9084_s16 + $0x170] sm:$0xf] %vm5744_vm6, %v5648_v60  ;;  %v5361_v19 = vsel %vm5038_vm0, %v5351_v51, %v5360_v20  ;;  %v5370_v37 = vsel %vm5038_vm0, %v5360_v20, %v10856_v57 }
 0x5a0   : > { %5838 = vst.msk [vmem:[%s9084_s16 + $0x174] sm:$0xf] %vm5744_vm6, %v5649_v1  ;;  %v5534_v39 = vunpack.c.l.b16 %v5361_v19  ;;  %v5535_v11 = vunpack.c.h.b16 %v5361_v19  ;;  %v5536_v52 = vunpack.c.l.b16 %v5370_v37  ;;  %v5537_v41 = vunpack.c.h.b16 %v5370_v37 }
 0x5a2   : > { %v5628_v28 = vpack.c.b16 %v5534_v39, %v5534_v39  ;;  %v5629_v56 = vpack.c.b16 %v5535_v11, %v5535_v11  ;;  %v5630_v45 = vpack.c.b16 %v5536_v52, %v5536_v52  ;;  %v5631_v40 = vpack.c.b16 %v5537_v41, %v5537_v41 }
 0x5a4   : > { %5817 = vst.msk [vmem:[%s9084_s16 + $0x120] sm:$0xf] %vm5744_vm6, %v5628_v28 }
 0x5a5   : > { %5818 = vst.msk [vmem:[%s9084_s16 + $0x124] sm:$0xf] %vm5744_vm6, %v5629_v56 }
 0x5a6   : > { %5819 = vst.msk [vmem:[%s9084_s16 + $0x128] sm:$0xf] %vm5744_vm6, %v5630_v45 }
 0x5a7   : > { %5820 = vst.msk [vmem:[%s9084_s16 + $0x12c] sm:$0xf] %vm5744_vm6, %v5631_v40 }
 0x5a8 PF: > { %s15_s18 = sadd.s32 1, %s6639_s18  }
 0x5a9   : > { %p12_p4 = scmp.ge.s32.totalorder %s15_s18, 4  }
 0x5ab   :  { %14 = sbr.rel (!%p12_p4) target bundleno = 1 (0x1), region = 73 }

</bundles_post_ra>
